<compile_context>
chip_gen: v7x
topology: tpu7x:2x2x1
jax: 0.10.0
libtpu: 0.0.40
codegen_flags: <defaults>
</compile_context>

<pallas_src>
import functools

import jax
import jax.numpy as jnp
from jax.experimental import pallas as pl
from jax.experimental.pallas import tpu as pltpu


# ----------------------------------------------------------------------------
# Shared GRU cell (PyTorch semantics) with fused gate weights.
#   i_gates : (N, 3D)  = x @ [Wir|Wiz|Win] + [bir+bhr | biz+bhz | bin]  (hoisted)
#   h       : (N, D)
#   whh     : (D, 3D)  = [Whr|Whz|Whn]
#   bhn     : (1, D)   = bhn  (cannot be folded: r multiplies (Whn h + bhn))
# ----------------------------------------------------------------------------
def _gru_cell(i_gates, h, whh, bhn, d):
    g = jnp.dot(h, whh, preferred_element_type=jnp.float32)     # (N, 3D), one MXU push
    r = jax.nn.sigmoid(i_gates[:, :d] + g[:, :d])
    z = jax.nn.sigmoid(i_gates[:, d:2 * d] + g[:, d:2 * d])
    n = jnp.tanh(i_gates[:, 2 * d:] + r * (g[:, 2 * d:] + bhn))
    return (1.0 - z) * n + z * h


# ----------------------------------------------------------------------------
# Kernel A: TimeDelayedStack (time GRU over T, bidirectional freq GRU over M)
#           + fused time_out linear + residual.
#   x_nat : (B, T, M, D)   natural layout (used by time GRU, residual, output)
#   x_m   : (M, B*T, D)    m-major layout (used by the bidirectional freq GRU)
#   wih/whh : (3, D, 3D)   [time, bifreq_fwd, bifreq_bwd]
#   bi      : (3, 1, 3D)   bih with bhh_r / bhh_z folded in
#   bhn     : (3, 1, D)
#   wout    : (3, D, D)    time_out weight split into [x1 | fwd | bwd] blocks
#   bout    : (1, D)
#   out     : (B, T, M, D) = x_time + time_out([x1, fwd, bwd]) (no concat built)
# ----------------------------------------------------------------------------
def _time_stack_kernel(x_nat_ref, x_m_ref, wih_ref, whh_ref, bi_ref, bhn_ref,
                       wout_ref, bout_ref, out_ref):
    B, T, M, D = x_nat_ref.shape
    BT = B * T
    BM = B * M
    f32 = jnp.float32

    # ---- time_rnn over T, batch (b, m): hoisted input projection ----
    gi_t = (jnp.dot(x_nat_ref[...].reshape(B * T * M, D), wih_ref[0],
                    preferred_element_type=f32) + bi_ref[0]).reshape(B, T, M, 3 * D)
    whh_t = whh_ref[0]
    bhn_t = bhn_ref[0]
    h = jnp.zeros((BM, D), f32)
    ys = []
    for t in range(T):                       # static, fully unrolled recurrence
        h = _gru_cell(gi_t[:, t].reshape(BM, 3 * D), h, whh_t, bhn_t, D)
        ys.append(h.reshape(B, 1, M, D))
    y1 = jnp.concatenate(ys, axis=1)                                   # (B, T, M, D)
    c1 = jnp.dot(y1.reshape(B * T * M, D), wout_ref[0],
                 preferred_element_type=f32).reshape(B, T, M, D)       # x1 @ W1

    # ---- bidirectional freq rnn over M, batch (b, t): fwd + bwd in one loop ----
    x_m = x_m_ref[...].reshape(M * BT, D)
    gi_f = (jnp.dot(x_m, wih_ref[1], preferred_element_type=f32)
            + bi_ref[1]).reshape(M, BT, 3 * D)
    gi_b = (jnp.dot(x_m, wih_ref[2], preferred_element_type=f32)
            + bi_ref[2]).reshape(M, BT, 3 * D)
    whh_f, bhn_f = whh_ref[1], bhn_ref[1]
    whh_b, bhn_b = whh_ref[2], bhn_ref[2]
    hf = jnp.zeros((BT, D), f32)
    hb = jnp.zeros((BT, D), f32)
    yf = [None] * M
    yb = [None] * M
    for m in range(M):                       # static, fully unrolled recurrence
        hf = _gru_cell(gi_f[m], hf, whh_f, bhn_f, D)
        hb = _gru_cell(gi_b[M - 1 - m], hb, whh_b, bhn_b, D)
        yf[m] = hf
        yb[M - 1 - m] = hb                   # store bwd output at original position
    yf_all = jnp.stack(yf, axis=0).reshape(M * BT, D)
    yb_all = jnp.stack(yb, axis=0).reshape(M * BT, D)
    c23 = (jnp.dot(yf_all, wout_ref[1], preferred_element_type=f32)
           + jnp.dot(yb_all, wout_ref[2], preferred_element_type=f32)
           ).reshape(M, B, T, D)                                       # fwd@W2 + bwd@W3

    # ---- fused time_out epilogue: out = x + x1@W1 + fwd@W2 + bwd@W3 + b ----
    base = x_nat_ref[...] + c1 + bout_ref[...]
    # c23 is m-major; scatter it into the natural layout one (static) sublane at a time.
    for m in range(M):
        out_ref[:, :, m:m + 1, :] = base[:, :, m:m + 1, :] + c23[m][:, :, None, :]


# ----------------------------------------------------------------------------
# Kernel B: CentralizedStack GRU over T + fused central_out linear + residual.
#   x : (B, T, D);  out = x + (GRU(x) @ Wc + bc)
# ----------------------------------------------------------------------------
def _central_stack_kernel(x_ref, wih_ref, whh_ref, bi_ref, bhn_ref,
                          wout_ref, bout_ref, out_ref):
    B, T, D = x_ref.shape
    f32 = jnp.float32

    gi = (jnp.dot(x_ref[...].reshape(B * T, D), wih_ref[...],
                  preferred_element_type=f32) + bi_ref[...]).reshape(B, T, 3 * D)
    whh = whh_ref[...]
    bhn = bhn_ref[...]
    wout = wout_ref[...]
    bout = bout_ref[...]

    h = jnp.zeros((B, D), f32)
    for t in range(T):                       # static, fully unrolled recurrence
        h = _gru_cell(gi[:, t], h, whh, bhn, D)
        c = jnp.dot(h, wout, preferred_element_type=f32)               # (B, D)
        out_ref[:, t:t + 1, :] = x_ref[:, t:t + 1, :] + c[:, None, :] + bout


# ----------------------------------------------------------------------------
# Kernel C: FrequencyDelayedStack with fused add3 prologue and freq_out epilogue.
#   xt_m, xf_m : (M, B*T, D)   x_time_new / x_freq in m-major layout
#   xc         : (B, T, D)     x_central_new (broadcast over M inside the kernel)
#   out        : (M, B*T, D)   x_freq + freq_out(GRU(x_time_new + x_freq + xc))
# ----------------------------------------------------------------------------
def _freq_stack_kernel(xt_m_ref, xf_m_ref, xc_ref, wih_ref, whh_ref, bi_ref,
                       bhn_ref, wout_ref, bout_ref, out_ref):
    M, BT, D = xf_m_ref.shape
    f32 = jnp.float32

    xf = xf_m_ref[...]
    xc = xc_ref[...].reshape(BT, D)
    s = xt_m_ref[...] + xf + xc[None, :, :]                            # fused add3

    gi = (jnp.dot(s.reshape(M * BT, D), wih_ref[...],
                  preferred_element_type=f32) + bi_ref[...]).reshape(M, BT, 3 * D)
    whh = whh_ref[...]
    bhn = bhn_ref[...]

    h = jnp.zeros((BT, D), f32)
    ys = []
    for m in range(M):                       # static, fully unrolled recurrence
        h = _gru_cell(gi[m], h, whh, bhn, D)
        ys.append(h)
    y = jnp.stack(ys, axis=0).reshape(M * BT, D)
    c = jnp.dot(y, wout_ref[...], preferred_element_type=f32).reshape(M, BT, D)
    out_ref[...] = xf + c + bout_ref[...]                              # fused freq_out


# ----------------------------------------------------------------------------
# Parameter init (deterministic, PyTorch-style U(-1/sqrt(D), 1/sqrt(D))),
# stored directly in the fused layouts the kernels consume.
# ----------------------------------------------------------------------------
def init_gru_params(key, d):
    k = 1.0 / jnp.sqrt(jnp.float32(d))
    k0, k1, k2, k3 = jax.random.split(key, 4)
    wih = jax.random.uniform(k0, (3, d, d), jnp.float32, -k, k)   # [r, z, n], (in, out)
    whh = jax.random.uniform(k1, (3, d, d), jnp.float32, -k, k)
    bih = jax.random.uniform(k2, (3, d), jnp.float32, -k, k)
    bhh = jax.random.uniform(k3, (3, d), jnp.float32, -k, k)
    w_ih = jnp.concatenate([wih[0], wih[1], wih[2]], axis=1)           # (d, 3d)
    w_hh = jnp.concatenate([whh[0], whh[1], whh[2]], axis=1)           # (d, 3d)
    b_i = jnp.concatenate([bih[0] + bhh[0], bih[1] + bhh[1], bih[2]])[None, :]  # (1, 3d)
    b_hn = bhh[2][None, :]                                             # (1, d)
    return w_ih, w_hh, b_i, b_hn


def init_linear_params(key, din, dout):
    k = 1.0 / jnp.sqrt(jnp.float32(din))
    k0, k1 = jax.random.split(key)
    w = jax.random.uniform(k0, (din, dout), jnp.float32, -k, k)
    b = jax.random.uniform(k1, (1, dout), jnp.float32, -k, k)
    return w, b


def init_layer_params(key, d):
    keys = jax.random.split(key, 8)
    t_rnn = init_gru_params(keys[0], d)
    bf_fwd = init_gru_params(keys[1], d)
    bf_bwd = init_gru_params(keys[2], d)
    # Stack the three TimeDelayedStack GRUs along a leading axis for a single kernel.
    time_grus = tuple(jnp.stack([a, b, c], axis=0) for a, b, c in zip(t_rnn, bf_fwd, bf_bwd))
    w_time, b_time = init_linear_params(keys[5], 3 * d, d)
    wout3 = jnp.stack([w_time[0:d], w_time[d:2 * d], w_time[2 * d:3 * d]], axis=0)  # (3,d,d)
    return {
        "time_grus": time_grus,           # (3,d,3d), (3,d,3d), (3,1,3d), (3,1,d)
        "time_out": (wout3, b_time),      # (3,d,d), (1,d)
        "central_rnn": init_gru_params(keys[3], d),
        "central_out": init_linear_params(keys[6], d, d),
        "freq_rnn": init_gru_params(keys[4], d),
        "freq_out": init_linear_params(keys[7], d, d),
    }


# ----------------------------------------------------------------------------
# Layer forward (matches melnet.model.initial.Layer.forward, central=True)
# ----------------------------------------------------------------------------
def layer_forward(params, x_time, x_central, x_freq):
    B, T, M, D = x_time.shape
    BT = B * T
    vmem = pl.BlockSpec(memory_space=pltpu.MemorySpace.VMEM)

    # m-major view of x_time for the bidirectional frequency GRU (contiguous per-step tiles).
    x_time_m = jnp.transpose(x_time, (2, 0, 1, 3)).reshape(M, BT, D)

    wih3, whh3, bi3, bhn3 = params["time_grus"]
    wout3, bout_t = params["time_out"]
    x_time_new = pl.pallas_call(
        _time_stack_kernel,
        out_shape=jax.ShapeDtypeStruct((B, T, M, D), jnp.float32),
        in_specs=[vmem] * 8,
        out_specs=vmem,
    )(x_time, x_time_m, wih3, whh3, bi3, bhn3, wout3, bout_t)

    wih_c, whh_c, bi_c, bhn_c = params["central_rnn"]
    w_c, b_c = params["central_out"]
    x_central_new = pl.pallas_call(
        _central_stack_kernel,
        out_shape=jax.ShapeDtypeStruct((B, T, D), jnp.float32),
        in_specs=[vmem] * 7,
        out_specs=vmem,
    )(x_central, wih_c, whh_c, bi_c, bhn_c, w_c, b_c)

    # Frequency stack works in m-major layout; add3 + freq_out are fused inside.
    x_time_new_m = jnp.transpose(x_time_new, (2, 0, 1, 3)).reshape(M, BT, D)
    x_freq_m = jnp.transpose(x_freq, (2, 0, 1, 3)).reshape(M, BT, D)
    wih_f, whh_f, bi_f, bhn_f = params["freq_rnn"]
    w_f, b_f = params["freq_out"]
    x_freq_new_m = pl.pallas_call(
        _freq_stack_kernel,
        out_shape=jax.ShapeDtypeStruct((M, BT, D), jnp.float32),
        in_specs=[vmem] * 9,
        out_specs=vmem,
    )(x_time_new_m, x_freq_m, x_central_new, wih_f, whh_f, bi_f, bhn_f, w_f, b_f)
    x_freq_new = jnp.transpose(x_freq_new_m.reshape(M, B, T, D), (1, 2, 0, 3))

    return x_time_new, x_central_new, x_freq_new


if __name__ == "__main__":
    B, T, M, D = 2, 8, 8, 32
    key = jax.random.PRNGKey(0)
    kp, k0, k1, k2 = jax.random.split(key, 4)

    params = init_layer_params(kp, D)
    x_time = jax.random.normal(k0, (B, T, M, D), jnp.float32)
    x_central = jax.random.normal(k1, (B, T, D), jnp.float32)
    x_freq = jax.random.normal(k2, (B, T, M, D), jnp.float32)

    fwd = jax.jit(functools.partial(layer_forward, params))
    out_time, out_central, out_freq = fwd(x_time, x_central, x_freq)
    jax.block_until_ready((out_time, out_central, out_freq))

    assert out_time.shape == (B, T, M, D)
    assert out_central.shape == (B, T, D)
    assert out_freq.shape == (B, T, M, D)
    assert bool(jnp.all(jnp.isfinite(out_time)))
    assert bool(jnp.all(jnp.isfinite(out_central)))
    assert bool(jnp.all(jnp.isfinite(out_freq)))
    print("KERNEL_OK")
</pallas_src>

<mosaic_0001>
module attributes {stable_mosaic.version = 11 : i64} {
  func.func @_central_stack_kernel(%arg0: memref<2x8x32xf32, #tpu.memory_space<vmem>>, %arg1: memref<32x96xf32, #tpu.memory_space<vmem>>, %arg2: memref<32x96xf32, #tpu.memory_space<vmem>>, %arg3: memref<1x96xf32, #tpu.memory_space<vmem>>, %arg4: memref<1x32xf32, #tpu.memory_space<vmem>>, %arg5: memref<32x32xf32, #tpu.memory_space<vmem>>, %arg6: memref<1x32xf32, #tpu.memory_space<vmem>>, %arg7: memref<2x8x32xf32, #tpu.memory_space<vmem>>) attributes {dimension_semantics = [], scalar_prefetch = 0 : i64, scratch_operands = 0 : i64, tpu.core_type = #tpu.core_type<tc>} {
    %c0 = arith.constant 0 : index
    %c0_0 = arith.constant 0 : index
    %c0_1 = arith.constant 0 : index
    %0 = vector.load %arg0[%c0, %c0_0, %c0_1] : memref<2x8x32xf32, #tpu.memory_space<vmem>>, vector<2x8x32xf32>
    %1 = vector.shape_cast %0 : vector<2x8x32xf32> to vector<16x32xf32>
    %c0_2 = arith.constant 0 : index
    %c0_3 = arith.constant 0 : index
    %2 = vector.load %arg1[%c0_2, %c0_3] : memref<32x96xf32, #tpu.memory_space<vmem>>, vector<32x96xf32>
    %cst = arith.constant dense<0.000000e+00> : vector<16x96xf32>
    %3 = tpu.matmul %1, %2, %cst {dimension_numbers = #tpu.dot_dimension_numbers<[1], [0], [0], [1], [0, 0, 1, 1], [], []>} : vector<16x32xf32>, vector<32x96xf32>, vector<16x96xf32> -> vector<16x96xf32>
    %c0_4 = arith.constant 0 : index
    %c0_5 = arith.constant 0 : index
    %4 = vector.load %arg3[%c0_4, %c0_5] : memref<1x96xf32, #tpu.memory_space<vmem>>, vector<1x96xf32>
    %5 = vector.broadcast %4 : vector<1x96xf32> to vector<16x96xf32>
    %6 = arith.addf %3, %5 : vector<16x96xf32>
    %7 = vector.shape_cast %6 : vector<16x96xf32> to vector<2x8x96xf32>
    %c0_6 = arith.constant 0 : index
    %c0_7 = arith.constant 0 : index
    %8 = vector.load %arg2[%c0_6, %c0_7] : memref<32x96xf32, #tpu.memory_space<vmem>>, vector<32x96xf32>
    %c0_8 = arith.constant 0 : index
    %c0_9 = arith.constant 0 : index
    %9 = vector.load %arg4[%c0_8, %c0_9] : memref<1x32xf32, #tpu.memory_space<vmem>>, vector<1x32xf32>
    %c0_10 = arith.constant 0 : index
    %c0_11 = arith.constant 0 : index
    %10 = vector.load %arg5[%c0_10, %c0_11] : memref<32x32xf32, #tpu.memory_space<vmem>>, vector<32x32xf32>
    %c0_12 = arith.constant 0 : index
    %c0_13 = arith.constant 0 : index
    %11 = vector.load %arg6[%c0_12, %c0_13] : memref<1x32xf32, #tpu.memory_space<vmem>>, vector<1x32xf32>
    %cst_14 = arith.constant 0.000000e+00 : f32
    %12 = vector.broadcast %cst_14 : f32 to vector<2x32xf32>
    %13 = vector.extract_strided_slice %7 {offsets = [0, 0, 0], sizes = [2, 1, 96], strides = [1, 1, 1]} : vector<2x8x96xf32> to vector<2x1x96xf32>
    %14 = vector.shape_cast %13 : vector<2x1x96xf32> to vector<2x96xf32>
    %cst_15 = arith.constant dense<0.000000e+00> : vector<2x96xf32>
    %15 = tpu.matmul %12, %8, %cst_15 {dimension_numbers = #tpu.dot_dimension_numbers<[1], [0], [0], [1], [0, 0, 1, 1], [], []>} : vector<2x32xf32>, vector<32x96xf32>, vector<2x96xf32> -> vector<2x96xf32>
    %16 = vector.extract_strided_slice %14 {offsets = [0, 0], sizes = [2, 32], strides = [1, 1]} : vector<2x96xf32> to vector<2x32xf32>
    %17 = vector.extract_strided_slice %15 {offsets = [0, 0], sizes = [2, 32], strides = [1, 1]} : vector<2x96xf32> to vector<2x32xf32>
    %18 = arith.addf %16, %17 : vector<2x32xf32>
    %19 = arith.negf %18 : vector<2x32xf32>
    %20 = math.exp %19 : vector<2x32xf32>
    %cst_16 = arith.constant 1.000000e+00 : f32
    %21 = vector.broadcast %cst_16 : f32 to vector<2x32xf32>
    %22 = arith.addf %21, %20 : vector<2x32xf32>
    %23 = arith.divf %21, %22 : vector<2x32xf32>
    %24 = vector.extract_strided_slice %14 {offsets = [0, 32], sizes = [2, 32], strides = [1, 1]} : vector<2x96xf32> to vector<2x32xf32>
    %25 = vector.extract_strided_slice %15 {offsets = [0, 32], sizes = [2, 32], strides = [1, 1]} : vector<2x96xf32> to vector<2x32xf32>
    %26 = arith.addf %24, %25 : vector<2x32xf32>
    %27 = arith.negf %26 : vector<2x32xf32>
    %28 = math.exp %27 : vector<2x32xf32>
    %cst_17 = arith.constant 1.000000e+00 : f32
    %29 = vector.broadcast %cst_17 : f32 to vector<2x32xf32>
    %30 = arith.addf %29, %28 : vector<2x32xf32>
    %31 = arith.divf %29, %30 : vector<2x32xf32>
    %32 = vector.extract_strided_slice %14 {offsets = [0, 64], sizes = [2, 32], strides = [1, 1]} : vector<2x96xf32> to vector<2x32xf32>
    %33 = vector.extract_strided_slice %15 {offsets = [0, 64], sizes = [2, 32], strides = [1, 1]} : vector<2x96xf32> to vector<2x32xf32>
    %34 = vector.broadcast %9 : vector<1x32xf32> to vector<2x32xf32>
    %35 = arith.addf %33, %34 : vector<2x32xf32>
    %36 = arith.mulf %23, %35 : vector<2x32xf32>
    %37 = arith.addf %32, %36 : vector<2x32xf32>
    %38 = math.tanh %37 : vector<2x32xf32>
    %cst_18 = arith.constant 1.000000e+00 : f32
    %39 = vector.broadcast %cst_18 : f32 to vector<2x32xf32>
    %40 = arith.subf %39, %31 : vector<2x32xf32>
    %41 = arith.mulf %40, %38 : vector<2x32xf32>
    %42 = arith.mulf %31, %12 : vector<2x32xf32>
    %43 = arith.addf %41, %42 : vector<2x32xf32>
    %cst_19 = arith.constant dense<0.000000e+00> : vector<2x32xf32>
    %44 = tpu.matmul %43, %10, %cst_19 {dimension_numbers = #tpu.dot_dimension_numbers<[1], [0], [0], [1], [0, 0, 1, 1], [], []>} : vector<2x32xf32>, vector<32x32xf32>, vector<2x32xf32> -> vector<2x32xf32>
    %c0_20 = arith.constant 0 : index
    %c0_21 = arith.constant 0 : index
    %c0_22 = arith.constant 0 : index
    %45 = vector.load %arg0[%c0_20, %c0_21, %c0_22] : memref<2x8x32xf32, #tpu.memory_space<vmem>>, vector<2x1x32xf32>
    %46 = vector.shape_cast %44 : vector<2x32xf32> to vector<2x1x32xf32>
    %47 = arith.addf %45, %46 : vector<2x1x32xf32>
    %48 = vector.shape_cast %11 : vector<1x32xf32> to vector<1x1x32xf32>
    %49 = vector.broadcast %48 : vector<1x1x32xf32> to vector<2x1x32xf32>
    %50 = arith.addf %47, %49 : vector<2x1x32xf32>
    %c0_23 = arith.constant 0 : index
    %c0_24 = arith.constant 0 : index
    %c0_25 = arith.constant 0 : index
    %51 = vector.load %arg7[%c0_23, %c0_24, %c0_25] : memref<2x8x32xf32, #tpu.memory_space<vmem>>, vector<2x1x32xf32>
    tpu.vector_store %arg7[%c0_23, %c0_24, %c0_25], %50 {strides = array<i32>} : memref<2x8x32xf32, #tpu.memory_space<vmem>>, vector<2x1x32xf32>,
    %52 = vector.extract_strided_slice %7 {offsets = [0, 1, 0], sizes = [2, 1, 96], strides = [1, 1, 1]} : vector<2x8x96xf32> to vector<2x1x96xf32>
    %53 = vector.shape_cast %52 : vector<2x1x96xf32> to vector<2x96xf32>
    %cst_26 = arith.constant dense<0.000000e+00> : vector<2x96xf32>
    %54 = tpu.matmul %43, %8, %cst_26 {dimension_numbers = #tpu.dot_dimension_numbers<[1], [0], [0], [1], [0, 0, 1, 1], [], []>} : vector<2x32xf32>, vector<32x96xf32>, vector<2x96xf32> -> vector<2x96xf32>
    %55 = vector.extract_strided_slice %53 {offsets = [0, 0], sizes = [2, 32], strides = [1, 1]} : vector<2x96xf32> to vector<2x32xf32>
    %56 = vector.extract_strided_slice %54 {offsets = [0, 0], sizes = [2, 32], strides = [1, 1]} : vector<2x96xf32> to vector<2x32xf32>
    %57 = arith.addf %55, %56 : vector<2x32xf32>
    %58 = arith.negf %57 : vector<2x32xf32>
    %59 = math.exp %58 : vector<2x32xf32>
    %cst_27 = arith.constant 1.000000e+00 : f32
    %60 = vector.broadcast %cst_27 : f32 to vector<2x32xf32>
    %61 = arith.addf %60, %59 : vector<2x32xf32>
    %62 = arith.divf %60, %61 : vector<2x32xf32>
    %63 = vector.extract_strided_slice %53 {offsets = [0, 32], sizes = [2, 32], strides = [1, 1]} : vector<2x96xf32> to vector<2x32xf32>
    %64 = vector.extract_strided_slice %54 {offsets = [0, 32], sizes = [2, 32], strides = [1, 1]} : vector<2x96xf32> to vector<2x32xf32>
    %65 = arith.addf %63, %64 : vector<2x32xf32>
    %66 = arith.negf %65 : vector<2x32xf32>
    %67 = math.exp %66 : vector<2x32xf32>
    %cst_28 = arith.constant 1.000000e+00 : f32
    %68 = vector.broadcast %cst_28 : f32 to vector<2x32xf32>
    %69 = arith.addf %68, %67 : vector<2x32xf32>
    %70 = arith.divf %68, %69 : vector<2x32xf32>
    %71 = vector.extract_strided_slice %53 {offsets = [0, 64], sizes = [2, 32], strides = [1, 1]} : vector<2x96xf32> to vector<2x32xf32>
    %72 = vector.extract_strided_slice %54 {offsets = [0, 64], sizes = [2, 32], strides = [1, 1]} : vector<2x96xf32> to vector<2x32xf32>
    %73 = vector.broadcast %9 : vector<1x32xf32> to vector<2x32xf32>
    %74 = arith.addf %72, %73 : vector<2x32xf32>
    %75 = arith.mulf %62, %74 : vector<2x32xf32>
    %76 = arith.addf %71, %75 : vector<2x32xf32>
    %77 = math.tanh %76 : vector<2x32xf32>
    %cst_29 = arith.constant 1.000000e+00 : f32
    %78 = vector.broadcast %cst_29 : f32 to vector<2x32xf32>
    %79 = arith.subf %78, %70 : vector<2x32xf32>
    %80 = arith.mulf %79, %77 : vector<2x32xf32>
    %81 = arith.mulf %70, %43 : vector<2x32xf32>
    %82 = arith.addf %80, %81 : vector<2x32xf32>
    %cst_30 = arith.constant dense<0.000000e+00> : vector<2x32xf32>
    %83 = tpu.matmul %82, %10, %cst_30 {dimension_numbers = #tpu.dot_dimension_numbers<[1], [0], [0], [1], [0, 0, 1, 1], [], []>} : vector<2x32xf32>, vector<32x32xf32>, vector<2x32xf32> -> vector<2x32xf32>
    %c0_31 = arith.constant 0 : index
    %c1 = arith.constant 1 : index
    %c0_32 = arith.constant 0 : index
    %84 = vector.load %arg0[%c0_31, %c1, %c0_32] : memref<2x8x32xf32, #tpu.memory_space<vmem>>, vector<2x1x32xf32>
    %85 = vector.shape_cast %83 : vector<2x32xf32> to vector<2x1x32xf32>
    %86 = arith.addf %84, %85 : vector<2x1x32xf32>
    %87 = vector.shape_cast %11 : vector<1x32xf32> to vector<1x1x32xf32>
    %88 = vector.broadcast %87 : vector<1x1x32xf32> to vector<2x1x32xf32>
    %89 = arith.addf %86, %88 : vector<2x1x32xf32>
    %c0_33 = arith.constant 0 : index
    %c1_34 = arith.constant 1 : index
    %c0_35 = arith.constant 0 : index
    %90 = vector.load %arg7[%c0_33, %c1_34, %c0_35] : memref<2x8x32xf32, #tpu.memory_space<vmem>>, vector<2x1x32xf32>
    tpu.vector_store %arg7[%c0_33, %c1_34, %c0_35], %89 {strides = array<i32>} : memref<2x8x32xf32, #tpu.memory_space<vmem>>, vector<2x1x32xf32>,
    %91 = vector.extract_strided_slice %7 {offsets = [0, 2, 0], sizes = [2, 1, 96], strides = [1, 1, 1]} : vector<2x8x96xf32> to vector<2x1x96xf32>
    %92 = vector.shape_cast %91 : vector<2x1x96xf32> to vector<2x96xf32>
    %cst_36 = arith.constant dense<0.000000e+00> : vector<2x96xf32>
    %93 = tpu.matmul %82, %8, %cst_36 {dimension_numbers = #tpu.dot_dimension_numbers<[1], [0], [0], [1], [0, 0, 1, 1], [], []>} : vector<2x32xf32>, vector<32x96xf32>, vector<2x96xf32> -> vector<2x96xf32>
    %94 = vector.extract_strided_slice %92 {offsets = [0, 0], sizes = [2, 32], strides = [1, 1]} : vector<2x96xf32> to vector<2x32xf32>
    %95 = vector.extract_strided_slice %93 {offsets = [0, 0], sizes = [2, 32], strides = [1, 1]} : vector<2x96xf32> to vector<2x32xf32>
    %96 = arith.addf %94, %95 : vector<2x32xf32>
    %97 = arith.negf %96 : vector<2x32xf32>
    %98 = math.exp %97 : vector<2x32xf32>
    %cst_37 = arith.constant 1.000000e+00 : f32
    %99 = vector.broadcast %cst_37 : f32 to vector<2x32xf32>
    %100 = arith.addf %99, %98 : vector<2x32xf32>
    %101 = arith.divf %99, %100 : vector<2x32xf32>
    %102 = vector.extract_strided_slice %92 {offsets = [0, 32], sizes = [2, 32], strides = [1, 1]} : vector<2x96xf32> to vector<2x32xf32>
    %103 = vector.extract_strided_slice %93 {offsets = [0, 32], sizes = [2, 32], strides = [1, 1]} : vector<2x96xf32> to vector<2x32xf32>
    %104 = arith.addf %102, %103 : vector<2x32xf32>
    %105 = arith.negf %104 : vector<2x32xf32>
    %106 = math.exp %105 : vector<2x32xf32>
    %cst_38 = arith.constant 1.000000e+00 : f32
    %107 = vector.broadcast %cst_38 : f32 to vector<2x32xf32>
    %108 = arith.addf %107, %106 : vector<2x32xf32>
    %109 = arith.divf %107, %108 : vector<2x32xf32>
    %110 = vector.extract_strided_slice %92 {offsets = [0, 64], sizes = [2, 32], strides = [1, 1]} : vector<2x96xf32> to vector<2x32xf32>
    %111 = vector.extract_strided_slice %93 {offsets = [0, 64], sizes = [2, 32], strides = [1, 1]} : vector<2x96xf32> to vector<2x32xf32>
    %112 = vector.broadcast %9 : vector<1x32xf32> to vector<2x32xf32>
    %113 = arith.addf %111, %112 : vector<2x32xf32>
    %114 = arith.mulf %101, %113 : vector<2x32xf32>
    %115 = arith.addf %110, %114 : vector<2x32xf32>
    %116 = math.tanh %115 : vector<2x32xf32>
    %cst_39 = arith.constant 1.000000e+00 : f32
    %117 = vector.broadcast %cst_39 : f32 to vector<2x32xf32>
    %118 = arith.subf %117, %109 : vector<2x32xf32>
    %119 = arith.mulf %118, %116 : vector<2x32xf32>
    %120 = arith.mulf %109, %82 : vector<2x32xf32>
    %121 = arith.addf %119, %120 : vector<2x32xf32>
    %cst_40 = arith.constant dense<0.000000e+00> : vector<2x32xf32>
    %122 = tpu.matmul %121, %10, %cst_40 {dimension_numbers = #tpu.dot_dimension_numbers<[1], [0], [0], [1], [0, 0, 1, 1], [], []>} : vector<2x32xf32>, vector<32x32xf32>, vector<2x32xf32> -> vector<2x32xf32>
    %c0_41 = arith.constant 0 : index
    %c2 = arith.constant 2 : index
    %c0_42 = arith.constant 0 : index
    %123 = vector.load %arg0[%c0_41, %c2, %c0_42] : memref<2x8x32xf32, #tpu.memory_space<vmem>>, vector<2x1x32xf32>
    %124 = vector.shape_cast %122 : vector<2x32xf32> to vector<2x1x32xf32>
    %125 = arith.addf %123, %124 : vector<2x1x32xf32>
    %126 = vector.shape_cast %11 : vector<1x32xf32> to vector<1x1x32xf32>
    %127 = vector.broadcast %126 : vector<1x1x32xf32> to vector<2x1x32xf32>
    %128 = arith.addf %125, %127 : vector<2x1x32xf32>
    %c0_43 = arith.constant 0 : index
    %c2_44 = arith.constant 2 : index
    %c0_45 = arith.constant 0 : index
    %129 = vector.load %arg7[%c0_43, %c2_44, %c0_45] : memref<2x8x32xf32, #tpu.memory_space<vmem>>, vector<2x1x32xf32>
    tpu.vector_store %arg7[%c0_43, %c2_44, %c0_45], %128 {strides = array<i32>} : memref<2x8x32xf32, #tpu.memory_space<vmem>>, vector<2x1x32xf32>,
    %130 = vector.extract_strided_slice %7 {offsets = [0, 3, 0], sizes = [2, 1, 96], strides = [1, 1, 1]} : vector<2x8x96xf32> to vector<2x1x96xf32>
    %131 = vector.shape_cast %130 : vector<2x1x96xf32> to vector<2x96xf32>
    %cst_46 = arith.constant dense<0.000000e+00> : vector<2x96xf32>
    %132 = tpu.matmul %121, %8, %cst_46 {dimension_numbers = #tpu.dot_dimension_numbers<[1], [0], [0], [1], [0, 0, 1, 1], [], []>} : vector<2x32xf32>, vector<32x96xf32>, vector<2x96xf32> -> vector<2x96xf32>
    %133 = vector.extract_strided_slice %131 {offsets = [0, 0], sizes = [2, 32], strides = [1, 1]} : vector<2x96xf32> to vector<2x32xf32>
    %134 = vector.extract_strided_slice %132 {offsets = [0, 0], sizes = [2, 32], strides = [1, 1]} : vector<2x96xf32> to vector<2x32xf32>
    %135 = arith.addf %133, %134 : vector<2x32xf32>
    %136 = arith.negf %135 : vector<2x32xf32>
    %137 = math.exp %136 : vector<2x32xf32>
    %cst_47 = arith.constant 1.000000e+00 : f32
    %138 = vector.broadcast %cst_47 : f32 to vector<2x32xf32>
    %139 = arith.addf %138, %137 : vector<2x32xf32>
    %140 = arith.divf %138, %139 : vector<2x32xf32>
    %141 = vector.extract_strided_slice %131 {offsets = [0, 32], sizes = [2, 32], strides = [1, 1]} : vector<2x96xf32> to vector<2x32xf32>
    %142 = vector.extract_strided_slice %132 {offsets = [0, 32], sizes = [2, 32], strides = [1, 1]} : vector<2x96xf32> to vector<2x32xf32>
    %143 = arith.addf %141, %142 : vector<2x32xf32>
    %144 = arith.negf %143 : vector<2x32xf32>
    %145 = math.exp %144 : vector<2x32xf32>
    %cst_48 = arith.constant 1.000000e+00 : f32
    %146 = vector.broadcast %cst_48 : f32 to vector<2x32xf32>
    %147 = arith.addf %146, %145 : vector<2x32xf32>
    %148 = arith.divf %146, %147 : vector<2x32xf32>
    %149 = vector.extract_strided_slice %131 {offsets = [0, 64], sizes = [2, 32], strides = [1, 1]} : vector<2x96xf32> to vector<2x32xf32>
    %150 = vector.extract_strided_slice %132 {offsets = [0, 64], sizes = [2, 32], strides = [1, 1]} : vector<2x96xf32> to vector<2x32xf32>
    %151 = vector.broadcast %9 : vector<1x32xf32> to vector<2x32xf32>
    %152 = arith.addf %150, %151 : vector<2x32xf32>
    %153 = arith.mulf %140, %152 : vector<2x32xf32>
    %154 = arith.addf %149, %153 : vector<2x32xf32>
    %155 = math.tanh %154 : vector<2x32xf32>
    %cst_49 = arith.constant 1.000000e+00 : f32
    %156 = vector.broadcast %cst_49 : f32 to vector<2x32xf32>
    %157 = arith.subf %156, %148 : vector<2x32xf32>
    %158 = arith.mulf %157, %155 : vector<2x32xf32>
    %159 = arith.mulf %148, %121 : vector<2x32xf32>
    %160 = arith.addf %158, %159 : vector<2x32xf32>
    %cst_50 = arith.constant dense<0.000000e+00> : vector<2x32xf32>
    %161 = tpu.matmul %160, %10, %cst_50 {dimension_numbers = #tpu.dot_dimension_numbers<[1], [0], [0], [1], [0, 0, 1, 1], [], []>} : vector<2x32xf32>, vector<32x32xf32>, vector<2x32xf32> -> vector<2x32xf32>
    %c0_51 = arith.constant 0 : index
    %c3 = arith.constant 3 : index
    %c0_52 = arith.constant 0 : index
    %162 = vector.load %arg0[%c0_51, %c3, %c0_52] : memref<2x8x32xf32, #tpu.memory_space<vmem>>, vector<2x1x32xf32>
    %163 = vector.shape_cast %161 : vector<2x32xf32> to vector<2x1x32xf32>
    %164 = arith.addf %162, %163 : vector<2x1x32xf32>
    %165 = vector.shape_cast %11 : vector<1x32xf32> to vector<1x1x32xf32>
    %166 = vector.broadcast %165 : vector<1x1x32xf32> to vector<2x1x32xf32>
    %167 = arith.addf %164, %166 : vector<2x1x32xf32>
    %c0_53 = arith.constant 0 : index
    %c3_54 = arith.constant 3 : index
    %c0_55 = arith.constant 0 : index
    %168 = vector.load %arg7[%c0_53, %c3_54, %c0_55] : memref<2x8x32xf32, #tpu.memory_space<vmem>>, vector<2x1x32xf32>
    tpu.vector_store %arg7[%c0_53, %c3_54, %c0_55], %167 {strides = array<i32>} : memref<2x8x32xf32, #tpu.memory_space<vmem>>, vector<2x1x32xf32>,
    %169 = vector.extract_strided_slice %7 {offsets = [0, 4, 0], sizes = [2, 1, 96], strides = [1, 1, 1]} : vector<2x8x96xf32> to vector<2x1x96xf32>
    %170 = vector.shape_cast %169 : vector<2x1x96xf32> to vector<2x96xf32>
    %cst_56 = arith.constant dense<0.000000e+00> : vector<2x96xf32>
    %171 = tpu.matmul %160, %8, %cst_56 {dimension_numbers = #tpu.dot_dimension_numbers<[1], [0], [0], [1], [0, 0, 1, 1], [], []>} : vector<2x32xf32>, vector<32x96xf32>, vector<2x96xf32> -> vector<2x96xf32>
    %172 = vector.extract_strided_slice %170 {offsets = [0, 0], sizes = [2, 32], strides = [1, 1]} : vector<2x96xf32> to vector<2x32xf32>
    %173 = vector.extract_strided_slice %171 {offsets = [0, 0], sizes = [2, 32], strides = [1, 1]} : vector<2x96xf32> to vector<2x32xf32>
    %174 = arith.addf %172, %173 : vector<2x32xf32>
    %175 = arith.negf %174 : vector<2x32xf32>
    %176 = math.exp %175 : vector<2x32xf32>
    %cst_57 = arith.constant 1.000000e+00 : f32
    %177 = vector.broadcast %cst_57 : f32 to vector<2x32xf32>
    %178 = arith.addf %177, %176 : vector<2x32xf32>
    %179 = arith.divf %177, %178 : vector<2x32xf32>
    %180 = vector.extract_strided_slice %170 {offsets = [0, 32], sizes = [2, 32], strides = [1, 1]} : vector<2x96xf32> to vector<2x32xf32>
    %181 = vector.extract_strided_slice %171 {offsets = [0, 32], sizes = [2, 32], strides = [1, 1]} : vector<2x96xf32> to vector<2x32xf32>
    %182 = arith.addf %180, %181 : vector<2x32xf32>
    %183 = arith.negf %182 : vector<2x32xf32>
    %184 = math.exp %183 : vector<2x32xf32>
    %cst_58 = arith.constant 1.000000e+00 : f32
    %185 = vector.broadcast %cst_58 : f32 to vector<2x32xf32>
    %186 = arith.addf %185, %184 : vector<2x32xf32>
    %187 = arith.divf %185, %186 : vector<2x32xf32>
    %188 = vector.extract_strided_slice %170 {offsets = [0, 64], sizes = [2, 32], strides = [1, 1]} : vector<2x96xf32> to vector<2x32xf32>
    %189 = vector.extract_strided_slice %171 {offsets = [0, 64], sizes = [2, 32], strides = [1, 1]} : vector<2x96xf32> to vector<2x32xf32>
    %190 = vector.broadcast %9 : vector<1x32xf32> to vector<2x32xf32>
    %191 = arith.addf %189, %190 : vector<2x32xf32>
    %192 = arith.mulf %179, %191 : vector<2x32xf32>
    %193 = arith.addf %188, %192 : vector<2x32xf32>
    %194 = math.tanh %193 : vector<2x32xf32>
    %cst_59 = arith.constant 1.000000e+00 : f32
    %195 = vector.broadcast %cst_59 : f32 to vector<2x32xf32>
    %196 = arith.subf %195, %187 : vector<2x32xf32>
    %197 = arith.mulf %196, %194 : vector<2x32xf32>
    %198 = arith.mulf %187, %160 : vector<2x32xf32>
    %199 = arith.addf %197, %198 : vector<2x32xf32>
    %cst_60 = arith.constant dense<0.000000e+00> : vector<2x32xf32>
    %200 = tpu.matmul %199, %10, %cst_60 {dimension_numbers = #tpu.dot_dimension_numbers<[1], [0], [0], [1], [0, 0, 1, 1], [], []>} : vector<2x32xf32>, vector<32x32xf32>, vector<2x32xf32> -> vector<2x32xf32>
    %c0_61 = arith.constant 0 : index
    %c4 = arith.constant 4 : index
    %c0_62 = arith.constant 0 : index
    %201 = vector.load %arg0[%c0_61, %c4, %c0_62] : memref<2x8x32xf32, #tpu.memory_space<vmem>>, vector<2x1x32xf32>
    %202 = vector.shape_cast %200 : vector<2x32xf32> to vector<2x1x32xf32>
    %203 = arith.addf %201, %202 : vector<2x1x32xf32>
    %204 = vector.shape_cast %11 : vector<1x32xf32> to vector<1x1x32xf32>
    %205 = vector.broadcast %204 : vector<1x1x32xf32> to vector<2x1x32xf32>
    %206 = arith.addf %203, %205 : vector<2x1x32xf32>
    %c0_63 = arith.constant 0 : index
    %c4_64 = arith.constant 4 : index
    %c0_65 = arith.constant 0 : index
    %207 = vector.load %arg7[%c0_63, %c4_64, %c0_65] : memref<2x8x32xf32, #tpu.memory_space<vmem>>, vector<2x1x32xf32>
    tpu.vector_store %arg7[%c0_63, %c4_64, %c0_65], %206 {strides = array<i32>} : memref<2x8x32xf32, #tpu.memory_space<vmem>>, vector<2x1x32xf32>,
    %208 = vector.extract_strided_slice %7 {offsets = [0, 5, 0], sizes = [2, 1, 96], strides = [1, 1, 1]} : vector<2x8x96xf32> to vector<2x1x96xf32>
    %209 = vector.shape_cast %208 : vector<2x1x96xf32> to vector<2x96xf32>
    %cst_66 = arith.constant dense<0.000000e+00> : vector<2x96xf32>
    %210 = tpu.matmul %199, %8, %cst_66 {dimension_numbers = #tpu.dot_dimension_numbers<[1], [0], [0], [1], [0, 0, 1, 1], [], []>} : vector<2x32xf32>, vector<32x96xf32>, vector<2x96xf32> -> vector<2x96xf32>
    %211 = vector.extract_strided_slice %209 {offsets = [0, 0], sizes = [2, 32], strides = [1, 1]} : vector<2x96xf32> to vector<2x32xf32>
    %212 = vector.extract_strided_slice %210 {offsets = [0, 0], sizes = [2, 32], strides = [1, 1]} : vector<2x96xf32> to vector<2x32xf32>
    %213 = arith.addf %211, %212 : vector<2x32xf32>
    %214 = arith.negf %213 : vector<2x32xf32>
    %215 = math.exp %214 : vector<2x32xf32>
    %cst_67 = arith.constant 1.000000e+00 : f32
    %216 = vector.broadcast %cst_67 : f32 to vector<2x32xf32>
    %217 = arith.addf %216, %215 : vector<2x32xf32>
    %218 = arith.divf %216, %217 : vector<2x32xf32>
    %219 = vector.extract_strided_slice %209 {offsets = [0, 32], sizes = [2, 32], strides = [1, 1]} : vector<2x96xf32> to vector<2x32xf32>
    %220 = vector.extract_strided_slice %210 {offsets = [0, 32], sizes = [2, 32], strides = [1, 1]} : vector<2x96xf32> to vector<2x32xf32>
    %221 = arith.addf %219, %220 : vector<2x32xf32>
    %222 = arith.negf %221 : vector<2x32xf32>
    %223 = math.exp %222 : vector<2x32xf32>
    %cst_68 = arith.constant 1.000000e+00 : f32
    %224 = vector.broadcast %cst_68 : f32 to vector<2x32xf32>
    %225 = arith.addf %224, %223 : vector<2x32xf32>
    %226 = arith.divf %224, %225 : vector<2x32xf32>
    %227 = vector.extract_strided_slice %209 {offsets = [0, 64], sizes = [2, 32], strides = [1, 1]} : vector<2x96xf32> to vector<2x32xf32>
    %228 = vector.extract_strided_slice %210 {offsets = [0, 64], sizes = [2, 32], strides = [1, 1]} : vector<2x96xf32> to vector<2x32xf32>
    %229 = vector.broadcast %9 : vector<1x32xf32> to vector<2x32xf32>
    %230 = arith.addf %228, %229 : vector<2x32xf32>
    %231 = arith.mulf %218, %230 : vector<2x32xf32>
    %232 = arith.addf %227, %231 : vector<2x32xf32>
    %233 = math.tanh %232 : vector<2x32xf32>
    %cst_69 = arith.constant 1.000000e+00 : f32
    %234 = vector.broadcast %cst_69 : f32 to vector<2x32xf32>
    %235 = arith.subf %234, %226 : vector<2x32xf32>
    %236 = arith.mulf %235, %233 : vector<2x32xf32>
    %237 = arith.mulf %226, %199 : vector<2x32xf32>
    %238 = arith.addf %236, %237 : vector<2x32xf32>
    %cst_70 = arith.constant dense<0.000000e+00> : vector<2x32xf32>
    %239 = tpu.matmul %238, %10, %cst_70 {dimension_numbers = #tpu.dot_dimension_numbers<[1], [0], [0], [1], [0, 0, 1, 1], [], []>} : vector<2x32xf32>, vector<32x32xf32>, vector<2x32xf32> -> vector<2x32xf32>
    %c0_71 = arith.constant 0 : index
    %c5 = arith.constant 5 : index
    %c0_72 = arith.constant 0 : index
    %240 = vector.load %arg0[%c0_71, %c5, %c0_72] : memref<2x8x32xf32, #tpu.memory_space<vmem>>, vector<2x1x32xf32>
    %241 = vector.shape_cast %239 : vector<2x32xf32> to vector<2x1x32xf32>
    %242 = arith.addf %240, %241 : vector<2x1x32xf32>
    %243 = vector.shape_cast %11 : vector<1x32xf32> to vector<1x1x32xf32>
    %244 = vector.broadcast %243 : vector<1x1x32xf32> to vector<2x1x32xf32>
    %245 = arith.addf %242, %244 : vector<2x1x32xf32>
    %c0_73 = arith.constant 0 : index
    %c5_74 = arith.constant 5 : index
    %c0_75 = arith.constant 0 : index
    %246 = vector.load %arg7[%c0_73, %c5_74, %c0_75] : memref<2x8x32xf32, #tpu.memory_space<vmem>>, vector<2x1x32xf32>
    tpu.vector_store %arg7[%c0_73, %c5_74, %c0_75], %245 {strides = array<i32>} : memref<2x8x32xf32, #tpu.memory_space<vmem>>, vector<2x1x32xf32>,
    %247 = vector.extract_strided_slice %7 {offsets = [0, 6, 0], sizes = [2, 1, 96], strides = [1, 1, 1]} : vector<2x8x96xf32> to vector<2x1x96xf32>
    %248 = vector.shape_cast %247 : vector<2x1x96xf32> to vector<2x96xf32>
    %cst_76 = arith.constant dense<0.000000e+00> : vector<2x96xf32>
    %249 = tpu.matmul %238, %8, %cst_76 {dimension_numbers = #tpu.dot_dimension_numbers<[1], [0], [0], [1], [0, 0, 1, 1], [], []>} : vector<2x32xf32>, vector<32x96xf32>, vector<2x96xf32> -> vector<2x96xf32>
    %250 = vector.extract_strided_slice %248 {offsets = [0, 0], sizes = [2, 32], strides = [1, 1]} : vector<2x96xf32> to vector<2x32xf32>
    %251 = vector.extract_strided_slice %249 {offsets = [0, 0], sizes = [2, 32], strides = [1, 1]} : vector<2x96xf32> to vector<2x32xf32>
    %252 = arith.addf %250, %251 : vector<2x32xf32>
    %253 = arith.negf %252 : vector<2x32xf32>
    %254 = math.exp %253 : vector<2x32xf32>
    %cst_77 = arith.constant 1.000000e+00 : f32
    %255 = vector.broadcast %cst_77 : f32 to vector<2x32xf32>
    %256 = arith.addf %255, %254 : vector<2x32xf32>
    %257 = arith.divf %255, %256 : vector<2x32xf32>
    %258 = vector.extract_strided_slice %248 {offsets = [0, 32], sizes = [2, 32], strides = [1, 1]} : vector<2x96xf32> to vector<2x32xf32>
    %259 = vector.extract_strided_slice %249 {offsets = [0, 32], sizes = [2, 32], strides = [1, 1]} : vector<2x96xf32> to vector<2x32xf32>
    %260 = arith.addf %258, %259 : vector<2x32xf32>
    %261 = arith.negf %260 : vector<2x32xf32>
    %262 = math.exp %261 : vector<2x32xf32>
    %cst_78 = arith.constant 1.000000e+00 : f32
    %263 = vector.broadcast %cst_78 : f32 to vector<2x32xf32>
    %264 = arith.addf %263, %262 : vector<2x32xf32>
    %265 = arith.divf %263, %264 : vector<2x32xf32>
    %266 = vector.extract_strided_slice %248 {offsets = [0, 64], sizes = [2, 32], strides = [1, 1]} : vector<2x96xf32> to vector<2x32xf32>
    %267 = vector.extract_strided_slice %249 {offsets = [0, 64], sizes = [2, 32], strides = [1, 1]} : vector<2x96xf32> to vector<2x32xf32>
    %268 = vector.broadcast %9 : vector<1x32xf32> to vector<2x32xf32>
    %269 = arith.addf %267, %268 : vector<2x32xf32>
    %270 = arith.mulf %257, %269 : vector<2x32xf32>
    %271 = arith.addf %266, %270 : vector<2x32xf32>
    %272 = math.tanh %271 : vector<2x32xf32>
    %cst_79 = arith.constant 1.000000e+00 : f32
    %273 = vector.broadcast %cst_79 : f32 to vector<2x32xf32>
    %274 = arith.subf %273, %265 : vector<2x32xf32>
    %275 = arith.mulf %274, %272 : vector<2x32xf32>
    %276 = arith.mulf %265, %238 : vector<2x32xf32>
    %277 = arith.addf %275, %276 : vector<2x32xf32>
    %cst_80 = arith.constant dense<0.000000e+00> : vector<2x32xf32>
    %278 = tpu.matmul %277, %10, %cst_80 {dimension_numbers = #tpu.dot_dimension_numbers<[1], [0], [0], [1], [0, 0, 1, 1], [], []>} : vector<2x32xf32>, vector<32x32xf32>, vector<2x32xf32> -> vector<2x32xf32>
    %c0_81 = arith.constant 0 : index
    %c6 = arith.constant 6 : index
    %c0_82 = arith.constant 0 : index
    %279 = vector.load %arg0[%c0_81, %c6, %c0_82] : memref<2x8x32xf32, #tpu.memory_space<vmem>>, vector<2x1x32xf32>
    %280 = vector.shape_cast %278 : vector<2x32xf32> to vector<2x1x32xf32>
    %281 = arith.addf %279, %280 : vector<2x1x32xf32>
    %282 = vector.shape_cast %11 : vector<1x32xf32> to vector<1x1x32xf32>
    %283 = vector.broadcast %282 : vector<1x1x32xf32> to vector<2x1x32xf32>
    %284 = arith.addf %281, %283 : vector<2x1x32xf32>
    %c0_83 = arith.constant 0 : index
    %c6_84 = arith.constant 6 : index
    %c0_85 = arith.constant 0 : index
    %285 = vector.load %arg7[%c0_83, %c6_84, %c0_85] : memref<2x8x32xf32, #tpu.memory_space<vmem>>, vector<2x1x32xf32>
    tpu.vector_store %arg7[%c0_83, %c6_84, %c0_85], %284 {strides = array<i32>} : memref<2x8x32xf32, #tpu.memory_space<vmem>>, vector<2x1x32xf32>,
    %286 = vector.extract_strided_slice %7 {offsets = [0, 7, 0], sizes = [2, 1, 96], strides = [1, 1, 1]} : vector<2x8x96xf32> to vector<2x1x96xf32>
    %287 = vector.shape_cast %286 : vector<2x1x96xf32> to vector<2x96xf32>
    %cst_86 = arith.constant dense<0.000000e+00> : vector<2x96xf32>
    %288 = tpu.matmul %277, %8, %cst_86 {dimension_numbers = #tpu.dot_dimension_numbers<[1], [0], [0], [1], [0, 0, 1, 1], [], []>} : vector<2x32xf32>, vector<32x96xf32>, vector<2x96xf32> -> vector<2x96xf32>
    %289 = vector.extract_strided_slice %287 {offsets = [0, 0], sizes = [2, 32], strides = [1, 1]} : vector<2x96xf32> to vector<2x32xf32>
    %290 = vector.extract_strided_slice %288 {offsets = [0, 0], sizes = [2, 32], strides = [1, 1]} : vector<2x96xf32> to vector<2x32xf32>
    %291 = arith.addf %289, %290 : vector<2x32xf32>
    %292 = arith.negf %291 : vector<2x32xf32>
    %293 = math.exp %292 : vector<2x32xf32>
    %cst_87 = arith.constant 1.000000e+00 : f32
    %294 = vector.broadcast %cst_87 : f32 to vector<2x32xf32>
    %295 = arith.addf %294, %293 : vector<2x32xf32>
    %296 = arith.divf %294, %295 : vector<2x32xf32>
    %297 = vector.extract_strided_slice %287 {offsets = [0, 32], sizes = [2, 32], strides = [1, 1]} : vector<2x96xf32> to vector<2x32xf32>
    %298 = vector.extract_strided_slice %288 {offsets = [0, 32], sizes = [2, 32], strides = [1, 1]} : vector<2x96xf32> to vector<2x32xf32>
    %299 = arith.addf %297, %298 : vector<2x32xf32>
    %300 = arith.negf %299 : vector<2x32xf32>
    %301 = math.exp %300 : vector<2x32xf32>
    %cst_88 = arith.constant 1.000000e+00 : f32
    %302 = vector.broadcast %cst_88 : f32 to vector<2x32xf32>
    %303 = arith.addf %302, %301 : vector<2x32xf32>
    %304 = arith.divf %302, %303 : vector<2x32xf32>
    %305 = vector.extract_strided_slice %287 {offsets = [0, 64], sizes = [2, 32], strides = [1, 1]} : vector<2x96xf32> to vector<2x32xf32>
    %306 = vector.extract_strided_slice %288 {offsets = [0, 64], sizes = [2, 32], strides = [1, 1]} : vector<2x96xf32> to vector<2x32xf32>
    %307 = vector.broadcast %9 : vector<1x32xf32> to vector<2x32xf32>
    %308 = arith.addf %306, %307 : vector<2x32xf32>
    %309 = arith.mulf %296, %308 : vector<2x32xf32>
    %310 = arith.addf %305, %309 : vector<2x32xf32>
    %311 = math.tanh %310 : vector<2x32xf32>
    %cst_89 = arith.constant 1.000000e+00 : f32
    %312 = vector.broadcast %cst_89 : f32 to vector<2x32xf32>
    %313 = arith.subf %312, %304 : vector<2x32xf32>
    %314 = arith.mulf %313, %311 : vector<2x32xf32>
    %315 = arith.mulf %304, %277 : vector<2x32xf32>
    %316 = arith.addf %314, %315 : vector<2x32xf32>
    %cst_90 = arith.constant dense<0.000000e+00> : vector<2x32xf32>
    %317 = tpu.matmul %316, %10, %cst_90 {dimension_numbers = #tpu.dot_dimension_numbers<[1], [0], [0], [1], [0, 0, 1, 1], [], []>} : vector<2x32xf32>, vector<32x32xf32>, vector<2x32xf32> -> vector<2x32xf32>
    %c0_91 = arith.constant 0 : index
    %c7 = arith.constant 7 : index
    %c0_92 = arith.constant 0 : index
    %318 = vector.load %arg0[%c0_91, %c7, %c0_92] : memref<2x8x32xf32, #tpu.memory_space<vmem>>, vector<2x1x32xf32>
    %319 = vector.shape_cast %317 : vector<2x32xf32> to vector<2x1x32xf32>
    %320 = arith.addf %318, %319 : vector<2x1x32xf32>
    %321 = vector.shape_cast %11 : vector<1x32xf32> to vector<1x1x32xf32>
    %322 = vector.broadcast %321 : vector<1x1x32xf32> to vector<2x1x32xf32>
    %323 = arith.addf %320, %322 : vector<2x1x32xf32>
    %c0_93 = arith.constant 0 : index
    %c7_94 = arith.constant 7 : index
    %c0_95 = arith.constant 0 : index
    %324 = vector.load %arg7[%c0_93, %c7_94, %c0_95] : memref<2x8x32xf32, #tpu.memory_space<vmem>>, vector<2x1x32xf32>
    tpu.vector_store %arg7[%c0_93, %c7_94, %c0_95], %323 {strides = array<i32>} : memref<2x8x32xf32, #tpu.memory_space<vmem>>, vector<2x1x32xf32>,
    return
  }
}

module attributes {stable_mosaic.version = 11 : i64} {
  func.func @_time_stack_kernel(%arg0: memref<2x8x8x32xf32, #tpu.memory_space<vmem>>, %arg1: memref<8x16x32xf32, #tpu.memory_space<vmem>>, %arg2: memref<3x32x96xf32, #tpu.memory_space<vmem>>, %arg3: memref<3x32x96xf32, #tpu.memory_space<vmem>>, %arg4: memref<3x1x96xf32, #tpu.memory_space<vmem>>, %arg5: memref<3x1x32xf32, #tpu.memory_space<vmem>>, %arg6: memref<3x32x32xf32, #tpu.memory_space<vmem>>, %arg7: memref<1x32xf32, #tpu.memory_space<vmem>>, %arg8: memref<2x8x8x32xf32, #tpu.memory_space<vmem>>) attributes {dimension_semantics = [], scalar_prefetch = 0 : i64, scratch_operands = 0 : i64, tpu.core_type = #tpu.core_type<tc>} {
    %c0 = arith.constant 0 : index
    %c0_0 = arith.constant 0 : index
    %c0_1 = arith.constant 0 : index
    %c0_2 = arith.constant 0 : index
    %0 = vector.load %arg0[%c0, %c0_0, %c0_1, %c0_2] : memref<2x8x8x32xf32, #tpu.memory_space<vmem>>, vector<2x8x8x32xf32>
    %1 = vector.shape_cast %0 : vector<2x8x8x32xf32> to vector<128x32xf32>
    %c0_3 = arith.constant 0 : index
    %c0_4 = arith.constant 0 : index
    %c0_5 = arith.constant 0 : index
    %2 = vector.load %arg2[%c0_3, %c0_4, %c0_5] : memref<3x32x96xf32, #tpu.memory_space<vmem>>, vector<1x32x96xf32>
    %3 = vector.shape_cast %2 : vector<1x32x96xf32> to vector<32x96xf32>
    %cst = arith.constant dense<0.000000e+00> : vector<128x96xf32>
    %4 = tpu.matmul %1, %3, %cst {dimension_numbers = #tpu.dot_dimension_numbers<[1], [0], [0], [1], [0, 0, 1, 1], [], []>} : vector<128x32xf32>, vector<32x96xf32>, vector<128x96xf32> -> vector<128x96xf32>
    %c0_6 = arith.constant 0 : index
    %c0_7 = arith.constant 0 : index
    %c0_8 = arith.constant 0 : index
    %5 = vector.load %arg4[%c0_6, %c0_7, %c0_8] : memref<3x1x96xf32, #tpu.memory_space<vmem>>, vector<1x1x96xf32>
    %6 = vector.shape_cast %5 : vector<1x1x96xf32> to vector<1x96xf32>
    %7 = vector.broadcast %6 : vector<1x96xf32> to vector<128x96xf32>
    %8 = arith.addf %4, %7 : vector<128x96xf32>
    %9 = vector.shape_cast %8 : vector<128x96xf32> to vector<2x8x8x96xf32>
    %c0_9 = arith.constant 0 : index
    %c0_10 = arith.constant 0 : index
    %c0_11 = arith.constant 0 : index
    %10 = vector.load %arg3[%c0_9, %c0_10, %c0_11] : memref<3x32x96xf32, #tpu.memory_space<vmem>>, vector<1x32x96xf32>
    %11 = vector.shape_cast %10 : vector<1x32x96xf32> to vector<32x96xf32>
    %c0_12 = arith.constant 0 : index
    %c0_13 = arith.constant 0 : index
    %c0_14 = arith.constant 0 : index
    %12 = vector.load %arg5[%c0_12, %c0_13, %c0_14] : memref<3x1x32xf32, #tpu.memory_space<vmem>>, vector<1x1x32xf32>
    %13 = vector.shape_cast %12 : vector<1x1x32xf32> to vector<1x32xf32>
    %cst_15 = arith.constant 0.000000e+00 : f32
    %14 = vector.broadcast %cst_15 : f32 to vector<16x32xf32>
    %15 = vector.extract_strided_slice %9 {offsets = [0, 0, 0, 0], sizes = [2, 1, 8, 96], strides = [1, 1, 1, 1]} : vector<2x8x8x96xf32> to vector<2x1x8x96xf32>
    %16 = vector.shape_cast %15 : vector<2x1x8x96xf32> to vector<2x8x96xf32>
    %17 = vector.shape_cast %16 : vector<2x8x96xf32> to vector<16x96xf32>
    %cst_16 = arith.constant dense<0.000000e+00> : vector<16x96xf32>
    %18 = tpu.matmul %14, %11, %cst_16 {dimension_numbers = #tpu.dot_dimension_numbers<[1], [0], [0], [1], [0, 0, 1, 1], [], []>} : vector<16x32xf32>, vector<32x96xf32>, vector<16x96xf32> -> vector<16x96xf32>
    %19 = vector.extract_strided_slice %17 {offsets = [0, 0], sizes = [16, 32], strides = [1, 1]} : vector<16x96xf32> to vector<16x32xf32>
    %20 = vector.extract_strided_slice %18 {offsets = [0, 0], sizes = [16, 32], strides = [1, 1]} : vector<16x96xf32> to vector<16x32xf32>
    %21 = arith.addf %19, %20 : vector<16x32xf32>
    %22 = arith.negf %21 : vector<16x32xf32>
    %23 = math.exp %22 : vector<16x32xf32>
    %cst_17 = arith.constant 1.000000e+00 : f32
    %24 = vector.broadcast %cst_17 : f32 to vector<16x32xf32>
    %25 = arith.addf %24, %23 : vector<16x32xf32>
    %26 = arith.divf %24, %25 : vector<16x32xf32>
    %27 = vector.extract_strided_slice %17 {offsets = [0, 32], sizes = [16, 32], strides = [1, 1]} : vector<16x96xf32> to vector<16x32xf32>
    %28 = vector.extract_strided_slice %18 {offsets = [0, 32], sizes = [16, 32], strides = [1, 1]} : vector<16x96xf32> to vector<16x32xf32>
    %29 = arith.addf %27, %28 : vector<16x32xf32>
    %30 = arith.negf %29 : vector<16x32xf32>
    %31 = math.exp %30 : vector<16x32xf32>
    %cst_18 = arith.constant 1.000000e+00 : f32
    %32 = vector.broadcast %cst_18 : f32 to vector<16x32xf32>
    %33 = arith.addf %32, %31 : vector<16x32xf32>
    %34 = arith.divf %32, %33 : vector<16x32xf32>
    %35 = vector.extract_strided_slice %17 {offsets = [0, 64], sizes = [16, 32], strides = [1, 1]} : vector<16x96xf32> to vector<16x32xf32>
    %36 = vector.extract_strided_slice %18 {offsets = [0, 64], sizes = [16, 32], strides = [1, 1]} : vector<16x96xf32> to vector<16x32xf32>
    %37 = vector.broadcast %13 : vector<1x32xf32> to vector<16x32xf32>
    %38 = arith.addf %36, %37 : vector<16x32xf32>
    %39 = arith.mulf %26, %38 : vector<16x32xf32>
    %40 = arith.addf %35, %39 : vector<16x32xf32>
    %41 = math.tanh %40 : vector<16x32xf32>
    %cst_19 = arith.constant 1.000000e+00 : f32
    %42 = vector.broadcast %cst_19 : f32 to vector<16x32xf32>
    %43 = arith.subf %42, %34 : vector<16x32xf32>
    %44 = arith.mulf %43, %41 : vector<16x32xf32>
    %45 = arith.mulf %34, %14 : vector<16x32xf32>
    %46 = arith.addf %44, %45 : vector<16x32xf32>
    %47 = vector.shape_cast %46 : vector<16x32xf32> to vector<2x1x8x32xf32>
    %48 = vector.extract_strided_slice %9 {offsets = [0, 1, 0, 0], sizes = [2, 1, 8, 96], strides = [1, 1, 1, 1]} : vector<2x8x8x96xf32> to vector<2x1x8x96xf32>
    %49 = vector.shape_cast %48 : vector<2x1x8x96xf32> to vector<2x8x96xf32>
    %50 = vector.shape_cast %49 : vector<2x8x96xf32> to vector<16x96xf32>
    %cst_20 = arith.constant dense<0.000000e+00> : vector<16x96xf32>
    %51 = tpu.matmul %46, %11, %cst_20 {dimension_numbers = #tpu.dot_dimension_numbers<[1], [0], [0], [1], [0, 0, 1, 1], [], []>} : vector<16x32xf32>, vector<32x96xf32>, vector<16x96xf32> -> vector<16x96xf32>
    %52 = vector.extract_strided_slice %50 {offsets = [0, 0], sizes = [16, 32], strides = [1, 1]} : vector<16x96xf32> to vector<16x32xf32>
    %53 = vector.extract_strided_slice %51 {offsets = [0, 0], sizes = [16, 32], strides = [1, 1]} : vector<16x96xf32> to vector<16x32xf32>
    %54 = arith.addf %52, %53 : vector<16x32xf32>
    %55 = arith.negf %54 : vector<16x32xf32>
    %56 = math.exp %55 : vector<16x32xf32>
    %cst_21 = arith.constant 1.000000e+00 : f32
    %57 = vector.broadcast %cst_21 : f32 to vector<16x32xf32>
    %58 = arith.addf %57, %56 : vector<16x32xf32>
    %59 = arith.divf %57, %58 : vector<16x32xf32>
    %60 = vector.extract_strided_slice %50 {offsets = [0, 32], sizes = [16, 32], strides = [1, 1]} : vector<16x96xf32> to vector<16x32xf32>
    %61 = vector.extract_strided_slice %51 {offsets = [0, 32], sizes = [16, 32], strides = [1, 1]} : vector<16x96xf32> to vector<16x32xf32>
    %62 = arith.addf %60, %61 : vector<16x32xf32>
    %63 = arith.negf %62 : vector<16x32xf32>
    %64 = math.exp %63 : vector<16x32xf32>
    %cst_22 = arith.constant 1.000000e+00 : f32
    %65 = vector.broadcast %cst_22 : f32 to vector<16x32xf32>
    %66 = arith.addf %65, %64 : vector<16x32xf32>
    %67 = arith.divf %65, %66 : vector<16x32xf32>
    %68 = vector.extract_strided_slice %50 {offsets = [0, 64], sizes = [16, 32], strides = [1, 1]} : vector<16x96xf32> to vector<16x32xf32>
    %69 = vector.extract_strided_slice %51 {offsets = [0, 64], sizes = [16, 32], strides = [1, 1]} : vector<16x96xf32> to vector<16x32xf32>
    %70 = vector.broadcast %13 : vector<1x32xf32> to vector<16x32xf32>
    %71 = arith.addf %69, %70 : vector<16x32xf32>
    %72 = arith.mulf %59, %71 : vector<16x32xf32>
    %73 = arith.addf %68, %72 : vector<16x32xf32>
    %74 = math.tanh %73 : vector<16x32xf32>
    %cst_23 = arith.constant 1.000000e+00 : f32
    %75 = vector.broadcast %cst_23 : f32 to vector<16x32xf32>
    %76 = arith.subf %75, %67 : vector<16x32xf32>
    %77 = arith.mulf %76, %74 : vector<16x32xf32>
    %78 = arith.mulf %67, %46 : vector<16x32xf32>
    %79 = arith.addf %77, %78 : vector<16x32xf32>
    %80 = vector.shape_cast %79 : vector<16x32xf32> to vector<2x1x8x32xf32>
    %81 = vector.extract_strided_slice %9 {offsets = [0, 2, 0, 0], sizes = [2, 1, 8, 96], strides = [1, 1, 1, 1]} : vector<2x8x8x96xf32> to vector<2x1x8x96xf32>
    %82 = vector.shape_cast %81 : vector<2x1x8x96xf32> to vector<2x8x96xf32>
    %83 = vector.shape_cast %82 : vector<2x8x96xf32> to vector<16x96xf32>
    %cst_24 = arith.constant dense<0.000000e+00> : vector<16x96xf32>
    %84 = tpu.matmul %79, %11, %cst_24 {dimension_numbers = #tpu.dot_dimension_numbers<[1], [0], [0], [1], [0, 0, 1, 1], [], []>} : vector<16x32xf32>, vector<32x96xf32>, vector<16x96xf32> -> vector<16x96xf32>
    %85 = vector.extract_strided_slice %83 {offsets = [0, 0], sizes = [16, 32], strides = [1, 1]} : vector<16x96xf32> to vector<16x32xf32>
    %86 = vector.extract_strided_slice %84 {offsets = [0, 0], sizes = [16, 32], strides = [1, 1]} : vector<16x96xf32> to vector<16x32xf32>
    %87 = arith.addf %85, %86 : vector<16x32xf32>
    %88 = arith.negf %87 : vector<16x32xf32>
    %89 = math.exp %88 : vector<16x32xf32>
    %cst_25 = arith.constant 1.000000e+00 : f32
    %90 = vector.broadcast %cst_25 : f32 to vector<16x32xf32>
    %91 = arith.addf %90, %89 : vector<16x32xf32>
    %92 = arith.divf %90, %91 : vector<16x32xf32>
    %93 = vector.extract_strided_slice %83 {offsets = [0, 32], sizes = [16, 32], strides = [1, 1]} : vector<16x96xf32> to vector<16x32xf32>
    %94 = vector.extract_strided_slice %84 {offsets = [0, 32], sizes = [16, 32], strides = [1, 1]} : vector<16x96xf32> to vector<16x32xf32>
    %95 = arith.addf %93, %94 : vector<16x32xf32>
    %96 = arith.negf %95 : vector<16x32xf32>
    %97 = math.exp %96 : vector<16x32xf32>
    %cst_26 = arith.constant 1.000000e+00 : f32
    %98 = vector.broadcast %cst_26 : f32 to vector<16x32xf32>
    %99 = arith.addf %98, %97 : vector<16x32xf32>
    %100 = arith.divf %98, %99 : vector<16x32xf32>
    %101 = vector.extract_strided_slice %83 {offsets = [0, 64], sizes = [16, 32], strides = [1, 1]} : vector<16x96xf32> to vector<16x32xf32>
    %102 = vector.extract_strided_slice %84 {offsets = [0, 64], sizes = [16, 32], strides = [1, 1]} : vector<16x96xf32> to vector<16x32xf32>
    %103 = vector.broadcast %13 : vector<1x32xf32> to vector<16x32xf32>
    %104 = arith.addf %102, %103 : vector<16x32xf32>
    %105 = arith.mulf %92, %104 : vector<16x32xf32>
    %106 = arith.addf %101, %105 : vector<16x32xf32>
    %107 = math.tanh %106 : vector<16x32xf32>
    %cst_27 = arith.constant 1.000000e+00 : f32
    %108 = vector.broadcast %cst_27 : f32 to vector<16x32xf32>
    %109 = arith.subf %108, %100 : vector<16x32xf32>
    %110 = arith.mulf %109, %107 : vector<16x32xf32>
    %111 = arith.mulf %100, %79 : vector<16x32xf32>
    %112 = arith.addf %110, %111 : vector<16x32xf32>
    %113 = vector.shape_cast %112 : vector<16x32xf32> to vector<2x1x8x32xf32>
    %114 = vector.extract_strided_slice %9 {offsets = [0, 3, 0, 0], sizes = [2, 1, 8, 96], strides = [1, 1, 1, 1]} : vector<2x8x8x96xf32> to vector<2x1x8x96xf32>
    %115 = vector.shape_cast %114 : vector<2x1x8x96xf32> to vector<2x8x96xf32>
    %116 = vector.shape_cast %115 : vector<2x8x96xf32> to vector<16x96xf32>
    %cst_28 = arith.constant dense<0.000000e+00> : vector<16x96xf32>
    %117 = tpu.matmul %112, %11, %cst_28 {dimension_numbers = #tpu.dot_dimension_numbers<[1], [0], [0], [1], [0, 0, 1, 1], [], []>} : vector<16x32xf32>, vector<32x96xf32>, vector<16x96xf32> -> vector<16x96xf32>
    %118 = vector.extract_strided_slice %116 {offsets = [0, 0], sizes = [16, 32], strides = [1, 1]} : vector<16x96xf32> to vector<16x32xf32>
    %119 = vector.extract_strided_slice %117 {offsets = [0, 0], sizes = [16, 32], strides = [1, 1]} : vector<16x96xf32> to vector<16x32xf32>
    %120 = arith.addf %118, %119 : vector<16x32xf32>
    %121 = arith.negf %120 : vector<16x32xf32>
    %122 = math.exp %121 : vector<16x32xf32>
    %cst_29 = arith.constant 1.000000e+00 : f32
    %123 = vector.broadcast %cst_29 : f32 to vector<16x32xf32>
    %124 = arith.addf %123, %122 : vector<16x32xf32>
    %125 = arith.divf %123, %124 : vector<16x32xf32>
    %126 = vector.extract_strided_slice %116 {offsets = [0, 32], sizes = [16, 32], strides = [1, 1]} : vector<16x96xf32> to vector<16x32xf32>
    %127 = vector.extract_strided_slice %117 {offsets = [0, 32], sizes = [16, 32], strides = [1, 1]} : vector<16x96xf32> to vector<16x32xf32>
    %128 = arith.addf %126, %127 : vector<16x32xf32>
    %129 = arith.negf %128 : vector<16x32xf32>
    %130 = math.exp %129 : vector<16x32xf32>
    %cst_30 = arith.constant 1.000000e+00 : f32
    %131 = vector.broadcast %cst_30 : f32 to vector<16x32xf32>
    %132 = arith.addf %131, %130 : vector<16x32xf32>
    %133 = arith.divf %131, %132 : vector<16x32xf32>
    %134 = vector.extract_strided_slice %116 {offsets = [0, 64], sizes = [16, 32], strides = [1, 1]} : vector<16x96xf32> to vector<16x32xf32>
    %135 = vector.extract_strided_slice %117 {offsets = [0, 64], sizes = [16, 32], strides = [1, 1]} : vector<16x96xf32> to vector<16x32xf32>
    %136 = vector.broadcast %13 : vector<1x32xf32> to vector<16x32xf32>
    %137 = arith.addf %135, %136 : vector<16x32xf32>
    %138 = arith.mulf %125, %137 : vector<16x32xf32>
    %139 = arith.addf %134, %138 : vector<16x32xf32>
    %140 = math.tanh %139 : vector<16x32xf32>
    %cst_31 = arith.constant 1.000000e+00 : f32
    %141 = vector.broadcast %cst_31 : f32 to vector<16x32xf32>
    %142 = arith.subf %141, %133 : vector<16x32xf32>
    %143 = arith.mulf %142, %140 : vector<16x32xf32>
    %144 = arith.mulf %133, %112 : vector<16x32xf32>
    %145 = arith.addf %143, %144 : vector<16x32xf32>
    %146 = vector.shape_cast %145 : vector<16x32xf32> to vector<2x1x8x32xf32>
    %147 = vector.extract_strided_slice %9 {offsets = [0, 4, 0, 0], sizes = [2, 1, 8, 96], strides = [1, 1, 1, 1]} : vector<2x8x8x96xf32> to vector<2x1x8x96xf32>
    %148 = vector.shape_cast %147 : vector<2x1x8x96xf32> to vector<2x8x96xf32>
    %149 = vector.shape_cast %148 : vector<2x8x96xf32> to vector<16x96xf32>
    %cst_32 = arith.constant dense<0.000000e+00> : vector<16x96xf32>
    %150 = tpu.matmul %145, %11, %cst_32 {dimension_numbers = #tpu.dot_dimension_numbers<[1], [0], [0], [1], [0, 0, 1, 1], [], []>} : vector<16x32xf32>, vector<32x96xf32>, vector<16x96xf32> -> vector<16x96xf32>
    %151 = vector.extract_strided_slice %149 {offsets = [0, 0], sizes = [16, 32], strides = [1, 1]} : vector<16x96xf32> to vector<16x32xf32>
    %152 = vector.extract_strided_slice %150 {offsets = [0, 0], sizes = [16, 32], strides = [1, 1]} : vector<16x96xf32> to vector<16x32xf32>
    %153 = arith.addf %151, %152 : vector<16x32xf32>
    %154 = arith.negf %153 : vector<16x32xf32>
    %155 = math.exp %154 : vector<16x32xf32>
    %cst_33 = arith.constant 1.000000e+00 : f32
    %156 = vector.broadcast %cst_33 : f32 to vector<16x32xf32>
    %157 = arith.addf %156, %155 : vector<16x32xf32>
    %158 = arith.divf %156, %157 : vector<16x32xf32>
    %159 = vector.extract_strided_slice %149 {offsets = [0, 32], sizes = [16, 32], strides = [1, 1]} : vector<16x96xf32> to vector<16x32xf32>
    %160 = vector.extract_strided_slice %150 {offsets = [0, 32], sizes = [16, 32], strides = [1, 1]} : vector<16x96xf32> to vector<16x32xf32>
    %161 = arith.addf %159, %160 : vector<16x32xf32>
    %162 = arith.negf %161 : vector<16x32xf32>
    %163 = math.exp %162 : vector<16x32xf32>
    %cst_34 = arith.constant 1.000000e+00 : f32
    %164 = vector.broadcast %cst_34 : f32 to vector<16x32xf32>
    %165 = arith.addf %164, %163 : vector<16x32xf32>
    %166 = arith.divf %164, %165 : vector<16x32xf32>
    %167 = vector.extract_strided_slice %149 {offsets = [0, 64], sizes = [16, 32], strides = [1, 1]} : vector<16x96xf32> to vector<16x32xf32>
    %168 = vector.extract_strided_slice %150 {offsets = [0, 64], sizes = [16, 32], strides = [1, 1]} : vector<16x96xf32> to vector<16x32xf32>
    %169 = vector.broadcast %13 : vector<1x32xf32> to vector<16x32xf32>
    %170 = arith.addf %168, %169 : vector<16x32xf32>
    %171 = arith.mulf %158, %170 : vector<16x32xf32>
    %172 = arith.addf %167, %171 : vector<16x32xf32>
    %173 = math.tanh %172 : vector<16x32xf32>
    %cst_35 = arith.constant 1.000000e+00 : f32
    %174 = vector.broadcast %cst_35 : f32 to vector<16x32xf32>
    %175 = arith.subf %174, %166 : vector<16x32xf32>
    %176 = arith.mulf %175, %173 : vector<16x32xf32>
    %177 = arith.mulf %166, %145 : vector<16x32xf32>
    %178 = arith.addf %176, %177 : vector<16x32xf32>
    %179 = vector.shape_cast %178 : vector<16x32xf32> to vector<2x1x8x32xf32>
    %180 = vector.extract_strided_slice %9 {offsets = [0, 5, 0, 0], sizes = [2, 1, 8, 96], strides = [1, 1, 1, 1]} : vector<2x8x8x96xf32> to vector<2x1x8x96xf32>
    %181 = vector.shape_cast %180 : vector<2x1x8x96xf32> to vector<2x8x96xf32>
    %182 = vector.shape_cast %181 : vector<2x8x96xf32> to vector<16x96xf32>
    %cst_36 = arith.constant dense<0.000000e+00> : vector<16x96xf32>
    %183 = tpu.matmul %178, %11, %cst_36 {dimension_numbers = #tpu.dot_dimension_numbers<[1], [0], [0], [1], [0, 0, 1, 1], [], []>} : vector<16x32xf32>, vector<32x96xf32>, vector<16x96xf32> -> vector<16x96xf32>
    %184 = vector.extract_strided_slice %182 {offsets = [0, 0], sizes = [16, 32], strides = [1, 1]} : vector<16x96xf32> to vector<16x32xf32>
    %185 = vector.extract_strided_slice %183 {offsets = [0, 0], sizes = [16, 32], strides = [1, 1]} : vector<16x96xf32> to vector<16x32xf32>
    %186 = arith.addf %184, %185 : vector<16x32xf32>
    %187 = arith.negf %186 : vector<16x32xf32>
    %188 = math.exp %187 : vector<16x32xf32>
    %cst_37 = arith.constant 1.000000e+00 : f32
    %189 = vector.broadcast %cst_37 : f32 to vector<16x32xf32>
    %190 = arith.addf %189, %188 : vector<16x32xf32>
    %191 = arith.divf %189, %190 : vector<16x32xf32>
    %192 = vector.extract_strided_slice %182 {offsets = [0, 32], sizes = [16, 32], strides = [1, 1]} : vector<16x96xf32> to vector<16x32xf32>
    %193 = vector.extract_strided_slice %183 {offsets = [0, 32], sizes = [16, 32], strides = [1, 1]} : vector<16x96xf32> to vector<16x32xf32>
    %194 = arith.addf %192, %193 : vector<16x32xf32>
    %195 = arith.negf %194 : vector<16x32xf32>
    %196 = math.exp %195 : vector<16x32xf32>
    %cst_38 = arith.constant 1.000000e+00 : f32
    %197 = vector.broadcast %cst_38 : f32 to vector<16x32xf32>
    %198 = arith.addf %197, %196 : vector<16x32xf32>
    %199 = arith.divf %197, %198 : vector<16x32xf32>
    %200 = vector.extract_strided_slice %182 {offsets = [0, 64], sizes = [16, 32], strides = [1, 1]} : vector<16x96xf32> to vector<16x32xf32>
    %201 = vector.extract_strided_slice %183 {offsets = [0, 64], sizes = [16, 32], strides = [1, 1]} : vector<16x96xf32> to vector<16x32xf32>
    %202 = vector.broadcast %13 : vector<1x32xf32> to vector<16x32xf32>
    %203 = arith.addf %201, %202 : vector<16x32xf32>
    %204 = arith.mulf %191, %203 : vector<16x32xf32>
    %205 = arith.addf %200, %204 : vector<16x32xf32>
    %206 = math.tanh %205 : vector<16x32xf32>
    %cst_39 = arith.constant 1.000000e+00 : f32
    %207 = vector.broadcast %cst_39 : f32 to vector<16x32xf32>
    %208 = arith.subf %207, %199 : vector<16x32xf32>
    %209 = arith.mulf %208, %206 : vector<16x32xf32>
    %210 = arith.mulf %199, %178 : vector<16x32xf32>
    %211 = arith.addf %209, %210 : vector<16x32xf32>
    %212 = vector.shape_cast %211 : vector<16x32xf32> to vector<2x1x8x32xf32>
    %213 = vector.extract_strided_slice %9 {offsets = [0, 6, 0, 0], sizes = [2, 1, 8, 96], strides = [1, 1, 1, 1]} : vector<2x8x8x96xf32> to vector<2x1x8x96xf32>
    %214 = vector.shape_cast %213 : vector<2x1x8x96xf32> to vector<2x8x96xf32>
    %215 = vector.shape_cast %214 : vector<2x8x96xf32> to vector<16x96xf32>
    %cst_40 = arith.constant dense<0.000000e+00> : vector<16x96xf32>
    %216 = tpu.matmul %211, %11, %cst_40 {dimension_numbers = #tpu.dot_dimension_numbers<[1], [0], [0], [1], [0, 0, 1, 1], [], []>} : vector<16x32xf32>, vector<32x96xf32>, vector<16x96xf32> -> vector<16x96xf32>
    %217 = vector.extract_strided_slice %215 {offsets = [0, 0], sizes = [16, 32], strides = [1, 1]} : vector<16x96xf32> to vector<16x32xf32>
    %218 = vector.extract_strided_slice %216 {offsets = [0, 0], sizes = [16, 32], strides = [1, 1]} : vector<16x96xf32> to vector<16x32xf32>
    %219 = arith.addf %217, %218 : vector<16x32xf32>
    %220 = arith.negf %219 : vector<16x32xf32>
    %221 = math.exp %220 : vector<16x32xf32>
    %cst_41 = arith.constant 1.000000e+00 : f32
    %222 = vector.broadcast %cst_41 : f32 to vector<16x32xf32>
    %223 = arith.addf %222, %221 : vector<16x32xf32>
    %224 = arith.divf %222, %223 : vector<16x32xf32>
    %225 = vector.extract_strided_slice %215 {offsets = [0, 32], sizes = [16, 32], strides = [1, 1]} : vector<16x96xf32> to vector<16x32xf32>
    %226 = vector.extract_strided_slice %216 {offsets = [0, 32], sizes = [16, 32], strides = [1, 1]} : vector<16x96xf32> to vector<16x32xf32>
    %227 = arith.addf %225, %226 : vector<16x32xf32>
    %228 = arith.negf %227 : vector<16x32xf32>
    %229 = math.exp %228 : vector<16x32xf32>
    %cst_42 = arith.constant 1.000000e+00 : f32
    %230 = vector.broadcast %cst_42 : f32 to vector<16x32xf32>
    %231 = arith.addf %230, %229 : vector<16x32xf32>
    %232 = arith.divf %230, %231 : vector<16x32xf32>
    %233 = vector.extract_strided_slice %215 {offsets = [0, 64], sizes = [16, 32], strides = [1, 1]} : vector<16x96xf32> to vector<16x32xf32>
    %234 = vector.extract_strided_slice %216 {offsets = [0, 64], sizes = [16, 32], strides = [1, 1]} : vector<16x96xf32> to vector<16x32xf32>
    %235 = vector.broadcast %13 : vector<1x32xf32> to vector<16x32xf32>
    %236 = arith.addf %234, %235 : vector<16x32xf32>
    %237 = arith.mulf %224, %236 : vector<16x32xf32>
    %238 = arith.addf %233, %237 : vector<16x32xf32>
    %239 = math.tanh %238 : vector<16x32xf32>
    %cst_43 = arith.constant 1.000000e+00 : f32
    %240 = vector.broadcast %cst_43 : f32 to vector<16x32xf32>
    %241 = arith.subf %240, %232 : vector<16x32xf32>
    %242 = arith.mulf %241, %239 : vector<16x32xf32>
    %243 = arith.mulf %232, %211 : vector<16x32xf32>
    %244 = arith.addf %242, %243 : vector<16x32xf32>
    %245 = vector.shape_cast %244 : vector<16x32xf32> to vector<2x1x8x32xf32>
    %246 = vector.extract_strided_slice %9 {offsets = [0, 7, 0, 0], sizes = [2, 1, 8, 96], strides = [1, 1, 1, 1]} : vector<2x8x8x96xf32> to vector<2x1x8x96xf32>
    %247 = vector.shape_cast %246 : vector<2x1x8x96xf32> to vector<2x8x96xf32>
    %248 = vector.shape_cast %247 : vector<2x8x96xf32> to vector<16x96xf32>
    %cst_44 = arith.constant dense<0.000000e+00> : vector<16x96xf32>
    %249 = tpu.matmul %244, %11, %cst_44 {dimension_numbers = #tpu.dot_dimension_numbers<[1], [0], [0], [1], [0, 0, 1, 1], [], []>} : vector<16x32xf32>, vector<32x96xf32>, vector<16x96xf32> -> vector<16x96xf32>
    %250 = vector.extract_strided_slice %248 {offsets = [0, 0], sizes = [16, 32], strides = [1, 1]} : vector<16x96xf32> to vector<16x32xf32>
    %251 = vector.extract_strided_slice %249 {offsets = [0, 0], sizes = [16, 32], strides = [1, 1]} : vector<16x96xf32> to vector<16x32xf32>
    %252 = arith.addf %250, %251 : vector<16x32xf32>
    %253 = arith.negf %252 : vector<16x32xf32>
    %254 = math.exp %253 : vector<16x32xf32>
    %cst_45 = arith.constant 1.000000e+00 : f32
    %255 = vector.broadcast %cst_45 : f32 to vector<16x32xf32>
    %256 = arith.addf %255, %254 : vector<16x32xf32>
    %257 = arith.divf %255, %256 : vector<16x32xf32>
    %258 = vector.extract_strided_slice %248 {offsets = [0, 32], sizes = [16, 32], strides = [1, 1]} : vector<16x96xf32> to vector<16x32xf32>
    %259 = vector.extract_strided_slice %249 {offsets = [0, 32], sizes = [16, 32], strides = [1, 1]} : vector<16x96xf32> to vector<16x32xf32>
    %260 = arith.addf %258, %259 : vector<16x32xf32>
    %261 = arith.negf %260 : vector<16x32xf32>
    %262 = math.exp %261 : vector<16x32xf32>
    %cst_46 = arith.constant 1.000000e+00 : f32
    %263 = vector.broadcast %cst_46 : f32 to vector<16x32xf32>
    %264 = arith.addf %263, %262 : vector<16x32xf32>
    %265 = arith.divf %263, %264 : vector<16x32xf32>
    %266 = vector.extract_strided_slice %248 {offsets = [0, 64], sizes = [16, 32], strides = [1, 1]} : vector<16x96xf32> to vector<16x32xf32>
    %267 = vector.extract_strided_slice %249 {offsets = [0, 64], sizes = [16, 32], strides = [1, 1]} : vector<16x96xf32> to vector<16x32xf32>
    %268 = vector.broadcast %13 : vector<1x32xf32> to vector<16x32xf32>
    %269 = arith.addf %267, %268 : vector<16x32xf32>
    %270 = arith.mulf %257, %269 : vector<16x32xf32>
    %271 = arith.addf %266, %270 : vector<16x32xf32>
    %272 = math.tanh %271 : vector<16x32xf32>
    %cst_47 = arith.constant 1.000000e+00 : f32
    %273 = vector.broadcast %cst_47 : f32 to vector<16x32xf32>
    %274 = arith.subf %273, %265 : vector<16x32xf32>
    %275 = arith.mulf %274, %272 : vector<16x32xf32>
    %276 = arith.mulf %265, %244 : vector<16x32xf32>
    %277 = arith.addf %275, %276 : vector<16x32xf32>
    %278 = vector.shape_cast %277 : vector<16x32xf32> to vector<2x1x8x32xf32>
    %279 = tpu.concatenate %47, %80, %113, %146, %179, %212, %245, %278 in 1 : vector<2x1x8x32xf32>, vector<2x1x8x32xf32>, vector<2x1x8x32xf32>, vector<2x1x8x32xf32>, vector<2x1x8x32xf32>, vector<2x1x8x32xf32>, vector<2x1x8x32xf32>, vector<2x1x8x32xf32> -> vector<2x8x8x32xf32>
    %280 = vector.shape_cast %279 : vector<2x8x8x32xf32> to vector<128x32xf32>
    %c0_48 = arith.constant 0 : index
    %c0_49 = arith.constant 0 : index
    %c0_50 = arith.constant 0 : index
    %281 = vector.load %arg6[%c0_48, %c0_49, %c0_50] : memref<3x32x32xf32, #tpu.memory_space<vmem>>, vector<1x32x32xf32>
    %282 = vector.shape_cast %281 : vector<1x32x32xf32> to vector<32x32xf32>
    %cst_51 = arith.constant dense<0.000000e+00> : vector<128x32xf32>
    %283 = tpu.matmul %280, %282, %cst_51 {dimension_numbers = #tpu.dot_dimension_numbers<[1], [0], [0], [1], [0, 0, 1, 1], [], []>} : vector<128x32xf32>, vector<32x32xf32>, vector<128x32xf32> -> vector<128x32xf32>
    %284 = vector.shape_cast %283 : vector<128x32xf32> to vector<2x8x8x32xf32>
    %c0_52 = arith.constant 0 : index
    %c0_53 = arith.constant 0 : index
    %c0_54 = arith.constant 0 : index
    %285 = vector.load %arg1[%c0_52, %c0_53, %c0_54] : memref<8x16x32xf32, #tpu.memory_space<vmem>>, vector<8x16x32xf32>
    %286 = vector.shape_cast %285 : vector<8x16x32xf32> to vector<128x32xf32>
    %c1 = arith.constant 1 : index
    %c0_55 = arith.constant 0 : index
    %c0_56 = arith.constant 0 : index
    %287 = vector.load %arg2[%c1, %c0_55, %c0_56] : memref<3x32x96xf32, #tpu.memory_space<vmem>>, vector<1x32x96xf32>
    %288 = vector.shape_cast %287 : vector<1x32x96xf32> to vector<32x96xf32>
    %cst_57 = arith.constant dense<0.000000e+00> : vector<128x96xf32>
    %289 = tpu.matmul %286, %288, %cst_57 {dimension_numbers = #tpu.dot_dimension_numbers<[1], [0], [0], [1], [0, 0, 1, 1], [], []>} : vector<128x32xf32>, vector<32x96xf32>, vector<128x96xf32> -> vector<128x96xf32>
    %c1_58 = arith.constant 1 : index
    %c0_59 = arith.constant 0 : index
    %c0_60 = arith.constant 0 : index
    %290 = vector.load %arg4[%c1_58, %c0_59, %c0_60] : memref<3x1x96xf32, #tpu.memory_space<vmem>>, vector<1x1x96xf32>
    %291 = vector.shape_cast %290 : vector<1x1x96xf32> to vector<1x96xf32>
    %292 = vector.broadcast %291 : vector<1x96xf32> to vector<128x96xf32>
    %293 = arith.addf %289, %292 : vector<128x96xf32>
    %294 = vector.shape_cast %293 : vector<128x96xf32> to vector<8x16x96xf32>
    %c2 = arith.constant 2 : index
    %c0_61 = arith.constant 0 : index
    %c0_62 = arith.constant 0 : index
    %295 = vector.load %arg2[%c2, %c0_61, %c0_62] : memref<3x32x96xf32, #tpu.memory_space<vmem>>, vector<1x32x96xf32>
    %296 = vector.shape_cast %295 : vector<1x32x96xf32> to vector<32x96xf32>
    %cst_63 = arith.constant dense<0.000000e+00> : vector<128x96xf32>
    %297 = tpu.matmul %286, %296, %cst_63 {dimension_numbers = #tpu.dot_dimension_numbers<[1], [0], [0], [1], [0, 0, 1, 1], [], []>} : vector<128x32xf32>, vector<32x96xf32>, vector<128x96xf32> -> vector<128x96xf32>
    %c2_64 = arith.constant 2 : index
    %c0_65 = arith.constant 0 : index
    %c0_66 = arith.constant 0 : index
    %298 = vector.load %arg4[%c2_64, %c0_65, %c0_66] : memref<3x1x96xf32, #tpu.memory_space<vmem>>, vector<1x1x96xf32>
    %299 = vector.shape_cast %298 : vector<1x1x96xf32> to vector<1x96xf32>
    %300 = vector.broadcast %299 : vector<1x96xf32> to vector<128x96xf32>
    %301 = arith.addf %297, %300 : vector<128x96xf32>
    %302 = vector.shape_cast %301 : vector<128x96xf32> to vector<8x16x96xf32>
    %c1_67 = arith.constant 1 : index
    %c0_68 = arith.constant 0 : index
    %c0_69 = arith.constant 0 : index
    %303 = vector.load %arg3[%c1_67, %c0_68, %c0_69] : memref<3x32x96xf32, #tpu.memory_space<vmem>>, vector<1x32x96xf32>
    %304 = vector.shape_cast %303 : vector<1x32x96xf32> to vector<32x96xf32>
    %c1_70 = arith.constant 1 : index
    %c0_71 = arith.constant 0 : index
    %c0_72 = arith.constant 0 : index
    %305 = vector.load %arg5[%c1_70, %c0_71, %c0_72] : memref<3x1x32xf32, #tpu.memory_space<vmem>>, vector<1x1x32xf32>
    %306 = vector.shape_cast %305 : vector<1x1x32xf32> to vector<1x32xf32>
    %c2_73 = arith.constant 2 : index
    %c0_74 = arith.constant 0 : index
    %c0_75 = arith.constant 0 : index
    %307 = vector.load %arg3[%c2_73, %c0_74, %c0_75] : memref<3x32x96xf32, #tpu.memory_space<vmem>>, vector<1x32x96xf32>
    %308 = vector.shape_cast %307 : vector<1x32x96xf32> to vector<32x96xf32>
    %c2_76 = arith.constant 2 : index
    %c0_77 = arith.constant 0 : index
    %c0_78 = arith.constant 0 : index
    %309 = vector.load %arg5[%c2_76, %c0_77, %c0_78] : memref<3x1x32xf32, #tpu.memory_space<vmem>>, vector<1x1x32xf32>
    %310 = vector.shape_cast %309 : vector<1x1x32xf32> to vector<1x32xf32>
    %cst_79 = arith.constant 0.000000e+00 : f32
    %311 = vector.broadcast %cst_79 : f32 to vector<16x32xf32>
    %cst_80 = arith.constant 0.000000e+00 : f32
    %312 = vector.broadcast %cst_80 : f32 to vector<16x32xf32>
    %313 = vector.extract_strided_slice %294 {offsets = [0, 0, 0], sizes = [1, 16, 96], strides = [1, 1, 1]} : vector<8x16x96xf32> to vector<1x16x96xf32>
    %314 = vector.shape_cast %313 : vector<1x16x96xf32> to vector<16x96xf32>
    %cst_81 = arith.constant dense<0.000000e+00> : vector<16x96xf32>
    %315 = tpu.matmul %311, %304, %cst_81 {dimension_numbers = #tpu.dot_dimension_numbers<[1], [0], [0], [1], [0, 0, 1, 1], [], []>} : vector<16x32xf32>, vector<32x96xf32>, vector<16x96xf32> -> vector<16x96xf32>
    %316 = vector.extract_strided_slice %314 {offsets = [0, 0], sizes = [16, 32], strides = [1, 1]} : vector<16x96xf32> to vector<16x32xf32>
    %317 = vector.extract_strided_slice %315 {offsets = [0, 0], sizes = [16, 32], strides = [1, 1]} : vector<16x96xf32> to vector<16x32xf32>
    %318 = arith.addf %316, %317 : vector<16x32xf32>
    %319 = arith.negf %318 : vector<16x32xf32>
    %320 = math.exp %319 : vector<16x32xf32>
    %cst_82 = arith.constant 1.000000e+00 : f32
    %321 = vector.broadcast %cst_82 : f32 to vector<16x32xf32>
    %322 = arith.addf %321, %320 : vector<16x32xf32>
    %323 = arith.divf %321, %322 : vector<16x32xf32>
    %324 = vector.extract_strided_slice %314 {offsets = [0, 32], sizes = [16, 32], strides = [1, 1]} : vector<16x96xf32> to vector<16x32xf32>
    %325 = vector.extract_strided_slice %315 {offsets = [0, 32], sizes = [16, 32], strides = [1, 1]} : vector<16x96xf32> to vector<16x32xf32>
    %326 = arith.addf %324, %325 : vector<16x32xf32>
    %327 = arith.negf %326 : vector<16x32xf32>
    %328 = math.exp %327 : vector<16x32xf32>
    %cst_83 = arith.constant 1.000000e+00 : f32
    %329 = vector.broadcast %cst_83 : f32 to vector<16x32xf32>
    %330 = arith.addf %329, %328 : vector<16x32xf32>
    %331 = arith.divf %329, %330 : vector<16x32xf32>
    %332 = vector.extract_strided_slice %314 {offsets = [0, 64], sizes = [16, 32], strides = [1, 1]} : vector<16x96xf32> to vector<16x32xf32>
    %333 = vector.extract_strided_slice %315 {offsets = [0, 64], sizes = [16, 32], strides = [1, 1]} : vector<16x96xf32> to vector<16x32xf32>
    %334 = vector.broadcast %306 : vector<1x32xf32> to vector<16x32xf32>
    %335 = arith.addf %333, %334 : vector<16x32xf32>
    %336 = arith.mulf %323, %335 : vector<16x32xf32>
    %337 = arith.addf %332, %336 : vector<16x32xf32>
    %338 = math.tanh %337 : vector<16x32xf32>
    %cst_84 = arith.constant 1.000000e+00 : f32
    %339 = vector.broadcast %cst_84 : f32 to vector<16x32xf32>
    %340 = arith.subf %339, %331 : vector<16x32xf32>
    %341 = arith.mulf %340, %338 : vector<16x32xf32>
    %342 = arith.mulf %331, %311 : vector<16x32xf32>
    %343 = arith.addf %341, %342 : vector<16x32xf32>
    %344 = vector.extract_strided_slice %302 {offsets = [7, 0, 0], sizes = [1, 16, 96], strides = [1, 1, 1]} : vector<8x16x96xf32> to vector<1x16x96xf32>
    %345 = vector.shape_cast %344 : vector<1x16x96xf32> to vector<16x96xf32>
    %cst_85 = arith.constant dense<0.000000e+00> : vector<16x96xf32>
    %346 = tpu.matmul %312, %308, %cst_85 {dimension_numbers = #tpu.dot_dimension_numbers<[1], [0], [0], [1], [0, 0, 1, 1], [], []>} : vector<16x32xf32>, vector<32x96xf32>, vector<16x96xf32> -> vector<16x96xf32>
    %347 = vector.extract_strided_slice %345 {offsets = [0, 0], sizes = [16, 32], strides = [1, 1]} : vector<16x96xf32> to vector<16x32xf32>
    %348 = vector.extract_strided_slice %346 {offsets = [0, 0], sizes = [16, 32], strides = [1, 1]} : vector<16x96xf32> to vector<16x32xf32>
    %349 = arith.addf %347, %348 : vector<16x32xf32>
    %350 = arith.negf %349 : vector<16x32xf32>
    %351 = math.exp %350 : vector<16x32xf32>
    %cst_86 = arith.constant 1.000000e+00 : f32
    %352 = vector.broadcast %cst_86 : f32 to vector<16x32xf32>
    %353 = arith.addf %352, %351 : vector<16x32xf32>
    %354 = arith.divf %352, %353 : vector<16x32xf32>
    %355 = vector.extract_strided_slice %345 {offsets = [0, 32], sizes = [16, 32], strides = [1, 1]} : vector<16x96xf32> to vector<16x32xf32>
    %356 = vector.extract_strided_slice %346 {offsets = [0, 32], sizes = [16, 32], strides = [1, 1]} : vector<16x96xf32> to vector<16x32xf32>
    %357 = arith.addf %355, %356 : vector<16x32xf32>
    %358 = arith.negf %357 : vector<16x32xf32>
    %359 = math.exp %358 : vector<16x32xf32>
    %cst_87 = arith.constant 1.000000e+00 : f32
    %360 = vector.broadcast %cst_87 : f32 to vector<16x32xf32>
    %361 = arith.addf %360, %359 : vector<16x32xf32>
    %362 = arith.divf %360, %361 : vector<16x32xf32>
    %363 = vector.extract_strided_slice %345 {offsets = [0, 64], sizes = [16, 32], strides = [1, 1]} : vector<16x96xf32> to vector<16x32xf32>
    %364 = vector.extract_strided_slice %346 {offsets = [0, 64], sizes = [16, 32], strides = [1, 1]} : vector<16x96xf32> to vector<16x32xf32>
    %365 = vector.broadcast %310 : vector<1x32xf32> to vector<16x32xf32>
    %366 = arith.addf %364, %365 : vector<16x32xf32>
    %367 = arith.mulf %354, %366 : vector<16x32xf32>
    %368 = arith.addf %363, %367 : vector<16x32xf32>
    %369 = math.tanh %368 : vector<16x32xf32>
    %cst_88 = arith.constant 1.000000e+00 : f32
    %370 = vector.broadcast %cst_88 : f32 to vector<16x32xf32>
    %371 = arith.subf %370, %362 : vector<16x32xf32>
    %372 = arith.mulf %371, %369 : vector<16x32xf32>
    %373 = arith.mulf %362, %312 : vector<16x32xf32>
    %374 = arith.addf %372, %373 : vector<16x32xf32>
    %375 = vector.extract_strided_slice %294 {offsets = [1, 0, 0], sizes = [1, 16, 96], strides = [1, 1, 1]} : vector<8x16x96xf32> to vector<1x16x96xf32>
    %376 = vector.shape_cast %375 : vector<1x16x96xf32> to vector<16x96xf32>
    %cst_89 = arith.constant dense<0.000000e+00> : vector<16x96xf32>
    %377 = tpu.matmul %343, %304, %cst_89 {dimension_numbers = #tpu.dot_dimension_numbers<[1], [0], [0], [1], [0, 0, 1, 1], [], []>} : vector<16x32xf32>, vector<32x96xf32>, vector<16x96xf32> -> vector<16x96xf32>
    %378 = vector.extract_strided_slice %376 {offsets = [0, 0], sizes = [16, 32], strides = [1, 1]} : vector<16x96xf32> to vector<16x32xf32>
    %379 = vector.extract_strided_slice %377 {offsets = [0, 0], sizes = [16, 32], strides = [1, 1]} : vector<16x96xf32> to vector<16x32xf32>
    %380 = arith.addf %378, %379 : vector<16x32xf32>
    %381 = arith.negf %380 : vector<16x32xf32>
    %382 = math.exp %381 : vector<16x32xf32>
    %cst_90 = arith.constant 1.000000e+00 : f32
    %383 = vector.broadcast %cst_90 : f32 to vector<16x32xf32>
    %384 = arith.addf %383, %382 : vector<16x32xf32>
    %385 = arith.divf %383, %384 : vector<16x32xf32>
    %386 = vector.extract_strided_slice %376 {offsets = [0, 32], sizes = [16, 32], strides = [1, 1]} : vector<16x96xf32> to vector<16x32xf32>
    %387 = vector.extract_strided_slice %377 {offsets = [0, 32], sizes = [16, 32], strides = [1, 1]} : vector<16x96xf32> to vector<16x32xf32>
    %388 = arith.addf %386, %387 : vector<16x32xf32>
    %389 = arith.negf %388 : vector<16x32xf32>
    %390 = math.exp %389 : vector<16x32xf32>
    %cst_91 = arith.constant 1.000000e+00 : f32
    %391 = vector.broadcast %cst_91 : f32 to vector<16x32xf32>
    %392 = arith.addf %391, %390 : vector<16x32xf32>
    %393 = arith.divf %391, %392 : vector<16x32xf32>
    %394 = vector.extract_strided_slice %376 {offsets = [0, 64], sizes = [16, 32], strides = [1, 1]} : vector<16x96xf32> to vector<16x32xf32>
    %395 = vector.extract_strided_slice %377 {offsets = [0, 64], sizes = [16, 32], strides = [1, 1]} : vector<16x96xf32> to vector<16x32xf32>
    %396 = vector.broadcast %306 : vector<1x32xf32> to vector<16x32xf32>
    %397 = arith.addf %395, %396 : vector<16x32xf32>
    %398 = arith.mulf %385, %397 : vector<16x32xf32>
    %399 = arith.addf %394, %398 : vector<16x32xf32>
    %400 = math.tanh %399 : vector<16x32xf32>
    %cst_92 = arith.constant 1.000000e+00 : f32
    %401 = vector.broadcast %cst_92 : f32 to vector<16x32xf32>
    %402 = arith.subf %401, %393 : vector<16x32xf32>
    %403 = arith.mulf %402, %400 : vector<16x32xf32>
    %404 = arith.mulf %393, %343 : vector<16x32xf32>
    %405 = arith.addf %403, %404 : vector<16x32xf32>
    %406 = vector.extract_strided_slice %302 {offsets = [6, 0, 0], sizes = [1, 16, 96], strides = [1, 1, 1]} : vector<8x16x96xf32> to vector<1x16x96xf32>
    %407 = vector.shape_cast %406 : vector<1x16x96xf32> to vector<16x96xf32>
    %cst_93 = arith.constant dense<0.000000e+00> : vector<16x96xf32>
    %408 = tpu.matmul %374, %308, %cst_93 {dimension_numbers = #tpu.dot_dimension_numbers<[1], [0], [0], [1], [0, 0, 1, 1], [], []>} : vector<16x32xf32>, vector<32x96xf32>, vector<16x96xf32> -> vector<16x96xf32>
    %409 = vector.extract_strided_slice %407 {offsets = [0, 0], sizes = [16, 32], strides = [1, 1]} : vector<16x96xf32> to vector<16x32xf32>
    %410 = vector.extract_strided_slice %408 {offsets = [0, 0], sizes = [16, 32], strides = [1, 1]} : vector<16x96xf32> to vector<16x32xf32>
    %411 = arith.addf %409, %410 : vector<16x32xf32>
    %412 = arith.negf %411 : vector<16x32xf32>
    %413 = math.exp %412 : vector<16x32xf32>
    %cst_94 = arith.constant 1.000000e+00 : f32
    %414 = vector.broadcast %cst_94 : f32 to vector<16x32xf32>
    %415 = arith.addf %414, %413 : vector<16x32xf32>
    %416 = arith.divf %414, %415 : vector<16x32xf32>
    %417 = vector.extract_strided_slice %407 {offsets = [0, 32], sizes = [16, 32], strides = [1, 1]} : vector<16x96xf32> to vector<16x32xf32>
    %418 = vector.extract_strided_slice %408 {offsets = [0, 32], sizes = [16, 32], strides = [1, 1]} : vector<16x96xf32> to vector<16x32xf32>
    %419 = arith.addf %417, %418 : vector<16x32xf32>
    %420 = arith.negf %419 : vector<16x32xf32>
    %421 = math.exp %420 : vector<16x32xf32>
    %cst_95 = arith.constant 1.000000e+00 : f32
    %422 = vector.broadcast %cst_95 : f32 to vector<16x32xf32>
    %423 = arith.addf %422, %421 : vector<16x32xf32>
    %424 = arith.divf %422, %423 : vector<16x32xf32>
    %425 = vector.extract_strided_slice %407 {offsets = [0, 64], sizes = [16, 32], strides = [1, 1]} : vector<16x96xf32> to vector<16x32xf32>
    %426 = vector.extract_strided_slice %408 {offsets = [0, 64], sizes = [16, 32], strides = [1, 1]} : vector<16x96xf32> to vector<16x32xf32>
    %427 = vector.broadcast %310 : vector<1x32xf32> to vector<16x32xf32>
    %428 = arith.addf %426, %427 : vector<16x32xf32>
    %429 = arith.mulf %416, %428 : vector<16x32xf32>
    %430 = arith.addf %425, %429 : vector<16x32xf32>
    %431 = math.tanh %430 : vector<16x32xf32>
    %cst_96 = arith.constant 1.000000e+00 : f32
    %432 = vector.broadcast %cst_96 : f32 to vector<16x32xf32>
    %433 = arith.subf %432, %424 : vector<16x32xf32>
    %434 = arith.mulf %433, %431 : vector<16x32xf32>
    %435 = arith.mulf %424, %374 : vector<16x32xf32>
    %436 = arith.addf %434, %435 : vector<16x32xf32>
    %437 = vector.extract_strided_slice %294 {offsets = [2, 0, 0], sizes = [1, 16, 96], strides = [1, 1, 1]} : vector<8x16x96xf32> to vector<1x16x96xf32>
    %438 = vector.shape_cast %437 : vector<1x16x96xf32> to vector<16x96xf32>
    %cst_97 = arith.constant dense<0.000000e+00> : vector<16x96xf32>
    %439 = tpu.matmul %405, %304, %cst_97 {dimension_numbers = #tpu.dot_dimension_numbers<[1], [0], [0], [1], [0, 0, 1, 1], [], []>} : vector<16x32xf32>, vector<32x96xf32>, vector<16x96xf32> -> vector<16x96xf32>
    %440 = vector.extract_strided_slice %438 {offsets = [0, 0], sizes = [16, 32], strides = [1, 1]} : vector<16x96xf32> to vector<16x32xf32>
    %441 = vector.extract_strided_slice %439 {offsets = [0, 0], sizes = [16, 32], strides = [1, 1]} : vector<16x96xf32> to vector<16x32xf32>
    %442 = arith.addf %440, %441 : vector<16x32xf32>
    %443 = arith.negf %442 : vector<16x32xf32>
    %444 = math.exp %443 : vector<16x32xf32>
    %cst_98 = arith.constant 1.000000e+00 : f32
    %445 = vector.broadcast %cst_98 : f32 to vector<16x32xf32>
    %446 = arith.addf %445, %444 : vector<16x32xf32>
    %447 = arith.divf %445, %446 : vector<16x32xf32>
    %448 = vector.extract_strided_slice %438 {offsets = [0, 32], sizes = [16, 32], strides = [1, 1]} : vector<16x96xf32> to vector<16x32xf32>
    %449 = vector.extract_strided_slice %439 {offsets = [0, 32], sizes = [16, 32], strides = [1, 1]} : vector<16x96xf32> to vector<16x32xf32>
    %450 = arith.addf %448, %449 : vector<16x32xf32>
    %451 = arith.negf %450 : vector<16x32xf32>
    %452 = math.exp %451 : vector<16x32xf32>
    %cst_99 = arith.constant 1.000000e+00 : f32
    %453 = vector.broadcast %cst_99 : f32 to vector<16x32xf32>
    %454 = arith.addf %453, %452 : vector<16x32xf32>
    %455 = arith.divf %453, %454 : vector<16x32xf32>
    %456 = vector.extract_strided_slice %438 {offsets = [0, 64], sizes = [16, 32], strides = [1, 1]} : vector<16x96xf32> to vector<16x32xf32>
    %457 = vector.extract_strided_slice %439 {offsets = [0, 64], sizes = [16, 32], strides = [1, 1]} : vector<16x96xf32> to vector<16x32xf32>
    %458 = vector.broadcast %306 : vector<1x32xf32> to vector<16x32xf32>
    %459 = arith.addf %457, %458 : vector<16x32xf32>
    %460 = arith.mulf %447, %459 : vector<16x32xf32>
    %461 = arith.addf %456, %460 : vector<16x32xf32>
    %462 = math.tanh %461 : vector<16x32xf32>
    %cst_100 = arith.constant 1.000000e+00 : f32
    %463 = vector.broadcast %cst_100 : f32 to vector<16x32xf32>
    %464 = arith.subf %463, %455 : vector<16x32xf32>
    %465 = arith.mulf %464, %462 : vector<16x32xf32>
    %466 = arith.mulf %455, %405 : vector<16x32xf32>
    %467 = arith.addf %465, %466 : vector<16x32xf32>
    %468 = vector.extract_strided_slice %302 {offsets = [5, 0, 0], sizes = [1, 16, 96], strides = [1, 1, 1]} : vector<8x16x96xf32> to vector<1x16x96xf32>
    %469 = vector.shape_cast %468 : vector<1x16x96xf32> to vector<16x96xf32>
    %cst_101 = arith.constant dense<0.000000e+00> : vector<16x96xf32>
    %470 = tpu.matmul %436, %308, %cst_101 {dimension_numbers = #tpu.dot_dimension_numbers<[1], [0], [0], [1], [0, 0, 1, 1], [], []>} : vector<16x32xf32>, vector<32x96xf32>, vector<16x96xf32> -> vector<16x96xf32>
    %471 = vector.extract_strided_slice %469 {offsets = [0, 0], sizes = [16, 32], strides = [1, 1]} : vector<16x96xf32> to vector<16x32xf32>
    %472 = vector.extract_strided_slice %470 {offsets = [0, 0], sizes = [16, 32], strides = [1, 1]} : vector<16x96xf32> to vector<16x32xf32>
    %473 = arith.addf %471, %472 : vector<16x32xf32>
    %474 = arith.negf %473 : vector<16x32xf32>
    %475 = math.exp %474 : vector<16x32xf32>
    %cst_102 = arith.constant 1.000000e+00 : f32
    %476 = vector.broadcast %cst_102 : f32 to vector<16x32xf32>
    %477 = arith.addf %476, %475 : vector<16x32xf32>
    %478 = arith.divf %476, %477 : vector<16x32xf32>
    %479 = vector.extract_strided_slice %469 {offsets = [0, 32], sizes = [16, 32], strides = [1, 1]} : vector<16x96xf32> to vector<16x32xf32>
    %480 = vector.extract_strided_slice %470 {offsets = [0, 32], sizes = [16, 32], strides = [1, 1]} : vector<16x96xf32> to vector<16x32xf32>
    %481 = arith.addf %479, %480 : vector<16x32xf32>
    %482 = arith.negf %481 : vector<16x32xf32>
    %483 = math.exp %482 : vector<16x32xf32>
    %cst_103 = arith.constant 1.000000e+00 : f32
    %484 = vector.broadcast %cst_103 : f32 to vector<16x32xf32>
    %485 = arith.addf %484, %483 : vector<16x32xf32>
    %486 = arith.divf %484, %485 : vector<16x32xf32>
    %487 = vector.extract_strided_slice %469 {offsets = [0, 64], sizes = [16, 32], strides = [1, 1]} : vector<16x96xf32> to vector<16x32xf32>
    %488 = vector.extract_strided_slice %470 {offsets = [0, 64], sizes = [16, 32], strides = [1, 1]} : vector<16x96xf32> to vector<16x32xf32>
    %489 = vector.broadcast %310 : vector<1x32xf32> to vector<16x32xf32>
    %490 = arith.addf %488, %489 : vector<16x32xf32>
    %491 = arith.mulf %478, %490 : vector<16x32xf32>
    %492 = arith.addf %487, %491 : vector<16x32xf32>
    %493 = math.tanh %492 : vector<16x32xf32>
    %cst_104 = arith.constant 1.000000e+00 : f32
    %494 = vector.broadcast %cst_104 : f32 to vector<16x32xf32>
    %495 = arith.subf %494, %486 : vector<16x32xf32>
    %496 = arith.mulf %495, %493 : vector<16x32xf32>
    %497 = arith.mulf %486, %436 : vector<16x32xf32>
    %498 = arith.addf %496, %497 : vector<16x32xf32>
    %499 = vector.extract_strided_slice %294 {offsets = [3, 0, 0], sizes = [1, 16, 96], strides = [1, 1, 1]} : vector<8x16x96xf32> to vector<1x16x96xf32>
    %500 = vector.shape_cast %499 : vector<1x16x96xf32> to vector<16x96xf32>
    %cst_105 = arith.constant dense<0.000000e+00> : vector<16x96xf32>
    %501 = tpu.matmul %467, %304, %cst_105 {dimension_numbers = #tpu.dot_dimension_numbers<[1], [0], [0], [1], [0, 0, 1, 1], [], []>} : vector<16x32xf32>, vector<32x96xf32>, vector<16x96xf32> -> vector<16x96xf32>
    %502 = vector.extract_strided_slice %500 {offsets = [0, 0], sizes = [16, 32], strides = [1, 1]} : vector<16x96xf32> to vector<16x32xf32>
    %503 = vector.extract_strided_slice %501 {offsets = [0, 0], sizes = [16, 32], strides = [1, 1]} : vector<16x96xf32> to vector<16x32xf32>
    %504 = arith.addf %502, %503 : vector<16x32xf32>
    %505 = arith.negf %504 : vector<16x32xf32>
    %506 = math.exp %505 : vector<16x32xf32>
    %cst_106 = arith.constant 1.000000e+00 : f32
    %507 = vector.broadcast %cst_106 : f32 to vector<16x32xf32>
    %508 = arith.addf %507, %506 : vector<16x32xf32>
    %509 = arith.divf %507, %508 : vector<16x32xf32>
    %510 = vector.extract_strided_slice %500 {offsets = [0, 32], sizes = [16, 32], strides = [1, 1]} : vector<16x96xf32> to vector<16x32xf32>
    %511 = vector.extract_strided_slice %501 {offsets = [0, 32], sizes = [16, 32], strides = [1, 1]} : vector<16x96xf32> to vector<16x32xf32>
    %512 = arith.addf %510, %511 : vector<16x32xf32>
    %513 = arith.negf %512 : vector<16x32xf32>
    %514 = math.exp %513 : vector<16x32xf32>
    %cst_107 = arith.constant 1.000000e+00 : f32
    %515 = vector.broadcast %cst_107 : f32 to vector<16x32xf32>
    %516 = arith.addf %515, %514 : vector<16x32xf32>
    %517 = arith.divf %515, %516 : vector<16x32xf32>
    %518 = vector.extract_strided_slice %500 {offsets = [0, 64], sizes = [16, 32], strides = [1, 1]} : vector<16x96xf32> to vector<16x32xf32>
    %519 = vector.extract_strided_slice %501 {offsets = [0, 64], sizes = [16, 32], strides = [1, 1]} : vector<16x96xf32> to vector<16x32xf32>
    %520 = vector.broadcast %306 : vector<1x32xf32> to vector<16x32xf32>
    %521 = arith.addf %519, %520 : vector<16x32xf32>
    %522 = arith.mulf %509, %521 : vector<16x32xf32>
    %523 = arith.addf %518, %522 : vector<16x32xf32>
    %524 = math.tanh %523 : vector<16x32xf32>
    %cst_108 = arith.constant 1.000000e+00 : f32
    %525 = vector.broadcast %cst_108 : f32 to vector<16x32xf32>
    %526 = arith.subf %525, %517 : vector<16x32xf32>
    %527 = arith.mulf %526, %524 : vector<16x32xf32>
    %528 = arith.mulf %517, %467 : vector<16x32xf32>
    %529 = arith.addf %527, %528 : vector<16x32xf32>
    %530 = vector.extract_strided_slice %302 {offsets = [4, 0, 0], sizes = [1, 16, 96], strides = [1, 1, 1]} : vector<8x16x96xf32> to vector<1x16x96xf32>
    %531 = vector.shape_cast %530 : vector<1x16x96xf32> to vector<16x96xf32>
    %cst_109 = arith.constant dense<0.000000e+00> : vector<16x96xf32>
    %532 = tpu.matmul %498, %308, %cst_109 {dimension_numbers = #tpu.dot_dimension_numbers<[1], [0], [0], [1], [0, 0, 1, 1], [], []>} : vector<16x32xf32>, vector<32x96xf32>, vector<16x96xf32> -> vector<16x96xf32>
    %533 = vector.extract_strided_slice %531 {offsets = [0, 0], sizes = [16, 32], strides = [1, 1]} : vector<16x96xf32> to vector<16x32xf32>
    %534 = vector.extract_strided_slice %532 {offsets = [0, 0], sizes = [16, 32], strides = [1, 1]} : vector<16x96xf32> to vector<16x32xf32>
    %535 = arith.addf %533, %534 : vector<16x32xf32>
    %536 = arith.negf %535 : vector<16x32xf32>
    %537 = math.exp %536 : vector<16x32xf32>
    %cst_110 = arith.constant 1.000000e+00 : f32
    %538 = vector.broadcast %cst_110 : f32 to vector<16x32xf32>
    %539 = arith.addf %538, %537 : vector<16x32xf32>
    %540 = arith.divf %538, %539 : vector<16x32xf32>
    %541 = vector.extract_strided_slice %531 {offsets = [0, 32], sizes = [16, 32], strides = [1, 1]} : vector<16x96xf32> to vector<16x32xf32>
    %542 = vector.extract_strided_slice %532 {offsets = [0, 32], sizes = [16, 32], strides = [1, 1]} : vector<16x96xf32> to vector<16x32xf32>
    %543 = arith.addf %541, %542 : vector<16x32xf32>
    %544 = arith.negf %543 : vector<16x32xf32>
    %545 = math.exp %544 : vector<16x32xf32>
    %cst_111 = arith.constant 1.000000e+00 : f32
    %546 = vector.broadcast %cst_111 : f32 to vector<16x32xf32>
    %547 = arith.addf %546, %545 : vector<16x32xf32>
    %548 = arith.divf %546, %547 : vector<16x32xf32>
    %549 = vector.extract_strided_slice %531 {offsets = [0, 64], sizes = [16, 32], strides = [1, 1]} : vector<16x96xf32> to vector<16x32xf32>
    %550 = vector.extract_strided_slice %532 {offsets = [0, 64], sizes = [16, 32], strides = [1, 1]} : vector<16x96xf32> to vector<16x32xf32>
    %551 = vector.broadcast %310 : vector<1x32xf32> to vector<16x32xf32>
    %552 = arith.addf %550, %551 : vector<16x32xf32>
    %553 = arith.mulf %540, %552 : vector<16x32xf32>
    %554 = arith.addf %549, %553 : vector<16x32xf32>
    %555 = math.tanh %554 : vector<16x32xf32>
    %cst_112 = arith.constant 1.000000e+00 : f32
    %556 = vector.broadcast %cst_112 : f32 to vector<16x32xf32>
    %557 = arith.subf %556, %548 : vector<16x32xf32>
    %558 = arith.mulf %557, %555 : vector<16x32xf32>
    %559 = arith.mulf %548, %498 : vector<16x32xf32>
    %560 = arith.addf %558, %559 : vector<16x32xf32>
    %561 = vector.extract_strided_slice %294 {offsets = [4, 0, 0], sizes = [1, 16, 96], strides = [1, 1, 1]} : vector<8x16x96xf32> to vector<1x16x96xf32>
    %562 = vector.shape_cast %561 : vector<1x16x96xf32> to vector<16x96xf32>
    %cst_113 = arith.constant dense<0.000000e+00> : vector<16x96xf32>
    %563 = tpu.matmul %529, %304, %cst_113 {dimension_numbers = #tpu.dot_dimension_numbers<[1], [0], [0], [1], [0, 0, 1, 1], [], []>} : vector<16x32xf32>, vector<32x96xf32>, vector<16x96xf32> -> vector<16x96xf32>
    %564 = vector.extract_strided_slice %562 {offsets = [0, 0], sizes = [16, 32], strides = [1, 1]} : vector<16x96xf32> to vector<16x32xf32>
    %565 = vector.extract_strided_slice %563 {offsets = [0, 0], sizes = [16, 32], strides = [1, 1]} : vector<16x96xf32> to vector<16x32xf32>
    %566 = arith.addf %564, %565 : vector<16x32xf32>
    %567 = arith.negf %566 : vector<16x32xf32>
    %568 = math.exp %567 : vector<16x32xf32>
    %cst_114 = arith.constant 1.000000e+00 : f32
    %569 = vector.broadcast %cst_114 : f32 to vector<16x32xf32>
    %570 = arith.addf %569, %568 : vector<16x32xf32>
    %571 = arith.divf %569, %570 : vector<16x32xf32>
    %572 = vector.extract_strided_slice %562 {offsets = [0, 32], sizes = [16, 32], strides = [1, 1]} : vector<16x96xf32> to vector<16x32xf32>
    %573 = vector.extract_strided_slice %563 {offsets = [0, 32], sizes = [16, 32], strides = [1, 1]} : vector<16x96xf32> to vector<16x32xf32>
    %574 = arith.addf %572, %573 : vector<16x32xf32>
    %575 = arith.negf %574 : vector<16x32xf32>
    %576 = math.exp %575 : vector<16x32xf32>
    %cst_115 = arith.constant 1.000000e+00 : f32
    %577 = vector.broadcast %cst_115 : f32 to vector<16x32xf32>
    %578 = arith.addf %577, %576 : vector<16x32xf32>
    %579 = arith.divf %577, %578 : vector<16x32xf32>
    %580 = vector.extract_strided_slice %562 {offsets = [0, 64], sizes = [16, 32], strides = [1, 1]} : vector<16x96xf32> to vector<16x32xf32>
    %581 = vector.extract_strided_slice %563 {offsets = [0, 64], sizes = [16, 32], strides = [1, 1]} : vector<16x96xf32> to vector<16x32xf32>
    %582 = vector.broadcast %306 : vector<1x32xf32> to vector<16x32xf32>
    %583 = arith.addf %581, %582 : vector<16x32xf32>
    %584 = arith.mulf %571, %583 : vector<16x32xf32>
    %585 = arith.addf %580, %584 : vector<16x32xf32>
    %586 = math.tanh %585 : vector<16x32xf32>
    %cst_116 = arith.constant 1.000000e+00 : f32
    %587 = vector.broadcast %cst_116 : f32 to vector<16x32xf32>
    %588 = arith.subf %587, %579 : vector<16x32xf32>
    %589 = arith.mulf %588, %586 : vector<16x32xf32>
    %590 = arith.mulf %579, %529 : vector<16x32xf32>
    %591 = arith.addf %589, %590 : vector<16x32xf32>
    %592 = vector.extract_strided_slice %302 {offsets = [3, 0, 0], sizes = [1, 16, 96], strides = [1, 1, 1]} : vector<8x16x96xf32> to vector<1x16x96xf32>
    %593 = vector.shape_cast %592 : vector<1x16x96xf32> to vector<16x96xf32>
    %cst_117 = arith.constant dense<0.000000e+00> : vector<16x96xf32>
    %594 = tpu.matmul %560, %308, %cst_117 {dimension_numbers = #tpu.dot_dimension_numbers<[1], [0], [0], [1], [0, 0, 1, 1], [], []>} : vector<16x32xf32>, vector<32x96xf32>, vector<16x96xf32> -> vector<16x96xf32>
    %595 = vector.extract_strided_slice %593 {offsets = [0, 0], sizes = [16, 32], strides = [1, 1]} : vector<16x96xf32> to vector<16x32xf32>
    %596 = vector.extract_strided_slice %594 {offsets = [0, 0], sizes = [16, 32], strides = [1, 1]} : vector<16x96xf32> to vector<16x32xf32>
    %597 = arith.addf %595, %596 : vector<16x32xf32>
    %598 = arith.negf %597 : vector<16x32xf32>
    %599 = math.exp %598 : vector<16x32xf32>
    %cst_118 = arith.constant 1.000000e+00 : f32
    %600 = vector.broadcast %cst_118 : f32 to vector<16x32xf32>
    %601 = arith.addf %600, %599 : vector<16x32xf32>
    %602 = arith.divf %600, %601 : vector<16x32xf32>
    %603 = vector.extract_strided_slice %593 {offsets = [0, 32], sizes = [16, 32], strides = [1, 1]} : vector<16x96xf32> to vector<16x32xf32>
    %604 = vector.extract_strided_slice %594 {offsets = [0, 32], sizes = [16, 32], strides = [1, 1]} : vector<16x96xf32> to vector<16x32xf32>
    %605 = arith.addf %603, %604 : vector<16x32xf32>
    %606 = arith.negf %605 : vector<16x32xf32>
    %607 = math.exp %606 : vector<16x32xf32>
    %cst_119 = arith.constant 1.000000e+00 : f32
    %608 = vector.broadcast %cst_119 : f32 to vector<16x32xf32>
    %609 = arith.addf %608, %607 : vector<16x32xf32>
    %610 = arith.divf %608, %609 : vector<16x32xf32>
    %611 = vector.extract_strided_slice %593 {offsets = [0, 64], sizes = [16, 32], strides = [1, 1]} : vector<16x96xf32> to vector<16x32xf32>
    %612 = vector.extract_strided_slice %594 {offsets = [0, 64], sizes = [16, 32], strides = [1, 1]} : vector<16x96xf32> to vector<16x32xf32>
    %613 = vector.broadcast %310 : vector<1x32xf32> to vector<16x32xf32>
    %614 = arith.addf %612, %613 : vector<16x32xf32>
    %615 = arith.mulf %602, %614 : vector<16x32xf32>
    %616 = arith.addf %611, %615 : vector<16x32xf32>
    %617 = math.tanh %616 : vector<16x32xf32>
    %cst_120 = arith.constant 1.000000e+00 : f32
    %618 = vector.broadcast %cst_120 : f32 to vector<16x32xf32>
    %619 = arith.subf %618, %610 : vector<16x32xf32>
    %620 = arith.mulf %619, %617 : vector<16x32xf32>
    %621 = arith.mulf %610, %560 : vector<16x32xf32>
    %622 = arith.addf %620, %621 : vector<16x32xf32>
    %623 = vector.extract_strided_slice %294 {offsets = [5, 0, 0], sizes = [1, 16, 96], strides = [1, 1, 1]} : vector<8x16x96xf32> to vector<1x16x96xf32>
    %624 = vector.shape_cast %623 : vector<1x16x96xf32> to vector<16x96xf32>
    %cst_121 = arith.constant dense<0.000000e+00> : vector<16x96xf32>
    %625 = tpu.matmul %591, %304, %cst_121 {dimension_numbers = #tpu.dot_dimension_numbers<[1], [0], [0], [1], [0, 0, 1, 1], [], []>} : vector<16x32xf32>, vector<32x96xf32>, vector<16x96xf32> -> vector<16x96xf32>
    %626 = vector.extract_strided_slice %624 {offsets = [0, 0], sizes = [16, 32], strides = [1, 1]} : vector<16x96xf32> to vector<16x32xf32>
    %627 = vector.extract_strided_slice %625 {offsets = [0, 0], sizes = [16, 32], strides = [1, 1]} : vector<16x96xf32> to vector<16x32xf32>
    %628 = arith.addf %626, %627 : vector<16x32xf32>
    %629 = arith.negf %628 : vector<16x32xf32>
    %630 = math.exp %629 : vector<16x32xf32>
    %cst_122 = arith.constant 1.000000e+00 : f32
    %631 = vector.broadcast %cst_122 : f32 to vector<16x32xf32>
    %632 = arith.addf %631, %630 : vector<16x32xf32>
    %633 = arith.divf %631, %632 : vector<16x32xf32>
    %634 = vector.extract_strided_slice %624 {offsets = [0, 32], sizes = [16, 32], strides = [1, 1]} : vector<16x96xf32> to vector<16x32xf32>
    %635 = vector.extract_strided_slice %625 {offsets = [0, 32], sizes = [16, 32], strides = [1, 1]} : vector<16x96xf32> to vector<16x32xf32>
    %636 = arith.addf %634, %635 : vector<16x32xf32>
    %637 = arith.negf %636 : vector<16x32xf32>
    %638 = math.exp %637 : vector<16x32xf32>
    %cst_123 = arith.constant 1.000000e+00 : f32
    %639 = vector.broadcast %cst_123 : f32 to vector<16x32xf32>
    %640 = arith.addf %639, %638 : vector<16x32xf32>
    %641 = arith.divf %639, %640 : vector<16x32xf32>
    %642 = vector.extract_strided_slice %624 {offsets = [0, 64], sizes = [16, 32], strides = [1, 1]} : vector<16x96xf32> to vector<16x32xf32>
    %643 = vector.extract_strided_slice %625 {offsets = [0, 64], sizes = [16, 32], strides = [1, 1]} : vector<16x96xf32> to vector<16x32xf32>
    %644 = vector.broadcast %306 : vector<1x32xf32> to vector<16x32xf32>
    %645 = arith.addf %643, %644 : vector<16x32xf32>
    %646 = arith.mulf %633, %645 : vector<16x32xf32>
    %647 = arith.addf %642, %646 : vector<16x32xf32>
    %648 = math.tanh %647 : vector<16x32xf32>
    %cst_124 = arith.constant 1.000000e+00 : f32
    %649 = vector.broadcast %cst_124 : f32 to vector<16x32xf32>
    %650 = arith.subf %649, %641 : vector<16x32xf32>
    %651 = arith.mulf %650, %648 : vector<16x32xf32>
    %652 = arith.mulf %641, %591 : vector<16x32xf32>
    %653 = arith.addf %651, %652 : vector<16x32xf32>
    %654 = vector.extract_strided_slice %302 {offsets = [2, 0, 0], sizes = [1, 16, 96], strides = [1, 1, 1]} : vector<8x16x96xf32> to vector<1x16x96xf32>
    %655 = vector.shape_cast %654 : vector<1x16x96xf32> to vector<16x96xf32>
    %cst_125 = arith.constant dense<0.000000e+00> : vector<16x96xf32>
    %656 = tpu.matmul %622, %308, %cst_125 {dimension_numbers = #tpu.dot_dimension_numbers<[1], [0], [0], [1], [0, 0, 1, 1], [], []>} : vector<16x32xf32>, vector<32x96xf32>, vector<16x96xf32> -> vector<16x96xf32>
    %657 = vector.extract_strided_slice %655 {offsets = [0, 0], sizes = [16, 32], strides = [1, 1]} : vector<16x96xf32> to vector<16x32xf32>
    %658 = vector.extract_strided_slice %656 {offsets = [0, 0], sizes = [16, 32], strides = [1, 1]} : vector<16x96xf32> to vector<16x32xf32>
    %659 = arith.addf %657, %658 : vector<16x32xf32>
    %660 = arith.negf %659 : vector<16x32xf32>
    %661 = math.exp %660 : vector<16x32xf32>
    %cst_126 = arith.constant 1.000000e+00 : f32
    %662 = vector.broadcast %cst_126 : f32 to vector<16x32xf32>
    %663 = arith.addf %662, %661 : vector<16x32xf32>
    %664 = arith.divf %662, %663 : vector<16x32xf32>
    %665 = vector.extract_strided_slice %655 {offsets = [0, 32], sizes = [16, 32], strides = [1, 1]} : vector<16x96xf32> to vector<16x32xf32>
    %666 = vector.extract_strided_slice %656 {offsets = [0, 32], sizes = [16, 32], strides = [1, 1]} : vector<16x96xf32> to vector<16x32xf32>
    %667 = arith.addf %665, %666 : vector<16x32xf32>
    %668 = arith.negf %667 : vector<16x32xf32>
    %669 = math.exp %668 : vector<16x32xf32>
    %cst_127 = arith.constant 1.000000e+00 : f32
    %670 = vector.broadcast %cst_127 : f32 to vector<16x32xf32>
    %671 = arith.addf %670, %669 : vector<16x32xf32>
    %672 = arith.divf %670, %671 : vector<16x32xf32>
    %673 = vector.extract_strided_slice %655 {offsets = [0, 64], sizes = [16, 32], strides = [1, 1]} : vector<16x96xf32> to vector<16x32xf32>
    %674 = vector.extract_strided_slice %656 {offsets = [0, 64], sizes = [16, 32], strides = [1, 1]} : vector<16x96xf32> to vector<16x32xf32>
    %675 = vector.broadcast %310 : vector<1x32xf32> to vector<16x32xf32>
    %676 = arith.addf %674, %675 : vector<16x32xf32>
    %677 = arith.mulf %664, %676 : vector<16x32xf32>
    %678 = arith.addf %673, %677 : vector<16x32xf32>
    %679 = math.tanh %678 : vector<16x32xf32>
    %cst_128 = arith.constant 1.000000e+00 : f32
    %680 = vector.broadcast %cst_128 : f32 to vector<16x32xf32>
    %681 = arith.subf %680, %672 : vector<16x32xf32>
    %682 = arith.mulf %681, %679 : vector<16x32xf32>
    %683 = arith.mulf %672, %622 : vector<16x32xf32>
    %684 = arith.addf %682, %683 : vector<16x32xf32>
    %685 = vector.extract_strided_slice %294 {offsets = [6, 0, 0], sizes = [1, 16, 96], strides = [1, 1, 1]} : vector<8x16x96xf32> to vector<1x16x96xf32>
    %686 = vector.shape_cast %685 : vector<1x16x96xf32> to vector<16x96xf32>
    %cst_129 = arith.constant dense<0.000000e+00> : vector<16x96xf32>
    %687 = tpu.matmul %653, %304, %cst_129 {dimension_numbers = #tpu.dot_dimension_numbers<[1], [0], [0], [1], [0, 0, 1, 1], [], []>} : vector<16x32xf32>, vector<32x96xf32>, vector<16x96xf32> -> vector<16x96xf32>
    %688 = vector.extract_strided_slice %686 {offsets = [0, 0], sizes = [16, 32], strides = [1, 1]} : vector<16x96xf32> to vector<16x32xf32>
    %689 = vector.extract_strided_slice %687 {offsets = [0, 0], sizes = [16, 32], strides = [1, 1]} : vector<16x96xf32> to vector<16x32xf32>
    %690 = arith.addf %688, %689 : vector<16x32xf32>
    %691 = arith.negf %690 : vector<16x32xf32>
    %692 = math.exp %691 : vector<16x32xf32>
    %cst_130 = arith.constant 1.000000e+00 : f32
    %693 = vector.broadcast %cst_130 : f32 to vector<16x32xf32>
    %694 = arith.addf %693, %692 : vector<16x32xf32>
    %695 = arith.divf %693, %694 : vector<16x32xf32>
    %696 = vector.extract_strided_slice %686 {offsets = [0, 32], sizes = [16, 32], strides = [1, 1]} : vector<16x96xf32> to vector<16x32xf32>
    %697 = vector.extract_strided_slice %687 {offsets = [0, 32], sizes = [16, 32], strides = [1, 1]} : vector<16x96xf32> to vector<16x32xf32>
    %698 = arith.addf %696, %697 : vector<16x32xf32>
    %699 = arith.negf %698 : vector<16x32xf32>
    %700 = math.exp %699 : vector<16x32xf32>
    %cst_131 = arith.constant 1.000000e+00 : f32
    %701 = vector.broadcast %cst_131 : f32 to vector<16x32xf32>
    %702 = arith.addf %701, %700 : vector<16x32xf32>
    %703 = arith.divf %701, %702 : vector<16x32xf32>
    %704 = vector.extract_strided_slice %686 {offsets = [0, 64], sizes = [16, 32], strides = [1, 1]} : vector<16x96xf32> to vector<16x32xf32>
    %705 = vector.extract_strided_slice %687 {offsets = [0, 64], sizes = [16, 32], strides = [1, 1]} : vector<16x96xf32> to vector<16x32xf32>
    %706 = vector.broadcast %306 : vector<1x32xf32> to vector<16x32xf32>
    %707 = arith.addf %705, %706 : vector<16x32xf32>
    %708 = arith.mulf %695, %707 : vector<16x32xf32>
    %709 = arith.addf %704, %708 : vector<16x32xf32>
    %710 = math.tanh %709 : vector<16x32xf32>
    %cst_132 = arith.constant 1.000000e+00 : f32
    %711 = vector.broadcast %cst_132 : f32 to vector<16x32xf32>
    %712 = arith.subf %711, %703 : vector<16x32xf32>
    %713 = arith.mulf %712, %710 : vector<16x32xf32>
    %714 = arith.mulf %703, %653 : vector<16x32xf32>
    %715 = arith.addf %713, %714 : vector<16x32xf32>
    %716 = vector.extract_strided_slice %302 {offsets = [1, 0, 0], sizes = [1, 16, 96], strides = [1, 1, 1]} : vector<8x16x96xf32> to vector<1x16x96xf32>
    %717 = vector.shape_cast %716 : vector<1x16x96xf32> to vector<16x96xf32>
    %cst_133 = arith.constant dense<0.000000e+00> : vector<16x96xf32>
    %718 = tpu.matmul %684, %308, %cst_133 {dimension_numbers = #tpu.dot_dimension_numbers<[1], [0], [0], [1], [0, 0, 1, 1], [], []>} : vector<16x32xf32>, vector<32x96xf32>, vector<16x96xf32> -> vector<16x96xf32>
    %719 = vector.extract_strided_slice %717 {offsets = [0, 0], sizes = [16, 32], strides = [1, 1]} : vector<16x96xf32> to vector<16x32xf32>
    %720 = vector.extract_strided_slice %718 {offsets = [0, 0], sizes = [16, 32], strides = [1, 1]} : vector<16x96xf32> to vector<16x32xf32>
    %721 = arith.addf %719, %720 : vector<16x32xf32>
    %722 = arith.negf %721 : vector<16x32xf32>
    %723 = math.exp %722 : vector<16x32xf32>
    %cst_134 = arith.constant 1.000000e+00 : f32
    %724 = vector.broadcast %cst_134 : f32 to vector<16x32xf32>
    %725 = arith.addf %724, %723 : vector<16x32xf32>
    %726 = arith.divf %724, %725 : vector<16x32xf32>
    %727 = vector.extract_strided_slice %717 {offsets = [0, 32], sizes = [16, 32], strides = [1, 1]} : vector<16x96xf32> to vector<16x32xf32>
    %728 = vector.extract_strided_slice %718 {offsets = [0, 32], sizes = [16, 32], strides = [1, 1]} : vector<16x96xf32> to vector<16x32xf32>
    %729 = arith.addf %727, %728 : vector<16x32xf32>
    %730 = arith.negf %729 : vector<16x32xf32>
    %731 = math.exp %730 : vector<16x32xf32>
    %cst_135 = arith.constant 1.000000e+00 : f32
    %732 = vector.broadcast %cst_135 : f32 to vector<16x32xf32>
    %733 = arith.addf %732, %731 : vector<16x32xf32>
    %734 = arith.divf %732, %733 : vector<16x32xf32>
    %735 = vector.extract_strided_slice %717 {offsets = [0, 64], sizes = [16, 32], strides = [1, 1]} : vector<16x96xf32> to vector<16x32xf32>
    %736 = vector.extract_strided_slice %718 {offsets = [0, 64], sizes = [16, 32], strides = [1, 1]} : vector<16x96xf32> to vector<16x32xf32>
    %737 = vector.broadcast %310 : vector<1x32xf32> to vector<16x32xf32>
    %738 = arith.addf %736, %737 : vector<16x32xf32>
    %739 = arith.mulf %726, %738 : vector<16x32xf32>
    %740 = arith.addf %735, %739 : vector<16x32xf32>
    %741 = math.tanh %740 : vector<16x32xf32>
    %cst_136 = arith.constant 1.000000e+00 : f32
    %742 = vector.broadcast %cst_136 : f32 to vector<16x32xf32>
    %743 = arith.subf %742, %734 : vector<16x32xf32>
    %744 = arith.mulf %743, %741 : vector<16x32xf32>
    %745 = arith.mulf %734, %684 : vector<16x32xf32>
    %746 = arith.addf %744, %745 : vector<16x32xf32>
    %747 = vector.extract_strided_slice %294 {offsets = [7, 0, 0], sizes = [1, 16, 96], strides = [1, 1, 1]} : vector<8x16x96xf32> to vector<1x16x96xf32>
    %748 = vector.shape_cast %747 : vector<1x16x96xf32> to vector<16x96xf32>
    %cst_137 = arith.constant dense<0.000000e+00> : vector<16x96xf32>
    %749 = tpu.matmul %715, %304, %cst_137 {dimension_numbers = #tpu.dot_dimension_numbers<[1], [0], [0], [1], [0, 0, 1, 1], [], []>} : vector<16x32xf32>, vector<32x96xf32>, vector<16x96xf32> -> vector<16x96xf32>
    %750 = vector.extract_strided_slice %748 {offsets = [0, 0], sizes = [16, 32], strides = [1, 1]} : vector<16x96xf32> to vector<16x32xf32>
    %751 = vector.extract_strided_slice %749 {offsets = [0, 0], sizes = [16, 32], strides = [1, 1]} : vector<16x96xf32> to vector<16x32xf32>
    %752 = arith.addf %750, %751 : vector<16x32xf32>
    %753 = arith.negf %752 : vector<16x32xf32>
    %754 = math.exp %753 : vector<16x32xf32>
    %cst_138 = arith.constant 1.000000e+00 : f32
    %755 = vector.broadcast %cst_138 : f32 to vector<16x32xf32>
    %756 = arith.addf %755, %754 : vector<16x32xf32>
    %757 = arith.divf %755, %756 : vector<16x32xf32>
    %758 = vector.extract_strided_slice %748 {offsets = [0, 32], sizes = [16, 32], strides = [1, 1]} : vector<16x96xf32> to vector<16x32xf32>
    %759 = vector.extract_strided_slice %749 {offsets = [0, 32], sizes = [16, 32], strides = [1, 1]} : vector<16x96xf32> to vector<16x32xf32>
    %760 = arith.addf %758, %759 : vector<16x32xf32>
    %761 = arith.negf %760 : vector<16x32xf32>
    %762 = math.exp %761 : vector<16x32xf32>
    %cst_139 = arith.constant 1.000000e+00 : f32
    %763 = vector.broadcast %cst_139 : f32 to vector<16x32xf32>
    %764 = arith.addf %763, %762 : vector<16x32xf32>
    %765 = arith.divf %763, %764 : vector<16x32xf32>
    %766 = vector.extract_strided_slice %748 {offsets = [0, 64], sizes = [16, 32], strides = [1, 1]} : vector<16x96xf32> to vector<16x32xf32>
    %767 = vector.extract_strided_slice %749 {offsets = [0, 64], sizes = [16, 32], strides = [1, 1]} : vector<16x96xf32> to vector<16x32xf32>
    %768 = vector.broadcast %306 : vector<1x32xf32> to vector<16x32xf32>
    %769 = arith.addf %767, %768 : vector<16x32xf32>
    %770 = arith.mulf %757, %769 : vector<16x32xf32>
    %771 = arith.addf %766, %770 : vector<16x32xf32>
    %772 = math.tanh %771 : vector<16x32xf32>
    %cst_140 = arith.constant 1.000000e+00 : f32
    %773 = vector.broadcast %cst_140 : f32 to vector<16x32xf32>
    %774 = arith.subf %773, %765 : vector<16x32xf32>
    %775 = arith.mulf %774, %772 : vector<16x32xf32>
    %776 = arith.mulf %765, %715 : vector<16x32xf32>
    %777 = arith.addf %775, %776 : vector<16x32xf32>
    %778 = vector.extract_strided_slice %302 {offsets = [0, 0, 0], sizes = [1, 16, 96], strides = [1, 1, 1]} : vector<8x16x96xf32> to vector<1x16x96xf32>
    %779 = vector.shape_cast %778 : vector<1x16x96xf32> to vector<16x96xf32>
    %cst_141 = arith.constant dense<0.000000e+00> : vector<16x96xf32>
    %780 = tpu.matmul %746, %308, %cst_141 {dimension_numbers = #tpu.dot_dimension_numbers<[1], [0], [0], [1], [0, 0, 1, 1], [], []>} : vector<16x32xf32>, vector<32x96xf32>, vector<16x96xf32> -> vector<16x96xf32>
    %781 = vector.extract_strided_slice %779 {offsets = [0, 0], sizes = [16, 32], strides = [1, 1]} : vector<16x96xf32> to vector<16x32xf32>
    %782 = vector.extract_strided_slice %780 {offsets = [0, 0], sizes = [16, 32], strides = [1, 1]} : vector<16x96xf32> to vector<16x32xf32>
    %783 = arith.addf %781, %782 : vector<16x32xf32>
    %784 = arith.negf %783 : vector<16x32xf32>
    %785 = math.exp %784 : vector<16x32xf32>
    %cst_142 = arith.constant 1.000000e+00 : f32
    %786 = vector.broadcast %cst_142 : f32 to vector<16x32xf32>
    %787 = arith.addf %786, %785 : vector<16x32xf32>
    %788 = arith.divf %786, %787 : vector<16x32xf32>
    %789 = vector.extract_strided_slice %779 {offsets = [0, 32], sizes = [16, 32], strides = [1, 1]} : vector<16x96xf32> to vector<16x32xf32>
    %790 = vector.extract_strided_slice %780 {offsets = [0, 32], sizes = [16, 32], strides = [1, 1]} : vector<16x96xf32> to vector<16x32xf32>
    %791 = arith.addf %789, %790 : vector<16x32xf32>
    %792 = arith.negf %791 : vector<16x32xf32>
    %793 = math.exp %792 : vector<16x32xf32>
    %cst_143 = arith.constant 1.000000e+00 : f32
    %794 = vector.broadcast %cst_143 : f32 to vector<16x32xf32>
    %795 = arith.addf %794, %793 : vector<16x32xf32>
    %796 = arith.divf %794, %795 : vector<16x32xf32>
    %797 = vector.extract_strided_slice %779 {offsets = [0, 64], sizes = [16, 32], strides = [1, 1]} : vector<16x96xf32> to vector<16x32xf32>
    %798 = vector.extract_strided_slice %780 {offsets = [0, 64], sizes = [16, 32], strides = [1, 1]} : vector<16x96xf32> to vector<16x32xf32>
    %799 = vector.broadcast %310 : vector<1x32xf32> to vector<16x32xf32>
    %800 = arith.addf %798, %799 : vector<16x32xf32>
    %801 = arith.mulf %788, %800 : vector<16x32xf32>
    %802 = arith.addf %797, %801 : vector<16x32xf32>
    %803 = math.tanh %802 : vector<16x32xf32>
    %cst_144 = arith.constant 1.000000e+00 : f32
    %804 = vector.broadcast %cst_144 : f32 to vector<16x32xf32>
    %805 = arith.subf %804, %796 : vector<16x32xf32>
    %806 = arith.mulf %805, %803 : vector<16x32xf32>
    %807 = arith.mulf %796, %746 : vector<16x32xf32>
    %808 = arith.addf %806, %807 : vector<16x32xf32>
    %809 = vector.shape_cast %343 : vector<16x32xf32> to vector<1x16x32xf32>
    %810 = vector.shape_cast %405 : vector<16x32xf32> to vector<1x16x32xf32>
    %811 = vector.shape_cast %467 : vector<16x32xf32> to vector<1x16x32xf32>
    %812 = vector.shape_cast %529 : vector<16x32xf32> to vector<1x16x32xf32>
    %813 = vector.shape_cast %591 : vector<16x32xf32> to vector<1x16x32xf32>
    %814 = vector.shape_cast %653 : vector<16x32xf32> to vector<1x16x32xf32>
    %815 = vector.shape_cast %715 : vector<16x32xf32> to vector<1x16x32xf32>
    %816 = vector.shape_cast %777 : vector<16x32xf32> to vector<1x16x32xf32>
    %817 = tpu.concatenate %809, %810, %811, %812, %813, %814, %815, %816 in 0 : vector<1x16x32xf32>, vector<1x16x32xf32>, vector<1x16x32xf32>, vector<1x16x32xf32>, vector<1x16x32xf32>, vector<1x16x32xf32>, vector<1x16x32xf32>, vector<1x16x32xf32> -> vector<8x16x32xf32>
    %818 = vector.shape_cast %817 : vector<8x16x32xf32> to vector<128x32xf32>
    %819 = vector.shape_cast %808 : vector<16x32xf32> to vector<1x16x32xf32>
    %820 = vector.shape_cast %746 : vector<16x32xf32> to vector<1x16x32xf32>
    %821 = vector.shape_cast %684 : vector<16x32xf32> to vector<1x16x32xf32>
    %822 = vector.shape_cast %622 : vector<16x32xf32> to vector<1x16x32xf32>
    %823 = vector.shape_cast %560 : vector<16x32xf32> to vector<1x16x32xf32>
    %824 = vector.shape_cast %498 : vector<16x32xf32> to vector<1x16x32xf32>
    %825 = vector.shape_cast %436 : vector<16x32xf32> to vector<1x16x32xf32>
    %826 = vector.shape_cast %374 : vector<16x32xf32> to vector<1x16x32xf32>
    %827 = tpu.concatenate %819, %820, %821, %822, %823, %824, %825, %826 in 0 : vector<1x16x32xf32>, vector<1x16x32xf32>, vector<1x16x32xf32>, vector<1x16x32xf32>, vector<1x16x32xf32>, vector<1x16x32xf32>, vector<1x16x32xf32>, vector<1x16x32xf32> -> vector<8x16x32xf32>
    %828 = vector.shape_cast %827 : vector<8x16x32xf32> to vector<128x32xf32>
    %c1_145 = arith.constant 1 : index
    %c0_146 = arith.constant 0 : index
    %c0_147 = arith.constant 0 : index
    %829 = vector.load %arg6[%c1_145, %c0_146, %c0_147] : memref<3x32x32xf32, #tpu.memory_space<vmem>>, vector<1x32x32xf32>
    %830 = vector.shape_cast %829 : vector<1x32x32xf32> to vector<32x32xf32>
    %cst_148 = arith.constant dense<0.000000e+00> : vector<128x32xf32>
    %831 = tpu.matmul %818, %830, %cst_148 {dimension_numbers = #tpu.dot_dimension_numbers<[1], [0], [0], [1], [0, 0, 1, 1], [], []>} : vector<128x32xf32>, vector<32x32xf32>, vector<128x32xf32> -> vector<128x32xf32>
    %c2_149 = arith.constant 2 : index
    %c0_150 = arith.constant 0 : index
    %c0_151 = arith.constant 0 : index
    %832 = vector.load %arg6[%c2_149, %c0_150, %c0_151] : memref<3x32x32xf32, #tpu.memory_space<vmem>>, vector<1x32x32xf32>
    %833 = vector.shape_cast %832 : vector<1x32x32xf32> to vector<32x32xf32>
    %cst_152 = arith.constant dense<0.000000e+00> : vector<128x32xf32>
    %834 = tpu.matmul %828, %833, %cst_152 {dimension_numbers = #tpu.dot_dimension_numbers<[1], [0], [0], [1], [0, 0, 1, 1], [], []>} : vector<128x32xf32>, vector<32x32xf32>, vector<128x32xf32> -> vector<128x32xf32>
    %835 = arith.addf %831, %834 : vector<128x32xf32>
    %836 = vector.shape_cast %835 : vector<128x32xf32> to vector<8x2x8x32xf32>
    %c0_153 = arith.constant 0 : index
    %c0_154 = arith.constant 0 : index
    %c0_155 = arith.constant 0 : index
    %c0_156 = arith.constant 0 : index
    %837 = vector.load %arg0[%c0_153, %c0_154, %c0_155, %c0_156] : memref<2x8x8x32xf32, #tpu.memory_space<vmem>>, vector<2x8x8x32xf32>
    %838 = arith.addf %837, %284 : vector<2x8x8x32xf32>
    %c0_157 = arith.constant 0 : index
    %c0_158 = arith.constant 0 : index
    %839 = vector.load %arg7[%c0_157, %c0_158] : memref<1x32xf32, #tpu.memory_space<vmem>>, vector<1x32xf32>
    %840 = vector.shape_cast %839 : vector<1x32xf32> to vector<1x1x1x32xf32>
    %841 = vector.broadcast %840 : vector<1x1x1x32xf32> to vector<2x8x8x32xf32>
    %842 = arith.addf %838, %841 : vector<2x8x8x32xf32>
    %843 = vector.extract_strided_slice %842 {offsets = [0, 0, 0, 0], sizes = [2, 8, 1, 32], strides = [1, 1, 1, 1]} : vector<2x8x8x32xf32> to vector<2x8x1x32xf32>
    %844 = vector.extract_strided_slice %836 {offsets = [0, 0, 0, 0], sizes = [1, 2, 8, 32], strides = [1, 1, 1, 1]} : vector<8x2x8x32xf32> to vector<1x2x8x32xf32>
    %845 = vector.shape_cast %844 : vector<1x2x8x32xf32> to vector<2x8x32xf32>
    %846 = vector.shape_cast %845 : vector<2x8x32xf32> to vector<2x8x1x32xf32>
    %847 = arith.addf %843, %846 : vector<2x8x1x32xf32>
    %c0_159 = arith.constant 0 : index
    %c0_160 = arith.constant 0 : index
    %c0_161 = arith.constant 0 : index
    %c0_162 = arith.constant 0 : index
    %848 = vector.load %arg8[%c0_159, %c0_160, %c0_161, %c0_162] : memref<2x8x8x32xf32, #tpu.memory_space<vmem>>, vector<2x8x1x32xf32>
    tpu.vector_store %arg8[%c0_159, %c0_160, %c0_161, %c0_162], %847 {strides = array<i32>} : memref<2x8x8x32xf32, #tpu.memory_space<vmem>>, vector<2x8x1x32xf32>,
    %849 = vector.extract_strided_slice %842 {offsets = [0, 0, 1, 0], sizes = [2, 8, 1, 32], strides = [1, 1, 1, 1]} : vector<2x8x8x32xf32> to vector<2x8x1x32xf32>
    %850 = vector.extract_strided_slice %836 {offsets = [1, 0, 0, 0], sizes = [1, 2, 8, 32], strides = [1, 1, 1, 1]} : vector<8x2x8x32xf32> to vector<1x2x8x32xf32>
    %851 = vector.shape_cast %850 : vector<1x2x8x32xf32> to vector<2x8x32xf32>
    %852 = vector.shape_cast %851 : vector<2x8x32xf32> to vector<2x8x1x32xf32>
    %853 = arith.addf %849, %852 : vector<2x8x1x32xf32>
    %c0_163 = arith.constant 0 : index
    %c0_164 = arith.constant 0 : index
    %c1_165 = arith.constant 1 : index
    %c0_166 = arith.constant 0 : index
    %854 = vector.load %arg8[%c0_163, %c0_164, %c1_165, %c0_166] : memref<2x8x8x32xf32, #tpu.memory_space<vmem>>, vector<2x8x1x32xf32>
    tpu.vector_store %arg8[%c0_163, %c0_164, %c1_165, %c0_166], %853 {strides = array<i32>} : memref<2x8x8x32xf32, #tpu.memory_space<vmem>>, vector<2x8x1x32xf32>,
    %855 = vector.extract_strided_slice %842 {offsets = [0, 0, 2, 0], sizes = [2, 8, 1, 32], strides = [1, 1, 1, 1]} : vector<2x8x8x32xf32> to vector<2x8x1x32xf32>
    %856 = vector.extract_strided_slice %836 {offsets = [2, 0, 0, 0], sizes = [1, 2, 8, 32], strides = [1, 1, 1, 1]} : vector<8x2x8x32xf32> to vector<1x2x8x32xf32>
    %857 = vector.shape_cast %856 : vector<1x2x8x32xf32> to vector<2x8x32xf32>
    %858 = vector.shape_cast %857 : vector<2x8x32xf32> to vector<2x8x1x32xf32>
    %859 = arith.addf %855, %858 : vector<2x8x1x32xf32>
    %c0_167 = arith.constant 0 : index
    %c0_168 = arith.constant 0 : index
    %c2_169 = arith.constant 2 : index
    %c0_170 = arith.constant 0 : index
    %860 = vector.load %arg8[%c0_167, %c0_168, %c2_169, %c0_170] : memref<2x8x8x32xf32, #tpu.memory_space<vmem>>, vector<2x8x1x32xf32>
    tpu.vector_store %arg8[%c0_167, %c0_168, %c2_169, %c0_170], %859 {strides = array<i32>} : memref<2x8x8x32xf32, #tpu.memory_space<vmem>>, vector<2x8x1x32xf32>,
    %861 = vector.extract_strided_slice %842 {offsets = [0, 0, 3, 0], sizes = [2, 8, 1, 32], strides = [1, 1, 1, 1]} : vector<2x8x8x32xf32> to vector<2x8x1x32xf32>
    %862 = vector.extract_strided_slice %836 {offsets = [3, 0, 0, 0], sizes = [1, 2, 8, 32], strides = [1, 1, 1, 1]} : vector<8x2x8x32xf32> to vector<1x2x8x32xf32>
    %863 = vector.shape_cast %862 : vector<1x2x8x32xf32> to vector<2x8x32xf32>
    %864 = vector.shape_cast %863 : vector<2x8x32xf32> to vector<2x8x1x32xf32>
    %865 = arith.addf %861, %864 : vector<2x8x1x32xf32>
    %c0_171 = arith.constant 0 : index
    %c0_172 = arith.constant 0 : index
    %c3 = arith.constant 3 : index
    %c0_173 = arith.constant 0 : index
    %866 = vector.load %arg8[%c0_171, %c0_172, %c3, %c0_173] : memref<2x8x8x32xf32, #tpu.memory_space<vmem>>, vector<2x8x1x32xf32>
    tpu.vector_store %arg8[%c0_171, %c0_172, %c3, %c0_173], %865 {strides = array<i32>} : memref<2x8x8x32xf32, #tpu.memory_space<vmem>>, vector<2x8x1x32xf32>,
    %867 = vector.extract_strided_slice %842 {offsets = [0, 0, 4, 0], sizes = [2, 8, 1, 32], strides = [1, 1, 1, 1]} : vector<2x8x8x32xf32> to vector<2x8x1x32xf32>
    %868 = vector.extract_strided_slice %836 {offsets = [4, 0, 0, 0], sizes = [1, 2, 8, 32], strides = [1, 1, 1, 1]} : vector<8x2x8x32xf32> to vector<1x2x8x32xf32>
    %869 = vector.shape_cast %868 : vector<1x2x8x32xf32> to vector<2x8x32xf32>
    %870 = vector.shape_cast %869 : vector<2x8x32xf32> to vector<2x8x1x32xf32>
    %871 = arith.addf %867, %870 : vector<2x8x1x32xf32>
    %c0_174 = arith.constant 0 : index
    %c0_175 = arith.constant 0 : index
    %c4 = arith.constant 4 : index
    %c0_176 = arith.constant 0 : index
    %872 = vector.load %arg8[%c0_174, %c0_175, %c4, %c0_176] : memref<2x8x8x32xf32, #tpu.memory_space<vmem>>, vector<2x8x1x32xf32>
    tpu.vector_store %arg8[%c0_174, %c0_175, %c4, %c0_176], %871 {strides = array<i32>} : memref<2x8x8x32xf32, #tpu.memory_space<vmem>>, vector<2x8x1x32xf32>,
    %873 = vector.extract_strided_slice %842 {offsets = [0, 0, 5, 0], sizes = [2, 8, 1, 32], strides = [1, 1, 1, 1]} : vector<2x8x8x32xf32> to vector<2x8x1x32xf32>
    %874 = vector.extract_strided_slice %836 {offsets = [5, 0, 0, 0], sizes = [1, 2, 8, 32], strides = [1, 1, 1, 1]} : vector<8x2x8x32xf32> to vector<1x2x8x32xf32>
    %875 = vector.shape_cast %874 : vector<1x2x8x32xf32> to vector<2x8x32xf32>
    %876 = vector.shape_cast %875 : vector<2x8x32xf32> to vector<2x8x1x32xf32>
    %877 = arith.addf %873, %876 : vector<2x8x1x32xf32>
    %c0_177 = arith.constant 0 : index
    %c0_178 = arith.constant 0 : index
    %c5 = arith.constant 5 : index
    %c0_179 = arith.constant 0 : index
    %878 = vector.load %arg8[%c0_177, %c0_178, %c5, %c0_179] : memref<2x8x8x32xf32, #tpu.memory_space<vmem>>, vector<2x8x1x32xf32>
    tpu.vector_store %arg8[%c0_177, %c0_178, %c5, %c0_179], %877 {strides = array<i32>} : memref<2x8x8x32xf32, #tpu.memory_space<vmem>>, vector<2x8x1x32xf32>,
    %879 = vector.extract_strided_slice %842 {offsets = [0, 0, 6, 0], sizes = [2, 8, 1, 32], strides = [1, 1, 1, 1]} : vector<2x8x8x32xf32> to vector<2x8x1x32xf32>
    %880 = vector.extract_strided_slice %836 {offsets = [6, 0, 0, 0], sizes = [1, 2, 8, 32], strides = [1, 1, 1, 1]} : vector<8x2x8x32xf32> to vector<1x2x8x32xf32>
    %881 = vector.shape_cast %880 : vector<1x2x8x32xf32> to vector<2x8x32xf32>
    %882 = vector.shape_cast %881 : vector<2x8x32xf32> to vector<2x8x1x32xf32>
    %883 = arith.addf %879, %882 : vector<2x8x1x32xf32>
    %c0_180 = arith.constant 0 : index
    %c0_181 = arith.constant 0 : index
    %c6 = arith.constant 6 : index
    %c0_182 = arith.constant 0 : index
    %884 = vector.load %arg8[%c0_180, %c0_181, %c6, %c0_182] : memref<2x8x8x32xf32, #tpu.memory_space<vmem>>, vector<2x8x1x32xf32>
    tpu.vector_store %arg8[%c0_180, %c0_181, %c6, %c0_182], %883 {strides = array<i32>} : memref<2x8x8x32xf32, #tpu.memory_space<vmem>>, vector<2x8x1x32xf32>,
    %885 = vector.extract_strided_slice %842 {offsets = [0, 0, 7, 0], sizes = [2, 8, 1, 32], strides = [1, 1, 1, 1]} : vector<2x8x8x32xf32> to vector<2x8x1x32xf32>
    %886 = vector.extract_strided_slice %836 {offsets = [7, 0, 0, 0], sizes = [1, 2, 8, 32], strides = [1, 1, 1, 1]} : vector<8x2x8x32xf32> to vector<1x2x8x32xf32>
    %887 = vector.shape_cast %886 : vector<1x2x8x32xf32> to vector<2x8x32xf32>
    %888 = vector.shape_cast %887 : vector<2x8x32xf32> to vector<2x8x1x32xf32>
    %889 = arith.addf %885, %888 : vector<2x8x1x32xf32>
    %c0_183 = arith.constant 0 : index
    %c0_184 = arith.constant 0 : index
    %c7 = arith.constant 7 : index
    %c0_185 = arith.constant 0 : index
    %890 = vector.load %arg8[%c0_183, %c0_184, %c7, %c0_185] : memref<2x8x8x32xf32, #tpu.memory_space<vmem>>, vector<2x8x1x32xf32>
    tpu.vector_store %arg8[%c0_183, %c0_184, %c7, %c0_185], %889 {strides = array<i32>} : memref<2x8x8x32xf32, #tpu.memory_space<vmem>>, vector<2x8x1x32xf32>,
    return
  }
}

module attributes {stable_mosaic.version = 11 : i64} {
  func.func @_freq_stack_kernel(%arg0: memref<8x16x32xf32, #tpu.memory_space<vmem>>, %arg1: memref<8x16x32xf32, #tpu.memory_space<vmem>>, %arg2: memref<2x8x32xf32, #tpu.memory_space<vmem>>, %arg3: memref<32x96xf32, #tpu.memory_space<vmem>>, %arg4: memref<32x96xf32, #tpu.memory_space<vmem>>, %arg5: memref<1x96xf32, #tpu.memory_space<vmem>>, %arg6: memref<1x32xf32, #tpu.memory_space<vmem>>, %arg7: memref<32x32xf32, #tpu.memory_space<vmem>>, %arg8: memref<1x32xf32, #tpu.memory_space<vmem>>, %arg9: memref<8x16x32xf32, #tpu.memory_space<vmem>>) attributes {dimension_semantics = [], scalar_prefetch = 0 : i64, scratch_operands = 0 : i64, tpu.core_type = #tpu.core_type<tc>} {
    %c0 = arith.constant 0 : index
    %c0_0 = arith.constant 0 : index
    %c0_1 = arith.constant 0 : index
    %0 = vector.load %arg1[%c0, %c0_0, %c0_1] : memref<8x16x32xf32, #tpu.memory_space<vmem>>, vector<8x16x32xf32>
    %c0_2 = arith.constant 0 : index
    %c0_3 = arith.constant 0 : index
    %c0_4 = arith.constant 0 : index
    %1 = vector.load %arg2[%c0_2, %c0_3, %c0_4] : memref<2x8x32xf32, #tpu.memory_space<vmem>>, vector<2x8x32xf32>
    %2 = vector.shape_cast %1 : vector<2x8x32xf32> to vector<16x32xf32>
    %c0_5 = arith.constant 0 : index
    %c0_6 = arith.constant 0 : index
    %c0_7 = arith.constant 0 : index
    %3 = vector.load %arg0[%c0_5, %c0_6, %c0_7] : memref<8x16x32xf32, #tpu.memory_space<vmem>>, vector<8x16x32xf32>
    %4 = arith.addf %3, %0 : vector<8x16x32xf32>
    %5 = vector.shape_cast %2 : vector<16x32xf32> to vector<1x16x32xf32>
    %6 = vector.broadcast %5 : vector<1x16x32xf32> to vector<8x16x32xf32>
    %7 = arith.addf %4, %6 : vector<8x16x32xf32>
    %8 = vector.shape_cast %7 : vector<8x16x32xf32> to vector<128x32xf32>
    %c0_8 = arith.constant 0 : index
    %c0_9 = arith.constant 0 : index
    %9 = vector.load %arg3[%c0_8, %c0_9] : memref<32x96xf32, #tpu.memory_space<vmem>>, vector<32x96xf32>
    %cst = arith.constant dense<0.000000e+00> : vector<128x96xf32>
    %10 = tpu.matmul %8, %9, %cst {dimension_numbers = #tpu.dot_dimension_numbers<[1], [0], [0], [1], [0, 0, 1, 1], [], []>} : vector<128x32xf32>, vector<32x96xf32>, vector<128x96xf32> -> vector<128x96xf32>
    %c0_10 = arith.constant 0 : index
    %c0_11 = arith.constant 0 : index
    %11 = vector.load %arg5[%c0_10, %c0_11] : memref<1x96xf32, #tpu.memory_space<vmem>>, vector<1x96xf32>
    %12 = vector.broadcast %11 : vector<1x96xf32> to vector<128x96xf32>
    %13 = arith.addf %10, %12 : vector<128x96xf32>
    %14 = vector.shape_cast %13 : vector<128x96xf32> to vector<8x16x96xf32>
    %c0_12 = arith.constant 0 : index
    %c0_13 = arith.constant 0 : index
    %15 = vector.load %arg4[%c0_12, %c0_13] : memref<32x96xf32, #tpu.memory_space<vmem>>, vector<32x96xf32>
    %c0_14 = arith.constant 0 : index
    %c0_15 = arith.constant 0 : index
    %16 = vector.load %arg6[%c0_14, %c0_15] : memref<1x32xf32, #tpu.memory_space<vmem>>, vector<1x32xf32>
    %cst_16 = arith.constant 0.000000e+00 : f32
    %17 = vector.broadcast %cst_16 : f32 to vector<16x32xf32>
    %18 = vector.extract_strided_slice %14 {offsets = [0, 0, 0], sizes = [1, 16, 96], strides = [1, 1, 1]} : vector<8x16x96xf32> to vector<1x16x96xf32>
    %19 = vector.shape_cast %18 : vector<1x16x96xf32> to vector<16x96xf32>
    %cst_17 = arith.constant dense<0.000000e+00> : vector<16x96xf32>
    %20 = tpu.matmul %17, %15, %cst_17 {dimension_numbers = #tpu.dot_dimension_numbers<[1], [0], [0], [1], [0, 0, 1, 1], [], []>} : vector<16x32xf32>, vector<32x96xf32>, vector<16x96xf32> -> vector<16x96xf32>
    %21 = vector.extract_strided_slice %19 {offsets = [0, 0], sizes = [16, 32], strides = [1, 1]} : vector<16x96xf32> to vector<16x32xf32>
    %22 = vector.extract_strided_slice %20 {offsets = [0, 0], sizes = [16, 32], strides = [1, 1]} : vector<16x96xf32> to vector<16x32xf32>
    %23 = arith.addf %21, %22 : vector<16x32xf32>
    %24 = arith.negf %23 : vector<16x32xf32>
    %25 = math.exp %24 : vector<16x32xf32>
    %cst_18 = arith.constant 1.000000e+00 : f32
    %26 = vector.broadcast %cst_18 : f32 to vector<16x32xf32>
    %27 = arith.addf %26, %25 : vector<16x32xf32>
    %28 = arith.divf %26, %27 : vector<16x32xf32>
    %29 = vector.extract_strided_slice %19 {offsets = [0, 32], sizes = [16, 32], strides = [1, 1]} : vector<16x96xf32> to vector<16x32xf32>
    %30 = vector.extract_strided_slice %20 {offsets = [0, 32], sizes = [16, 32], strides = [1, 1]} : vector<16x96xf32> to vector<16x32xf32>
    %31 = arith.addf %29, %30 : vector<16x32xf32>
    %32 = arith.negf %31 : vector<16x32xf32>
    %33 = math.exp %32 : vector<16x32xf32>
    %cst_19 = arith.constant 1.000000e+00 : f32
    %34 = vector.broadcast %cst_19 : f32 to vector<16x32xf32>
    %35 = arith.addf %34, %33 : vector<16x32xf32>
    %36 = arith.divf %34, %35 : vector<16x32xf32>
    %37 = vector.extract_strided_slice %19 {offsets = [0, 64], sizes = [16, 32], strides = [1, 1]} : vector<16x96xf32> to vector<16x32xf32>
    %38 = vector.extract_strided_slice %20 {offsets = [0, 64], sizes = [16, 32], strides = [1, 1]} : vector<16x96xf32> to vector<16x32xf32>
    %39 = vector.broadcast %16 : vector<1x32xf32> to vector<16x32xf32>
    %40 = arith.addf %38, %39 : vector<16x32xf32>
    %41 = arith.mulf %28, %40 : vector<16x32xf32>
    %42 = arith.addf %37, %41 : vector<16x32xf32>
    %43 = math.tanh %42 : vector<16x32xf32>
    %cst_20 = arith.constant 1.000000e+00 : f32
    %44 = vector.broadcast %cst_20 : f32 to vector<16x32xf32>
    %45 = arith.subf %44, %36 : vector<16x32xf32>
    %46 = arith.mulf %45, %43 : vector<16x32xf32>
    %47 = arith.mulf %36, %17 : vector<16x32xf32>
    %48 = arith.addf %46, %47 : vector<16x32xf32>
    %49 = vector.extract_strided_slice %14 {offsets = [1, 0, 0], sizes = [1, 16, 96], strides = [1, 1, 1]} : vector<8x16x96xf32> to vector<1x16x96xf32>
    %50 = vector.shape_cast %49 : vector<1x16x96xf32> to vector<16x96xf32>
    %cst_21 = arith.constant dense<0.000000e+00> : vector<16x96xf32>
    %51 = tpu.matmul %48, %15, %cst_21 {dimension_numbers = #tpu.dot_dimension_numbers<[1], [0], [0], [1], [0, 0, 1, 1], [], []>} : vector<16x32xf32>, vector<32x96xf32>, vector<16x96xf32> -> vector<16x96xf32>
    %52 = vector.extract_strided_slice %50 {offsets = [0, 0], sizes = [16, 32], strides = [1, 1]} : vector<16x96xf32> to vector<16x32xf32>
    %53 = vector.extract_strided_slice %51 {offsets = [0, 0], sizes = [16, 32], strides = [1, 1]} : vector<16x96xf32> to vector<16x32xf32>
    %54 = arith.addf %52, %53 : vector<16x32xf32>
    %55 = arith.negf %54 : vector<16x32xf32>
    %56 = math.exp %55 : vector<16x32xf32>
    %cst_22 = arith.constant 1.000000e+00 : f32
    %57 = vector.broadcast %cst_22 : f32 to vector<16x32xf32>
    %58 = arith.addf %57, %56 : vector<16x32xf32>
    %59 = arith.divf %57, %58 : vector<16x32xf32>
    %60 = vector.extract_strided_slice %50 {offsets = [0, 32], sizes = [16, 32], strides = [1, 1]} : vector<16x96xf32> to vector<16x32xf32>
    %61 = vector.extract_strided_slice %51 {offsets = [0, 32], sizes = [16, 32], strides = [1, 1]} : vector<16x96xf32> to vector<16x32xf32>
    %62 = arith.addf %60, %61 : vector<16x32xf32>
    %63 = arith.negf %62 : vector<16x32xf32>
    %64 = math.exp %63 : vector<16x32xf32>
    %cst_23 = arith.constant 1.000000e+00 : f32
    %65 = vector.broadcast %cst_23 : f32 to vector<16x32xf32>
    %66 = arith.addf %65, %64 : vector<16x32xf32>
    %67 = arith.divf %65, %66 : vector<16x32xf32>
    %68 = vector.extract_strided_slice %50 {offsets = [0, 64], sizes = [16, 32], strides = [1, 1]} : vector<16x96xf32> to vector<16x32xf32>
    %69 = vector.extract_strided_slice %51 {offsets = [0, 64], sizes = [16, 32], strides = [1, 1]} : vector<16x96xf32> to vector<16x32xf32>
    %70 = vector.broadcast %16 : vector<1x32xf32> to vector<16x32xf32>
    %71 = arith.addf %69, %70 : vector<16x32xf32>
    %72 = arith.mulf %59, %71 : vector<16x32xf32>
    %73 = arith.addf %68, %72 : vector<16x32xf32>
    %74 = math.tanh %73 : vector<16x32xf32>
    %cst_24 = arith.constant 1.000000e+00 : f32
    %75 = vector.broadcast %cst_24 : f32 to vector<16x32xf32>
    %76 = arith.subf %75, %67 : vector<16x32xf32>
    %77 = arith.mulf %76, %74 : vector<16x32xf32>
    %78 = arith.mulf %67, %48 : vector<16x32xf32>
    %79 = arith.addf %77, %78 : vector<16x32xf32>
    %80 = vector.extract_strided_slice %14 {offsets = [2, 0, 0], sizes = [1, 16, 96], strides = [1, 1, 1]} : vector<8x16x96xf32> to vector<1x16x96xf32>
    %81 = vector.shape_cast %80 : vector<1x16x96xf32> to vector<16x96xf32>
    %cst_25 = arith.constant dense<0.000000e+00> : vector<16x96xf32>
    %82 = tpu.matmul %79, %15, %cst_25 {dimension_numbers = #tpu.dot_dimension_numbers<[1], [0], [0], [1], [0, 0, 1, 1], [], []>} : vector<16x32xf32>, vector<32x96xf32>, vector<16x96xf32> -> vector<16x96xf32>
    %83 = vector.extract_strided_slice %81 {offsets = [0, 0], sizes = [16, 32], strides = [1, 1]} : vector<16x96xf32> to vector<16x32xf32>
    %84 = vector.extract_strided_slice %82 {offsets = [0, 0], sizes = [16, 32], strides = [1, 1]} : vector<16x96xf32> to vector<16x32xf32>
    %85 = arith.addf %83, %84 : vector<16x32xf32>
    %86 = arith.negf %85 : vector<16x32xf32>
    %87 = math.exp %86 : vector<16x32xf32>
    %cst_26 = arith.constant 1.000000e+00 : f32
    %88 = vector.broadcast %cst_26 : f32 to vector<16x32xf32>
    %89 = arith.addf %88, %87 : vector<16x32xf32>
    %90 = arith.divf %88, %89 : vector<16x32xf32>
    %91 = vector.extract_strided_slice %81 {offsets = [0, 32], sizes = [16, 32], strides = [1, 1]} : vector<16x96xf32> to vector<16x32xf32>
    %92 = vector.extract_strided_slice %82 {offsets = [0, 32], sizes = [16, 32], strides = [1, 1]} : vector<16x96xf32> to vector<16x32xf32>
    %93 = arith.addf %91, %92 : vector<16x32xf32>
    %94 = arith.negf %93 : vector<16x32xf32>
    %95 = math.exp %94 : vector<16x32xf32>
    %cst_27 = arith.constant 1.000000e+00 : f32
    %96 = vector.broadcast %cst_27 : f32 to vector<16x32xf32>
    %97 = arith.addf %96, %95 : vector<16x32xf32>
    %98 = arith.divf %96, %97 : vector<16x32xf32>
    %99 = vector.extract_strided_slice %81 {offsets = [0, 64], sizes = [16, 32], strides = [1, 1]} : vector<16x96xf32> to vector<16x32xf32>
    %100 = vector.extract_strided_slice %82 {offsets = [0, 64], sizes = [16, 32], strides = [1, 1]} : vector<16x96xf32> to vector<16x32xf32>
    %101 = vector.broadcast %16 : vector<1x32xf32> to vector<16x32xf32>
    %102 = arith.addf %100, %101 : vector<16x32xf32>
    %103 = arith.mulf %90, %102 : vector<16x32xf32>
    %104 = arith.addf %99, %103 : vector<16x32xf32>
    %105 = math.tanh %104 : vector<16x32xf32>
    %cst_28 = arith.constant 1.000000e+00 : f32
    %106 = vector.broadcast %cst_28 : f32 to vector<16x32xf32>
    %107 = arith.subf %106, %98 : vector<16x32xf32>
    %108 = arith.mulf %107, %105 : vector<16x32xf32>
    %109 = arith.mulf %98, %79 : vector<16x32xf32>
    %110 = arith.addf %108, %109 : vector<16x32xf32>
    %111 = vector.extract_strided_slice %14 {offsets = [3, 0, 0], sizes = [1, 16, 96], strides = [1, 1, 1]} : vector<8x16x96xf32> to vector<1x16x96xf32>
    %112 = vector.shape_cast %111 : vector<1x16x96xf32> to vector<16x96xf32>
    %cst_29 = arith.constant dense<0.000000e+00> : vector<16x96xf32>
    %113 = tpu.matmul %110, %15, %cst_29 {dimension_numbers = #tpu.dot_dimension_numbers<[1], [0], [0], [1], [0, 0, 1, 1], [], []>} : vector<16x32xf32>, vector<32x96xf32>, vector<16x96xf32> -> vector<16x96xf32>
    %114 = vector.extract_strided_slice %112 {offsets = [0, 0], sizes = [16, 32], strides = [1, 1]} : vector<16x96xf32> to vector<16x32xf32>
    %115 = vector.extract_strided_slice %113 {offsets = [0, 0], sizes = [16, 32], strides = [1, 1]} : vector<16x96xf32> to vector<16x32xf32>
    %116 = arith.addf %114, %115 : vector<16x32xf32>
    %117 = arith.negf %116 : vector<16x32xf32>
    %118 = math.exp %117 : vector<16x32xf32>
    %cst_30 = arith.constant 1.000000e+00 : f32
    %119 = vector.broadcast %cst_30 : f32 to vector<16x32xf32>
    %120 = arith.addf %119, %118 : vector<16x32xf32>
    %121 = arith.divf %119, %120 : vector<16x32xf32>
    %122 = vector.extract_strided_slice %112 {offsets = [0, 32], sizes = [16, 32], strides = [1, 1]} : vector<16x96xf32> to vector<16x32xf32>
    %123 = vector.extract_strided_slice %113 {offsets = [0, 32], sizes = [16, 32], strides = [1, 1]} : vector<16x96xf32> to vector<16x32xf32>
    %124 = arith.addf %122, %123 : vector<16x32xf32>
    %125 = arith.negf %124 : vector<16x32xf32>
    %126 = math.exp %125 : vector<16x32xf32>
    %cst_31 = arith.constant 1.000000e+00 : f32
    %127 = vector.broadcast %cst_31 : f32 to vector<16x32xf32>
    %128 = arith.addf %127, %126 : vector<16x32xf32>
    %129 = arith.divf %127, %128 : vector<16x32xf32>
    %130 = vector.extract_strided_slice %112 {offsets = [0, 64], sizes = [16, 32], strides = [1, 1]} : vector<16x96xf32> to vector<16x32xf32>
    %131 = vector.extract_strided_slice %113 {offsets = [0, 64], sizes = [16, 32], strides = [1, 1]} : vector<16x96xf32> to vector<16x32xf32>
    %132 = vector.broadcast %16 : vector<1x32xf32> to vector<16x32xf32>
    %133 = arith.addf %131, %132 : vector<16x32xf32>
    %134 = arith.mulf %121, %133 : vector<16x32xf32>
    %135 = arith.addf %130, %134 : vector<16x32xf32>
    %136 = math.tanh %135 : vector<16x32xf32>
    %cst_32 = arith.constant 1.000000e+00 : f32
    %137 = vector.broadcast %cst_32 : f32 to vector<16x32xf32>
    %138 = arith.subf %137, %129 : vector<16x32xf32>
    %139 = arith.mulf %138, %136 : vector<16x32xf32>
    %140 = arith.mulf %129, %110 : vector<16x32xf32>
    %141 = arith.addf %139, %140 : vector<16x32xf32>
    %142 = vector.extract_strided_slice %14 {offsets = [4, 0, 0], sizes = [1, 16, 96], strides = [1, 1, 1]} : vector<8x16x96xf32> to vector<1x16x96xf32>
    %143 = vector.shape_cast %142 : vector<1x16x96xf32> to vector<16x96xf32>
    %cst_33 = arith.constant dense<0.000000e+00> : vector<16x96xf32>
    %144 = tpu.matmul %141, %15, %cst_33 {dimension_numbers = #tpu.dot_dimension_numbers<[1], [0], [0], [1], [0, 0, 1, 1], [], []>} : vector<16x32xf32>, vector<32x96xf32>, vector<16x96xf32> -> vector<16x96xf32>
    %145 = vector.extract_strided_slice %143 {offsets = [0, 0], sizes = [16, 32], strides = [1, 1]} : vector<16x96xf32> to vector<16x32xf32>
    %146 = vector.extract_strided_slice %144 {offsets = [0, 0], sizes = [16, 32], strides = [1, 1]} : vector<16x96xf32> to vector<16x32xf32>
    %147 = arith.addf %145, %146 : vector<16x32xf32>
    %148 = arith.negf %147 : vector<16x32xf32>
    %149 = math.exp %148 : vector<16x32xf32>
    %cst_34 = arith.constant 1.000000e+00 : f32
    %150 = vector.broadcast %cst_34 : f32 to vector<16x32xf32>
    %151 = arith.addf %150, %149 : vector<16x32xf32>
    %152 = arith.divf %150, %151 : vector<16x32xf32>
    %153 = vector.extract_strided_slice %143 {offsets = [0, 32], sizes = [16, 32], strides = [1, 1]} : vector<16x96xf32> to vector<16x32xf32>
    %154 = vector.extract_strided_slice %144 {offsets = [0, 32], sizes = [16, 32], strides = [1, 1]} : vector<16x96xf32> to vector<16x32xf32>
    %155 = arith.addf %153, %154 : vector<16x32xf32>
    %156 = arith.negf %155 : vector<16x32xf32>
    %157 = math.exp %156 : vector<16x32xf32>
    %cst_35 = arith.constant 1.000000e+00 : f32
    %158 = vector.broadcast %cst_35 : f32 to vector<16x32xf32>
    %159 = arith.addf %158, %157 : vector<16x32xf32>
    %160 = arith.divf %158, %159 : vector<16x32xf32>
    %161 = vector.extract_strided_slice %143 {offsets = [0, 64], sizes = [16, 32], strides = [1, 1]} : vector<16x96xf32> to vector<16x32xf32>
    %162 = vector.extract_strided_slice %144 {offsets = [0, 64], sizes = [16, 32], strides = [1, 1]} : vector<16x96xf32> to vector<16x32xf32>
    %163 = vector.broadcast %16 : vector<1x32xf32> to vector<16x32xf32>
    %164 = arith.addf %162, %163 : vector<16x32xf32>
    %165 = arith.mulf %152, %164 : vector<16x32xf32>
    %166 = arith.addf %161, %165 : vector<16x32xf32>
    %167 = math.tanh %166 : vector<16x32xf32>
    %cst_36 = arith.constant 1.000000e+00 : f32
    %168 = vector.broadcast %cst_36 : f32 to vector<16x32xf32>
    %169 = arith.subf %168, %160 : vector<16x32xf32>
    %170 = arith.mulf %169, %167 : vector<16x32xf32>
    %171 = arith.mulf %160, %141 : vector<16x32xf32>
    %172 = arith.addf %170, %171 : vector<16x32xf32>
    %173 = vector.extract_strided_slice %14 {offsets = [5, 0, 0], sizes = [1, 16, 96], strides = [1, 1, 1]} : vector<8x16x96xf32> to vector<1x16x96xf32>
    %174 = vector.shape_cast %173 : vector<1x16x96xf32> to vector<16x96xf32>
    %cst_37 = arith.constant dense<0.000000e+00> : vector<16x96xf32>
    %175 = tpu.matmul %172, %15, %cst_37 {dimension_numbers = #tpu.dot_dimension_numbers<[1], [0], [0], [1], [0, 0, 1, 1], [], []>} : vector<16x32xf32>, vector<32x96xf32>, vector<16x96xf32> -> vector<16x96xf32>
    %176 = vector.extract_strided_slice %174 {offsets = [0, 0], sizes = [16, 32], strides = [1, 1]} : vector<16x96xf32> to vector<16x32xf32>
    %177 = vector.extract_strided_slice %175 {offsets = [0, 0], sizes = [16, 32], strides = [1, 1]} : vector<16x96xf32> to vector<16x32xf32>
    %178 = arith.addf %176, %177 : vector<16x32xf32>
    %179 = arith.negf %178 : vector<16x32xf32>
    %180 = math.exp %179 : vector<16x32xf32>
    %cst_38 = arith.constant 1.000000e+00 : f32
    %181 = vector.broadcast %cst_38 : f32 to vector<16x32xf32>
    %182 = arith.addf %181, %180 : vector<16x32xf32>
    %183 = arith.divf %181, %182 : vector<16x32xf32>
    %184 = vector.extract_strided_slice %174 {offsets = [0, 32], sizes = [16, 32], strides = [1, 1]} : vector<16x96xf32> to vector<16x32xf32>
    %185 = vector.extract_strided_slice %175 {offsets = [0, 32], sizes = [16, 32], strides = [1, 1]} : vector<16x96xf32> to vector<16x32xf32>
    %186 = arith.addf %184, %185 : vector<16x32xf32>
    %187 = arith.negf %186 : vector<16x32xf32>
    %188 = math.exp %187 : vector<16x32xf32>
    %cst_39 = arith.constant 1.000000e+00 : f32
    %189 = vector.broadcast %cst_39 : f32 to vector<16x32xf32>
    %190 = arith.addf %189, %188 : vector<16x32xf32>
    %191 = arith.divf %189, %190 : vector<16x32xf32>
    %192 = vector.extract_strided_slice %174 {offsets = [0, 64], sizes = [16, 32], strides = [1, 1]} : vector<16x96xf32> to vector<16x32xf32>
    %193 = vector.extract_strided_slice %175 {offsets = [0, 64], sizes = [16, 32], strides = [1, 1]} : vector<16x96xf32> to vector<16x32xf32>
    %194 = vector.broadcast %16 : vector<1x32xf32> to vector<16x32xf32>
    %195 = arith.addf %193, %194 : vector<16x32xf32>
    %196 = arith.mulf %183, %195 : vector<16x32xf32>
    %197 = arith.addf %192, %196 : vector<16x32xf32>
    %198 = math.tanh %197 : vector<16x32xf32>
    %cst_40 = arith.constant 1.000000e+00 : f32
    %199 = vector.broadcast %cst_40 : f32 to vector<16x32xf32>
    %200 = arith.subf %199, %191 : vector<16x32xf32>
    %201 = arith.mulf %200, %198 : vector<16x32xf32>
    %202 = arith.mulf %191, %172 : vector<16x32xf32>
    %203 = arith.addf %201, %202 : vector<16x32xf32>
    %204 = vector.extract_strided_slice %14 {offsets = [6, 0, 0], sizes = [1, 16, 96], strides = [1, 1, 1]} : vector<8x16x96xf32> to vector<1x16x96xf32>
    %205 = vector.shape_cast %204 : vector<1x16x96xf32> to vector<16x96xf32>
    %cst_41 = arith.constant dense<0.000000e+00> : vector<16x96xf32>
    %206 = tpu.matmul %203, %15, %cst_41 {dimension_numbers = #tpu.dot_dimension_numbers<[1], [0], [0], [1], [0, 0, 1, 1], [], []>} : vector<16x32xf32>, vector<32x96xf32>, vector<16x96xf32> -> vector<16x96xf32>
    %207 = vector.extract_strided_slice %205 {offsets = [0, 0], sizes = [16, 32], strides = [1, 1]} : vector<16x96xf32> to vector<16x32xf32>
    %208 = vector.extract_strided_slice %206 {offsets = [0, 0], sizes = [16, 32], strides = [1, 1]} : vector<16x96xf32> to vector<16x32xf32>
    %209 = arith.addf %207, %208 : vector<16x32xf32>
    %210 = arith.negf %209 : vector<16x32xf32>
    %211 = math.exp %210 : vector<16x32xf32>
    %cst_42 = arith.constant 1.000000e+00 : f32
    %212 = vector.broadcast %cst_42 : f32 to vector<16x32xf32>
    %213 = arith.addf %212, %211 : vector<16x32xf32>
    %214 = arith.divf %212, %213 : vector<16x32xf32>
    %215 = vector.extract_strided_slice %205 {offsets = [0, 32], sizes = [16, 32], strides = [1, 1]} : vector<16x96xf32> to vector<16x32xf32>
    %216 = vector.extract_strided_slice %206 {offsets = [0, 32], sizes = [16, 32], strides = [1, 1]} : vector<16x96xf32> to vector<16x32xf32>
    %217 = arith.addf %215, %216 : vector<16x32xf32>
    %218 = arith.negf %217 : vector<16x32xf32>
    %219 = math.exp %218 : vector<16x32xf32>
    %cst_43 = arith.constant 1.000000e+00 : f32
    %220 = vector.broadcast %cst_43 : f32 to vector<16x32xf32>
    %221 = arith.addf %220, %219 : vector<16x32xf32>
    %222 = arith.divf %220, %221 : vector<16x32xf32>
    %223 = vector.extract_strided_slice %205 {offsets = [0, 64], sizes = [16, 32], strides = [1, 1]} : vector<16x96xf32> to vector<16x32xf32>
    %224 = vector.extract_strided_slice %206 {offsets = [0, 64], sizes = [16, 32], strides = [1, 1]} : vector<16x96xf32> to vector<16x32xf32>
    %225 = vector.broadcast %16 : vector<1x32xf32> to vector<16x32xf32>
    %226 = arith.addf %224, %225 : vector<16x32xf32>
    %227 = arith.mulf %214, %226 : vector<16x32xf32>
    %228 = arith.addf %223, %227 : vector<16x32xf32>
    %229 = math.tanh %228 : vector<16x32xf32>
    %cst_44 = arith.constant 1.000000e+00 : f32
    %230 = vector.broadcast %cst_44 : f32 to vector<16x32xf32>
    %231 = arith.subf %230, %222 : vector<16x32xf32>
    %232 = arith.mulf %231, %229 : vector<16x32xf32>
    %233 = arith.mulf %222, %203 : vector<16x32xf32>
    %234 = arith.addf %232, %233 : vector<16x32xf32>
    %235 = vector.extract_strided_slice %14 {offsets = [7, 0, 0], sizes = [1, 16, 96], strides = [1, 1, 1]} : vector<8x16x96xf32> to vector<1x16x96xf32>
    %236 = vector.shape_cast %235 : vector<1x16x96xf32> to vector<16x96xf32>
    %cst_45 = arith.constant dense<0.000000e+00> : vector<16x96xf32>
    %237 = tpu.matmul %234, %15, %cst_45 {dimension_numbers = #tpu.dot_dimension_numbers<[1], [0], [0], [1], [0, 0, 1, 1], [], []>} : vector<16x32xf32>, vector<32x96xf32>, vector<16x96xf32> -> vector<16x96xf32>
    %238 = vector.extract_strided_slice %236 {offsets = [0, 0], sizes = [16, 32], strides = [1, 1]} : vector<16x96xf32> to vector<16x32xf32>
    %239 = vector.extract_strided_slice %237 {offsets = [0, 0], sizes = [16, 32], strides = [1, 1]} : vector<16x96xf32> to vector<16x32xf32>
    %240 = arith.addf %238, %239 : vector<16x32xf32>
    %241 = arith.negf %240 : vector<16x32xf32>
    %242 = math.exp %241 : vector<16x32xf32>
    %cst_46 = arith.constant 1.000000e+00 : f32
    %243 = vector.broadcast %cst_46 : f32 to vector<16x32xf32>
    %244 = arith.addf %243, %242 : vector<16x32xf32>
    %245 = arith.divf %243, %244 : vector<16x32xf32>
    %246 = vector.extract_strided_slice %236 {offsets = [0, 32], sizes = [16, 32], strides = [1, 1]} : vector<16x96xf32> to vector<16x32xf32>
    %247 = vector.extract_strided_slice %237 {offsets = [0, 32], sizes = [16, 32], strides = [1, 1]} : vector<16x96xf32> to vector<16x32xf32>
    %248 = arith.addf %246, %247 : vector<16x32xf32>
    %249 = arith.negf %248 : vector<16x32xf32>
    %250 = math.exp %249 : vector<16x32xf32>
    %cst_47 = arith.constant 1.000000e+00 : f32
    %251 = vector.broadcast %cst_47 : f32 to vector<16x32xf32>
    %252 = arith.addf %251, %250 : vector<16x32xf32>
    %253 = arith.divf %251, %252 : vector<16x32xf32>
    %254 = vector.extract_strided_slice %236 {offsets = [0, 64], sizes = [16, 32], strides = [1, 1]} : vector<16x96xf32> to vector<16x32xf32>
    %255 = vector.extract_strided_slice %237 {offsets = [0, 64], sizes = [16, 32], strides = [1, 1]} : vector<16x96xf32> to vector<16x32xf32>
    %256 = vector.broadcast %16 : vector<1x32xf32> to vector<16x32xf32>
    %257 = arith.addf %255, %256 : vector<16x32xf32>
    %258 = arith.mulf %245, %257 : vector<16x32xf32>
    %259 = arith.addf %254, %258 : vector<16x32xf32>
    %260 = math.tanh %259 : vector<16x32xf32>
    %cst_48 = arith.constant 1.000000e+00 : f32
    %261 = vector.broadcast %cst_48 : f32 to vector<16x32xf32>
    %262 = arith.subf %261, %253 : vector<16x32xf32>
    %263 = arith.mulf %262, %260 : vector<16x32xf32>
    %264 = arith.mulf %253, %234 : vector<16x32xf32>
    %265 = arith.addf %263, %264 : vector<16x32xf32>
    %266 = vector.shape_cast %48 : vector<16x32xf32> to vector<1x16x32xf32>
    %267 = vector.shape_cast %79 : vector<16x32xf32> to vector<1x16x32xf32>
    %268 = vector.shape_cast %110 : vector<16x32xf32> to vector<1x16x32xf32>
    %269 = vector.shape_cast %141 : vector<16x32xf32> to vector<1x16x32xf32>
    %270 = vector.shape_cast %172 : vector<16x32xf32> to vector<1x16x32xf32>
    %271 = vector.shape_cast %203 : vector<16x32xf32> to vector<1x16x32xf32>
    %272 = vector.shape_cast %234 : vector<16x32xf32> to vector<1x16x32xf32>
    %273 = vector.shape_cast %265 : vector<16x32xf32> to vector<1x16x32xf32>
    %274 = tpu.concatenate %266, %267, %268, %269, %270, %271, %272, %273 in 0 : vector<1x16x32xf32>, vector<1x16x32xf32>, vector<1x16x32xf32>, vector<1x16x32xf32>, vector<1x16x32xf32>, vector<1x16x32xf32>, vector<1x16x32xf32>, vector<1x16x32xf32> -> vector<8x16x32xf32>
    %275 = vector.shape_cast %274 : vector<8x16x32xf32> to vector<128x32xf32>
    %c0_49 = arith.constant 0 : index
    %c0_50 = arith.constant 0 : index
    %276 = vector.load %arg7[%c0_49, %c0_50] : memref<32x32xf32, #tpu.memory_space<vmem>>, vector<32x32xf32>
    %cst_51 = arith.constant dense<0.000000e+00> : vector<128x32xf32>
    %277 = tpu.matmul %275, %276, %cst_51 {dimension_numbers = #tpu.dot_dimension_numbers<[1], [0], [0], [1], [0, 0, 1, 1], [], []>} : vector<128x32xf32>, vector<32x32xf32>, vector<128x32xf32> -> vector<128x32xf32>
    %278 = vector.shape_cast %277 : vector<128x32xf32> to vector<8x16x32xf32>
    %279 = arith.addf %0, %278 : vector<8x16x32xf32>
    %c0_52 = arith.constant 0 : index
    %c0_53 = arith.constant 0 : index
    %280 = vector.load %arg8[%c0_52, %c0_53] : memref<1x32xf32, #tpu.memory_space<vmem>>, vector<1x32xf32>
    %281 = vector.shape_cast %280 : vector<1x32xf32> to vector<1x1x32xf32>
    %282 = vector.broadcast %281 : vector<1x1x32xf32> to vector<8x16x32xf32>
    %283 = arith.addf %279, %282 : vector<8x16x32xf32>
    %c0_54 = arith.constant 0 : index
    %c0_55 = arith.constant 0 : index
    %c0_56 = arith.constant 0 : index
    %284 = vector.load %arg9[%c0_54, %c0_55, %c0_56] : memref<8x16x32xf32, #tpu.memory_space<vmem>>, vector<8x16x32xf32>
    tpu.vector_store %arg9[%c0_54, %c0_55, %c0_56], %283 {strides = array<i32>} : memref<8x16x32xf32, #tpu.memory_space<vmem>>, vector<8x16x32xf32>,
    return
  }
}

</mosaic_0001>

<bundles_post_ra>
// kernel: layer_forward.5
= control target key start
LH: loop header
LB: loop body
LE: loop exit
PB: predicated region body
PF: predicated region fallthrough
CT: control target
= control target key end

     0   :  { %vm109_vm0 = vcmask 261120   ;;  %s2136_s20 = smov 64   ;;  %v2137_v55 = vmov 0.0   ;;  %s2138_s29 = smov 96   ;;  %s2774_s3 = inlined_call_operand.vmem [shape: f32[32,96], index: 3, kind: input, shape index: {}]   ;;  %s2775_s0 = inlined_call_operand.vmem [shape: f32[8,16,32], index: 0, kind: input, shape index: {}]   ;;  %s2776_s1 = inlined_call_operand.vmem [shape: f32[8,16,32], index: 1, kind: input, shape index: {}]   ;;  %s2777_s2 = inlined_call_operand.vmem [shape: f32[2,8,32], index: 2, kind: input, shape index: {}]   ;;  %s2778_s4 = inlined_call_operand.vmem [shape: f32[32,96], index: 4, kind: input, shape index: {}]   ;;  %s2779_s6 = inlined_call_operand.vmem [shape: f32[1,32], index: 6, kind: input, shape index: {}]   ;;  %s2780_s5 = inlined_call_operand.vmem [shape: f32[1,96], index: 5, kind: input, shape index: {}]   ;;  %s2781_s7 = inlined_call_operand.vmem [shape: f32[32,32], index: 7, kind: input, shape index: {}]   ;;  %s2782_s8 = inlined_call_operand.vmem [shape: f32[1,32], index: 8, kind: input, shape index: {}]   ;;  %s2783_s9 = inlined_call_operand.vmem [shape: f32[8,16,32], index: 9, kind: output, shape index: {}]  }
   0x1   :  { %v98_v0 = vld [vmem:[%s2774_s3] sm:$0xff]  ;;  %v99_v1 = vld [vmem:[%s2774_s3 + $0x8] sm:$0xff]  ;;  %v100_v2 = vld [vmem:[%s2774_s3 + $0x10] sm:$0xff] }
   0x2   :  { %v1944_v3 = vpack.c.bf16 %v99_v1, %v98_v0  ;;  %v101_v4 = vld [vmem:[%s2774_s3 + $0x18] sm:$0xff]  ;;  %v40_v5 = vld [vmem:[%s2776_s1 + $0x40] sm:$0xff]  ;;  %v2212_v8 = vld [vmem:[%s2777_s2 + $0x8] sm:$0xff] }
   0x3   :  { %v2207_v6 = vld [vmem:[%s2777_s2] sm:$0xff]  ;;  %v1948_v7 = vpack.c.bf16 %v101_v4, %v100_v2  ;;  %v41_v10 = vld [vmem:[%s2776_s1 + $0x48] sm:$0xff]  ;;  %v42_v16 = vld [vmem:[%s2776_s1 + $0x50] sm:$0xff] }
   0x4   :  { %v58_v9 = vld [vmem:[%s2775_s0 + $0x40] sm:$0xff]  ;;  %2024 = vmatprep.subr.bf16.mxu1 %v1944_v3  ;;  %v59_v12 = vld [vmem:[%s2775_s0 + $0x48] sm:$0xff]  ;;  %1945 = vmatprep.subr.bf16.mxu0 %v1944_v3  ;;  %v60_v17 = vld [vmem:[%s2775_s0 + $0x50] sm:$0xff] }
   0x5   :  { %v74_v11 = vadd.f32 %v58_v9, %v40_v5  ;;  %v303_v13 = vld [vmem:[%s2778_s4] sm:$0xff]  ;;  %v304_v14 = vld [vmem:[%s2778_s4 + $0x8] sm:$0xff]  ;;  %2026 = vmatpush3.bf16.msra.mxu1 %v1944_v3  ;;  %v75_v15 = vadd.f32 %v59_v12, %v41_v10  ;;  %v43_v18 = vld [vmem:[%s2776_s1 + $0x58] sm:$0xff]  ;;  %1947 = vmatpush3.bf16.msra.mxu0 %v1944_v3  ;;  %v76_v21 = vadd.f32 %v60_v17, %v42_v16 }
   0x6   :  { %2025 = vmatprep.subr.bf16.mxu1 %v1948_v7  ;;  %v2239_v20 = vpack.c.bf16 %v304_v14, %v303_v13  ;;  %v61_v22 = vld [vmem:[%s2775_s0 + $0x58] sm:$0xff]  ;;  %v44_v23 = vld [vmem:[%s2776_s1 + $0x60] sm:$0xff]  ;;  %1949 = vmatprep.subr.bf16.mxu0 %v1948_v7  ;;  %v305_v25 = vld [vmem:[%s2778_s4 + $0x10] sm:$0xff] }
   0x7   :  { %v90_v19 = vadd.f32 %v74_v11, %v2207_v6  ;;  %v62_v24 = vld [vmem:[%s2775_s0 + $0x60] sm:$0xff]  ;;  %v91_v26 = vadd.f32 %v75_v15, %v2212_v8  ;;  %v77_v27 = vadd.f32 %v61_v22, %v43_v18  ;;  %v45_v29 = vld [vmem:[%s2776_s1 + $0x68] sm:$0xff]  ;;  %v306_v31 = vld [vmem:[%s2778_s4 + $0x18] sm:$0xff]  ;;  %v92_v32 = vadd.f32 %v76_v21, %v2207_v6 }
   0x8   :  { %v78_v28 = vadd.f32 %v62_v24, %v44_v23  ;;  %v63_v30 = vld [vmem:[%s2775_s0 + $0x68] sm:$0xff]  ;;  %v46_v33 = vld [vmem:[%s2776_s1 + $0x70] sm:$0xff]  ;;  %v2274_v35 = vld [vmem:[%s2776_s1] sm:$0xff]  ;;  %v2277_v36 = vpack.c.bf16 %v306_v31, %v305_v25 }
   0x9   :  { %1812 = vmatprep.mubr.msk.f32.mxu1 %vm109_vm0, %v90_v19  ;;  %2027 = vmatpush3.bf16.msra.mxu1 %v1948_v7  ;;  %v64_v34 = vld [vmem:[%s2775_s0 + $0x70] sm:$0xff]  ;;  %v50_v37 = vld [vmem:[%s2775_s0] sm:$0xff]  ;;  %v2285_v38 = vld [vmem:[%s2776_s1 + $0x8] sm:$0xff]  ;;  %v93_v43 = vadd.f32 %v77_v27, %v2212_v8  ;;  %v79_v45 = vadd.f32 %v63_v30, %v45_v29 }
   0xa   :  { %1951 = vmatpush3.bf16.msra.mxu0 %v1948_v7  ;;  %1953 = vmatprep.subr.bf16.mxu1 %v2239_v20  ;;  %v51_v39 = vld [vmem:[%s2775_s0 + $0x8] sm:$0xff]  ;;  %v66_v40 = vadd.f32 %v50_v37, %v2274_v35  ;;  %v1658_v42 = vld [vmem:[%s2779_s6] ss:$0 sm:$0xff]  ;;  %v94_v44 = vadd.f32 %v78_v28, %v2207_v6  ;;  %v80_v46 = vadd.f32 %v64_v34, %v46_v33  ;;  %v47_v47 = vld [vmem:[%s2776_s1 + $0x78] sm:$0xff] }
   0xb   :  { %1985 = vmatprep.subr.bf16.mxu0 %v2239_v20  ;;  %v67_v41 = vadd.f32 %v51_v39, %v2285_v38  ;;  %405 = vrot.lane.b32.xlu0 %v1658_v42, %s2136_s20  ;;  %v65_v48 = vld [vmem:[%s2775_s0 + $0x78] sm:$0xff]  ;;  %v95_v51 = vadd.f32 %v79_v45, %v2212_v8  ;;  %v2356_v9 = vld [vmem:[%s2780_s5] ss:$0 sm:$0xff]  ;;  %v2365_v31 = vld [vmem:[%s2776_s1 + $0x10] sm:$0xff] }
   0xc   :  { %1813 = vmatmul.mubr.msk.f32.vlgmr.msra.gmra.mrb[0].mxu1 %vm109_vm0, %v91_v26  ;;  %v82_v49 = vadd.f32 %v66_v40, %v2207_v6  ;;  %v81_v52 = vadd.f32 %v65_v48, %v47_v47  ;;  %v96_v53 = vadd.f32 %v80_v46, %v2207_v6  ;;  %v2378_v40 = vld [vmem:[%s2776_s1 + $0x18] sm:$0xff] }
   0xd   :  { %1955 = vmatpush3.bf16.msra.mxu1 %v2239_v20  ;;  %1815 = vmatprep.mubr.msk.f32.mxu1 %vm109_vm0, %v92_v32  ;;  %v83_v50 = vadd.f32 %v67_v41, %v2212_v8  ;;  %v52_v32 = vld [vmem:[%s2775_s0 + $0x10] sm:$0xff]  ;;  %v53_v41 = vld [vmem:[%s2775_s0 + $0x18] sm:$0xff] }
   0xe   :  { %1957 = vmatprep.subr.bf16.mxu1 %v2277_v36  ;;  %1800 = vmatprep.mubr.msk.f32.mxu0 %vm109_vm0, %v82_v49  ;;  %v97_v54 = vadd.f32 %v81_v52, %v2212_v8  ;;  %v68_v33 = vadd.f32 %v52_v32, %v2365_v31  ;;  %v69_v42 = vadd.f32 %v53_v41, %v2378_v40  ;;  %v2417_v32 = vld [vmem:[%s2776_s1 + $0x20] sm:$0xff] }
   0xf   :  { %1801 = vmatmul.mubr.msk.f32.vlgmr.msra.gmra.mrb[0].mxu0 %vm109_vm0, %v83_v50 }
  0x10   :  { %1816 = vmatmul.mubr.msk.f32.gmra.mrb[2].mxu1 %vm109_vm0, %v93_v43  ;;  %1987 = vmatpush3.bf16.msra.mxu0 %v2239_v20  ;;  %v84_v34 = vadd.f32 %v68_v33, %v2207_v6  ;;  %v85_v43 = vadd.f32 %v69_v42, %v2212_v8  ;;  %v54_v33 = vld [vmem:[%s2775_s0 + $0x20] sm:$0xff]  ;;  %v2430_v42 = vld [vmem:[%s2776_s1 + $0x28] sm:$0xff] }
  0x11   :  { %1818 = vmatprep.mubr.msk.f32.mxu1 %vm109_vm0, %v94_v44  ;;  %1959 = vmatpush3.bf16.msra.mxu1 %v2277_v36 }
  0x12   :  { %1961 = vmatprep.subr.bf16.mxu1 %v2239_v20  ;;  %1989 = vmatprep.subr.bf16.mxu0 %v2277_v36 }
  0x13   :  { %1803 = vmatprep.mubr.msk.f32.mxu0 %vm109_vm0, %v84_v34  ;;  %v70_v34 = vadd.f32 %v54_v33, %v2417_v32 }
  0x14   :  { %1819 = vmatmul.mubr.msk.f32.gmra.mrb[4].mxu1 %vm109_vm0, %v95_v51  ;;  %1991 = vmatpush3.bf16.msra.mxu0 %v2277_v36 }
  0x15   :  { %1821 = vmatprep.mubr.msk.f32.mxu1 %vm109_vm0, %v96_v53  ;;  %2001 = vmatprep.subr.bf16.mxu0 %v2239_v20 }
  0x16   :  { %1804 = vmatmul.mubr.msk.f32.gmra.mrb[2].mxu0 %vm109_vm0, %v85_v43  ;;  %v55_v43 = vld [vmem:[%s2775_s0 + $0x28] sm:$0xff] }
  0x18   :  { %1822 = vmatmul.mubr.msk.f32.gmra.mrb[6].mxu1 %vm109_vm0, %v97_v54 }
  0x19   :  { %1832 = vmatprep.mubr.f32.mxu1 %v2137_v55 }
  0x1c   :  { %1833 = vmatmul.mubr.f32.vlgmr.msra.gmra.mrb[8].mxu1 %v2137_v55 }
  0x1d   :  { %1963 = vmatpush3.bf16.msra.mxu1 %v2239_v20 }
  0x1e   :  { %1965 = vmatprep.subr.bf16.mxu1 %v2277_v36 }
  0x21   :  { %1967 = vmatpush3.bf16.msra.mxu1 %v2277_v36 }
  0x22   :  { %1969 = vmatprep.subr.bf16.mxu1 %v2239_v20 }
  0x7d   :  { %v2347_v2 = vpop.permute.xlu0 %405 }
  0xdf   :  { %v2331_v56 = vpop.f32.mrb[0].mxu1 }
  0xe0   :  { %v2333_v57 = vpop.f32.mrb[1].mxu1 }
  0xe2   :  { %v1802_v59 = vpop.f32.mrb[0].mxu0 }
  0xe3   :  { %v2335_v58 = vpop.f32.mrb[2].mxu1  ;;  %v224_v61 = vpop.f32.mrb[1].mxu0  ;;  %v230_v10 = vadd.f32 %v1802_v59, %v2356_v9 }
  0xe4   :  { %v2337_v60 = vpop.f32.mrb[3].mxu1  ;;  %v225_v11 = vadd.f32 %v2356_v9, %v224_v61 }
  0xe7   :  { %v2339_v62 = vpop.f32.mrb[4].mxu1 }
  0xe8   :  { %v2341_v63 = vpop.f32.mrb[5].mxu1 }
  0xe9   :  { %v1805_v59 = vpop.f32.mrb[2].mxu0 }
  0xea   :  { %v234_v61 = vpop.f32.mrb[3].mxu0 }
  0xeb   :  { %v2343_v0 = vpop.f32.mrb[6].mxu1 }
  0xec   :  { %v2345_v1 = vpop.f32.mrb[7].mxu1 }
  0xef   :  { %v1834_v3 = vpop.f32.mrb[8].mxu1 }
  0xf0   :  { %v377_v4 = vpop.f32.mrb[9].mxu1  ;;  %v409_v5 = vadd.f32 %v1834_v3, %v2347_v2  ;;  %v387_v12 = vadd.f32 %v1834_v3, %v230_v10 }
  0xf1   :  { %v408_v7 = vadd.f32 %v2347_v2, %v377_v4  ;;  %v386_v13 = vadd.f32 %v377_v4, %v225_v11 }
  0xf2   :  { %414 = vrot.lane.b32.xlu1 %v409_v5, %s2136_s20  ;;  %v1657_v14 = vmul.f32 -1.442695, %v387_v12 }
  0xf3   :  { %412 = vrot.lane.b32.xlu0 %v408_v7, %s2136_s20  ;;  %v1656_v15 = vmul.f32 -1.442695, %v386_v13 }
  0xf4   :  { %2031 = vpow2.f32 %v1657_v14 }
  0xf5   :  { %2033 = vpow2.f32 %v1656_v15 }
  0xfe   :  { %v2032_v16 = vpop.eup %2031 }
  0xff   :  { %v2034_v17 = vpop.eup %2033  ;;  %v395_v18 = vadd.f32 1.0, %v2032_v16 }
 0x100   :  { %v394_v19 = vadd.f32 1.0, %v2034_v17 }
 0x101   :  { %2035 = vrcp.f32 %v395_v18 }
 0x102   :  { %2037 = vrcp.f32 %v394_v19 }
 0x10b   :  { %v2036_v21 = vpop.eup %2035 }
 0x10c   :  { %v2038_v23 = vpop.eup %2037  ;;  %v433_v44 = vsub.f32 1.0, %v2036_v21  ;;  %v445_v47 = vmul.f32 0.0, %v2036_v21 }
 0x10d   :  { %v432_v46 = vsub.f32 1.0, %v2038_v23  ;;  %v444_v50 = vmul.f32 0.0, %v2038_v23 }
 0x164   :  { %v415_v22 = vpop.permute.xlu1 %414 }
 0x165   :  { %v419_v24 = vmul.f32 %v2036_v21, %v415_v22  ;;  %v413_v25 = vpop.permute.xlu0 %412 }
 0x166   :  { %v418_v26 = vmul.f32 %v2038_v23, %v413_v25 }
 0x167   :  { %424 = vrot.lane.b32.xlu0 %v419_v24, %s2136_s20 }
 0x168   :  { %422 = vrot.lane.b32.xlu1 %v418_v26, %s2136_s20 }
 0x1d9   :  { %v425_v27 = vpop.permute.xlu0 %424 }
 0x1da   :  { %v429_v28 = vadd.f32 %v425_v27, %v230_v10  ;;  %v423_v29 = vpop.permute.xlu1 %422  ;;  %v240_v10 = vadd.f32 %v1805_v59, %v2356_v9 }
 0x1db   :  { %v428_v30 = vadd.f32 %v423_v29, %v225_v11  ;;  %v235_v11 = vadd.f32 %v2356_v9, %v234_v61 }
 0x1dc   :  { %2039 = vtanh.f32 %v429_v28 }
 0x1dd   :  { %2041 = vtanh.f32 %v428_v30 }
 0x1e6   :  { %v2040_v37 = vpop.eup %2039 }
 0x1e7   :  { %v2042_v39 = vpop.eup %2041  ;;  %438 = vrot.lane.b32.xlu0 %v2040_v37, %s2138_s29  ;;  %v86_v37 = vadd.f32 %v70_v34, %v2207_v6 }
 0x1e8   :  { %436 = vrot.lane.b32.xlu1 %v2042_v39, %s2138_s29 }
 0x1e9   :  { %1806 = vmatprep.mubr.msk.f32.mxu0 %vm109_vm0, %v86_v37 }
 0x259   :  { %v439_v45 = vpop.permute.xlu0 %438 }
 0x25a   :  { %v443_v48 = vmul.f32 %v439_v45, %v433_v44  ;;  %v437_v49 = vpop.permute.xlu1 %436  ;;  %v71_v44 = vadd.f32 %v55_v43, %v2430_v42  ;;  %v56_v43 = vld [vmem:[%s2775_s0 + $0x30] sm:$0xff] }
 0x25b   :  { %v442_v51 = vmul.f32 %v437_v49, %v432_v46 }
 0x25c   :  { %v2386_v52 = vadd.f32 %v445_v47, %v443_v48  ;;  %v87_v45 = vadd.f32 %v71_v44, %v2212_v8 }
 0x25d   :  { %v2388_v53 = vadd.f32 %v444_v50, %v442_v51 }
 0x25e   :  { %452 = vrot.lane.b32.xlu0 %v2386_v52, %s2138_s29  ;;  %1807 = vmatmul.mubr.msk.f32.gmra.mrb[4].mxu0 %vm109_vm0, %v87_v45 }
 0x25f   :  { %450 = vrot.lane.b32.xlu1 %v2388_v53, %s2138_s29 }
 0x2d0   :  { %v2396_v55 = vpop.permute.xlu0 %452 }
 0x2d1   :  { %v2394_v54 = vpop.permute.xlu1 %450 }
 0x2d2   :  { %1843 = vmatprep.mubr.msk.f32.mxu1 %vm109_vm0, %v2394_v54 }
 0x2d3   :  { %1844 = vmatmul.mubr.msk.f32.vlgmr.msra.gmra.mrb[10].mxu1 %vm109_vm0, %v2396_v55 }
 0x2d4   :  { %1971 = vmatpush3.bf16.msra.mxu1 %v2239_v20 }
 0x2d5   :  { %1973 = vmatprep.subr.bf16.mxu1 %v2277_v36 }
 0x2d8   :  { %1975 = vmatpush3.bf16.msra.mxu1 %v2277_v36 }
 0x2d9   :  { %1977 = vmatprep.subr.bf16.mxu1 %v2239_v20 }
 0x3a6   :  { %v1845_v3 = vpop.f32.mrb[10].mxu1 }
 0x3a7   :  { %v548_v4 = vadd.f32 %v1845_v3, %v2347_v2  ;;  %v524_v5 = vpop.f32.mrb[11].mxu1  ;;  %v534_v12 = vadd.f32 %v1845_v3, %v240_v10 }
 0x3a8   :  { %v547_v7 = vadd.f32 %v524_v5, %v2347_v2  ;;  %v533_v13 = vadd.f32 %v524_v5, %v235_v11 }
 0x3a9   :  { %553 = vrot.lane.b32.xlu0 %v548_v4, %s2136_s20  ;;  %v1662_v14 = vmul.f32 -1.442695, %v534_v12 }
 0x3aa   :  { %551 = vrot.lane.b32.xlu1 %v547_v7, %s2136_s20  ;;  %v1661_v15 = vmul.f32 -1.442695, %v533_v13 }
 0x3ab   :  { %2043 = vpow2.f32 %v1662_v14 }
 0x3ac   :  { %2045 = vpow2.f32 %v1661_v15 }
 0x3b5   :  { %v2044_v16 = vpop.eup %2043 }
 0x3b6   :  { %v2046_v17 = vpop.eup %2045  ;;  %v542_v18 = vadd.f32 1.0, %v2044_v16 }
 0x3b7   :  { %v541_v19 = vadd.f32 1.0, %v2046_v17 }
 0x3b8   :  { %2047 = vrcp.f32 %v542_v18 }
 0x3b9   :  { %2049 = vrcp.f32 %v541_v19 }
 0x3c2   :  { %v2048_v21 = vpop.eup %2047 }
 0x3c3   :  { %v2050_v23 = vpop.eup %2049  ;;  %v572_v46 = vsub.f32 1.0, %v2048_v21  ;;  %v584_v49 = vmul.f32 %v2048_v21, %v2386_v52  ;;  %v1808_v52 = vpop.f32.mrb[4].mxu0 }
 0x3c4   :  { %v571_v48 = vsub.f32 1.0, %v2050_v23  ;;  %v583_v59 = vmul.f32 %v2050_v23, %v2388_v53  ;;  %v244_v53 = vpop.f32.mrb[5].mxu0  ;;  %v250_v14 = vadd.f32 %v1808_v52, %v2356_v9 }
 0x3c5   :  { %v245_v15 = vadd.f32 %v2356_v9, %v244_v53 }
 0x41b   :  { %v554_v22 = vpop.permute.xlu0 %553 }
 0x41c   :  { %v558_v24 = vmul.f32 %v2048_v21, %v554_v22  ;;  %v552_v25 = vpop.permute.xlu1 %551 }
 0x41d   :  { %v557_v26 = vmul.f32 %v2050_v23, %v552_v25 }
 0x41e   :  { %563 = vrot.lane.b32.xlu0 %v558_v24, %s2136_s20 }
 0x41f   :  { %561 = vrot.lane.b32.xlu1 %v557_v26, %s2136_s20 }
 0x490   :  { %v564_v27 = vpop.permute.xlu0 %563 }
 0x491   :  { %v568_v28 = vadd.f32 %v564_v27, %v240_v10  ;;  %v562_v29 = vpop.permute.xlu1 %561 }
 0x492   :  { %v567_v30 = vadd.f32 %v562_v29, %v235_v11 }
 0x493   :  { %2051 = vtanh.f32 %v568_v28 }
 0x494   :  { %2053 = vtanh.f32 %v567_v30 }
 0x49d   :  { %v2052_v39 = vpop.eup %2051 }
 0x49e   :  { %v2054_v41 = vpop.eup %2053  ;;  %577 = vrot.lane.b32.xlu0 %v2052_v39, %s2138_s29 }
 0x49f   :  { %575 = vrot.lane.b32.xlu1 %v2054_v41, %s2138_s29  ;;  %v2471_v41 = vld [vmem:[%s2776_s1 + $0x30] sm:$0xff] }
 0x4a0   :  { %v72_v44 = vadd.f32 %v56_v43, %v2471_v41 }
 0x4a2   :  { %v88_v45 = vadd.f32 %v72_v44, %v2207_v6 }
 0x4a4   :  { %1809 = vmatprep.mubr.msk.f32.mxu0 %vm109_vm0, %v88_v45 }
 0x510   :  { %v578_v47 = vpop.permute.xlu0 %577 }
 0x511   :  { %v582_v50 = vmul.f32 %v578_v47, %v572_v46  ;;  %v576_v51 = vpop.permute.xlu1 %575 }
 0x512   :  { %v581_v61 = vmul.f32 %v576_v51, %v571_v48  ;;  %v2484_v48 = vld [vmem:[%s2776_s1 + $0x38] sm:$0xff] }
 0x513   :  { %v2440_v3 = vadd.f32 %v584_v49, %v582_v50  ;;  %v57_v49 = vld [vmem:[%s2775_s0 + $0x38] sm:$0xff] }
 0x514   :  { %v2442_v4 = vadd.f32 %v583_v59, %v581_v61  ;;  %v73_v50 = vadd.f32 %v57_v49, %v2484_v48 }
 0x515   :  { %591 = vrot.lane.b32.xlu0 %v2440_v3, %s2138_s29 }
 0x516   :  { %589 = vrot.lane.b32.xlu1 %v2442_v4, %s2138_s29  ;;  %v89_v6 = vadd.f32 %v73_v50, %v2212_v8 }
 0x518   :  { %1810 = vmatmul.mubr.msk.f32.gmra.mrb[6].mxu0 %vm109_vm0, %v89_v6 }
 0x587   :  { %v2450_v7 = vpop.permute.xlu0 %591 }
 0x588   :  { %v2448_v5 = vpop.permute.xlu1 %589 }
 0x589   :  { %1854 = vmatprep.mubr.msk.f32.mxu1 %vm109_vm0, %v2448_v5 }
 0x58a   :  { %1855 = vmatmul.mubr.msk.f32.vlgmr.msra.gmra.mrb[12].mxu1 %vm109_vm0, %v2450_v7 }
 0x58b   :  { %1979 = vmatpush3.bf16.msra.mxu1 %v2239_v20 }
 0x58c   :  { %1981 = vmatprep.subr.bf16.mxu1 %v2277_v36 }
 0x58f   :  { %1983 = vmatpush3.bf16.msra.mxu1 %v2277_v36 }
 0x590   :  { %1993 = vmatprep.subr.bf16.mxu1 %v2239_v20 }
 0x65d   :  { %v1856_v10 = vpop.f32.mrb[12].mxu1 }
 0x65e   :  { %v687_v11 = vadd.f32 %v1856_v10, %v2347_v2  ;;  %v663_v12 = vpop.f32.mrb[13].mxu1  ;;  %v673_v16 = vadd.f32 %v1856_v10, %v250_v14 }
 0x65f   :  { %v686_v13 = vadd.f32 %v663_v12, %v2347_v2  ;;  %v672_v17 = vadd.f32 %v663_v12, %v245_v15 }
 0x660   :  { %692 = vrot.lane.b32.xlu0 %v687_v11, %s2136_s20  ;;  %v1666_v18 = vmul.f32 -1.442695, %v673_v16 }
 0x661   :  { %690 = vrot.lane.b32.xlu1 %v686_v13, %s2136_s20  ;;  %v1665_v19 = vmul.f32 -1.442695, %v672_v17 }
 0x662   :  { %2055 = vpow2.f32 %v1666_v18 }
 0x663   :  { %2057 = vpow2.f32 %v1665_v19 }
 0x66c   :  { %v2056_v21 = vpop.eup %2055 }
 0x66d   :  { %v2058_v22 = vpop.eup %2057  ;;  %v681_v23 = vadd.f32 1.0, %v2056_v21 }
 0x66e   :  { %v680_v24 = vadd.f32 1.0, %v2058_v22 }
 0x66f   :  { %2059 = vrcp.f32 %v681_v23 }
 0x670   :  { %2061 = vrcp.f32 %v680_v24 }
 0x679   :  { %v2060_v25 = vpop.eup %2059 }
 0x67a   :  { %v2062_v27 = vpop.eup %2061  ;;  %v711_v51 = vsub.f32 1.0, %v2060_v25  ;;  %v723_v52 = vmul.f32 %v2060_v25, %v2440_v3  ;;  %v1811_v3 = vpop.f32.mrb[6].mxu0 }
 0x67b   :  { %v710_v61 = vsub.f32 1.0, %v2062_v27  ;;  %v722_v11 = vmul.f32 %v2062_v27, %v2442_v4  ;;  %v254_v4 = vpop.f32.mrb[7].mxu0  ;;  %v260_v21 = vadd.f32 %v1811_v3, %v2356_v9 }
 0x67c   :  { %v255_v22 = vadd.f32 %v2356_v9, %v254_v4 }
 0x6d2   :  { %v693_v26 = vpop.permute.xlu0 %692 }
 0x6d3   :  { %v697_v28 = vmul.f32 %v2060_v25, %v693_v26  ;;  %v691_v29 = vpop.permute.xlu1 %690 }
 0x6d4   :  { %v696_v30 = vmul.f32 %v2062_v27, %v691_v29 }
 0x6d5   :  { %702 = vrot.lane.b32.xlu0 %v697_v28, %s2136_s20 }
 0x6d6   :  { %700 = vrot.lane.b32.xlu1 %v696_v30, %s2136_s20 }
 0x747   :  { %v703_v33 = vpop.permute.xlu0 %702 }
 0x748   :  { %v707_v34 = vadd.f32 %v703_v33, %v250_v14  ;;  %v701_v37 = vpop.permute.xlu1 %700 }
 0x749   :  { %v706_v39 = vadd.f32 %v701_v37, %v245_v15 }
 0x74a   :  { %2063 = vtanh.f32 %v707_v34 }
 0x74b   :  { %2065 = vtanh.f32 %v706_v39 }
 0x754   :  { %v2064_v46 = vpop.eup %2063 }
 0x755   :  { %v2066_v47 = vpop.eup %2065  ;;  %716 = vrot.lane.b32.xlu0 %v2064_v46, %s2138_s29 }
 0x756   :  { %714 = vrot.lane.b32.xlu1 %v2066_v47, %s2138_s29 }
 0x7c7   :  { %v717_v59 = vpop.permute.xlu0 %716 }
 0x7c8   :  { %v721_v53 = vmul.f32 %v717_v59, %v711_v51  ;;  %v715_v10 = vpop.permute.xlu1 %714 }
 0x7c9   :  { %v720_v12 = vmul.f32 %v715_v10, %v710_v61 }
 0x7ca   :  { %v725_v13 = vadd.f32 %v723_v52, %v721_v53 }
 0x7cb   :  { %v724_v14 = vadd.f32 %v722_v11, %v720_v12 }
 0x7cc   :  { %730 = vrot.lane.b32.xlu0 %v725_v13, %s2138_s29 }
 0x7cd   :  { %728 = vrot.lane.b32.xlu1 %v724_v14, %s2138_s29 }
 0x83e   :  { %v2498_v8 = vpop.permute.xlu0 %730 }
 0x83f   :  { %v2496_v15 = vpop.permute.xlu1 %728 }
 0x840   :  { %1865 = vmatprep.mubr.msk.f32.mxu1 %vm109_vm0, %v2496_v15 }
 0x841   :  { %1866 = vmatmul.mubr.msk.f32.vlgmr.msra.gmra.mrb[14].mxu1 %vm109_vm0, %v2498_v8 }
 0x842   :  { %1995 = vmatpush3.bf16.msra.mxu1 %v2239_v20 }
 0x843   :  { %1997 = vmatprep.subr.bf16.mxu1 %v2277_v36 }
 0x846   :  { %1999 = vmatpush3.bf16.msra.mxu1 %v2277_v36 }
 0x847   :  { %2009 = vmatprep.subr.bf16.mxu1 %v2239_v20 }
 0x914   :  { %v1867_v16 = vpop.f32.mrb[14].mxu1 }
 0x915   :  { %v826_v17 = vadd.f32 %v1867_v16, %v2347_v2  ;;  %v802_v18 = vpop.f32.mrb[15].mxu1  ;;  %v812_v23 = vadd.f32 %v1867_v16, %v260_v21 }
 0x916   :  { %v825_v19 = vadd.f32 %v802_v18, %v2347_v2  ;;  %v811_v24 = vadd.f32 %v802_v18, %v255_v22 }
 0x917   :  { %831 = vrot.lane.b32.xlu0 %v826_v17, %s2136_s20  ;;  %v1670_v25 = vmul.f32 -1.442695, %v812_v23 }
 0x918   :  { %829 = vrot.lane.b32.xlu1 %v825_v19, %s2136_s20  ;;  %v1669_v26 = vmul.f32 -1.442695, %v811_v24 }
 0x919   :  { %2067 = vpow2.f32 %v1670_v25 }
 0x91a   :  { %2069 = vpow2.f32 %v1669_v26 }
 0x923   :  { %v2068_v27 = vpop.eup %2067 }
 0x924   :  { %v2070_v28 = vpop.eup %2069  ;;  %v820_v29 = vadd.f32 1.0, %v2068_v27 }
 0x925   :  { %v819_v30 = vadd.f32 1.0, %v2070_v28 }
 0x926   :  { %2071 = vrcp.f32 %v820_v29 }
 0x927   :  { %2073 = vrcp.f32 %v819_v30 }
 0x930   :  { %v2072_v33 = vpop.eup %2071 }
 0x931   :  { %v2074_v37 = vpop.eup %2073  ;;  %v850_v51 = vsub.f32 1.0, %v2072_v33  ;;  %v862_v52 = vmul.f32 %v2072_v33, %v725_v13 }
 0x932   :  { %v849_v61 = vsub.f32 1.0, %v2074_v37  ;;  %v861_v11 = vmul.f32 %v2074_v37, %v724_v14 }
 0x989   :  { %v832_v34 = vpop.permute.xlu0 %831 }
 0x98a   :  { %v836_v39 = vmul.f32 %v2072_v33, %v832_v34  ;;  %v830_v43 = vpop.permute.xlu1 %829 }
 0x98b   :  { %v835_v44 = vmul.f32 %v2074_v37, %v830_v43 }
 0x98c   :  { %841 = vrot.lane.b32.xlu0 %v836_v39, %s2136_s20 }
 0x98d   :  { %839 = vrot.lane.b32.xlu1 %v835_v44, %s2136_s20 }
 0x9fe   :  { %v842_v45 = vpop.permute.xlu0 %841 }
 0x9ff   :  { %v846_v46 = vadd.f32 %v842_v45, %v260_v21  ;;  %v840_v47 = vpop.permute.xlu1 %839  ;;  %v270_v21 = vadd.f32 %v2331_v56, %v2356_v9 }
 0xa00   :  { %v845_v49 = vadd.f32 %v840_v47, %v255_v22  ;;  %v265_v22 = vadd.f32 %v2356_v9, %v2333_v57 }
 0xa01   :  { %2075 = vtanh.f32 %v846_v46 }
 0xa02   :  { %2077 = vtanh.f32 %v845_v49 }
 0xa0b   :  { %v2076_v50 = vpop.eup %2075 }
 0xa0c   :  { %v2078_v6 = vpop.eup %2077  ;;  %855 = vrot.lane.b32.xlu0 %v2076_v50, %s2138_s29 }
 0xa0d   :  { %853 = vrot.lane.b32.xlu1 %v2078_v6, %s2138_s29 }
 0xa7e   :  { %v856_v59 = vpop.permute.xlu0 %855 }
 0xa7f   :  { %v860_v53 = vmul.f32 %v856_v59, %v850_v51  ;;  %v854_v10 = vpop.permute.xlu1 %853 }
 0xa80   :  { %v859_v12 = vmul.f32 %v854_v10, %v849_v61 }
 0xa81   :  { %v864_v3 = vadd.f32 %v862_v52, %v860_v53 }
 0xa82   :  { %v863_v4 = vadd.f32 %v861_v11, %v859_v12 }
 0xa83   :  { %869 = vrot.lane.b32.xlu0 %v864_v3, %s2138_s29 }
 0xa84   :  { %867 = vrot.lane.b32.xlu1 %v863_v4, %s2138_s29 }
 0xaf5   :  { %v2522_v17 = vpop.permute.xlu0 %869 }
 0xaf6   :  { %v2520_v16 = vpop.permute.xlu1 %867 }
 0xaf7   :  { %1876 = vmatprep.mubr.msk.f32.mxu0 %vm109_vm0, %v2520_v16 }
 0xaf8   :  { %1877 = vmatmul.mubr.msk.f32.vlgmr.msra.gmra.mrb[8].mxu0 %vm109_vm0, %v2522_v17 }
 0xaf9   :  { %2003 = vmatpush3.bf16.msra.mxu0 %v2239_v20 }
 0xafa   :  { %2005 = vmatprep.subr.bf16.mxu0 %v2277_v36 }
 0xafd   :  { %2007 = vmatpush3.bf16.msra.mxu0 %v2277_v36 }
 0xbcb   :  { %v1878_v13 = vpop.f32.mrb[8].mxu0 }
 0xbcc   :  { %v965_v14 = vadd.f32 %v1878_v13, %v2347_v2  ;;  %v941_v18 = vpop.f32.mrb[9].mxu0  ;;  %v951_v23 = vadd.f32 %v1878_v13, %v270_v21 }
 0xbcd   :  { %v964_v19 = vadd.f32 %v941_v18, %v2347_v2  ;;  %v950_v24 = vadd.f32 %v941_v18, %v265_v22 }
 0xbce   :  { %970 = vrot.lane.b32.xlu0 %v965_v14, %s2136_s20  ;;  %v1674_v25 = vmul.f32 -1.442695, %v951_v23 }
 0xbcf   :  { %968 = vrot.lane.b32.xlu1 %v964_v19, %s2136_s20  ;;  %v1673_v26 = vmul.f32 -1.442695, %v950_v24 }
 0xbd0   :  { %2079 = vpow2.f32 %v1674_v25 }
 0xbd1   :  { %2081 = vpow2.f32 %v1673_v26 }
 0xbda   :  { %v2080_v27 = vpop.eup %2079 }
 0xbdb   :  { %v2082_v28 = vpop.eup %2081  ;;  %v959_v29 = vadd.f32 1.0, %v2080_v27 }
 0xbdc   :  { %v958_v30 = vadd.f32 1.0, %v2082_v28 }
 0xbdd   :  { %2083 = vrcp.f32 %v959_v29 }
 0xbde   :  { %2085 = vrcp.f32 %v958_v30 }
 0xbe7   :  { %v2084_v33 = vpop.eup %2083 }
 0xbe8   :  { %v2086_v37 = vpop.eup %2085  ;;  %v989_v50 = vsub.f32 1.0, %v2084_v33  ;;  %v1001_v59 = vmul.f32 %v2084_v33, %v864_v3 }
 0xbe9   :  { %v988_v51 = vsub.f32 1.0, %v2086_v37  ;;  %v1000_v53 = vmul.f32 %v2086_v37, %v863_v4 }
 0xc40   :  { %v971_v34 = vpop.permute.xlu0 %970 }
 0xc41   :  { %v975_v39 = vmul.f32 %v2084_v33, %v971_v34  ;;  %v969_v56 = vpop.permute.xlu1 %968 }
 0xc42   :  { %v974_v43 = vmul.f32 %v2086_v37, %v969_v56 }
 0xc43   :  { %980 = vrot.lane.b32.xlu0 %v975_v39, %s2136_s20 }
 0xc44   :  { %978 = vrot.lane.b32.xlu1 %v974_v43, %s2136_s20 }
 0xcb5   :  { %v981_v57 = vpop.permute.xlu0 %980 }
 0xcb6   :  { %v985_v44 = vadd.f32 %v981_v57, %v270_v21  ;;  %v979_v45 = vpop.permute.xlu1 %978  ;;  %v280_v21 = vadd.f32 %v2335_v58, %v2356_v9 }
 0xcb7   :  { %v984_v46 = vadd.f32 %v979_v45, %v265_v22  ;;  %v1421_v45 = vld [vmem:[%s2781_s7] sm:$0xff] }
 0xcb8   :  { %2087 = vtanh.f32 %v985_v44 }
 0xcb9   :  { %2089 = vtanh.f32 %v984_v46  ;;  %v1422_v46 = vld [vmem:[%s2781_s7 + $0x8] sm:$0xff] }
 0xcc2   :  { %v2088_v47 = vpop.eup %2087 }
 0xcc3   :  { %v2090_v49 = vpop.eup %2089  ;;  %994 = vrot.lane.b32.xlu0 %v2088_v47, %s2138_s29  ;;  %v2016_v47 = vpack.c.bf16 %v1422_v46, %v1421_v45  ;;  %v2130_v46 = vld [vmem:[%s2776_s1 + $0x50] sm:$0xff] }
 0xcc4   :  { %992 = vrot.lane.b32.xlu1 %v2090_v49, %s2138_s29 }
 0xcc5   :  { %2017 = vmatprep.subr.bf16.mxu0 %v2016_v47 }
 0xd35   :  { %v995_v6 = vpop.permute.xlu0 %994 }
 0xd36   :  { %v999_v61 = vmul.f32 %v995_v6, %v989_v50  ;;  %v993_v52 = vpop.permute.xlu1 %992 }
 0xd37   :  { %v998_v10 = vmul.f32 %v993_v52, %v988_v51 }
 0xd38   :  { %v1003_v11 = vadd.f32 %v1001_v59, %v999_v61 }
 0xd39   :  { %v1002_v12 = vadd.f32 %v1000_v53, %v998_v10 }
 0xd3a   :  { %1008 = vrot.lane.b32.xlu0 %v1003_v11, %s2138_s29 }
 0xd3b   :  { %1006 = vrot.lane.b32.xlu1 %v1002_v12, %s2138_s29 }
 0xdac   :  { %v2547_v14 = vpop.permute.xlu0 %1008 }
 0xdad   :  { %v2545_v13 = vpop.permute.xlu1 %1006 }
 0xdae   :  { %1887 = vmatprep.mubr.msk.f32.mxu1 %vm109_vm0, %v2545_v13 }
 0xdaf   :  { %1888 = vmatmul.mubr.msk.f32.vlgmr.msra.gmra.mrb[16].mxu1 %vm109_vm0, %v2547_v14 }
 0xdb0   :  { %2011 = vmatpush3.bf16.msra.mxu1 %v2239_v20  ;;  %v275_v20 = vadd.f32 %v2356_v9, %v2337_v60 }
 0xdb1   :  { %2013 = vmatprep.subr.bf16.mxu1 %v2277_v36 }
 0xdb4   :  { %2015 = vmatpush3.bf16.msra.mxu1 %v2277_v36 }
 0xe82   :  { %v1889_v3 = vpop.f32.mrb[16].mxu1 }
 0xe83   :  { %v1104_v4 = vadd.f32 %v1889_v3, %v2347_v2  ;;  %v1080_v18 = vpop.f32.mrb[17].mxu1  ;;  %v1090_v22 = vadd.f32 %v1889_v3, %v280_v21 }
 0xe84   :  { %v1103_v19 = vadd.f32 %v1080_v18, %v2347_v2  ;;  %v1089_v23 = vadd.f32 %v1080_v18, %v275_v20 }
 0xe85   :  { %1109 = vrot.lane.b32.xlu0 %v1104_v4, %s2136_s20  ;;  %v1678_v24 = vmul.f32 -1.442695, %v1090_v22  ;;  %v1423_v4 = vld [vmem:[%s2781_s7 + $0x10] sm:$0xff] }
 0xe86   :  { %1107 = vrot.lane.b32.xlu1 %v1103_v19, %s2136_s20  ;;  %v1677_v36 = vmul.f32 -1.442695, %v1089_v23 }
 0xe87   :  { %2091 = vpow2.f32 %v1678_v24 }
 0xe88   :  { %2093 = vpow2.f32 %v1677_v36 }
 0xe91   :  { %v2092_v25 = vpop.eup %2091 }
 0xe92   :  { %v2094_v26 = vpop.eup %2093  ;;  %v1098_v27 = vadd.f32 1.0, %v2092_v25 }
 0xe93   :  { %v1097_v28 = vadd.f32 1.0, %v2094_v26 }
 0xe94   :  { %2095 = vrcp.f32 %v1098_v27 }
 0xe95   :  { %2097 = vrcp.f32 %v1097_v28 }
 0xe9e   :  { %v2096_v29 = vpop.eup %2095 }
 0xe9f   :  { %v2098_v33 = vpop.eup %2097  ;;  %v1128_v49 = vsub.f32 1.0, %v2096_v29  ;;  %v1140_v51 = vmul.f32 %v2096_v29, %v1003_v11  ;;  %v1424_v11 = vld [vmem:[%s2781_s7 + $0x18] sm:$0xff] }
 0xea0   :  { %v1127_v6 = vsub.f32 1.0, %v2098_v33  ;;  %v1139_v52 = vmul.f32 %v2098_v33, %v1002_v12  ;;  %v2020_v18 = vpack.c.bf16 %v1424_v11, %v1423_v4 }
 0xef7   :  { %v1110_v30 = vpop.permute.xlu0 %1109 }
 0xef8   :  { %v1114_v34 = vmul.f32 %v2096_v29, %v1110_v30  ;;  %v1108_v58 = vpop.permute.xlu1 %1107 }
 0xef9   :  { %v1113_v37 = vmul.f32 %v2098_v33, %v1108_v58 }
 0xefa   :  { %1119 = vrot.lane.b32.xlu0 %v1114_v34, %s2136_s20 }
 0xefb   :  { %1117 = vrot.lane.b32.xlu1 %v1113_v37, %s2136_s20 }
 0xf6c   :  { %v1120_v60 = vpop.permute.xlu0 %1119 }
 0xf6d   :  { %v1124_v39 = vadd.f32 %v1120_v60, %v280_v21  ;;  %v1118_v56 = vpop.permute.xlu1 %1117 }
 0xf6e   :  { %v1123_v43 = vadd.f32 %v1118_v56, %v275_v20 }
 0xf6f   :  { %2099 = vtanh.f32 %v1124_v39 }
 0xf70   :  { %2101 = vtanh.f32 %v1123_v43 }
 0xf79   :  { %v2100_v57 = vpop.eup %2099 }
 0xf7a   :  { %v2102_v44 = vpop.eup %2101  ;;  %1133 = vrot.lane.b32.xlu0 %v2100_v57, %s2138_s29  ;;  %v2129_v57 = vld [vmem:[%s2776_s1 + $0x58] sm:$0xff] }
 0xf7b   :  { %1131 = vrot.lane.b32.xlu1 %v2102_v44, %s2138_s29 }
 0xfec   :  { %v1134_v50 = vpop.permute.xlu0 %1133 }
 0xfed   :  { %v1138_v59 = vmul.f32 %v1134_v50, %v1128_v49  ;;  %v1132_v61 = vpop.permute.xlu1 %1131 }
 0xfee   :  { %v1137_v53 = vmul.f32 %v1132_v61, %v1127_v6  ;;  %v290_v6 = vadd.f32 %v2339_v62, %v2356_v9 }
 0xfef   :  { %v2574_v10 = vadd.f32 %v1140_v51, %v1138_v59  ;;  %v285_v51 = vadd.f32 %v2356_v9, %v2341_v63 }
 0xff0   :  { %v2576_v3 = vadd.f32 %v1139_v52, %v1137_v53 }
 0xff1   :  { %1147 = vrot.lane.b32.xlu0 %v2574_v10, %s2138_s29 }
 0xff2   :  { %1145 = vrot.lane.b32.xlu1 %v2576_v3, %s2138_s29 }
0x1063   :  { %v1148_v19 = vpop.permute.xlu0 %1147 }
0x1064   :  { %v1146_v12 = vpop.permute.xlu1 %1145 }
0x1065   :  { %1898 = vmatprep.mubr.msk.f32.mxu0 %vm109_vm0, %v1146_v12 }
0x1066   :  { %1899 = vmatmul.mubr.msk.f32.vlgmr.msra.gmra.mrb[10].mxu0 %vm109_vm0, %v1148_v19 }
0x1067   :  { %2019 = vmatpush3.bf16.msra.mxu0 %v2016_v47  ;;  %1920 = vmatprep.mubr.msk.f32.mxu0 %vm109_vm0, %v2394_v54 }
0x1068   :  { %2021 = vmatprep.subr.bf16.mxu0 %v2020_v18 }
0x106b   :  { %2023 = vmatpush3.bf16.msra.mxu0 %v2020_v18 }
0x106e   :  { %1921 = vmatmul.mubr.msk.f32.vlgmr.msra.gmra.mrb[12].mxu0 %vm109_vm0, %v2396_v55 }
0x106f   :  { %1923 = vmatprep.mubr.msk.f32.mxu0 %vm109_vm0, %v2448_v5 }
0x1072   :  { %1924 = vmatmul.mubr.msk.f32.gmra.mrb[14].mxu0 %vm109_vm0, %v2450_v7 }
0x1073   :  { %1926 = vmatprep.mubr.msk.f32.mxu0 %vm109_vm0, %v2496_v15 }
0x1076   :  { %1927 = vmatmul.mubr.msk.f32.gmra.mrb[16].mxu0 %vm109_vm0, %v2498_v8  ;;  %v2622_v8 = vld [vmem:[%s2782_s8] ss:$0 sm:$0xff] }
0x1077   :  { %1929 = vmatprep.mubr.msk.f32.mxu0 %vm109_vm0, %v2520_v16 }
0x107a   :  { %1930 = vmatmul.mubr.msk.f32.gmra.mrb[18].mxu0 %vm109_vm0, %v2522_v17 }
0x107b   :  { %1932 = vmatprep.mubr.msk.f32.mxu0 %vm109_vm0, %v2545_v13 }
0x107e   :  { %1933 = vmatmul.mubr.msk.f32.gmra.mrb[20].mxu0 %vm109_vm0, %v2547_v14 }
0x107f   :  { %1935 = vmatprep.mubr.msk.f32.mxu0 %vm109_vm0, %v1146_v12 }
0x1082   :  { %1936 = vmatmul.mubr.msk.f32.gmra.mrb[22].mxu0 %vm109_vm0, %v1148_v19 }
0x1139   :  { %v2612_v54 = vpop.f32.mrb[10].mxu0 }
0x113a   :  { %v1243_v55 = vadd.f32 %v2612_v54, %v2347_v2  ;;  %v1219_v5 = vpop.f32.mrb[11].mxu0  ;;  %v1229_v59 = vadd.f32 %v2612_v54, %v290_v6 }
0x113b   :  { %v1242_v7 = vadd.f32 %v1219_v5, %v2347_v2  ;;  %v1228_v61 = vadd.f32 %v1219_v5, %v285_v51 }
0x113c   :  { %1248 = vrot.lane.b32.xlu0 %v1243_v55, %s2136_s20  ;;  %v1682_v52 = vmul.f32 -1.442695, %v1229_v59 }
0x113d   :  { %1246 = vrot.lane.b32.xlu1 %v1242_v7, %s2136_s20  ;;  %v1681_v53 = vmul.f32 -1.442695, %v1228_v61 }
0x113e   :  { %2103 = vpow2.f32 %v1682_v52 }
0x113f   :  { %2105 = vpow2.f32 %v1681_v53 }
0x1141   :  { %v1922_v15 = vpop.f32.mrb[12].mxu0 }
0x1142   :  { %v1581_v16 = vadd.f32 %v1922_v15, %v2285_v38  ;;  %v1501_v17 = vpop.f32.mrb[13].mxu0 }
0x1143   :  { %v1580_v13 = vadd.f32 %v1501_v17, %v2274_v35 }
0x1144   :  { %v1604_v14 = vadd.f32 %v2622_v8, %v1581_v16 }
0x1145   :  { %v1603_v21 = vadd.f32 %v2622_v8, %v1580_v13  ;;  %v1925_v20 = vpop.f32.mrb[14].mxu0 }
0x1146   :  { %1620 = vst.msk [vmem:[%s2783_s9 + $0x8] sm:$0xff] %vm109_vm0, %v1604_v14  ;;  %v1583_v22 = vadd.f32 %v1925_v20, %v2378_v40  ;;  %v1511_v23 = vpop.f32.mrb[15].mxu0 }
0x1147   :  { %1619 = vst.msk [vmem:[%s2783_s9] sm:$0xff] %vm109_vm0, %v1603_v21  ;;  %v1582_v35 = vadd.f32 %v1511_v23, %v2365_v31 }
0x1148   :  { %v1606_v38 = vadd.f32 %v2622_v8, %v1583_v22  ;;  %v2104_v4 = vpop.eup %2103 }
0x1149   :  { %v1605_v24 = vadd.f32 %v2622_v8, %v1582_v35  ;;  %v1928_v36 = vpop.f32.mrb[16].mxu0  ;;  %v2106_v11 = vpop.eup %2105  ;;  %v1237_v12 = vadd.f32 1.0, %v2104_v4 }
0x114a   :  { %1622 = vst.msk [vmem:[%s2783_s9 + $0x18] sm:$0xff] %vm109_vm0, %v1606_v38  ;;  %v1585_v40 = vadd.f32 %v1928_v36, %v2430_v42  ;;  %v1521_v25 = vpop.f32.mrb[17].mxu0  ;;  %v1236_v18 = vadd.f32 1.0, %v2106_v11 }
0x114b   :  { %1621 = vst.msk [vmem:[%s2783_s9 + $0x10] sm:$0xff] %vm109_vm0, %v1605_v24  ;;  %v1584_v31 = vadd.f32 %v1521_v25, %v2417_v32  ;;  %2107 = vrcp.f32 %v1237_v12 }
0x114c   :  { %v1608_v26 = vadd.f32 %v2622_v8, %v1585_v40  ;;  %2109 = vrcp.f32 %v1236_v18 }
0x114d   :  { %v1607_v27 = vadd.f32 %v2622_v8, %v1584_v31  ;;  %v1931_v28 = vpop.f32.mrb[18].mxu0 }
0x114e   :  { %1624 = vst.msk [vmem:[%s2783_s9 + $0x28] sm:$0xff] %vm109_vm0, %v1608_v26  ;;  %v1587_v42 = vadd.f32 %v1931_v28, %v2484_v48  ;;  %v1531_v29 = vpop.f32.mrb[19].mxu0  ;;  %v2127_v48 = vld [vmem:[%s2776_s1 + $0x48] sm:$0xff] }
0x114f   :  { %1623 = vst.msk [vmem:[%s2783_s9 + $0x20] sm:$0xff] %vm109_vm0, %v1607_v27  ;;  %v1586_v32 = vadd.f32 %v1531_v29, %v2471_v41  ;;  %v2128_v41 = vld [vmem:[%s2776_s1 + $0x40] sm:$0xff]  ;;  %v2131_v27 = vld [vmem:[%s2776_s1 + $0x68] sm:$0xff] }
0x1150   :  { %v1610_v30 = vadd.f32 %v2622_v8, %v1587_v42 }
0x1151   :  { %v1609_v33 = vadd.f32 %v2622_v8, %v1586_v32  ;;  %v1934_v34 = vpop.f32.mrb[20].mxu0 }
0x1152   :  { %1626 = vst.msk [vmem:[%s2783_s9 + $0x38] sm:$0xff] %vm109_vm0, %v1610_v30  ;;  %v1589_v58 = vadd.f32 %v2127_v48, %v1934_v34  ;;  %v1541_v37 = vpop.f32.mrb[21].mxu0  ;;  %v2132_v30 = vld [vmem:[%s2776_s1 + $0x60] sm:$0xff] }
0x1153   :  { %1625 = vst.msk [vmem:[%s2783_s9 + $0x30] sm:$0xff] %vm109_vm0, %v1609_v33  ;;  %v1588_v60 = vadd.f32 %v2128_v41, %v1541_v37 }
0x1154   :  { %v1612_v39 = vadd.f32 %v2622_v8, %v1589_v58 }
0x1155   :  { %v1611_v56 = vadd.f32 %v2622_v8, %v1588_v60  ;;  %v1937_v43 = vpop.f32.mrb[22].mxu0  ;;  %v2108_v19 = vpop.eup %2107 }
0x1156   :  { %1628 = vst.msk [vmem:[%s2783_s9 + $0x48] sm:$0xff] %vm109_vm0, %v1612_v39  ;;  %v1591_v44 = vadd.f32 %v2129_v57, %v1937_v43  ;;  %v1551_v45 = vpop.f32.mrb[23].mxu0  ;;  %v2110_v7 = vpop.eup %2109  ;;  %v1267_v14 = vsub.f32 1.0, %v2108_v19  ;;  %v1279_v22 = vmul.f32 %v2108_v19, %v2574_v10 }
0x1157   :  { %1627 = vst.msk [vmem:[%s2783_s9 + $0x40] sm:$0xff] %vm109_vm0, %v1611_v56  ;;  %v1590_v47 = vadd.f32 %v2130_v46, %v1551_v45  ;;  %v1266_v20 = vsub.f32 1.0, %v2110_v7  ;;  %v1278_v38 = vmul.f32 %v2110_v7, %v2576_v3 }
0x1158   :  { %v1614_v49 = vadd.f32 %v2622_v8, %v1591_v44 }
0x1159   :  { %v1613_v50 = vadd.f32 %v2622_v8, %v1590_v47 }
0x115a   :  { %1630 = vst.msk [vmem:[%s2783_s9 + $0x58] sm:$0xff] %vm109_vm0, %v1614_v49 }
0x115b   :  { %1629 = vst.msk [vmem:[%s2783_s9 + $0x50] sm:$0xff] %vm109_vm0, %v1613_v50 }
0x11ae   :  { %v1249_v55 = vpop.permute.xlu0 %1248 }
0x11af   :  { %v1253_v62 = vmul.f32 %v2108_v19, %v1249_v55  ;;  %v1247_v15 = vpop.permute.xlu1 %1246 }
0x11b0   :  { %v1252_v16 = vmul.f32 %v2110_v7, %v1247_v15 }
0x11b1   :  { %1258 = vrot.lane.b32.xlu0 %v1253_v62, %s2136_s20 }
0x11b2   :  { %1256 = vrot.lane.b32.xlu1 %v1252_v16, %s2136_s20 }
0x1223   :  { %v1259_v63 = vpop.permute.xlu0 %1258 }
0x1224   :  { %v1263_v9 = vadd.f32 %v1259_v63, %v290_v6  ;;  %v1257_v54 = vpop.permute.xlu1 %1256 }
0x1225   :  { %v1262_v5 = vadd.f32 %v1257_v54, %v285_v51 }
0x1226   :  { %2111 = vtanh.f32 %v1263_v9 }
0x1227   :  { %2113 = vtanh.f32 %v1262_v5  ;;  %v2134_v5 = vld [vmem:[%s2776_s1 + $0x78] sm:$0xff] }
0x1230   :  { %v2112_v17 = vpop.eup %2111 }
0x1231   :  { %v2114_v13 = vpop.eup %2113  ;;  %1272 = vrot.lane.b32.xlu0 %v2112_v17, %s2138_s29 }
0x1232   :  { %1270 = vrot.lane.b32.xlu1 %v2114_v13, %s2138_s29 }
0x12a3   :  { %v1273_v21 = vpop.permute.xlu0 %1272 }
0x12a4   :  { %v1277_v23 = vmul.f32 %v1273_v21, %v1267_v14  ;;  %v1271_v35 = vpop.permute.xlu1 %1270  ;;  %v2135_v14 = vld [vmem:[%s2776_s1 + $0x70] sm:$0xff] }
0x12a5   :  { %v1276_v24 = vmul.f32 %v1271_v35, %v1266_v20 }
0x12a6   :  { %v1281_v36 = vadd.f32 %v1279_v22, %v1277_v23 }
0x12a7   :  { %v2715_v40 = vadd.f32 %v1278_v38, %v1276_v24 }
0x12a8   :  { %1286 = vrot.lane.b32.xlu0 %v1281_v36, %s2138_s29 }
0x12a9   :  { %1284 = vrot.lane.b32.xlu1 %v2715_v40, %s2138_s29 }
0x131a   :  { %v1287_v31 = vpop.permute.xlu0 %1286 }
0x131b   :  { %v1285_v25 = vpop.permute.xlu1 %1284 }
0x131c   :  { %1909 = vmatprep.mubr.msk.f32.mxu1 %vm109_vm0, %v1285_v25  ;;  %1938 = vmatprep.mubr.msk.f32.mxu0 %vm109_vm0, %v1285_v25 }
0x131d   :  { %1910 = vmatmul.mubr.msk.f32.vlgmr.msra.gmra.mrb[18].mxu1 %vm109_vm0, %v1287_v31  ;;  %1939 = vmatmul.mubr.msk.f32.gmra.mrb[24].mxu0 %vm109_vm0, %v1287_v31 }
0x13f0   :  { %v1911_v10 = vpop.f32.mrb[18].mxu1  ;;  %v1940_v3 = vpop.f32.mrb[24].mxu0 }
0x13f1   :  { %v1382_v26 = vadd.f32 %v1911_v10, %v2347_v2  ;;  %v1593_v28 = vadd.f32 %v2131_v27, %v1940_v3  ;;  %v1358_v42 = vpop.f32.mrb[19].mxu1  ;;  %v1561_v29 = vpop.f32.mrb[25].mxu0 }
0x13f2   :  { %v1381_v32 = vadd.f32 %v1358_v42, %v2347_v2  ;;  %v1592_v33 = vadd.f32 %v2132_v30, %v1561_v29  ;;  %v2133_v2 = vld [vmem:[%s2780_s5] ss:$0 sm:$0xff] }
0x13f3   :  { %v1616_v34 = vadd.f32 %v2622_v8, %v1593_v28  ;;  %1387 = vrot.lane.b32.xlu0 %v1382_v26, %s2136_s20  ;;  %v300_v58 = vadd.f32 %v2133_v2, %v2343_v0  ;;  %v295_v37 = vadd.f32 %v2133_v2, %v2345_v1 }
0x13f4   :  { %v1615_v48 = vadd.f32 %v2622_v8, %v1592_v33  ;;  %1385 = vrot.lane.b32.xlu1 %v1381_v32, %s2136_s20 }
0x13f5   :  { %1632 = vst.msk [vmem:[%s2783_s9 + $0x68] sm:$0xff] %vm109_vm0, %v1616_v34  ;;  %v1368_v41 = vadd.f32 %v1911_v10, %v300_v58  ;;  %v1367_v60 = vadd.f32 %v1358_v42, %v295_v37 }
0x13f6   :  { %1631 = vst.msk [vmem:[%s2783_s9 + $0x60] sm:$0xff] %vm109_vm0, %v1615_v48 }
0x13f7   :  { %v1686_v39 = vmul.f32 -1.442695, %v1368_v41  ;;  %v1685_v56 = vmul.f32 -1.442695, %v1367_v60 }
0x13f9   :  { %2115 = vpow2.f32 %v1686_v39 }
0x13fa   :  { %2117 = vpow2.f32 %v1685_v56 }
0x1403   :  { %v2116_v43 = vpop.eup %2115 }
0x1404   :  { %v2118_v57 = vpop.eup %2117  ;;  %v1376_v44 = vadd.f32 1.0, %v2116_v43 }
0x1405   :  { %v1375_v45 = vadd.f32 1.0, %v2118_v57 }
0x1406   :  { %2119 = vrcp.f32 %v1376_v44 }
0x1407   :  { %2121 = vrcp.f32 %v1375_v45 }
0x1410   :  { %v2120_v46 = vpop.eup %2119 }
0x1411   :  { %v2122_v49 = vpop.eup %2121  ;;  %v1406_v4 = vsub.f32 1.0, %v2120_v46  ;;  %v1418_v18 = vmul.f32 %v2120_v46, %v1281_v36 }
0x1412   :  { %v1405_v12 = vsub.f32 1.0, %v2122_v49  ;;  %v1417_v7 = vmul.f32 %v2122_v49, %v2715_v40 }
0x1465   :  { %v1388_v47 = vpop.permute.xlu0 %1387 }
0x1466   :  { %v1392_v50 = vmul.f32 %v2120_v46, %v1388_v47  ;;  %v1386_v6 = vpop.permute.xlu1 %1385 }
0x1467   :  { %v1391_v0 = vmul.f32 %v2122_v49, %v1386_v6 }
0x1468   :  { %1397 = vrot.lane.b32.xlu0 %v1392_v50, %s2136_s20 }
0x1469   :  { %1395 = vrot.lane.b32.xlu1 %v1391_v0, %s2136_s20 }
0x14da   :  { %v1398_v1 = vpop.permute.xlu0 %1397 }
0x14db   :  { %v1402_v51 = vadd.f32 %v1398_v1, %v300_v58  ;;  %v1396_v59 = vpop.permute.xlu1 %1395 }
0x14dc   :  { %v1401_v61 = vadd.f32 %v1396_v59, %v295_v37 }
0x14dd   :  { %2123 = vtanh.f32 %v1402_v51 }
0x14de   :  { %2125 = vtanh.f32 %v1401_v61 }
0x14e7   :  { %v2124_v52 = vpop.eup %2123 }
0x14e8   :  { %v2126_v53 = vpop.eup %2125  ;;  %1411 = vrot.lane.b32.xlu0 %v2124_v52, %s2138_s29 }
0x14e9   :  { %1409 = vrot.lane.b32.xlu1 %v2126_v53, %s2138_s29 }
0x155a   :  { %v1412_v11 = vpop.permute.xlu0 %1411 }
0x155b   :  { %v1416_v19 = vmul.f32 %v1412_v11, %v1406_v4  ;;  %v1410_v55 = vpop.permute.xlu1 %1409 }
0x155c   :  { %v1415_v62 = vmul.f32 %v1410_v55, %v1405_v12 }
0x155d   :  { %v1420_v15 = vadd.f32 %v1418_v18, %v1416_v19 }
0x155e   :  { %v1419_v16 = vadd.f32 %v1417_v7, %v1415_v62 }
0x155f   :  { %1429 = vrot.lane.b32.xlu0 %v1420_v15, %s2138_s29 }
0x1560   :  { %1427 = vrot.lane.b32.xlu1 %v1419_v16, %s2138_s29 }
0x15d1   :  { %v1430_v9 = vpop.permute.xlu0 %1429 }
0x15d2   :  { %v1428_v63 = vpop.permute.xlu1 %1427 }
0x15d3   :  { %1941 = vmatprep.mubr.msk.f32.mxu0 %vm109_vm0, %v1428_v63 }
0x15d4   :  { %1942 = vmatmul.mubr.msk.f32.gmra.mrb[26].mxu0 %vm109_vm0, %v1430_v9 }
0x16a7   :  { %v1943_v54 = vpop.f32.mrb[26].mxu0 }
0x16a8   :  { %v1595_v17 = vadd.f32 %v2134_v5, %v1943_v54  ;;  %v1571_v13 = vpop.f32.mrb[27].mxu0 }
0x16a9   :  { %v1594_v21 = vadd.f32 %v2135_v14, %v1571_v13 }
0x16aa   :  { %v1618_v20 = vadd.f32 %v2622_v8, %v1595_v17 }
0x16ab   :  { %v1617_v22 = vadd.f32 %v2622_v8, %v1594_v21 }
0x16ac   :  { %1634 = vst.msk [vmem:[%s2783_s9 + $0x78] sm:$0xff] %vm109_vm0, %v1618_v20 }
0x16ad   :  { %1633 = vst.msk [vmem:[%s2783_s9 + $0x70] sm:$0xff] %vm109_vm0, %v1617_v22 }

// kernel: layer_forward.4
= control target key start
LH: loop header
LB: loop body
LE: loop exit
PB: predicated region body
PF: predicated region fallthrough
CT: control target
= control target key end

     0   :  { %12 = vsyncpa [#allocation3], 0  ;;  %s3202_s0 = inlined_call_operand.hbm [shape: f32[2,8,32], index: 0, kind: input, shape index: {}]   ;;  %s3203_s1 = inlined_call_operand.hbm [shape: f32[32,96], index: 1, kind: input, shape index: {}]   ;;  %s3204_s2 = inlined_call_operand.vmem [shape: f32[32,96], index: 2, kind: input, shape index: {}]   ;;  %s3205_s3 = inlined_call_operand.vmem [shape: f32[1,96], index: 3, kind: input, shape index: {}]   ;;  %s3206_s4 = inlined_call_operand.vmem [shape: f32[1,32], index: 4, kind: input, shape index: {}]   ;;  %s3207_s5 = inlined_call_operand.vmem [shape: f32[32,32], index: 5, kind: input, shape index: {}]   ;;  %s3208_s6 = inlined_call_operand.vmem [shape: f32[1,32], index: 6, kind: input, shape index: {}]   ;;  %s3209_s7 = inlined_call_operand.vmem [shape: f32[2,8,32], index: 7, kind: output, shape index: {}]  }
   0x1   :  { %13 = vsyncpa [#allocation5], 0  ;;  %s2694_s24 = smov [#allocation2]   ;;  %s2646_s28 = scalar_lea.hbm %s3202_s0, 256 }
   0x2   :  { %s19_s25 = sshll.u32 %s2694_s24, 4  ;;  %p2647_p0 = scmp.ne.s32.totalorder %s3202_s0, %s2646_s28  ;;  %s20_s25 = int_to_ptr.vmem [resolvable:$true] %s19_s25 }
   0x3   :  { %p2650_p1 = scmp.lt.u32.totalorder %s2646_s28, %s3202_s0 }
   0x5   :  { %p2652_p2 = pnand %p2650_p1, %p2647_p0 }
   0x7   :  { %2655 = shalt.err (!%p2652_p2)
}
   0x8   :  { %s2656_s10 = scalar_lea.vmem %s20_s25, 256  ;;  %p2661_p4 = scmp.lt.s32.totalorder %s20_s25, %s20_s25 }
   0x9   :  { %p2657_p3 = scmp.ne.s32.totalorder %s20_s25, %s2656_s10  ;;  %p2662_p5 = scmp.lt.s32.totalorder %s2656_s10, %s2656_s10 }
   0xb   :  { %p2663_p6 = por %p2662_p5, %p2661_p4 }
   0xd   :  { %p2664_p7 = pnand %p2663_p6, %p2657_p3 }
   0xf   :  { %2667 = shalt.err (!%p2664_p7)
}
  0x10   :  { %s2695_s11 = smov 128   ;;  %s2696_s12 = smov 8  }
  0x11   :  { %25 = dma.hbm_to_vmem [thread:$0]  %s3202_s0, 256, %s20_s25, [#allocation3], %s2695_s11, %s2695_s11, %s2696_s12  }
  0x12   :  { %s2697_s15 = smov [#allocation4]   ;;  %s2668_s19 = scalar_lea.hbm %s3203_s1, 512 }
  0x13   :  { %s31_s16 = sshll.u32 %s2697_s15, 4  ;;  %p2669_p8 = scmp.ne.s32.totalorder %s3203_s1, %s2668_s19  ;;  %s32_s16 = int_to_ptr.vmem [resolvable:$true] %s31_s16 }
  0x14   :  { %p2672_p9 = scmp.lt.u32.totalorder %s2668_s19, %s3203_s1 }
  0x16   :  { %p2674_p10 = pnand %p2672_p9, %p2669_p8 }
  0x18   :  { %2677 = shalt.err (!%p2674_p10)
}
  0x19   :  { %s2678_s24 = scalar_lea.vmem %s32_s16, 512  ;;  %p2683_p12 = scmp.lt.s32.totalorder %s32_s16, %s32_s16 }
  0x1a   :  { %p2679_p11 = scmp.ne.s32.totalorder %s32_s16, %s2678_s24  ;;  %p2684_p13 = scmp.lt.s32.totalorder %s2678_s24, %s2678_s24 }
  0x1c   :  { %p2685_p0 = por %p2684_p13, %p2683_p12 }
  0x1e   :  { %p2686_p1 = pnand %p2685_p0, %p2679_p11 }
  0x20   :  { %2689 = shalt.err (!%p2686_p1)
}
  0x21   :  { %37 = dma.hbm_to_vmem [thread:$0]  %s3203_s1, 512, %s32_s16, [#allocation5], %s2695_s11, %s2695_s11, %s2696_s12  }
  0x22   :  { %2690 = dma.done.wait [#allocation3], 256  }
  0x23   :  { %2691 = vsyncadd [#allocation3], 4294967040 }
  0x24   :  { %2692 = dma.done.wait [#allocation5], 512  }
  0x25   :  { %2693 = vsyncadd [#allocation5], 4294966784  ;;  %v2698_v0 = vmov 0.0|0.0   ;;  %vm2699_vm0 = vmmov 0   ;;  %v2700_v1 = vmov 0.0   ;;  %v56_v2 = vld [vmem:[#allocation4] sm:$0xff] }
  0x26   :  { %2443 = vmatprep.subr.bf16.mxu1 %v2698_v0  ;;  %2267 = vmatprep.mubr.msk.f32.mxu1 %vm2699_vm0, %v2700_v1  ;;  %v57_v3 = vld [vmem:[#allocation4 + $0x8] sm:$0xff]  ;;  %v149_v4 = vld [vmem:[%s3204_s2] sm:$0xff]  ;;  %vm67_vm1 = vcmask 261120   ;;  %v150_v6 = vld [vmem:[%s3204_s2 + $0x8] sm:$0xff]  ;;  %s2701_s12 = smov 64   ;;  %s2702_s20 = smov 96  }
  0x27   :  { %v2435_v5 = vpack.c.bf16 %v57_v3, %v56_v2  ;;  %v58_v7 = vld [vmem:[#allocation4 + $0x10] sm:$0xff]  ;;  %v59_v8 = vld [vmem:[#allocation4 + $0x18] sm:$0xff]  ;;  %v2777_v9 = vpack.c.bf16 %v150_v6, %v149_v4  ;;  %v151_v11 = vld [vmem:[%s3204_s2 + $0x10] sm:$0xff]  ;;  %vm300_vm2 = vcmask 1041409   ;;  %vm407_vm3 = vcmask 253952  }
  0x28   :  { %v2439_v10 = vpack.c.bf16 %v59_v8, %v58_v7  ;;  %v152_v12 = vld [vmem:[%s3204_s2 + $0x18] sm:$0xff]  ;;  %v54_v13 = vld [vmem:[#allocation2] sm:$0xff]  ;;  %v55_v16 = vld [vmem:[#allocation2 + $0x8] sm:$0xff]  ;;  %v382_v7 = vlaneseq }
  0x29   :  { %2436 = vmatprep.subr.bf16.mxu0 %v2435_v5  ;;  %2256 = vmatprep.mubr.msk.f32.mxu0 %vm67_vm1, %v54_v13  ;;  %v2132_v14 = vld [vmem:[%s3206_s4] ss:$0 sm:$0xff]  ;;  %v2790_v15 = vpack.c.bf16 %v152_v12, %v151_v11  ;;  %v155_v47 = vld [vmem:[%s3207_s5 + $0x8] sm:$0xff]  ;;  %v156_v48 = vld [vmem:[%s3207_s5 + $0x10] sm:$0xff] }
  0x2a   :  { %2445 = vmatpush3.bf16.msra.mxu1 %v2777_v9  ;;  %2438 = vmatpush3.bf16.msra.mxu0 %v2435_v5  ;;  %v2127_v24 = vld [vmem:[%s3205_s3] ss:$0 sm:$0xff]  ;;  %v157_v50 = vld [vmem:[%s3207_s5 + $0x18] sm:$0xff]  ;;  %v2703_v5 = vmov 1966171168  }
  0x2b   :  { %2446 = vmatprep.subr.bf16.mxu1 %v2698_v0  ;;  %2440 = vmatprep.subr.bf16.mxu0 %v2439_v10  ;;  %v154_v46 = vld [vmem:[%s3207_s5] sm:$0xff]  ;;  %v2840_v52 = vpack.c.bf16 %v157_v50, %v156_v48  ;;  %v380_v6 = vunpack.c.l.s4 %v2703_v5 }
  0x2c   :  { %255 = vrot.lane.b32.xlu0 %v2132_v14, %s2701_s12  ;;  %v2834_v49 = vpack.c.bf16 %v155_v47, %v154_v46 }
  0x2d   :  { %v381_v8 = vunpack.c.0.s8 %v380_v6 }
  0x2e   :  { %2448 = vmatpush3.bf16.msra.mxu1 %v2790_v15  ;;  %2442 = vmatpush3.bf16.msra.mxu0 %v2439_v10  ;;  %v383_v10 = vshrl.u32 %v382_v7, 7 }
  0x2f   :  { %2449 = vmatprep.subr.bf16.mxu0 %v2698_v0  ;;  %2455 = vmatprep.subr.bf16.mxu1 %v2698_v0 }
  0x30   :  { %v2871_v11 = vsub.s32 %v381_v8, %v383_v10 }
  0x31   :  { %2268 = vmatmul.mubr.f32.vlgmr.msra.gmra.mrb[0].mxu1 %v2700_v1  ;;  %2257 = vmatmul.mubr.msk.f32.vlgmr.msra.gmra.mrb[0].mxu0 %vm67_vm1, %v55_v16 }
  0x32   :  { %2457 = vmatpush3.bf16.msra.mxu1 %v2777_v9  ;;  %2278 = vmatprep.mubr.msk.f32.mxu0 %vm2699_vm0, %v2700_v1 }
  0x33   :  { %2458 = vmatprep.subr.bf16.mxu1 %v2698_v0  ;;  %2289 = vmatprep.mubr.msk.f32.mxu1 %vm2699_vm0, %v2700_v1 }
  0x34   :  { %2451 = vmatpush3.bf16.msra.mxu0 %v2834_v49 }
  0x35   :  { %2452 = vmatprep.subr.bf16.mxu0 %v2698_v0 }
  0x36   :  { %2460 = vmatpush3.bf16.msra.mxu1 %v2790_v15 }
  0x37   :  { %2467 = vmatprep.subr.bf16.mxu1 %v2698_v0 }
  0x38   :  { %2454 = vmatpush3.bf16.msra.mxu0 %v2840_v52 }
  0x39   :  { %2461 = vmatprep.subr.bf16.mxu0 %v2698_v0 }
  0x9e   :  { %v2807_v17 = vpop.permute.xlu0 %255 }
 0x104   :  { %v228_v18 = vpop.f32.mrb[0].mxu1  ;;  %v2258_v19 = vpop.f32.mrb[0].mxu0 }
 0x105   :  { %v2269_v20 = vpop.f32.mrb[1].mxu1  ;;  %v140_v21 = vpop.f32.mrb[1].mxu0  ;;  %v258_v22 = vadd.f32 %v2807_v17, %v228_v18  ;;  %v233_v26 = vrot.slane %v228_v18, 1  ;;  %v2817_v27 = vadd.f32 %v2258_v19, %v2127_v24 }
 0x106   :  { %v2815_v25 = vadd.f32 %v2127_v24, %v140_v21  ;;  %v376_v20 = vld [vmem:[#allocation2] sm:$0x1]  ;;  %v377_v24 = vld [vmem:[#allocation2 + $0x8] sm:$0x1] }
 0x107   :  { %261 = vrot.lane.b32.xlu1 %v258_v22, %s2701_s12  ;;  %v260_v23 = vrot.slane %v258_v22, 1  ;;  %v237_v29 = vadd.f32 %v233_v26, %v2817_v27 }
 0x108   :  { %v236_v28 = vadd.f32 %v228_v18, %v2815_v25 }
 0x109   :  { %263 = vrot.lane.b32.xlu0 %v260_v23, %s2701_s12  ;;  %v2131_v31 = vmul.f32 -1.442695, %v237_v29  ;;  %v2880_v23 = vld [vmem:[%s3208_s6] sm:$0x1] }
 0x10a   :  { %v2130_v30 = vmul.f32 -1.442695, %v236_v28 }
 0x10c   :  { %2549 = vpow2.f32 %v2130_v30 }
 0x10d   :  { %2551 = vpow2.f32 %v2131_v31 }
 0x116   :  { %v2550_v32 = vpop.eup %2549 }
 0x117   :  { %v2552_v33 = vpop.eup %2551  ;;  %v244_v34 = vadd.f32 1.0, %v2550_v32 }
 0x118   :  { %v245_v35 = vadd.f32 1.0, %v2552_v33 }
 0x119   :  { %2553 = vrcp.f32 %v244_v34 }
 0x11a   :  { %2555 = vrcp.f32 %v245_v35 }
 0x123   :  { %v2554_v36 = vpop.eup %2553 }
 0x124   :  { %v2556_v39 = vpop.eup %2555  ;;  %v281_v55 = vsub.f32 1.0, %v2554_v36  ;;  %v293_v61 = vmul.f32 0.0, %v2554_v36 }
 0x125   :  { %v282_v56 = vsub.f32 1.0, %v2556_v39  ;;  %v294_v59 = vmul.f32 0.0, %v2556_v39 }
 0x179   :  { %v262_v37 = vpop.permute.xlu1 %261 }
 0x17a   :  { %v267_v38 = vmul.f32 %v2554_v36, %v262_v37 }
 0x17b   :  { %v264_v40 = vpop.permute.xlu0 %263 }
 0x17c   :  { %v268_v41 = vmul.f32 %v2556_v39, %v264_v40  ;;  %271 = vrot.lane.b32.xlu0 %v267_v38, %s2701_s12 }
 0x17e   :  { %273 = vrot.lane.b32.xlu1 %v268_v41, %s2701_s12 }
 0x1ee   :  { %v272_v42 = vpop.permute.xlu0 %271 }
 0x1ef   :  { %v277_v43 = vadd.f32 %v272_v42, %v2815_v25 }
 0x1f0   :  { %v274_v44 = vpop.permute.xlu1 %273 }
 0x1f1   :  { %2557 = vtanh.f32 %v277_v43  ;;  %v278_v45 = vadd.f32 %v274_v44, %v2817_v27 }
 0x1f3   :  { %2559 = vtanh.f32 %v278_v45 }
 0x1fb   :  { %v2558_v51 = vpop.eup %2557 }
 0x1fc   :  { %285 = vrot.lane.b32.xlu0 %v2558_v51, %s2702_s20 }
 0x1fd   :  { %v2560_v53 = vpop.eup %2559 }
 0x1fe   :  { %287 = vrot.lane.b32.xlu1 %v2560_v53, %s2702_s20 }
 0x26e   :  { %v286_v54 = vpop.permute.xlu0 %285 }
 0x26f   :  { %v291_v58 = vmul.f32 %v286_v54, %v281_v55 }
 0x270   :  { %v288_v57 = vpop.permute.xlu1 %287 }
 0x271   :  { %v292_v60 = vmul.f32 %v288_v57, %v282_v56  ;;  %v2849_v63 = vadd.f32 %v293_v61, %v291_v58 }
 0x273   :  { %v2847_v62 = vadd.f32 %v294_v59, %v292_v60  ;;  %v533_v57 = vrot.slane %v2849_v63, 7 }
 0x275   :  { %v299_v2 = vrot.slane %v2847_v62, 7 }
 0x277   :  { %v301_v3 = vsel %vm300_vm2, %v299_v2, %v2849_v63 }
 0x278   :  { %302 = vrot.lane.b32.xlu1 %v301_v3, %s2702_s20 }
 0x2ea   :  { %v303_v4 = vpop.permute.xlu1 %302 }
 0x2eb   :  { %2279 = vmatmul.mubr.msk.f32.vlgmr.msra.gmra.mrb[2].mxu0 %vm67_vm1, %v303_v4  ;;  %2290 = vmatmul.mubr.msk.f32.vlgmr.msra.gmra.mrb[2].mxu1 %vm67_vm1, %v303_v4 }
 0x2ec   :  { %2463 = vmatpush3.bf16.msra.mxu0 %v2834_v49  ;;  %2469 = vmatpush3.bf16.msra.mxu1 %v2777_v9 }
 0x2ed   :  { %2464 = vmatprep.subr.bf16.mxu0 %v2698_v0  ;;  %2470 = vmatprep.subr.bf16.mxu1 %v2698_v0 }
 0x2ee   :  { %2311 = vmatprep.mubr.msk.f32.mxu1 %vm2699_vm0, %v2700_v1  ;;  %2300 = vmatprep.mubr.msk.f32.mxu0 %vm2699_vm0, %v2700_v1 }
 0x2f0   :  { %2466 = vmatpush3.bf16.msra.mxu0 %v2840_v52  ;;  %2472 = vmatpush3.bf16.msra.mxu1 %v2790_v15 }
 0x2f1   :  { %2473 = vmatprep.subr.bf16.mxu0 %v2698_v0  ;;  %2479 = vmatprep.subr.bf16.mxu1 %v2698_v0 }
 0x3be   :  { %v372_v12 = vpop.f32.mrb[2].mxu0  ;;  %v476_v13 = vpop.f32.mrb[2].mxu1 }
 0x3bf   :  { %v385_v14 = vrot.slane %v372_v12, %v2871_v11  ;;  %v498_v16 = vadd.f32 %v476_v13, %v2807_v17  ;;  %v2280_v18 = vpop.f32.mrb[3].mxu0  ;;  %v2291_v19 = vpop.f32.mrb[3].mxu1  ;;  %v481_v33 = vrot.slane %v476_v13, 7  ;;  %v485_v34 = vadd.f32 %v476_v13, %v2817_v27 }
 0x3c0   :  { %v618_v18 = vld [vmem:[#allocation2 + $0x1] sm:$0x1] }
 0x3c1   :  { %v386_v21 = vcombine.high %v385_v14, %v385_v14  ;;  %v393_v22 = vrot.slane %v385_v14, %v2871_v11  ;;  %503 = vrot.lane.b32.xlu1 %v498_v16, %s2701_s12  ;;  %v500_v26 = vrot.slane %v498_v16, 7  ;;  %v484_v35 = vadd.f32 %v481_v33, %v2815_v25 }
 0x3c2   :  { %v2136_v36 = vmul.f32 -1.442695, %v485_v34 }
 0x3c3   :  { %v400_v28 = vrot.slane %v386_v21, %v2871_v11  ;;  %v403_v29 = vadd.f32 %v393_v22, %v376_v20  ;;  %501 = vrot.lane.b32.xlu0 %v500_v26, %s2701_s12  ;;  %v2135_v37 = vmul.f32 -1.442695, %v484_v35  ;;  %v619_v21 = vld [vmem:[#allocation2 + $0x9] sm:$0x1] }
 0x3c4   :  { %2561 = vpow2.f32 %v2136_v36 }
 0x3c5   :  { %v404_v30 = vadd.f32 %v400_v28, %v377_v24  ;;  %v405_v31 = vadd.f32 %v403_v29, %v2880_v23  ;;  %2563 = vpow2.f32 %v2135_v37 }
 0x3c7   :  { %v406_v32 = vadd.f32 %v404_v30, %v2880_v23  ;;  %408 = vst.msk [vmem:[%s3209_s7] sm:$0x1] %vm407_vm3, %v405_v31 }
 0x3c9   :  { %409 = vst.msk [vmem:[%s3209_s7 + $0x8] sm:$0x1] %vm407_vm3, %v406_v32 }
 0x3ce   :  { %v2562_v38 = vpop.eup %2561 }
 0x3cf   :  { %v2564_v39 = vpop.eup %2563  ;;  %v493_v40 = vadd.f32 1.0, %v2562_v38 }
 0x3d0   :  { %v492_v41 = vadd.f32 1.0, %v2564_v39 }
 0x3d1   :  { %2565 = vrcp.f32 %v493_v40 }
 0x3d2   :  { %2567 = vrcp.f32 %v492_v41 }
 0x3db   :  { %v2566_v42 = vpop.eup %2565 }
 0x3dc   :  { %v2568_v45 = vpop.eup %2567  ;;  %v522_v58 = vsub.f32 1.0, %v2566_v42  ;;  %v537_v5 = vmul.f32 %v2566_v42, %v299_v2 }
 0x3dd   :  { %v521_v59 = vsub.f32 1.0, %v2568_v45  ;;  %v536_v3 = vmul.f32 %v2568_v45, %v533_v57 }
 0x433   :  { %v504_v43 = vpop.permute.xlu1 %503 }
 0x434   :  { %v508_v44 = vmul.f32 %v2566_v42, %v504_v43 }
 0x435   :  { %v502_v46 = vpop.permute.xlu0 %501 }
 0x436   :  { %513 = vrot.lane.b32.xlu1 %v508_v44, %s2701_s12  ;;  %v507_v47 = vmul.f32 %v2568_v45, %v502_v46 }
 0x438   :  { %511 = vrot.lane.b32.xlu0 %v507_v47, %s2701_s12 }
 0x4a8   :  { %v514_v48 = vpop.permute.xlu1 %513 }
 0x4a9   :  { %v518_v50 = vadd.f32 %v514_v48, %v2817_v27 }
 0x4aa   :  { %v512_v51 = vpop.permute.xlu0 %511 }
 0x4ab   :  { %2569 = vtanh.f32 %v518_v50  ;;  %v517_v53 = vadd.f32 %v512_v51, %v2815_v25 }
 0x4ad   :  { %2571 = vtanh.f32 %v517_v53 }
 0x4b5   :  { %v2570_v54 = vpop.eup %2569 }
 0x4b6   :  { %527 = vrot.lane.b32.xlu1 %v2570_v54, %s2702_s20 }
 0x4b7   :  { %v2572_v55 = vpop.eup %2571 }
 0x4b8   :  { %525 = vrot.lane.b32.xlu0 %v2572_v55, %s2702_s20 }
 0x528   :  { %v528_v56 = vpop.permute.xlu1 %527 }
 0x529   :  { %v532_v61 = vmul.f32 %v528_v56, %v522_v58 }
 0x52a   :  { %v526_v60 = vpop.permute.xlu0 %525 }
 0x52b   :  { %v531_v4 = vmul.f32 %v526_v60, %v521_v59  ;;  %v2907_v7 = vadd.f32 %v537_v5, %v532_v61 }
 0x52d   :  { %v2905_v6 = vadd.f32 %v536_v3, %v531_v4  ;;  %v777_v56 = vrot.slane %v2907_v7, 7 }
 0x52f   :  { %v542_v8 = vrot.slane %v2905_v6, 1  ;;  %v776_v58 = vrot.slane %v2905_v6, 7 }
 0x531   :  { %v543_v10 = vsel %vm300_vm2, %v2907_v7, %v542_v8 }
 0x532   :  { %544 = vrot.lane.b32.xlu0 %v543_v10, %s2702_s20 }
 0x5a4   :  { %v545_v63 = vpop.permute.xlu0 %544 }
 0x5a5   :  { %2301 = vmatmul.mubr.msk.f32.vlgmr.msra.gmra.mrb[4].mxu0 %vm67_vm1, %v545_v63  ;;  %2312 = vmatmul.mubr.msk.f32.vlgmr.msra.gmra.mrb[4].mxu1 %vm67_vm1, %v545_v63 }
 0x5a6   :  { %2475 = vmatpush3.bf16.msra.mxu0 %v2834_v49  ;;  %2481 = vmatpush3.bf16.msra.mxu1 %v2777_v9 }
 0x5a7   :  { %2476 = vmatprep.subr.bf16.mxu0 %v2698_v0  ;;  %2482 = vmatprep.subr.bf16.mxu1 %v2698_v0 }
 0x5a8   :  { %2333 = vmatprep.mubr.msk.f32.mxu1 %vm2699_vm0, %v2700_v1  ;;  %2322 = vmatprep.mubr.msk.f32.mxu0 %vm2699_vm0, %v2700_v1 }
 0x5aa   :  { %2478 = vmatpush3.bf16.msra.mxu0 %v2840_v52  ;;  %2484 = vmatpush3.bf16.msra.mxu1 %v2790_v15 }
 0x5ab   :  { %2485 = vmatprep.subr.bf16.mxu0 %v2698_v0  ;;  %2491 = vmatprep.subr.bf16.mxu1 %v2698_v0 }
 0x678   :  { %v614_v62 = vpop.f32.mrb[4].mxu0  ;;  %v717_v2 = vpop.f32.mrb[4].mxu1 }
 0x679   :  { %v627_v12 = vrot.slane %v614_v62, %v2871_v11  ;;  %v740_v13 = vadd.f32 %v717_v2, %v2807_v17  ;;  %v2302_v14 = vpop.f32.mrb[5].mxu0  ;;  %v2313_v16 = vpop.f32.mrb[5].mxu1  ;;  %v722_v32 = vrot.slane %v717_v2, 6  ;;  %v723_v33 = vrot.slane %v717_v2, 7 }
 0x67b   :  { %v628_v19 = vcombine.high %v627_v12, %v627_v12  ;;  %v635_v20 = vrot.slane %v627_v12, %v2871_v11  ;;  %v743_v22 = vrot.slane %v740_v13, 7  ;;  %v742_v24 = vrot.slane %v740_v13, 6 }
 0x67c   :  { %v726_v34 = vadd.f32 %v722_v32, %v2815_v25  ;;  %v727_v35 = vadd.f32 %v723_v33, %v2817_v27 }
 0x67d   :  { %v642_v26 = vrot.slane %v628_v19, %v2871_v11  ;;  %v645_v28 = vadd.f32 %v635_v20, %v618_v18  ;;  %746 = vrot.lane.b32.xlu0 %v743_v22, %s2701_s12  ;;  %744 = vrot.lane.b32.xlu1 %v742_v24, %s2701_s12  ;;  %v863_v20 = vld [vmem:[#allocation2 + $0x2] sm:$0x1]  ;;  %v864_v24 = vld [vmem:[#allocation2 + $0xa] sm:$0x1] }
 0x67e   :  { %v2139_v36 = vmul.f32 -1.442695, %v726_v34  ;;  %v2140_v37 = vmul.f32 -1.442695, %v727_v35 }
 0x67f   :  { %v646_v29 = vadd.f32 %v642_v26, %v619_v21  ;;  %v647_v30 = vadd.f32 %v645_v28, %v2880_v23 }
 0x680   :  { %2573 = vpow2.f32 %v2139_v36 }
 0x681   :  { %v648_v31 = vadd.f32 %v646_v29, %v2880_v23  ;;  %649 = vst.msk [vmem:[%s3209_s7 + $0x1] sm:$0x1] %vm407_vm3, %v647_v30  ;;  %2575 = vpow2.f32 %v2140_v37 }
 0x683   :  { %650 = vst.msk [vmem:[%s3209_s7 + $0x9] sm:$0x1] %vm407_vm3, %v648_v31 }
 0x68a   :  { %v2574_v38 = vpop.eup %2573 }
 0x68b   :  { %v2576_v39 = vpop.eup %2575  ;;  %v734_v40 = vadd.f32 1.0, %v2574_v38 }
 0x68c   :  { %v735_v41 = vadd.f32 1.0, %v2576_v39 }
 0x68d   :  { %2577 = vrcp.f32 %v734_v40 }
 0x68e   :  { %2579 = vrcp.f32 %v735_v41 }
 0x697   :  { %v2578_v42 = vpop.eup %2577 }
 0x698   :  { %v2580_v43 = vpop.eup %2579  ;;  %v764_v60 = vsub.f32 1.0, %v2578_v42  ;;  %v780_v5 = vmul.f32 %v2578_v42, %v776_v58 }
 0x699   :  { %v765_v57 = vsub.f32 1.0, %v2580_v43  ;;  %v781_v61 = vmul.f32 %v2580_v43, %v777_v56 }
 0x6ef   :  { %v747_v44 = vpop.permute.xlu0 %746  ;;  %v745_v45 = vpop.permute.xlu1 %744 }
 0x6f0   :  { %v751_v46 = vmul.f32 %v2580_v43, %v747_v44  ;;  %v750_v47 = vmul.f32 %v2578_v42, %v745_v45 }
 0x6f2   :  { %756 = vrot.lane.b32.xlu0 %v751_v46, %s2701_s12  ;;  %754 = vrot.lane.b32.xlu1 %v750_v47, %s2701_s12 }
 0x764   :  { %v757_v48 = vpop.permute.xlu0 %756  ;;  %v755_v50 = vpop.permute.xlu1 %754 }
 0x765   :  { %v761_v51 = vadd.f32 %v757_v48, %v2817_v27  ;;  %v760_v53 = vadd.f32 %v755_v50, %v2815_v25 }
 0x767   :  { %2581 = vtanh.f32 %v761_v51 }
 0x768   :  { %2583 = vtanh.f32 %v760_v53 }
 0x771   :  { %v2582_v54 = vpop.eup %2581 }
 0x772   :  { %v2584_v55 = vpop.eup %2583  ;;  %770 = vrot.lane.b32.xlu0 %v2582_v54, %s2702_s20 }
 0x773   :  { %768 = vrot.lane.b32.xlu1 %v2584_v55, %s2702_s20 }
 0x7e4   :  { %v771_v59 = vpop.permute.xlu0 %770 }
 0x7e5   :  { %v775_v3 = vmul.f32 %v771_v59, %v765_v57  ;;  %v769_v4 = vpop.permute.xlu1 %768 }
 0x7e6   :  { %v774_v8 = vmul.f32 %v769_v4, %v764_v60 }
 0x7e7   :  { %v2953_v10 = vadd.f32 %v781_v61, %v775_v3 }
 0x7e8   :  { %v2955_v63 = vadd.f32 %v780_v5, %v774_v8 }
 0x7e9   :  { %v787_v62 = vrot.slane %v2953_v10, 1  ;;  %v1022_v58 = vrot.slane %v2953_v10, 7 }
 0x7ea   :  { %v786_v2 = vrot.slane %v2955_v63, 2  ;;  %v1021_v60 = vrot.slane %v2955_v63, 7 }
 0x7ec   :  { %v788_v7 = vsel %vm300_vm2, %v787_v62, %v786_v2 }
 0x7ed   :  { %789 = vrot.lane.b32.xlu1 %v788_v7, %s2702_s20 }
 0x85f   :  { %v790_v6 = vpop.permute.xlu1 %789 }
 0x860   :  { %2323 = vmatmul.mubr.msk.f32.vlgmr.msra.gmra.mrb[6].mxu0 %vm67_vm1, %v790_v6  ;;  %2334 = vmatmul.mubr.msk.f32.vlgmr.msra.gmra.mrb[6].mxu1 %vm67_vm1, %v790_v6 }
 0x861   :  { %2487 = vmatpush3.bf16.msra.mxu0 %v2834_v49  ;;  %2493 = vmatpush3.bf16.msra.mxu1 %v2777_v9 }
 0x862   :  { %2488 = vmatprep.subr.bf16.mxu0 %v2698_v0  ;;  %2494 = vmatprep.subr.bf16.mxu1 %v2698_v0 }
 0x863   :  { %2355 = vmatprep.mubr.msk.f32.mxu1 %vm2699_vm0, %v2700_v1  ;;  %2344 = vmatprep.mubr.msk.f32.mxu0 %vm2699_vm0, %v2700_v1 }
 0x865   :  { %2490 = vmatpush3.bf16.msra.mxu0 %v2840_v52  ;;  %2496 = vmatpush3.bf16.msra.mxu1 %v2790_v15 }
 0x866   :  { %2497 = vmatprep.subr.bf16.mxu0 %v2698_v0  ;;  %2503 = vmatprep.subr.bf16.mxu1 %v2698_v0 }
 0x933   :  { %v859_v12 = vpop.f32.mrb[6].mxu0  ;;  %v962_v13 = vpop.f32.mrb[6].mxu1 }
 0x934   :  { %v872_v14 = vrot.slane %v859_v12, %v2871_v11  ;;  %v985_v16 = vadd.f32 %v962_v13, %v2807_v17  ;;  %v2324_v18 = vpop.f32.mrb[7].mxu0  ;;  %v2335_v19 = vpop.f32.mrb[7].mxu1  ;;  %v967_v34 = vrot.slane %v962_v13, 5  ;;  %v968_v35 = vrot.slane %v962_v13, 6 }
 0x936   :  { %v873_v21 = vcombine.high %v872_v14, %v872_v14  ;;  %v880_v22 = vrot.slane %v872_v14, %v2871_v11  ;;  %v988_v26 = vrot.slane %v985_v16, 6  ;;  %v987_v28 = vrot.slane %v985_v16, 5 }
 0x937   :  { %v971_v36 = vadd.f32 %v967_v34, %v2815_v25  ;;  %v972_v37 = vadd.f32 %v968_v35, %v2817_v27 }
 0x938   :  { %v887_v29 = vrot.slane %v873_v21, %v2871_v11  ;;  %v890_v30 = vadd.f32 %v880_v22, %v863_v20  ;;  %991 = vrot.lane.b32.xlu1 %v988_v26, %s2701_s12  ;;  %989 = vrot.lane.b32.xlu0 %v987_v28, %s2701_s12  ;;  %v1108_v22 = vld [vmem:[#allocation2 + $0x3] sm:$0x1]  ;;  %v1109_v28 = vld [vmem:[#allocation2 + $0xb] sm:$0x1] }
 0x939   :  { %v2143_v38 = vmul.f32 -1.442695, %v971_v36  ;;  %v2144_v39 = vmul.f32 -1.442695, %v972_v37 }
 0x93a   :  { %v891_v31 = vadd.f32 %v887_v29, %v864_v24  ;;  %v892_v32 = vadd.f32 %v890_v30, %v2880_v23 }
 0x93b   :  { %2585 = vpow2.f32 %v2143_v38 }
 0x93c   :  { %v893_v33 = vadd.f32 %v891_v31, %v2880_v23  ;;  %894 = vst.msk [vmem:[%s3209_s7 + $0x2] sm:$0x1] %vm407_vm3, %v892_v32  ;;  %2587 = vpow2.f32 %v2144_v39 }
 0x93e   :  { %895 = vst.msk [vmem:[%s3209_s7 + $0xa] sm:$0x1] %vm407_vm3, %v893_v33 }
 0x945   :  { %v2586_v40 = vpop.eup %2585 }
 0x946   :  { %v2588_v41 = vpop.eup %2587  ;;  %v979_v42 = vadd.f32 1.0, %v2586_v40 }
 0x947   :  { %v980_v43 = vadd.f32 1.0, %v2588_v41 }
 0x948   :  { %2589 = vrcp.f32 %v979_v42 }
 0x949   :  { %2591 = vrcp.f32 %v980_v43 }
 0x952   :  { %v2590_v44 = vpop.eup %2589 }
 0x953   :  { %v2592_v45 = vpop.eup %2591  ;;  %v1009_v3 = vsub.f32 1.0, %v2590_v44  ;;  %v1025_v62 = vmul.f32 %v2590_v44, %v1021_v60 }
 0x954   :  { %v1010_v59 = vsub.f32 1.0, %v2592_v45  ;;  %v1026_v4 = vmul.f32 %v2592_v45, %v1022_v58 }
 0x9aa   :  { %v992_v46 = vpop.permute.xlu1 %991  ;;  %v990_v47 = vpop.permute.xlu0 %989 }
 0x9ab   :  { %v996_v48 = vmul.f32 %v2592_v45, %v992_v46  ;;  %v995_v50 = vmul.f32 %v2590_v44, %v990_v47 }
 0x9ad   :  { %1001 = vrot.lane.b32.xlu1 %v996_v48, %s2701_s12  ;;  %999 = vrot.lane.b32.xlu0 %v995_v50, %s2701_s12 }
 0xa1f   :  { %v1002_v51 = vpop.permute.xlu1 %1001  ;;  %v1000_v53 = vpop.permute.xlu0 %999 }
 0xa20   :  { %v1006_v54 = vadd.f32 %v1002_v51, %v2817_v27  ;;  %v1005_v55 = vadd.f32 %v1000_v53, %v2815_v25 }
 0xa22   :  { %2593 = vtanh.f32 %v1006_v54 }
 0xa23   :  { %2595 = vtanh.f32 %v1005_v55 }
 0xa2c   :  { %v2594_v56 = vpop.eup %2593 }
 0xa2d   :  { %v2596_v57 = vpop.eup %2595  ;;  %1015 = vrot.lane.b32.xlu1 %v2594_v56, %s2702_s20 }
 0xa2e   :  { %1013 = vrot.lane.b32.xlu0 %v2596_v57, %s2702_s20 }
 0xa9f   :  { %v1016_v61 = vpop.permute.xlu1 %1015 }
 0xaa0   :  { %v1020_v5 = vmul.f32 %v1016_v61, %v1010_v59  ;;  %v1014_v8 = vpop.permute.xlu0 %1013 }
 0xaa1   :  { %v1019_v2 = vmul.f32 %v1014_v8, %v1009_v3 }
 0xaa2   :  { %v3001_v7 = vadd.f32 %v1026_v4, %v1020_v5 }
 0xaa3   :  { %v3003_v6 = vadd.f32 %v1025_v62, %v1019_v2 }
 0xaa4   :  { %v1032_v12 = vrot.slane %v3001_v7, 2  ;;  %v1267_v60 = vrot.slane %v3001_v7, 7 }
 0xaa5   :  { %v1031_v13 = vrot.slane %v3003_v6, 3  ;;  %v1266_v3 = vrot.slane %v3003_v6, 7 }
 0xaa7   :  { %v1033_v10 = vsel %vm300_vm2, %v1032_v12, %v1031_v13 }
 0xaa8   :  { %1034 = vrot.lane.b32.xlu0 %v1033_v10, %s2702_s20 }
 0xb1a   :  { %v1035_v63 = vpop.permute.xlu0 %1034 }
 0xb1b   :  { %2345 = vmatmul.mubr.msk.f32.vlgmr.msra.gmra.mrb[8].mxu0 %vm67_vm1, %v1035_v63  ;;  %2356 = vmatmul.mubr.msk.f32.vlgmr.msra.gmra.mrb[8].mxu1 %vm67_vm1, %v1035_v63 }
 0xb1c   :  { %2499 = vmatpush3.bf16.msra.mxu0 %v2834_v49  ;;  %2505 = vmatpush3.bf16.msra.mxu1 %v2777_v9 }
 0xb1d   :  { %2500 = vmatprep.subr.bf16.mxu0 %v2698_v0  ;;  %2506 = vmatprep.subr.bf16.mxu1 %v2698_v0 }
 0xb1e   :  { %2377 = vmatprep.mubr.msk.f32.mxu1 %vm2699_vm0, %v2700_v1  ;;  %2366 = vmatprep.mubr.msk.f32.mxu0 %vm2699_vm0, %v2700_v1 }
 0xb20   :  { %2502 = vmatpush3.bf16.msra.mxu0 %v2840_v52  ;;  %2508 = vmatpush3.bf16.msra.mxu1 %v2790_v15 }
 0xb21   :  { %2509 = vmatprep.subr.bf16.mxu0 %v2698_v0  ;;  %2515 = vmatprep.subr.bf16.mxu1 %v2698_v0 }
 0xbee   :  { %v1104_v14 = vpop.f32.mrb[8].mxu0  ;;  %v1207_v16 = vpop.f32.mrb[8].mxu1 }
 0xbef   :  { %v1117_v18 = vrot.slane %v1104_v14, %v2871_v11  ;;  %v1230_v19 = vadd.f32 %v1207_v16, %v2807_v17  ;;  %v2346_v20 = vpop.f32.mrb[9].mxu0  ;;  %v2357_v21 = vpop.f32.mrb[9].mxu1  ;;  %v1212_v36 = vrot.slane %v1207_v16, 4  ;;  %v1213_v37 = vrot.slane %v1207_v16, 5 }
 0xbf1   :  { %v1118_v24 = vcombine.high %v1117_v18, %v1117_v18  ;;  %v1125_v26 = vrot.slane %v1117_v18, %v2871_v11  ;;  %v1233_v29 = vrot.slane %v1230_v19, 5  ;;  %v1232_v30 = vrot.slane %v1230_v19, 4 }
 0xbf2   :  { %v1216_v38 = vadd.f32 %v1212_v36, %v2815_v25  ;;  %v1217_v39 = vadd.f32 %v1213_v37, %v2817_v27 }
 0xbf3   :  { %v1132_v31 = vrot.slane %v1118_v24, %v2871_v11  ;;  %v1135_v32 = vadd.f32 %v1125_v26, %v1108_v22  ;;  %1236 = vrot.lane.b32.xlu0 %v1233_v29, %s2701_s12  ;;  %1234 = vrot.lane.b32.xlu1 %v1232_v30, %s2701_s12  ;;  %v1353_v26 = vld [vmem:[#allocation2 + $0x4] sm:$0x1]  ;;  %v1354_v30 = vld [vmem:[#allocation2 + $0xc] sm:$0x1] }
 0xbf4   :  { %v2147_v40 = vmul.f32 -1.442695, %v1216_v38  ;;  %v2148_v41 = vmul.f32 -1.442695, %v1217_v39 }
 0xbf5   :  { %v1136_v33 = vadd.f32 %v1132_v31, %v1109_v28  ;;  %v1137_v34 = vadd.f32 %v1135_v32, %v2880_v23 }
 0xbf6   :  { %2597 = vpow2.f32 %v2147_v40 }
 0xbf7   :  { %v1138_v35 = vadd.f32 %v1136_v33, %v2880_v23  ;;  %1139 = vst.msk [vmem:[%s3209_s7 + $0x3] sm:$0x1] %vm407_vm3, %v1137_v34  ;;  %2599 = vpow2.f32 %v2148_v41 }
 0xbf9   :  { %1140 = vst.msk [vmem:[%s3209_s7 + $0xb] sm:$0x1] %vm407_vm3, %v1138_v35 }
 0xc00   :  { %v2598_v42 = vpop.eup %2597 }
 0xc01   :  { %v2600_v43 = vpop.eup %2599  ;;  %v1224_v44 = vadd.f32 1.0, %v2598_v42 }
 0xc02   :  { %v1225_v45 = vadd.f32 1.0, %v2600_v43 }
 0xc03   :  { %2601 = vrcp.f32 %v1224_v44 }
 0xc04   :  { %2603 = vrcp.f32 %v1225_v45 }
 0xc0d   :  { %v2602_v46 = vpop.eup %2601 }
 0xc0e   :  { %v2604_v47 = vpop.eup %2603  ;;  %v1254_v5 = vsub.f32 1.0, %v2602_v46  ;;  %v1270_v12 = vmul.f32 %v2602_v46, %v1266_v3 }
 0xc0f   :  { %v1255_v61 = vsub.f32 1.0, %v2604_v47  ;;  %v1271_v8 = vmul.f32 %v2604_v47, %v1267_v60 }
 0xc65   :  { %v1237_v48 = vpop.permute.xlu0 %1236  ;;  %v1235_v50 = vpop.permute.xlu1 %1234 }
 0xc66   :  { %v1241_v51 = vmul.f32 %v2604_v47, %v1237_v48  ;;  %v1240_v53 = vmul.f32 %v2602_v46, %v1235_v50 }
 0xc68   :  { %1246 = vrot.lane.b32.xlu0 %v1241_v51, %s2701_s12  ;;  %1244 = vrot.lane.b32.xlu1 %v1240_v53, %s2701_s12 }
 0xcda   :  { %v1247_v54 = vpop.permute.xlu0 %1246  ;;  %v1245_v55 = vpop.permute.xlu1 %1244 }
 0xcdb   :  { %v1251_v56 = vadd.f32 %v1247_v54, %v2817_v27  ;;  %v1250_v57 = vadd.f32 %v1245_v55, %v2815_v25 }
 0xcdd   :  { %2605 = vtanh.f32 %v1251_v56 }
 0xcde   :  { %2607 = vtanh.f32 %v1250_v57 }
 0xce7   :  { %v2606_v58 = vpop.eup %2605 }
 0xce8   :  { %v2608_v59 = vpop.eup %2607  ;;  %1260 = vrot.lane.b32.xlu0 %v2606_v58, %s2702_s20 }
 0xce9   :  { %1258 = vrot.lane.b32.xlu1 %v2608_v59, %s2702_s20 }
 0xd5a   :  { %v1261_v4 = vpop.permute.xlu0 %1260 }
 0xd5b   :  { %v1265_v62 = vmul.f32 %v1261_v4, %v1255_v61  ;;  %v1259_v2 = vpop.permute.xlu1 %1258 }
 0xd5c   :  { %v1264_v13 = vmul.f32 %v1259_v2, %v1254_v5 }
 0xd5d   :  { %v3049_v10 = vadd.f32 %v1271_v8, %v1265_v62 }
 0xd5e   :  { %v3051_v63 = vadd.f32 %v1270_v12, %v1264_v13 }
 0xd5f   :  { %v1277_v14 = vrot.slane %v3049_v10, 3  ;;  %v1512_v3 = vrot.slane %v3049_v10, 7 }
 0xd60   :  { %v1276_v16 = vrot.slane %v3051_v63, 4  ;;  %v1511_v5 = vrot.slane %v3051_v63, 7 }
 0xd62   :  { %v1278_v7 = vsel %vm300_vm2, %v1277_v14, %v1276_v16 }
 0xd63   :  { %1279 = vrot.lane.b32.xlu1 %v1278_v7, %s2702_s20 }
 0xdd5   :  { %v1280_v6 = vpop.permute.xlu1 %1279 }
 0xdd6   :  { %2367 = vmatmul.mubr.msk.f32.vlgmr.msra.gmra.mrb[10].mxu0 %vm67_vm1, %v1280_v6  ;;  %2378 = vmatmul.mubr.msk.f32.vlgmr.msra.gmra.mrb[10].mxu1 %vm67_vm1, %v1280_v6 }
 0xdd7   :  { %2511 = vmatpush3.bf16.msra.mxu0 %v2834_v49  ;;  %2517 = vmatpush3.bf16.msra.mxu1 %v2777_v9 }
 0xdd8   :  { %2512 = vmatprep.subr.bf16.mxu0 %v2698_v0  ;;  %2518 = vmatprep.subr.bf16.mxu1 %v2698_v0 }
 0xdd9   :  { %2399 = vmatprep.mubr.msk.f32.mxu1 %vm2699_vm0, %v2700_v1  ;;  %2388 = vmatprep.mubr.msk.f32.mxu0 %vm2699_vm0, %v2700_v1 }
 0xddb   :  { %2514 = vmatpush3.bf16.msra.mxu0 %v2840_v52  ;;  %2520 = vmatpush3.bf16.msra.mxu1 %v2790_v15 }
 0xddc   :  { %2521 = vmatprep.subr.bf16.mxu0 %v2698_v0  ;;  %2527 = vmatprep.subr.bf16.mxu1 %v2698_v0 }
 0xea9   :  { %v1349_v18 = vpop.f32.mrb[10].mxu0  ;;  %v1452_v19 = vpop.f32.mrb[10].mxu1 }
 0xeaa   :  { %v1362_v20 = vrot.slane %v1349_v18, %v2871_v11  ;;  %v1475_v21 = vadd.f32 %v1452_v19, %v2807_v17  ;;  %v2368_v22 = vpop.f32.mrb[11].mxu0  ;;  %v2379_v24 = vpop.f32.mrb[11].mxu1  ;;  %v1457_v38 = vrot.slane %v1452_v19, 3  ;;  %v1458_v39 = vrot.slane %v1452_v19, 4 }
 0xeac   :  { %v1363_v28 = vcombine.high %v1362_v20, %v1362_v20  ;;  %v1370_v29 = vrot.slane %v1362_v20, %v2871_v11  ;;  %v1478_v31 = vrot.slane %v1475_v21, 4  ;;  %v1477_v32 = vrot.slane %v1475_v21, 3 }
 0xead   :  { %v1461_v40 = vadd.f32 %v1457_v38, %v2815_v25  ;;  %v1462_v41 = vadd.f32 %v1458_v39, %v2817_v27 }
 0xeae   :  { %v1377_v33 = vrot.slane %v1363_v28, %v2871_v11  ;;  %v1380_v34 = vadd.f32 %v1370_v29, %v1353_v26  ;;  %1481 = vrot.lane.b32.xlu1 %v1478_v31, %s2701_s12  ;;  %1479 = vrot.lane.b32.xlu0 %v1477_v32, %s2701_s12  ;;  %v1598_v28 = vld [vmem:[#allocation2 + $0x5] sm:$0x1]  ;;  %v1599_v31 = vld [vmem:[#allocation2 + $0xd] sm:$0x1] }
 0xeaf   :  { %v2151_v42 = vmul.f32 -1.442695, %v1461_v40  ;;  %v2152_v43 = vmul.f32 -1.442695, %v1462_v41 }
 0xeb0   :  { %v1381_v35 = vadd.f32 %v1377_v33, %v1354_v30  ;;  %v1382_v36 = vadd.f32 %v1380_v34, %v2880_v23 }
 0xeb1   :  { %2609 = vpow2.f32 %v2151_v42 }
 0xeb2   :  { %v1383_v37 = vadd.f32 %v1381_v35, %v2880_v23  ;;  %1384 = vst.msk [vmem:[%s3209_s7 + $0x4] sm:$0x1] %vm407_vm3, %v1382_v36  ;;  %2611 = vpow2.f32 %v2152_v43 }
 0xeb4   :  { %1385 = vst.msk [vmem:[%s3209_s7 + $0xc] sm:$0x1] %vm407_vm3, %v1383_v37 }
 0xebb   :  { %v2610_v44 = vpop.eup %2609 }
 0xebc   :  { %v2612_v45 = vpop.eup %2611  ;;  %v1469_v46 = vadd.f32 1.0, %v2610_v44 }
 0xebd   :  { %v1470_v47 = vadd.f32 1.0, %v2612_v45 }
 0xebe   :  { %2613 = vrcp.f32 %v1469_v46 }
 0xebf   :  { %2615 = vrcp.f32 %v1470_v47 }
 0xec8   :  { %v2614_v48 = vpop.eup %2613 }
 0xec9   :  { %v2616_v50 = vpop.eup %2615  ;;  %v1499_v62 = vsub.f32 1.0, %v2614_v48  ;;  %v1515_v14 = vmul.f32 %v2614_v48, %v1511_v5 }
 0xeca   :  { %v1500_v4 = vsub.f32 1.0, %v2616_v50  ;;  %v1516_v2 = vmul.f32 %v2616_v50, %v1512_v3 }
 0xf20   :  { %v1482_v51 = vpop.permute.xlu1 %1481  ;;  %v1480_v53 = vpop.permute.xlu0 %1479 }
 0xf21   :  { %v1486_v54 = vmul.f32 %v2616_v50, %v1482_v51  ;;  %v1485_v55 = vmul.f32 %v2614_v48, %v1480_v53 }
 0xf23   :  { %1491 = vrot.lane.b32.xlu1 %v1486_v54, %s2701_s12  ;;  %1489 = vrot.lane.b32.xlu0 %v1485_v55, %s2701_s12 }
 0xf95   :  { %v1492_v56 = vpop.permute.xlu1 %1491  ;;  %v1490_v57 = vpop.permute.xlu0 %1489 }
 0xf96   :  { %v1496_v58 = vadd.f32 %v1492_v56, %v2817_v27  ;;  %v1495_v59 = vadd.f32 %v1490_v57, %v2815_v25 }
 0xf98   :  { %2617 = vtanh.f32 %v1496_v58 }
 0xf99   :  { %2619 = vtanh.f32 %v1495_v59 }
 0xfa2   :  { %v2618_v60 = vpop.eup %2617 }
 0xfa3   :  { %v2620_v61 = vpop.eup %2619  ;;  %1505 = vrot.lane.b32.xlu1 %v2618_v60, %s2702_s20 }
 0xfa4   :  { %1503 = vrot.lane.b32.xlu0 %v2620_v61, %s2702_s20 }
0x1015   :  { %v1506_v8 = vpop.permute.xlu1 %1505 }
0x1016   :  { %v1510_v12 = vmul.f32 %v1506_v8, %v1500_v4  ;;  %v1504_v13 = vpop.permute.xlu0 %1503 }
0x1017   :  { %v1509_v16 = vmul.f32 %v1504_v13, %v1499_v62 }
0x1018   :  { %v3097_v7 = vadd.f32 %v1516_v2, %v1510_v12 }
0x1019   :  { %v3099_v6 = vadd.f32 %v1515_v14, %v1509_v16 }
0x101a   :  { %v1522_v18 = vrot.slane %v3097_v7, 4  ;;  %v1757_v3 = vrot.slane %v3097_v7, 7 }
0x101b   :  { %v1521_v19 = vrot.slane %v3099_v6, 5  ;;  %v1756_v5 = vrot.slane %v3099_v6, 7 }
0x101d   :  { %v1523_v10 = vsel %vm300_vm2, %v1522_v18, %v1521_v19 }
0x101e   :  { %1524 = vrot.lane.b32.xlu0 %v1523_v10, %s2702_s20 }
0x1090   :  { %v1525_v63 = vpop.permute.xlu0 %1524 }
0x1091   :  { %2389 = vmatmul.mubr.msk.f32.vlgmr.msra.gmra.mrb[12].mxu0 %vm67_vm1, %v1525_v63  ;;  %2400 = vmatmul.mubr.msk.f32.vlgmr.msra.gmra.mrb[12].mxu1 %vm67_vm1, %v1525_v63 }
0x1092   :  { %2523 = vmatpush3.bf16.msra.mxu0 %v2834_v49  ;;  %2529 = vmatpush3.bf16.msra.mxu1 %v2777_v9 }
0x1093   :  { %2524 = vmatprep.subr.bf16.mxu0 %v2698_v0  ;;  %2530 = vmatprep.subr.bf16.mxu1 %v2698_v0 }
0x1094   :  { %2421 = vmatprep.mubr.msk.f32.mxu1 %vm2699_vm0, %v2700_v1  ;;  %2410 = vmatprep.mubr.msk.f32.mxu0 %vm2699_vm0, %v2700_v1 }
0x1096   :  { %2526 = vmatpush3.bf16.msra.mxu0 %v2840_v52  ;;  %2532 = vmatpush3.bf16.msra.mxu1 %v2790_v15 }
0x1097   :  { %2533 = vmatprep.subr.bf16.mxu0 %v2698_v0 }
0x1164   :  { %v1594_v20 = vpop.f32.mrb[12].mxu0  ;;  %v1697_v21 = vpop.f32.mrb[12].mxu1 }
0x1165   :  { %v1607_v9 = vrot.slane %v1594_v20, %v2871_v11  ;;  %v1720_v22 = vadd.f32 %v1697_v21, %v2807_v17  ;;  %v2390_v24 = vpop.f32.mrb[13].mxu0  ;;  %v2401_v26 = vpop.f32.mrb[13].mxu1  ;;  %v1702_v38 = vrot.slane %v1697_v21, 2  ;;  %v1703_v39 = vrot.slane %v1697_v21, 3 }
0x1167   :  { %v1608_v29 = vcombine.high %v1607_v9, %v1607_v9  ;;  %v1615_v30 = vrot.slane %v1607_v9, %v2871_v11  ;;  %v1723_v32 = vrot.slane %v1720_v22, 3  ;;  %v1722_v33 = vrot.slane %v1720_v22, 2 }
0x1168   :  { %v1706_v40 = vadd.f32 %v1702_v38, %v2815_v25  ;;  %v1707_v41 = vadd.f32 %v1703_v39, %v2817_v27 }
0x1169   :  { %v1622_v34 = vrot.slane %v1608_v29, %v2871_v11  ;;  %v1625_v15 = vadd.f32 %v1615_v30, %v1598_v28  ;;  %1726 = vrot.lane.b32.xlu0 %v1723_v32, %s2701_s12  ;;  %1724 = vrot.lane.b32.xlu1 %v1722_v33, %s2701_s12  ;;  %v1843_v28 = vld [vmem:[#allocation2 + $0x6] sm:$0x1] }
0x116a   :  { %v2155_v42 = vmul.f32 -1.442695, %v1706_v40  ;;  %v2156_v43 = vmul.f32 -1.442695, %v1707_v41 }
0x116b   :  { %v1626_v35 = vadd.f32 %v1622_v34, %v1599_v31  ;;  %v1627_v36 = vadd.f32 %v1625_v15, %v2880_v23 }
0x116c   :  { %2621 = vpow2.f32 %v2155_v42 }
0x116d   :  { %v1628_v37 = vadd.f32 %v1626_v35, %v2880_v23  ;;  %1629 = vst.msk [vmem:[%s3209_s7 + $0x5] sm:$0x1] %vm407_vm3, %v1627_v36  ;;  %2623 = vpow2.f32 %v2156_v43 }
0x116f   :  { %1630 = vst.msk [vmem:[%s3209_s7 + $0xd] sm:$0x1] %vm407_vm3, %v1628_v37 }
0x1176   :  { %v2622_v44 = vpop.eup %2621 }
0x1177   :  { %v2624_v45 = vpop.eup %2623  ;;  %v1714_v46 = vadd.f32 1.0, %v2622_v44 }
0x1178   :  { %v1715_v47 = vadd.f32 1.0, %v2624_v45 }
0x1179   :  { %2625 = vrcp.f32 %v1714_v46 }
0x117a   :  { %2627 = vrcp.f32 %v1715_v47 }
0x1183   :  { %v2626_v48 = vpop.eup %2625 }
0x1184   :  { %v2628_v50 = vpop.eup %2627  ;;  %v1744_v62 = vsub.f32 1.0, %v2626_v48  ;;  %v1760_v14 = vmul.f32 %v2626_v48, %v1756_v5 }
0x1185   :  { %v1745_v4 = vsub.f32 1.0, %v2628_v50  ;;  %v1761_v2 = vmul.f32 %v2628_v50, %v1757_v3 }
0x11db   :  { %v1727_v51 = vpop.permute.xlu0 %1726  ;;  %v1725_v53 = vpop.permute.xlu1 %1724 }
0x11dc   :  { %v1731_v54 = vmul.f32 %v2628_v50, %v1727_v51  ;;  %v1730_v55 = vmul.f32 %v2626_v48, %v1725_v53 }
0x11de   :  { %1736 = vrot.lane.b32.xlu0 %v1731_v54, %s2701_s12  ;;  %1734 = vrot.lane.b32.xlu1 %v1730_v55, %s2701_s12 }
0x1250   :  { %v1737_v56 = vpop.permute.xlu0 %1736  ;;  %v1735_v57 = vpop.permute.xlu1 %1734 }
0x1251   :  { %v1741_v58 = vadd.f32 %v1737_v56, %v2817_v27  ;;  %v1740_v59 = vadd.f32 %v1735_v57, %v2815_v25 }
0x1253   :  { %2629 = vtanh.f32 %v1741_v58 }
0x1254   :  { %2631 = vtanh.f32 %v1740_v59 }
0x125d   :  { %v2630_v60 = vpop.eup %2629 }
0x125e   :  { %v2632_v61 = vpop.eup %2631  ;;  %1750 = vrot.lane.b32.xlu0 %v2630_v60, %s2702_s20 }
0x125f   :  { %1748 = vrot.lane.b32.xlu1 %v2632_v61, %s2702_s20 }
0x12d0   :  { %v1751_v8 = vpop.permute.xlu0 %1750 }
0x12d1   :  { %v1755_v12 = vmul.f32 %v1751_v8, %v1745_v4  ;;  %v1749_v13 = vpop.permute.xlu1 %1748 }
0x12d2   :  { %v1754_v16 = vmul.f32 %v1749_v13, %v1744_v62 }
0x12d3   :  { %v3144_v18 = vadd.f32 %v1761_v2, %v1755_v12 }
0x12d4   :  { %v3146_v19 = vadd.f32 %v1760_v14, %v1754_v16 }
0x12d5   :  { %v1767_v10 = vrot.slane %v3144_v18, 5  ;;  %v2002_v56 = vrot.slane %v3144_v18, 7 }
0x12d6   :  { %v1766_v63 = vrot.slane %v3146_v19, 6  ;;  %v2001_v58 = vrot.slane %v3146_v19, 7  ;;  %v2088_v19 = vld [vmem:[#allocation2 + $0x7] sm:$0x1] }
0x12d8   :  { %v1768_v7 = vsel %vm300_vm2, %v1767_v10, %v1766_v63 }
0x12d9   :  { %1769 = vrot.lane.b32.xlu1 %v1768_v7, %s2702_s20  ;;  %v2089_v7 = vld [vmem:[#allocation2 + $0xf] sm:$0x1] }
0x134b   :  { %v1770_v6 = vpop.permute.xlu1 %1769 }
0x134c   :  { %2411 = vmatmul.mubr.msk.f32.vlgmr.msra.gmra.mrb[14].mxu0 %vm67_vm1, %v1770_v6  ;;  %2422 = vmatmul.mubr.msk.f32.vlgmr.msra.gmra.mrb[14].mxu1 %vm67_vm1, %v1770_v6 }
0x134d   :  { %2535 = vmatpush3.bf16.msra.mxu0 %v2834_v49  ;;  %2432 = vmatprep.mubr.msk.f32.mxu0 %vm2699_vm0, %v2700_v1  ;;  %v1844_v49 = vld [vmem:[#allocation2 + $0xe] sm:$0x1] }
0x134e   :  { %2536 = vmatprep.subr.bf16.mxu0 %v2698_v0 }
0x1351   :  { %2538 = vmatpush3.bf16.msra.mxu0 %v2840_v52 }
0x141f   :  { %v1839_v20 = vpop.f32.mrb[14].mxu0  ;;  %v1942_v21 = vpop.f32.mrb[14].mxu1 }
0x1420   :  { %v1852_v9 = vrot.slane %v1839_v20, %v2871_v11  ;;  %v1965_v22 = vadd.f32 %v1942_v21, %v2807_v17  ;;  %v2412_v24 = vpop.f32.mrb[15].mxu0  ;;  %v2423_v26 = vpop.f32.mrb[15].mxu1  ;;  %v1947_v34 = vrot.slane %v1942_v21, 1  ;;  %v1948_v15 = vrot.slane %v1942_v21, 2 }
0x1422   :  { %v1853_v29 = vcombine.high %v1852_v9, %v1852_v9  ;;  %v1860_v30 = vrot.slane %v1852_v9, %v2871_v11  ;;  %v1968_v31 = vrot.slane %v1965_v22, 2  ;;  %v1967_v32 = vrot.slane %v1965_v22, 1  ;;  %v2645_v9 = vld [vmem:[%s3208_s6] sm:$0x1] }
0x1423   :  { %v1951_v35 = vadd.f32 %v1947_v34, %v2815_v25  ;;  %v1952_v36 = vadd.f32 %v1948_v15, %v2817_v27 }
0x1424   :  { %v1867_v1 = vrot.slane %v1853_v29, %v2871_v11  ;;  %v1870_v0 = vadd.f32 %v1860_v30, %v1843_v28  ;;  %1971 = vrot.lane.b32.xlu1 %v1968_v31, %s2701_s12  ;;  %1969 = vrot.lane.b32.xlu0 %v1967_v32, %s2701_s12 }
0x1425   :  { %v2159_v37 = vmul.f32 -1.442695, %v1951_v35  ;;  %v2160_v38 = vmul.f32 -1.442695, %v1952_v36 }
0x1426   :  { %v1871_v52 = vadd.f32 %v1867_v1, %v1844_v49  ;;  %v1872_v33 = vadd.f32 %v1870_v0, %v2880_v23 }
0x1427   :  { %2633 = vpow2.f32 %v2159_v37 }
0x1428   :  { %v1873_v17 = vadd.f32 %v1871_v52, %v2880_v23  ;;  %1874 = vst.msk [vmem:[%s3209_s7 + $0x6] sm:$0x1] %vm407_vm3, %v1872_v33  ;;  %2635 = vpow2.f32 %v2160_v38 }
0x142a   :  { %1875 = vst.msk [vmem:[%s3209_s7 + $0xe] sm:$0x1] %vm407_vm3, %v1873_v17 }
0x1431   :  { %v2634_v23 = vpop.eup %2633 }
0x1432   :  { %v2636_v39 = vpop.eup %2635  ;;  %v1959_v40 = vadd.f32 1.0, %v2634_v23 }
0x1433   :  { %v1960_v41 = vadd.f32 1.0, %v2636_v39 }
0x1434   :  { %2637 = vrcp.f32 %v1959_v40 }
0x1435   :  { %2639 = vrcp.f32 %v1960_v41 }
0x143e   :  { %v2638_v42 = vpop.eup %2637 }
0x143f   :  { %v2640_v43 = vpop.eup %2639  ;;  %v1989_v60 = vsub.f32 1.0, %v2638_v42  ;;  %v2005_v4 = vmul.f32 %v2638_v42, %v2001_v58 }
0x1440   :  { %v1990_v57 = vsub.f32 1.0, %v2640_v43  ;;  %v2006_v61 = vmul.f32 %v2640_v43, %v2002_v56 }
0x1496   :  { %v1972_v44 = vpop.permute.xlu1 %1971  ;;  %v1970_v45 = vpop.permute.xlu0 %1969 }
0x1497   :  { %v1976_v46 = vmul.f32 %v2640_v43, %v1972_v44  ;;  %v1975_v47 = vmul.f32 %v2638_v42, %v1970_v45 }
0x1499   :  { %1981 = vrot.lane.b32.xlu1 %v1976_v46, %s2701_s12  ;;  %1979 = vrot.lane.b32.xlu0 %v1975_v47, %s2701_s12 }
0x150b   :  { %v1982_v48 = vpop.permute.xlu1 %1981  ;;  %v1980_v50 = vpop.permute.xlu0 %1979 }
0x150c   :  { %v1986_v51 = vadd.f32 %v1982_v48, %v2817_v27  ;;  %v1985_v53 = vadd.f32 %v1980_v50, %v2815_v25 }
0x150e   :  { %2641 = vtanh.f32 %v1986_v51 }
0x150f   :  { %2643 = vtanh.f32 %v1985_v53 }
0x1518   :  { %v2642_v54 = vpop.eup %2641 }
0x1519   :  { %v2644_v55 = vpop.eup %2643  ;;  %1995 = vrot.lane.b32.xlu1 %v2642_v54, %s2702_s20 }
0x151a   :  { %1993 = vrot.lane.b32.xlu0 %v2644_v55, %s2702_s20 }
0x158b   :  { %v1996_v59 = vpop.permute.xlu1 %1995 }
0x158c   :  { %v2000_v3 = vmul.f32 %v1996_v59, %v1990_v57  ;;  %v1994_v27 = vpop.permute.xlu0 %1993 }
0x158d   :  { %v1999_v25 = vmul.f32 %v1994_v27, %v1989_v60 }
0x158e   :  { %v2008_v5 = vadd.f32 %v2006_v61, %v2000_v3 }
0x158f   :  { %v2007_v8 = vadd.f32 %v2005_v4, %v1999_v25 }
0x1590   :  { %v2012_v62 = vrot.slane %v2008_v5, 6 }
0x1591   :  { %v2011_v2 = vrot.slane %v2007_v8, 7 }
0x1593   :  { %v2013_v12 = vsel %vm300_vm2, %v2012_v62, %v2011_v2 }
0x1594   :  { %2014 = vrot.lane.b32.xlu0 %v2013_v12, %s2702_s20 }
0x1606   :  { %v2015_v13 = vpop.permute.xlu0 %2014 }
0x1607   :  { %2433 = vmatmul.mubr.msk.f32.vlgmr.msra.gmra.mrb[16].mxu0 %vm67_vm1, %v2015_v13 }
0x16da   :  { %v2084_v14 = vpop.f32.mrb[16].mxu0 }
0x16db   :  { %v2097_v16 = vrot.slane %v2084_v14, %v2871_v11  ;;  %v2434_v18 = vpop.f32.mrb[17].mxu0 }
0x16dd   :  { %v2098_v10 = vcombine.high %v2097_v16, %v2097_v16  ;;  %v2105_v63 = vrot.slane %v2097_v16, %v2871_v11 }
0x16df   :  { %v2112_v6 = vrot.slane %v2098_v10, %v2871_v11  ;;  %v2115_v20 = vadd.f32 %v2105_v63, %v2088_v19 }
0x16e1   :  { %v2116_v21 = vadd.f32 %v2112_v6, %v2089_v7  ;;  %v2117_v22 = vadd.f32 %v2645_v9, %v2115_v20 }
0x16e3   :  { %v2118_v24 = vadd.f32 %v2645_v9, %v2116_v21  ;;  %2119 = vst.msk [vmem:[%s3209_s7 + $0x7] sm:$0x1] %vm407_vm3, %v2117_v22 }
0x16e5   :  { %2120 = vst.msk [vmem:[%s3209_s7 + $0xf] sm:$0x1] %vm407_vm3, %v2118_v24 }
0x16e6   :  { %2125 = vsyncpa [#allocation3], 1 }
0x16e7   :  { %2126 = vsyncpa [#allocation5], 1 }

// kernel: layer_forward.3
= control target key start
LH: loop header
LB: loop body
LE: loop exit
PB: predicated region body
PF: predicated region fallthrough
CT: control target
= control target key end

     0   :  { %13 = vsyncpa [#allocation3], 0  ;;  %s7683_s27 = smov [#allocation2]   ;;  %s10106_s0 = inlined_call_operand.vmem [shape: f32[2,8,8,32], index: 0, kind: input, shape index: {}]   ;;  %s10107_s1 = inlined_call_operand.vmem [shape: f32[8,16,32], index: 1, kind: input, shape index: {}]   ;;  %s10108_s2 = inlined_call_operand.hbm [shape: f32[3,32,96], index: 2, kind: input, shape index: {}]   ;;  %s10109_s3 = inlined_call_operand.vmem [shape: f32[3,32,96], index: 3, kind: input, shape index: {}]   ;;  %s10110_s4 = inlined_call_operand.vmem [shape: f32[3,1,96], index: 4, kind: input, shape index: {}]   ;;  %s10111_s5 = inlined_call_operand.vmem [shape: f32[3,1,32], index: 5, kind: input, shape index: {}]   ;;  %s10112_s6 = inlined_call_operand.vmem [shape: f32[3,32,32], index: 6, kind: input, shape index: {}]   ;;  %s10113_s7 = inlined_call_operand.vmem [shape: f32[1,32], index: 7, kind: input, shape index: {}]   ;;  %s10114_s8 = inlined_call_operand.vmem [shape: f32[2,8,8,32], index: 8, kind: output, shape index: {}]  }
   0x1   :  { %s23_s28 = sshll.u32 %s7683_s27, 4  ;;  %s7659_s9 = scalar_lea.hbm %s10108_s2, 1536  ;;  %s24_s28 = int_to_ptr.vmem [resolvable:$true] %s23_s28 }
   0x2   :  { %p7660_p0 = scmp.ne.s32.totalorder %s10108_s2, %s7659_s9  ;;  %p7663_p1 = scmp.lt.u32.totalorder %s7659_s9, %s10108_s2 }
   0x4   :  { %p7665_p2 = pnand %p7663_p1, %p7660_p0 }
   0x6   :  { %7668 = shalt.err (!%p7665_p2)
}
   0x7   :  { %s7669_s14 = scalar_lea.vmem %s24_s28, 1536  ;;  %p7674_p4 = scmp.lt.s32.totalorder %s24_s28, %s24_s28 }
   0x8   :  { %p7670_p3 = scmp.ne.s32.totalorder %s24_s28, %s7669_s14  ;;  %p7675_p5 = scmp.lt.s32.totalorder %s7669_s14, %s7669_s14 }
   0xa   :  { %p7676_p6 = por %p7675_p5, %p7674_p4 }
   0xc   :  { %p7677_p7 = pnand %p7676_p6, %p7670_p3 }
   0xe   :  { %7680 = shalt.err (!%p7677_p7)
}
   0xf   :  { %s7684_s15 = smov 128   ;;  %s7685_s16 = smov 8  }
  0x10   :  { %29 = dma.hbm_to_vmem [thread:$0]  %s10108_s2, 1536, %s24_s28, [#allocation3], %s7684_s15, %s7684_s15, %s7685_s16  }
  0x11   :  { %7681 = dma.done.wait [#allocation3], 1536  }
  0x12   :  { %7682 = vsyncadd [#allocation3], 4294965760  ;;  %vm70_vm0 = vcmask 261120   ;;  %v59_v0 = vld [vmem:[#allocation2] sm:$0xff]  ;;  %v60_v1 = vld [vmem:[#allocation2 + $0x8] sm:$0xff]  ;;  %s7686_s12 = smov 64  }
  0x13   :  { %v61_v2 = vld [vmem:[#allocation2 + $0x10] sm:$0xff]  ;;  %v7092_v3 = vpack.c.bf16 %v60_v1, %v59_v0  ;;  %v62_v4 = vld [vmem:[#allocation2 + $0x18] sm:$0xff]  ;;  %v43_v5 = vld [vmem:[%s10106_s0] sm:$0xff]  ;;  %v7687_v29 = vmov 0.0   ;;  %s7688_s19 = smov 96   ;;  %vm4646_vm1 = vcmask 253952  }
  0x14   :  { %v7096_v6 = vpack.c.bf16 %v62_v4, %v61_v2  ;;  %6644 = vmatprep.mubr.msk.f32.mxu1 %vm70_vm0, %v43_v5  ;;  %v264_v7 = vld [vmem:[%s10109_s3] sm:$0xff]  ;;  %v265_v8 = vld [vmem:[%s10109_s3 + $0x8] sm:$0xff]  ;;  %v266_v10 = vld [vmem:[%s10109_s3 + $0x10] sm:$0xff]  ;;  %vm4859_vm2 = vcmask 254977   ;;  %vm5072_vm3 = vcmask 256002   ;;  %vm5285_vm4 = vcmask 257027  }
  0x15   :  { %7093 = vmatprep.subr.bf16.mxu1 %v7092_v3  ;;  %v7757_v9 = vpack.c.bf16 %v265_v8, %v264_v7  ;;  %v267_v11 = vld [vmem:[%s10109_s3 + $0x18] sm:$0xff]  ;;  %v44_v13 = vld [vmem:[%s10106_s0 + $0x8] sm:$0xff]  ;;  %v6178_v14 = vld [vmem:[%s10111_s5] ss:$0 sm:$0xff]  ;;  %vm5498_vm5 = vcmask 258052   ;;  %vm5711_vm6 = vcmask 259077  }
  0x16   :  { %7095 = vmatpush3.bf16.msra.mxu1 %v7092_v3  ;;  %v7766_v12 = vpack.c.bf16 %v267_v11, %v266_v10  ;;  %v45_v15 = vld [vmem:[%s10106_s0 + $0x10] sm:$0xff]  ;;  %366 = vrot.lane.b32.xlu0 %v6178_v14, %s7686_s12  ;;  %v46_v16 = vld [vmem:[%s10106_s0 + $0x18] sm:$0xff]  ;;  %v47_v17 = vld [vmem:[%s10106_s0 + $0x20] sm:$0xff]  ;;  %vm5924_vm7 = vcmask 260102   ;;  %vm6137_vm8 = vcmask 261127  }
  0x17   :  { %7097 = vmatprep.subr.bf16.mxu1 %v7096_v6  ;;  %7133 = vmatprep.subr.bf16.mxu0 %v7757_v9  ;;  %v48_v18 = vld [vmem:[%s10106_s0 + $0x28] sm:$0xff]  ;;  %v49_v19 = vld [vmem:[%s10106_s0 + $0x30] sm:$0xff]  ;;  %v50_v20 = vld [vmem:[%s10106_s0 + $0x38] sm:$0xff] }
  0x18   :  { %7135 = vmatpush3.bf16.msra.mxu0 %v7757_v9  ;;  %v51_v21 = vld [vmem:[%s10106_s0 + $0x40] sm:$0xff]  ;;  %v52_v22 = vld [vmem:[%s10106_s0 + $0x48] sm:$0xff]  ;;  %v53_v23 = vld [vmem:[%s10106_s0 + $0x50] sm:$0xff] }
  0x19   :  { %7137 = vmatprep.subr.bf16.mxu0 %v7766_v12  ;;  %v54_v24 = vld [vmem:[%s10106_s0 + $0x58] sm:$0xff]  ;;  %v55_v25 = vld [vmem:[%s10106_s0 + $0x60] sm:$0xff]  ;;  %v56_v26 = vld [vmem:[%s10106_s0 + $0x68] sm:$0xff] }
  0x1a   :  { %7099 = vmatpush3.bf16.msra.mxu1 %v7096_v6  ;;  %v57_v27 = vld [vmem:[%s10106_s0 + $0x70] sm:$0xff]  ;;  %v58_v28 = vld [vmem:[%s10106_s0 + $0x78] sm:$0xff]  ;;  %v6159_v30 = vld [vmem:[%s10110_s4] ss:$0 sm:$0xff] }
  0x1b   :  { %7101 = vmatprep.subr.bf16.mxu1 %v7757_v9 }
  0x1c   :  { %7139 = vmatpush3.bf16.msra.mxu0 %v7766_v12 }
  0x1d   :  { %6645 = vmatmul.mubr.msk.f32.vlgmr.msra.gmra.mrb[0].mxu1 %vm70_vm0, %v44_v13  ;;  %7149 = vmatprep.subr.bf16.mxu0 %v7757_v9 }
  0x1e   :  { %7103 = vmatpush3.bf16.msra.mxu1 %v7757_v9  ;;  %6647 = vmatprep.mubr.msk.f32.mxu1 %vm70_vm0, %v45_v15 }
  0x1f   :  { %7105 = vmatprep.subr.bf16.mxu1 %v7766_v12 }
  0x21   :  { %6648 = vmatmul.mubr.msk.f32.gmra.mrb[2].mxu1 %vm70_vm0, %v46_v16 }
  0x22   :  { %6650 = vmatprep.mubr.msk.f32.mxu1 %vm70_vm0, %v47_v17  ;;  %7107 = vmatpush3.bf16.msra.mxu1 %v7766_v12 }
  0x23   :  { %7109 = vmatprep.subr.bf16.mxu1 %v7757_v9 }
  0x25   :  { %6651 = vmatmul.mubr.msk.f32.gmra.mrb[4].mxu1 %vm70_vm0, %v48_v18 }
  0x26   :  { %6653 = vmatprep.mubr.msk.f32.mxu1 %vm70_vm0, %v49_v19 }
  0x29   :  { %6654 = vmatmul.mubr.msk.f32.gmra.mrb[6].mxu1 %vm70_vm0, %v50_v20 }
  0x2a   :  { %6656 = vmatprep.mubr.msk.f32.mxu1 %vm70_vm0, %v51_v21 }
  0x2d   :  { %6657 = vmatmul.mubr.msk.f32.gmra.mrb[8].mxu1 %vm70_vm0, %v52_v22 }
  0x2e   :  { %6659 = vmatprep.mubr.msk.f32.mxu1 %vm70_vm0, %v53_v23 }
  0x31   :  { %6660 = vmatmul.mubr.msk.f32.gmra.mrb[10].mxu1 %vm70_vm0, %v54_v24 }
  0x32   :  { %6662 = vmatprep.mubr.msk.f32.mxu1 %vm70_vm0, %v55_v25 }
  0x35   :  { %6663 = vmatmul.mubr.msk.f32.gmra.mrb[12].mxu1 %vm70_vm0, %v56_v26 }
  0x36   :  { %6665 = vmatprep.mubr.msk.f32.mxu1 %vm70_vm0, %v57_v27 }
  0x39   :  { %6666 = vmatmul.mubr.msk.f32.gmra.mrb[14].mxu1 %vm70_vm0, %v58_v28 }
  0x3a   :  { %6676 = vmatprep.mubr.f32.mxu1 %v7687_v29 }
  0x3d   :  { %6677 = vmatmul.mubr.f32.vlgmr.msra.gmra.mrb[16].mxu1 %v7687_v29 }
  0x3e   :  { %7111 = vmatpush3.bf16.msra.mxu1 %v7757_v9 }
  0x3f   :  { %7113 = vmatprep.subr.bf16.mxu1 %v7766_v12 }
  0x42   :  { %7115 = vmatpush3.bf16.msra.mxu1 %v7766_v12 }
  0x43   :  { %7117 = vmatprep.subr.bf16.mxu1 %v7757_v9 }
  0x88   :  { %v7878_v61 = vpop.permute.xlu0 %366 }
  0xf0   :  { %v6646_v31 = vpop.f32.mrb[0].mxu1 }
  0xf1   :  { %v7850_v32 = vadd.f32 %v6646_v31, %v6159_v30  ;;  %v185_v33 = vpop.f32.mrb[1].mxu1 }
  0xf2   :  { %v186_v3 = vadd.f32 %v6159_v30, %v185_v33 }
  0xf4   :  { %v6649_v34 = vpop.f32.mrb[2].mxu1 }
  0xf5   :  { %v7852_v35 = vadd.f32 %v6649_v34, %v6159_v30  ;;  %v195_v36 = vpop.f32.mrb[3].mxu1 }
  0xf6   :  { %v7854_v37 = vadd.f32 %v6159_v30, %v195_v36 }
  0xf8   :  { %v6652_v38 = vpop.f32.mrb[4].mxu1 }
  0xf9   :  { %v7856_v39 = vadd.f32 %v6652_v38, %v6159_v30  ;;  %v205_v40 = vpop.f32.mrb[5].mxu1 }
  0xfa   :  { %v7858_v41 = vadd.f32 %v6159_v30, %v205_v40 }
  0xfc   :  { %v6655_v42 = vpop.f32.mrb[6].mxu1 }
  0xfd   :  { %v7860_v43 = vadd.f32 %v6655_v42, %v6159_v30  ;;  %v215_v44 = vpop.f32.mrb[7].mxu1 }
  0xfe   :  { %v7862_v45 = vadd.f32 %v6159_v30, %v215_v44 }
 0x100   :  { %v6658_v46 = vpop.f32.mrb[8].mxu1 }
 0x101   :  { %v7864_v47 = vadd.f32 %v6658_v46, %v6159_v30  ;;  %v225_v48 = vpop.f32.mrb[9].mxu1 }
 0x102   :  { %v226_v2 = vadd.f32 %v6159_v30, %v225_v48 }
 0x104   :  { %v6661_v49 = vpop.f32.mrb[10].mxu1 }
 0x105   :  { %v7866_v50 = vadd.f32 %v6661_v49, %v6159_v30  ;;  %v235_v51 = vpop.f32.mrb[11].mxu1 }
 0x106   :  { %v7868_v52 = vadd.f32 %v6159_v30, %v235_v51 }
 0x108   :  { %v6664_v53 = vpop.f32.mrb[12].mxu1 }
 0x109   :  { %v7870_v54 = vadd.f32 %v6664_v53, %v6159_v30  ;;  %v245_v55 = vpop.f32.mrb[13].mxu1 }
 0x10a   :  { %v7872_v56 = vadd.f32 %v6159_v30, %v245_v55 }
 0x10c   :  { %v6667_v57 = vpop.f32.mrb[14].mxu1 }
 0x10d   :  { %v7874_v58 = vadd.f32 %v6667_v57, %v6159_v30  ;;  %v255_v59 = vpop.f32.mrb[15].mxu1 }
 0x10e   :  { %v7876_v60 = vadd.f32 %v6159_v30, %v255_v59 }
 0x110   :  { %v6678_v62 = vpop.f32.mrb[16].mxu1 }
 0x111   :  { %v338_v63 = vpop.f32.mrb[17].mxu1  ;;  %v370_v0 = vadd.f32 %v6678_v62, %v7878_v61  ;;  %v348_v4 = vadd.f32 %v6678_v62, %v226_v2 }
 0x112   :  { %v369_v1 = vadd.f32 %v7878_v61, %v338_v63  ;;  %v347_v5 = vadd.f32 %v338_v63, %v186_v3 }
 0x113   :  { %375 = vrot.lane.b32.xlu1 %v370_v0, %s7686_s12  ;;  %v6177_v6 = vmul.f32 -1.442695, %v348_v4 }
 0x114   :  { %373 = vrot.lane.b32.xlu0 %v369_v1, %s7686_s12  ;;  %v6176_v7 = vmul.f32 -1.442695, %v347_v5 }
 0x115   :  { %7355 = vpow2.f32 %v6177_v6 }
 0x116   :  { %7357 = vpow2.f32 %v6176_v7 }
 0x11f   :  { %v7356_v8 = vpop.eup %7355 }
 0x120   :  { %v7358_v10 = vpop.eup %7357  ;;  %v356_v11 = vadd.f32 1.0, %v7356_v8 }
 0x121   :  { %v355_v13 = vadd.f32 1.0, %v7358_v10 }
 0x122   :  { %7359 = vrcp.f32 %v356_v11 }
 0x123   :  { %7361 = vrcp.f32 %v355_v13 }
 0x12c   :  { %v7360_v14 = vpop.eup %7359 }
 0x12d   :  { %v7362_v16 = vpop.eup %7361  ;;  %v394_v26 = vsub.f32 1.0, %v7360_v14  ;;  %v406_v30 = vmul.f32 0.0, %v7360_v14 }
 0x12e   :  { %v393_v28 = vsub.f32 1.0, %v7362_v16  ;;  %v405_v34 = vmul.f32 0.0, %v7362_v16 }
 0x185   :  { %v376_v15 = vpop.permute.xlu1 %375 }
 0x186   :  { %v380_v17 = vmul.f32 %v7360_v14, %v376_v15  ;;  %v374_v18 = vpop.permute.xlu0 %373 }
 0x187   :  { %v379_v19 = vmul.f32 %v7362_v16, %v374_v18 }
 0x188   :  { %385 = vrot.lane.b32.xlu0 %v380_v17, %s7686_s12 }
 0x189   :  { %383 = vrot.lane.b32.xlu1 %v379_v19, %s7686_s12 }
 0x1fa   :  { %v386_v20 = vpop.permute.xlu0 %385 }
 0x1fb   :  { %v390_v21 = vadd.f32 %v386_v20, %v226_v2  ;;  %v384_v22 = vpop.permute.xlu1 %383 }
 0x1fc   :  { %v389_v23 = vadd.f32 %v384_v22, %v186_v3 }
 0x1fd   :  { %7363 = vtanh.f32 %v390_v21 }
 0x1fe   :  { %7365 = vtanh.f32 %v389_v23 }
 0x207   :  { %v7364_v24 = vpop.eup %7363 }
 0x208   :  { %v7366_v25 = vpop.eup %7365  ;;  %399 = vrot.lane.b32.xlu0 %v7364_v24, %s7688_s19 }
 0x209   :  { %397 = vrot.lane.b32.xlu1 %v7366_v25, %s7688_s19 }
 0x27a   :  { %v400_v27 = vpop.permute.xlu0 %399 }
 0x27b   :  { %v404_v31 = vmul.f32 %v400_v27, %v394_v26  ;;  %v398_v33 = vpop.permute.xlu1 %397 }
 0x27c   :  { %v403_v36 = vmul.f32 %v398_v33, %v393_v28 }
 0x27d   :  { %v408_v38 = vadd.f32 %v406_v30, %v404_v31 }
 0x27e   :  { %v407_v40 = vadd.f32 %v405_v34, %v403_v36 }
 0x27f   :  { %413 = vrot.lane.b32.xlu0 %v408_v38, %s7688_s19 }
 0x280   :  { %411 = vrot.lane.b32.xlu1 %v407_v40, %s7688_s19 }
 0x2f1   :  { %v7892_v44 = vpop.permute.xlu0 %413 }
 0x2f2   :  { %v7890_v42 = vpop.permute.xlu1 %411 }
 0x2f3   :  { %6687 = vmatprep.mubr.msk.f32.mxu1 %vm70_vm0, %v7890_v42 }
 0x2f4   :  { %6688 = vmatmul.mubr.msk.f32.vlgmr.msra.gmra.mrb[18].mxu1 %vm70_vm0, %v7892_v44 }
 0x2f5   :  { %7119 = vmatpush3.bf16.msra.mxu1 %v7757_v9 }
 0x2f6   :  { %7121 = vmatprep.subr.bf16.mxu1 %v7766_v12 }
 0x2f9   :  { %7123 = vmatpush3.bf16.msra.mxu1 %v7766_v12 }
 0x2fa   :  { %7125 = vmatprep.subr.bf16.mxu1 %v7757_v9 }
 0x3c7   :  { %v6689_v46 = vpop.f32.mrb[18].mxu1 }
 0x3c8   :  { %v509_v48 = vadd.f32 %v6689_v46, %v7878_v61  ;;  %v485_v49 = vpop.f32.mrb[19].mxu1  ;;  %v495_v53 = vadd.f32 %v6689_v46, %v7864_v47 }
 0x3c9   :  { %v508_v51 = vadd.f32 %v485_v49, %v7878_v61  ;;  %v494_v55 = vadd.f32 %v485_v49, %v7850_v32 }
 0x3ca   :  { %514 = vrot.lane.b32.xlu0 %v509_v48, %s7686_s12  ;;  %v6182_v57 = vmul.f32 -1.442695, %v495_v53 }
 0x3cb   :  { %512 = vrot.lane.b32.xlu1 %v508_v51, %s7686_s12  ;;  %v6181_v59 = vmul.f32 -1.442695, %v494_v55 }
 0x3cc   :  { %7367 = vpow2.f32 %v6182_v57 }
 0x3cd   :  { %7369 = vpow2.f32 %v6181_v59 }
 0x3d6   :  { %v7368_v62 = vpop.eup %7367 }
 0x3d7   :  { %v7370_v63 = vpop.eup %7369  ;;  %v503_v0 = vadd.f32 1.0, %v7368_v62 }
 0x3d8   :  { %v502_v1 = vadd.f32 1.0, %v7370_v63 }
 0x3d9   :  { %7371 = vrcp.f32 %v503_v0 }
 0x3da   :  { %7373 = vrcp.f32 %v502_v1 }
 0x3e3   :  { %v7372_v2 = vpop.eup %7371 }
 0x3e4   :  { %v7374_v4 = vpop.eup %7373  ;;  %v533_v16 = vsub.f32 1.0, %v7372_v2  ;;  %v545_v19 = vmul.f32 %v7372_v2, %v408_v38 }
 0x3e5   :  { %v532_v18 = vsub.f32 1.0, %v7374_v4  ;;  %v544_v22 = vmul.f32 %v7374_v4, %v407_v40 }
 0x43c   :  { %v515_v3 = vpop.permute.xlu0 %514 }
 0x43d   :  { %v519_v5 = vmul.f32 %v7372_v2, %v515_v3  ;;  %v513_v6 = vpop.permute.xlu1 %512 }
 0x43e   :  { %v518_v7 = vmul.f32 %v7374_v4, %v513_v6 }
 0x43f   :  { %524 = vrot.lane.b32.xlu0 %v519_v5, %s7686_s12 }
 0x440   :  { %522 = vrot.lane.b32.xlu1 %v518_v7, %s7686_s12 }
 0x4b1   :  { %v525_v8 = vpop.permute.xlu0 %524 }
 0x4b2   :  { %v529_v10 = vadd.f32 %v525_v8, %v7864_v47  ;;  %v523_v11 = vpop.permute.xlu1 %522 }
 0x4b3   :  { %v528_v13 = vadd.f32 %v523_v11, %v7850_v32 }
 0x4b4   :  { %7375 = vtanh.f32 %v529_v10 }
 0x4b5   :  { %7377 = vtanh.f32 %v528_v13 }
 0x4be   :  { %v7376_v14 = vpop.eup %7375 }
 0x4bf   :  { %v7378_v15 = vpop.eup %7377  ;;  %538 = vrot.lane.b32.xlu0 %v7376_v14, %s7688_s19 }
 0x4c0   :  { %536 = vrot.lane.b32.xlu1 %v7378_v15, %s7688_s19 }
 0x531   :  { %v539_v17 = vpop.permute.xlu0 %538 }
 0x532   :  { %v543_v20 = vmul.f32 %v539_v17, %v533_v16  ;;  %v537_v21 = vpop.permute.xlu1 %536 }
 0x533   :  { %v542_v23 = vmul.f32 %v537_v21, %v532_v18 }
 0x534   :  { %v547_v47 = vadd.f32 %v545_v19, %v543_v20 }
 0x535   :  { %v546_v24 = vadd.f32 %v544_v22, %v542_v23 }
 0x536   :  { %552 = vrot.lane.b32.xlu0 %v547_v47, %s7688_s19 }
 0x537   :  { %550 = vrot.lane.b32.xlu1 %v546_v24, %s7688_s19 }
 0x5a8   :  { %v7918_v25 = vpop.permute.xlu0 %552 }
 0x5a9   :  { %v7916_v32 = vpop.permute.xlu1 %550 }
 0x5aa   :  { %6698 = vmatprep.mubr.msk.f32.mxu1 %vm70_vm0, %v7916_v32 }
 0x5ab   :  { %6699 = vmatmul.mubr.msk.f32.vlgmr.msra.gmra.mrb[20].mxu1 %vm70_vm0, %v7918_v25 }
 0x5ac   :  { %7127 = vmatpush3.bf16.msra.mxu1 %v7757_v9 }
 0x5ad   :  { %7129 = vmatprep.subr.bf16.mxu1 %v7766_v12 }
 0x5b0   :  { %7131 = vmatpush3.bf16.msra.mxu1 %v7766_v12 }
 0x5b1   :  { %7141 = vmatprep.subr.bf16.mxu1 %v7757_v9 }
 0x67e   :  { %v6700_v26 = vpop.f32.mrb[20].mxu1 }
 0x67f   :  { %v648_v27 = vadd.f32 %v6700_v26, %v7878_v61  ;;  %v624_v28 = vpop.f32.mrb[21].mxu1  ;;  %v634_v31 = vadd.f32 %v6700_v26, %v7868_v52 }
 0x680   :  { %v647_v30 = vadd.f32 %v624_v28, %v7878_v61  ;;  %v633_v33 = vadd.f32 %v624_v28, %v7854_v37 }
 0x681   :  { %653 = vrot.lane.b32.xlu0 %v648_v27, %s7686_s12  ;;  %v6186_v34 = vmul.f32 -1.442695, %v634_v31 }
 0x682   :  { %651 = vrot.lane.b32.xlu1 %v647_v30, %s7686_s12  ;;  %v6185_v36 = vmul.f32 -1.442695, %v633_v33 }
 0x683   :  { %7379 = vpow2.f32 %v6186_v34 }
 0x684   :  { %7381 = vpow2.f32 %v6185_v36 }
 0x68d   :  { %v7380_v38 = vpop.eup %7379 }
 0x68e   :  { %v7382_v40 = vpop.eup %7381  ;;  %v642_v46 = vadd.f32 1.0, %v7380_v38 }
 0x68f   :  { %v641_v48 = vadd.f32 1.0, %v7382_v40 }
 0x690   :  { %7383 = vrcp.f32 %v642_v46 }
 0x691   :  { %7385 = vrcp.f32 %v641_v48 }
 0x69a   :  { %v7384_v49 = vpop.eup %7383 }
 0x69b   :  { %v7386_v53 = vpop.eup %7385  ;;  %v672_v4 = vsub.f32 1.0, %v7384_v49  ;;  %v684_v7 = vmul.f32 %v7384_v49, %v547_v47 }
 0x69c   :  { %v671_v6 = vsub.f32 1.0, %v7386_v53  ;;  %v683_v11 = vmul.f32 %v7386_v53, %v546_v24 }
 0x6f3   :  { %v654_v51 = vpop.permute.xlu0 %653 }
 0x6f4   :  { %v658_v55 = vmul.f32 %v7384_v49, %v654_v51  ;;  %v652_v57 = vpop.permute.xlu1 %651 }
 0x6f5   :  { %v657_v59 = vmul.f32 %v7386_v53, %v652_v57 }
 0x6f6   :  { %663 = vrot.lane.b32.xlu0 %v658_v55, %s7686_s12 }
 0x6f7   :  { %661 = vrot.lane.b32.xlu1 %v657_v59, %s7686_s12 }
 0x768   :  { %v664_v62 = vpop.permute.xlu0 %663 }
 0x769   :  { %v668_v63 = vadd.f32 %v664_v62, %v7868_v52  ;;  %v662_v0 = vpop.permute.xlu1 %661 }
 0x76a   :  { %v667_v1 = vadd.f32 %v662_v0, %v7854_v37 }
 0x76b   :  { %7387 = vtanh.f32 %v668_v63 }
 0x76c   :  { %7389 = vtanh.f32 %v667_v1 }
 0x775   :  { %v7388_v2 = vpop.eup %7387 }
 0x776   :  { %v7390_v3 = vpop.eup %7389  ;;  %677 = vrot.lane.b32.xlu0 %v7388_v2, %s7688_s19 }
 0x777   :  { %675 = vrot.lane.b32.xlu1 %v7390_v3, %s7688_s19 }
 0x7e8   :  { %v678_v5 = vpop.permute.xlu0 %677 }
 0x7e9   :  { %v682_v8 = vmul.f32 %v678_v5, %v672_v4  ;;  %v676_v10 = vpop.permute.xlu1 %675 }
 0x7ea   :  { %v681_v13 = vmul.f32 %v676_v10, %v671_v6 }
 0x7eb   :  { %v686_v52 = vadd.f32 %v684_v7, %v682_v8 }
 0x7ec   :  { %v685_v14 = vadd.f32 %v683_v11, %v681_v13 }
 0x7ed   :  { %691 = vrot.lane.b32.xlu0 %v686_v52, %s7688_s19 }
 0x7ee   :  { %689 = vrot.lane.b32.xlu1 %v685_v14, %s7688_s19 }
 0x85f   :  { %v7944_v15 = vpop.permute.xlu0 %691 }
 0x860   :  { %v7942_v37 = vpop.permute.xlu1 %689 }
 0x861   :  { %6709 = vmatprep.mubr.msk.f32.mxu1 %vm70_vm0, %v7942_v37 }
 0x862   :  { %6710 = vmatmul.mubr.msk.f32.vlgmr.msra.gmra.mrb[22].mxu1 %vm70_vm0, %v7944_v15 }
 0x863   :  { %7143 = vmatpush3.bf16.msra.mxu1 %v7757_v9 }
 0x864   :  { %7145 = vmatprep.subr.bf16.mxu1 %v7766_v12 }
 0x867   :  { %7147 = vmatpush3.bf16.msra.mxu1 %v7766_v12 }
 0x868   :  { %7157 = vmatprep.subr.bf16.mxu1 %v7757_v9 }
 0x935   :  { %v6711_v16 = vpop.f32.mrb[22].mxu1 }
 0x936   :  { %v787_v17 = vadd.f32 %v6711_v16, %v7878_v61  ;;  %v763_v18 = vpop.f32.mrb[23].mxu1  ;;  %v773_v20 = vadd.f32 %v6711_v16, %v7866_v50 }
 0x937   :  { %v786_v19 = vadd.f32 %v763_v18, %v7878_v61  ;;  %v772_v21 = vadd.f32 %v763_v18, %v7852_v35 }
 0x938   :  { %792 = vrot.lane.b32.xlu0 %v787_v17, %s7686_s12  ;;  %v6190_v22 = vmul.f32 -1.442695, %v773_v20 }
 0x939   :  { %790 = vrot.lane.b32.xlu1 %v786_v19, %s7686_s12  ;;  %v6189_v23 = vmul.f32 -1.442695, %v772_v21 }
 0x93a   :  { %7391 = vpow2.f32 %v6190_v22 }
 0x93b   :  { %7393 = vpow2.f32 %v6189_v23 }
 0x944   :  { %v7392_v47 = vpop.eup %7391 }
 0x945   :  { %v7394_v24 = vpop.eup %7393  ;;  %v781_v26 = vadd.f32 1.0, %v7392_v47 }
 0x946   :  { %v780_v27 = vadd.f32 1.0, %v7394_v24 }
 0x947   :  { %7395 = vrcp.f32 %v781_v26 }
 0x948   :  { %7397 = vrcp.f32 %v780_v27 }
 0x951   :  { %v7396_v28 = vpop.eup %7395 }
 0x952   :  { %v7398_v31 = vpop.eup %7397  ;;  %v811_v53 = vsub.f32 1.0, %v7396_v28  ;;  %v823_v59 = vmul.f32 %v7396_v28, %v686_v52 }
 0x953   :  { %v810_v57 = vsub.f32 1.0, %v7398_v31  ;;  %v822_v0 = vmul.f32 %v7398_v31, %v685_v14 }
 0x9aa   :  { %v793_v30 = vpop.permute.xlu0 %792 }
 0x9ab   :  { %v797_v33 = vmul.f32 %v7396_v28, %v793_v30  ;;  %v791_v34 = vpop.permute.xlu1 %790 }
 0x9ac   :  { %v796_v36 = vmul.f32 %v7398_v31, %v791_v34 }
 0x9ad   :  { %802 = vrot.lane.b32.xlu0 %v797_v33, %s7686_s12 }
 0x9ae   :  { %800 = vrot.lane.b32.xlu1 %v796_v36, %s7686_s12 }
 0xa1f   :  { %v803_v38 = vpop.permute.xlu0 %802 }
 0xa20   :  { %v807_v40 = vadd.f32 %v803_v38, %v7866_v50  ;;  %v801_v46 = vpop.permute.xlu1 %800 }
 0xa21   :  { %v806_v48 = vadd.f32 %v801_v46, %v7852_v35 }
 0xa22   :  { %7399 = vtanh.f32 %v807_v40 }
 0xa23   :  { %7401 = vtanh.f32 %v806_v48 }
 0xa2c   :  { %v7400_v49 = vpop.eup %7399 }
 0xa2d   :  { %v7402_v51 = vpop.eup %7401  ;;  %816 = vrot.lane.b32.xlu0 %v7400_v49, %s7688_s19 }
 0xa2e   :  { %814 = vrot.lane.b32.xlu1 %v7402_v51, %s7688_s19 }
 0xa9f   :  { %v817_v55 = vpop.permute.xlu0 %816 }
 0xaa0   :  { %v821_v62 = vmul.f32 %v817_v55, %v811_v53  ;;  %v815_v63 = vpop.permute.xlu1 %814 }
 0xaa1   :  { %v820_v1 = vmul.f32 %v815_v63, %v810_v57 }
 0xaa2   :  { %v825_v50 = vadd.f32 %v823_v59, %v821_v62 }
 0xaa3   :  { %v824_v2 = vadd.f32 %v822_v0, %v820_v1 }
 0xaa4   :  { %830 = vrot.lane.b32.xlu0 %v825_v50, %s7688_s19 }
 0xaa5   :  { %828 = vrot.lane.b32.xlu1 %v824_v2, %s7688_s19 }
 0xb16   :  { %v7970_v3 = vpop.permute.xlu0 %830 }
 0xb17   :  { %v7968_v35 = vpop.permute.xlu1 %828 }
 0xb18   :  { %6720 = vmatprep.mubr.msk.f32.mxu0 %vm70_vm0, %v7968_v35 }
 0xb19   :  { %6721 = vmatmul.mubr.msk.f32.vlgmr.msra.gmra.mrb[0].mxu0 %vm70_vm0, %v7970_v3 }
 0xb1a   :  { %7151 = vmatpush3.bf16.msra.mxu0 %v7757_v9 }
 0xb1b   :  { %7153 = vmatprep.subr.bf16.mxu0 %v7766_v12 }
 0xb1e   :  { %7155 = vmatpush3.bf16.msra.mxu0 %v7766_v12 }
 0xbec   :  { %v6722_v4 = vpop.f32.mrb[0].mxu0 }
 0xbed   :  { %v926_v5 = vadd.f32 %v6722_v4, %v7878_v61  ;;  %v902_v6 = vpop.f32.mrb[1].mxu0  ;;  %v912_v8 = vadd.f32 %v6722_v4, %v7872_v56 }
 0xbee   :  { %v925_v7 = vadd.f32 %v902_v6, %v7878_v61  ;;  %v911_v10 = vadd.f32 %v902_v6, %v7858_v41 }
 0xbef   :  { %931 = vrot.lane.b32.xlu0 %v926_v5, %s7686_s12  ;;  %v6194_v11 = vmul.f32 -1.442695, %v912_v8 }
 0xbf0   :  { %929 = vrot.lane.b32.xlu1 %v925_v7, %s7686_s12  ;;  %v6193_v13 = vmul.f32 -1.442695, %v911_v10 }
 0xbf1   :  { %7403 = vpow2.f32 %v6194_v11 }
 0xbf2   :  { %7405 = vpow2.f32 %v6193_v13 }
 0xbfb   :  { %v7404_v52 = vpop.eup %7403 }
 0xbfc   :  { %v7406_v14 = vpop.eup %7405  ;;  %v920_v16 = vadd.f32 1.0, %v7404_v52 }
 0xbfd   :  { %v919_v17 = vadd.f32 1.0, %v7406_v14 }
 0xbfe   :  { %7407 = vrcp.f32 %v920_v16 }
 0xbff   :  { %7409 = vrcp.f32 %v919_v17 }
 0xc08   :  { %v7408_v18 = vpop.eup %7407 }
 0xc09   :  { %v7410_v20 = vpop.eup %7409  ;;  %v950_v31 = vsub.f32 1.0, %v7408_v18  ;;  %v962_v36 = vmul.f32 %v7408_v18, %v825_v50 }
 0xc0a   :  { %v949_v34 = vsub.f32 1.0, %v7410_v20  ;;  %v961_v46 = vmul.f32 %v7410_v20, %v824_v2 }
 0xc61   :  { %v932_v19 = vpop.permute.xlu0 %931 }
 0xc62   :  { %v936_v21 = vmul.f32 %v7408_v18, %v932_v19  ;;  %v930_v22 = vpop.permute.xlu1 %929  ;;  %v1382_v18 = vld [vmem:[%s10112_s6] sm:$0xff]  ;;  %v1383_v19 = vld [vmem:[%s10112_s6 + $0x8] sm:$0xff] }
 0xc63   :  { %v935_v23 = vmul.f32 %v7410_v20, %v930_v22 }
 0xc64   :  { %941 = vrot.lane.b32.xlu0 %v936_v21, %s7686_s12 }
 0xc65   :  { %939 = vrot.lane.b32.xlu1 %v935_v23, %s7686_s12 }
 0xcd6   :  { %v942_v47 = vpop.permute.xlu0 %941 }
 0xcd7   :  { %v946_v24 = vadd.f32 %v942_v47, %v7872_v56  ;;  %v940_v26 = vpop.permute.xlu1 %939 }
 0xcd8   :  { %v945_v27 = vadd.f32 %v940_v26, %v7858_v41 }
 0xcd9   :  { %7411 = vtanh.f32 %v946_v24 }
 0xcda   :  { %7413 = vtanh.f32 %v945_v27 }
 0xce3   :  { %v7412_v28 = vpop.eup %7411 }
 0xce4   :  { %v7414_v30 = vpop.eup %7413  ;;  %955 = vrot.lane.b32.xlu0 %v7412_v28, %s7688_s19 }
 0xce5   :  { %953 = vrot.lane.b32.xlu1 %v7414_v30, %s7688_s19  ;;  %v1384_v30 = vld [vmem:[%s10112_s6 + $0x10] sm:$0xff] }
 0xd56   :  { %v956_v33 = vpop.permute.xlu0 %955 }
 0xd57   :  { %v960_v38 = vmul.f32 %v956_v33, %v950_v31  ;;  %v954_v40 = vpop.permute.xlu1 %953  ;;  %v1385_v31 = vld [vmem:[%s10112_s6 + $0x18] sm:$0xff] }
 0xd58   :  { %v959_v48 = vmul.f32 %v954_v40, %v949_v34  ;;  %v7168_v34 = vpack.c.bf16 %v1385_v31, %v1384_v30 }
 0xd59   :  { %v964_v56 = vadd.f32 %v962_v36, %v960_v38 }
 0xd5a   :  { %v963_v49 = vadd.f32 %v961_v46, %v959_v48 }
 0xd5b   :  { %969 = vrot.lane.b32.xlu0 %v964_v56, %s7688_s19 }
 0xd5c   :  { %967 = vrot.lane.b32.xlu1 %v963_v49, %s7688_s19 }
 0xdcd   :  { %v7995_v51 = vpop.permute.xlu0 %969 }
 0xdce   :  { %v7993_v41 = vpop.permute.xlu1 %967 }
 0xdcf   :  { %6731 = vmatprep.mubr.msk.f32.mxu1 %vm70_vm0, %v7993_v41 }
 0xdd0   :  { %6732 = vmatmul.mubr.msk.f32.vlgmr.msra.gmra.mrb[24].mxu1 %vm70_vm0, %v7995_v51 }
 0xdd1   :  { %7159 = vmatpush3.bf16.msra.mxu1 %v7757_v9 }
 0xdd2   :  { %7161 = vmatprep.subr.bf16.mxu1 %v7766_v12 }
 0xdd5   :  { %7163 = vmatpush3.bf16.msra.mxu1 %v7766_v12 }
 0xea3   :  { %v6733_v53 = vpop.f32.mrb[24].mxu1 }
 0xea4   :  { %v1065_v55 = vadd.f32 %v6733_v53, %v7878_v61  ;;  %v1041_v57 = vpop.f32.mrb[25].mxu1  ;;  %v1051_v62 = vadd.f32 %v6733_v53, %v7870_v54 }
 0xea5   :  { %v1064_v59 = vadd.f32 %v1041_v57, %v7878_v61  ;;  %v1050_v63 = vadd.f32 %v1041_v57, %v7856_v39 }
 0xea6   :  { %1070 = vrot.lane.b32.xlu0 %v1065_v55, %s7686_s12  ;;  %v6198_v0 = vmul.f32 -1.442695, %v1051_v62 }
 0xea7   :  { %1068 = vrot.lane.b32.xlu1 %v1064_v59, %s7686_s12  ;;  %v6197_v9 = vmul.f32 -1.442695, %v1050_v63 }
 0xea8   :  { %7415 = vpow2.f32 %v6198_v0 }
 0xea9   :  { %7417 = vpow2.f32 %v6197_v9 }
 0xeb2   :  { %v7416_v1 = vpop.eup %7415 }
 0xeb3   :  { %v7418_v12 = vpop.eup %7417  ;;  %v1059_v50 = vadd.f32 1.0, %v7416_v1 }
 0xeb4   :  { %v1058_v2 = vadd.f32 1.0, %v7418_v12 }
 0xeb5   :  { %7419 = vrcp.f32 %v1059_v50 }
 0xeb6   :  { %7421 = vrcp.f32 %v1058_v2 }
 0xebf   :  { %v7420_v4 = vpop.eup %7419 }
 0xec0   :  { %v7422_v6 = vpop.eup %7421  ;;  %v1089_v20 = vsub.f32 1.0, %v7420_v4  ;;  %v1101_v22 = vmul.f32 %v7420_v4, %v964_v56 }
 0xec1   :  { %v1088_v21 = vsub.f32 1.0, %v7422_v6  ;;  %v1100_v24 = vmul.f32 %v7422_v6, %v963_v49 }
 0xf18   :  { %v1071_v5 = vpop.permute.xlu0 %1070 }
 0xf19   :  { %v1075_v7 = vmul.f32 %v7420_v4, %v1071_v5  ;;  %v1069_v8 = vpop.permute.xlu1 %1068 }
 0xf1a   :  { %v1074_v10 = vmul.f32 %v7422_v6, %v1069_v8 }
 0xf1b   :  { %1080 = vrot.lane.b32.xlu0 %v1075_v7, %s7686_s12 }
 0xf1c   :  { %1078 = vrot.lane.b32.xlu1 %v1074_v10, %s7686_s12 }
 0xf8d   :  { %v1081_v11 = vpop.permute.xlu0 %1080 }
 0xf8e   :  { %v1085_v13 = vadd.f32 %v1081_v11, %v7870_v54  ;;  %v1079_v52 = vpop.permute.xlu1 %1078  ;;  %v7164_v54 = vpack.c.bf16 %v1383_v19, %v1382_v18 }
 0xf8f   :  { %v1084_v14 = vadd.f32 %v1079_v52, %v7856_v39 }
 0xf90   :  { %7423 = vtanh.f32 %v1085_v13  ;;  %7165 = vmatprep.subr.bf16.mxu0 %v7164_v54 }
 0xf91   :  { %7425 = vtanh.f32 %v1084_v14 }
 0xf9a   :  { %v7424_v16 = vpop.eup %7423 }
 0xf9b   :  { %v7426_v17 = vpop.eup %7425  ;;  %1094 = vrot.lane.b32.xlu0 %v7424_v16, %s7688_s19 }
 0xf9c   :  { %1092 = vrot.lane.b32.xlu1 %v7426_v17, %s7688_s19 }
0x100d   :  { %v1095_v39 = vpop.permute.xlu0 %1094 }
0x100e   :  { %v1099_v23 = vmul.f32 %v1095_v39, %v1089_v20  ;;  %v1093_v47 = vpop.permute.xlu1 %1092 }
0x100f   :  { %v1098_v26 = vmul.f32 %v1093_v47, %v1088_v21  ;;  %v1558_v21 = vld [vmem:[#allocation2 + $0x20] sm:$0xff] }
0x1010   :  { %v8022_v27 = vadd.f32 %v1101_v22, %v1099_v23  ;;  %v1559_v22 = vld [vmem:[#allocation2 + $0x28] sm:$0xff] }
0x1011   :  { %v8024_v28 = vadd.f32 %v1100_v24, %v1098_v26  ;;  %v7172_v23 = vpack.c.bf16 %v1559_v22, %v1558_v21 }
0x1012   :  { %1108 = vrot.lane.b32.xlu0 %v8022_v27, %s7688_s19 }
0x1013   :  { %1106 = vrot.lane.b32.xlu1 %v8024_v28, %s7688_s19  ;;  %7173 = vmatprep.subr.bf16.mxu1 %v7172_v23 }
0x1084   :  { %v8036_v36 = vpop.permute.xlu0 %1108 }
0x1085   :  { %v1107_v33 = vpop.permute.xlu1 %1106 }
0x1086   :  { %6742 = vmatprep.mubr.msk.f32.mxu0 %vm70_vm0, %v1107_v33 }
0x1087   :  { %6743 = vmatmul.mubr.msk.f32.vlgmr.msra.gmra.mrb[2].mxu0 %vm70_vm0, %v8036_v36 }
0x1088   :  { %7167 = vmatpush3.bf16.msra.mxu0 %v7164_v54  ;;  %6764 = vmatprep.mubr.msk.f32.mxu0 %vm70_vm0, %v7890_v42 }
0x1089   :  { %7169 = vmatprep.subr.bf16.mxu0 %v7168_v34 }
0x108c   :  { %7171 = vmatpush3.bf16.msra.mxu0 %v7168_v34 }
0x108f   :  { %6765 = vmatmul.mubr.msk.f32.vlgmr.msra.gmra.mrb[4].mxu0 %vm70_vm0, %v7916_v32 }
0x1090   :  { %6767 = vmatprep.mubr.msk.f32.mxu0 %vm70_vm0, %v7942_v37 }
0x1093   :  { %6768 = vmatmul.mubr.msk.f32.gmra.mrb[6].mxu0 %vm70_vm0, %v7968_v35 }
0x1094   :  { %6770 = vmatprep.mubr.msk.f32.mxu0 %vm70_vm0, %v7993_v41 }
0x1097   :  { %6771 = vmatmul.mubr.msk.f32.gmra.mrb[8].mxu0 %vm70_vm0, %v1107_v33 }
0x115a   :  { %v6744_v38 = vpop.f32.mrb[2].mxu0 }
0x115b   :  { %v1204_v40 = vadd.f32 %v6744_v38, %v7878_v61  ;;  %v1180_v42 = vpop.f32.mrb[3].mxu0  ;;  %v1190_v41 = vadd.f32 %v6744_v38, %v7876_v60 }
0x115c   :  { %v1203_v46 = vadd.f32 %v1180_v42, %v7878_v61  ;;  %v1189_v53 = vadd.f32 %v1180_v42, %v7862_v45 }
0x115d   :  { %1209 = vrot.lane.b32.xlu0 %v1204_v40, %s7686_s12  ;;  %v6202_v55 = vmul.f32 -1.442695, %v1190_v41 }
0x115e   :  { %1207 = vrot.lane.b32.xlu1 %v1203_v46, %s7686_s12  ;;  %v6201_v57 = vmul.f32 -1.442695, %v1189_v53  ;;  %v1560_v46 = vld [vmem:[#allocation2 + $0x30] sm:$0xff]  ;;  %v8101_v53 = vld [vmem:[%s10107_s1] sm:$0xff] }
0x115f   :  { %7427 = vpow2.f32 %v6202_v55  ;;  %v8108_v55 = vld [vmem:[%s10107_s1 + $0x8] sm:$0xff] }
0x1160   :  { %7429 = vpow2.f32 %v6201_v57  ;;  %v8113_v57 = vld [vmem:[%s10107_s1 + $0x10] sm:$0xff] }
0x1162   :  { %v8056_v32 = vpop.f32.mrb[4].mxu0 }
0x1163   :  { %v8058_v37 = vpop.f32.mrb[5].mxu0 }
0x1166   :  { %v8060_v35 = vpop.f32.mrb[6].mxu0 }
0x1167   :  { %10115 = vst [vmem:[#allocation5_spill] sm:$0xff] %v8060_v35  ;;  %v8062_v48 = vpop.f32.mrb[7].mxu0 }
0x1168   :  { %10116 = vst [vmem:[#allocation6_spill] sm:$0xff] %v8062_v48 }
0x1169   :  { %v7428_v59 = vpop.eup %7427 }
0x116a   :  { %v8064_v56 = vpop.f32.mrb[8].mxu0  ;;  %v7430_v62 = vpop.eup %7429  ;;  %v1198_v63 = vadd.f32 1.0, %v7428_v59  ;;  %v8122_v59 = vld [vmem:[%s10107_s1 + $0x18] sm:$0xff] }
0x116b   :  { %10117 = vst [vmem:[#allocation7_spill] sm:$0xff] %v8064_v56  ;;  %v8066_v49 = vpop.f32.mrb[9].mxu0  ;;  %v1197_v0 = vadd.f32 1.0, %v7430_v62 }
0x116c   :  { %10118 = vst [vmem:[#allocation8_spill] sm:$0xff] %v8066_v49  ;;  %7431 = vrcp.f32 %v1198_v63 }
0x116d   :  { %7433 = vrcp.f32 %v1197_v0 }
0x1176   :  { %v7432_v9 = vpop.eup %7431 }
0x1177   :  { %v7434_v12 = vpop.eup %7433  ;;  %v1228_v13 = vsub.f32 1.0, %v7432_v9  ;;  %v1240_v16 = vmul.f32 %v7432_v9, %v8022_v27 }
0x1178   :  { %v1227_v14 = vsub.f32 1.0, %v7434_v12 }
0x11cf   :  { %v1210_v1 = vpop.permute.xlu0 %1209 }
0x11d0   :  { %v1214_v50 = vmul.f32 %v7432_v9, %v1210_v1  ;;  %v1208_v2 = vpop.permute.xlu1 %1207 }
0x11d1   :  { %v1213_v4 = vmul.f32 %v7434_v12, %v1208_v2  ;;  %v8144_v2 = vld [vmem:[%s10107_s1 + $0x28] sm:$0xff] }
0x11d2   :  { %1219 = vrot.lane.b32.xlu0 %v1214_v50, %s7686_s12  ;;  %v8136_v50 = vld [vmem:[%s10107_s1 + $0x20] sm:$0xff] }
0x11d3   :  { %1217 = vrot.lane.b32.xlu1 %v1213_v4, %s7686_s12  ;;  %v8149_v4 = vld [vmem:[%s10107_s1 + $0x30] sm:$0xff] }
0x1244   :  { %v1220_v5 = vpop.permute.xlu0 %1219 }
0x1245   :  { %v1224_v6 = vadd.f32 %v1220_v5, %v7876_v60  ;;  %v1218_v7 = vpop.permute.xlu1 %1217  ;;  %v1239_v60 = vmul.f32 %v7434_v12, %v8024_v28  ;;  %v8158_v5 = vld [vmem:[%s10107_s1 + $0x38] sm:$0xff] }
0x1246   :  { %v1223_v8 = vadd.f32 %v1218_v7, %v7862_v45  ;;  %v6260_v7 = vld [vmem:[%s10109_s3 + $0x28] sm:$0xff] }
0x1247   :  { %7435 = vtanh.f32 %v1224_v6  ;;  %v6259_v6 = vld [vmem:[%s10109_s3 + $0x20] sm:$0xff] }
0x1248   :  { %7437 = vtanh.f32 %v1223_v8  ;;  %v8169_v8 = vld [vmem:[%s10107_s1 + $0x40] sm:$0xff] }
0x1251   :  { %v7436_v10 = vpop.eup %7435 }
0x1252   :  { %v7438_v11 = vpop.eup %7437  ;;  %1233 = vrot.lane.b32.xlu0 %v7436_v10, %s7688_s19  ;;  %v8171_v10 = vpack.c.bf16 %v6260_v7, %v6259_v6 }
0x1253   :  { %1231 = vrot.lane.b32.xlu1 %v7438_v11, %s7688_s19  ;;  %v6261_v11 = vld [vmem:[%s10109_s3 + $0x30] sm:$0xff] }
0x12c4   :  { %v1234_v52 = vpop.permute.xlu0 %1233 }
0x12c5   :  { %v1238_v17 = vmul.f32 %v1234_v52, %v1228_v13  ;;  %v1232_v18 = vpop.permute.xlu1 %1231  ;;  %v6262_v13 = vld [vmem:[%s10109_s3 + $0x38] sm:$0xff] }
0x12c6   :  { %v1237_v19 = vmul.f32 %v1232_v18, %v1227_v14  ;;  %v8179_v52 = vpack.c.bf16 %v6262_v13, %v6261_v11  ;;  %v8189_v14 = vld [vmem:[%s10107_s1 + $0x48] sm:$0xff]  ;;  %v8211_v18 = vld [vmem:[%s10107_s1 + $0x60] sm:$0xff] }
0x12c7   :  { %v8078_v54 = vadd.f32 %v1240_v16, %v1238_v17  ;;  %v8195_v16 = vld [vmem:[%s10107_s1 + $0x50] sm:$0xff]  ;;  %v8205_v17 = vld [vmem:[%s10107_s1 + $0x58] sm:$0xff] }
0x12c8   :  { %v8080_v45 = vadd.f32 %v1239_v60, %v1237_v19  ;;  %v8220_v60 = vld [vmem:[%s10107_s1 + $0x68] sm:$0xff]  ;;  %v8225_v19 = vld [vmem:[%s10107_s1 + $0x70] sm:$0xff] }
0x12c9   :  { %1247 = vrot.lane.b32.xlu0 %v8078_v54, %s7688_s19 }
0x12ca   :  { %1245 = vrot.lane.b32.xlu1 %v8080_v45, %s7688_s19 }
0x133b   :  { %v8086_v39 = vpop.permute.xlu0 %1247 }
0x133c   :  { %v1246_v20 = vpop.permute.xlu1 %1245 }
0x133d   :  { %6753 = vmatprep.mubr.msk.f32.mxu1 %vm70_vm0, %v1246_v20  ;;  %6773 = vmatprep.mubr.msk.f32.mxu0 %vm70_vm0, %v1246_v20  ;;  %v8234_v20 = vld [vmem:[%s10107_s1 + $0x78] sm:$0xff] }
0x133e   :  { %6754 = vmatmul.mubr.msk.f32.vlgmr.msra.gmra.mrb[26].mxu1 %vm70_vm0, %v8086_v39 }
0x133f   :  { %7175 = vmatpush3.bf16.msra.mxu1 %v7172_v23  ;;  %6796 = vmatprep.mubr.msk.f32.mxu1 %vm70_vm0, %v8101_v53 }
0x1411   :  { %v6755_v47 = vpop.f32.mrb[26].mxu1 }
0x1412   :  { %v1343_v24 = vadd.f32 %v6755_v47, %v7878_v61  ;;  %v1319_v26 = vpop.f32.mrb[27].mxu1  ;;  %v1329_v28 = vadd.f32 %v6755_v47, %v7874_v58 }
0x1413   :  { %v1342_v27 = vadd.f32 %v1319_v26, %v7878_v61  ;;  %v1328_v30 = vadd.f32 %v1319_v26, %v7860_v43  ;;  %v1561_v61 = vld [vmem:[#allocation2 + $0x38] sm:$0xff]  ;;  %v6265_v26 = vld [vmem:[%s10109_s3 + $0x48] sm:$0xff] }
0x1414   :  { %1348 = vrot.lane.b32.xlu0 %v1343_v24, %s7686_s12  ;;  %v6206_v31 = vmul.f32 -1.442695, %v1329_v28  ;;  %v7176_v41 = vpack.c.bf16 %v1561_v61, %v1560_v46  ;;  %v6264_v24 = vld [vmem:[%s10109_s3 + $0x40] sm:$0xff] }
0x1415   :  { %1346 = vrot.lane.b32.xlu1 %v1342_v27, %s7686_s12  ;;  %v6205_v33 = vmul.f32 -1.442695, %v1328_v30  ;;  %v6266_v27 = vld [vmem:[%s10109_s3 + $0x50] sm:$0xff]  ;;  %v8252_v28 = vpack.c.bf16 %v6265_v26, %v6264_v24  ;;  %v8278_v46 = vld [vmem:[%s10110_s4 + $0x1] ss:$0 sm:$0xff] }
0x1416   :  { %7439 = vpow2.f32 %v6206_v31  ;;  %7177 = vmatprep.subr.bf16.mxu1 %v7176_v41  ;;  %v1765_v31 = vld [vmem:[#allocation2 + $0x48] sm:$0xff] }
0x1417   :  { %7441 = vpow2.f32 %v6205_v33  ;;  %7179 = vmatpush3.bf16.msra.mxu1 %v7176_v41 }
0x1418   :  { %7189 = vmatprep.subr.bf16.mxu1 %v8171_v10 }
0x141a   :  { %6797 = vmatmul.mubr.msk.f32.vlgmr.msra.gmra.mrb[28].mxu1 %vm70_vm0, %v8108_v55 }
0x141b   :  { %6799 = vmatprep.mubr.msk.f32.mxu1 %vm70_vm0, %v8113_v57  ;;  %7191 = vmatpush3.bf16.msra.mxu1 %v8171_v10 }
0x141c   :  { %7193 = vmatprep.subr.bf16.mxu1 %v8179_v52 }
0x141e   :  { %6800 = vmatmul.mubr.msk.f32.gmra.mrb[30].mxu1 %vm70_vm0, %v8122_v59 }
0x141f   :  { %6802 = vmatprep.mubr.msk.f32.mxu1 %vm70_vm0, %v8136_v50  ;;  %7195 = vmatpush3.bf16.msra.mxu1 %v8179_v52 }
0x1420   :  { %v7440_v34 = vpop.eup %7439  ;;  %7197 = vmatprep.subr.bf16.mxu1 %v8252_v28 }
0x1421   :  { %v7442_v38 = vpop.eup %7441  ;;  %v1337_v40 = vadd.f32 1.0, %v7440_v34 }
0x1422   :  { %v1336_v42 = vadd.f32 1.0, %v7442_v38  ;;  %6803 = vmatmul.mubr.msk.f32.gmra.mrb[32].mxu1 %vm70_vm0, %v8144_v2 }
0x1423   :  { %7443 = vrcp.f32 %v1337_v40  ;;  %6805 = vmatprep.mubr.msk.f32.mxu1 %vm70_vm0, %v8149_v4 }
0x1424   :  { %7445 = vrcp.f32 %v1336_v42 }
0x1426   :  { %6806 = vmatmul.mubr.msk.f32.gmra.mrb[34].mxu1 %vm70_vm0, %v8158_v5 }
0x1427   :  { %6808 = vmatprep.mubr.msk.f32.mxu1 %vm70_vm0, %v8169_v8 }
0x142a   :  { %6809 = vmatmul.mubr.msk.f32.gmra.mrb[36].mxu1 %vm70_vm0, %v8189_v14 }
0x142b   :  { %6811 = vmatprep.mubr.msk.f32.mxu1 %vm70_vm0, %v8195_v16 }
0x142d   :  { %v8124_v62 = vpop.eup %7443 }
0x142e   :  { %v8126_v0 = vpop.eup %7445  ;;  %6812 = vmatmul.mubr.msk.f32.gmra.mrb[38].mxu1 %vm70_vm0, %v8205_v17 }
0x142f   :  { %6814 = vmatprep.mubr.msk.f32.mxu1 %vm70_vm0, %v8211_v18 }
0x1432   :  { %6815 = vmatmul.mubr.msk.f32.gmra.mrb[40].mxu1 %vm70_vm0, %v8220_v60 }
0x1433   :  { %6817 = vmatprep.mubr.msk.f32.mxu1 %vm70_vm0, %v8225_v19 }
0x1436   :  { %6818 = vmatmul.mubr.msk.f32.gmra.mrb[42].mxu1 %vm70_vm0, %v8234_v20 }
0x1437   :  { %6860 = vmatprep.mubr.f32.mxu1 %v7687_v29 }
0x143a   :  { %6861 = vmatmul.mubr.f32.vlgmr.msra.gmra.mrb[44].mxu1 %v7687_v29 }
0x143b   :  { %6871 = vmatprep.mubr.f32.mxu1 %v7687_v29  ;;  %7199 = vmatpush3.bf16.msra.mxu1 %v8252_v28 }
0x1486   :  { %v1349_v63 = vpop.permute.xlu0 %1348 }
0x1487   :  { %v1353_v9 = vmul.f32 %v8124_v62, %v1349_v63  ;;  %v1347_v1 = vpop.permute.xlu1 %1346 }
0x1488   :  { %v1352_v12 = vmul.f32 %v8126_v0, %v1347_v1 }
0x1489   :  { %1358 = vrot.lane.b32.xlu0 %v1353_v9, %s7686_s12 }
0x148a   :  { %1356 = vrot.lane.b32.xlu1 %v1352_v12, %s7686_s12 }
0x14ed   :  { %v8271_v40 = vpop.f32.mrb[28].mxu1 }
0x14ee   :  { %v8273_v42 = vpop.f32.mrb[29].mxu1 }
0x14f1   :  { %v6801_v61 = vpop.f32.mrb[30].mxu1 }
0x14f2   :  { %v1694_v41 = vpop.f32.mrb[31].mxu1 }
0x14f3   :  { %v8284_v63 = vadd.f32 %v8278_v46, %v1694_v41 }
0x14f5   :  { %v6804_v9 = vpop.f32.mrb[32].mxu1 }
0x14f6   :  { %v8287_v1 = vadd.f32 %v6804_v9, %v8278_v46  ;;  %v1704_v12 = vpop.f32.mrb[33].mxu1 }
0x14f7   :  { %v8290_v6 = vadd.f32 %v8278_v46, %v1704_v12 }
0x14f9   :  { %v6807_v7 = vpop.f32.mrb[34].mxu1 }
0x14fa   :  { %v8293_v11 = vadd.f32 %v6807_v7, %v8278_v46  ;;  %v1714_v13 = vpop.f32.mrb[35].mxu1 }
0x14fb   :  { %v1359_v21 = vpop.permute.xlu0 %1358 }
0x14fc   :  { %v1363_v22 = vadd.f32 %v1359_v21, %v7874_v58  ;;  %v1357_v23 = vpop.permute.xlu1 %1356  ;;  %v1764_v58 = vld [vmem:[#allocation2 + $0x40] sm:$0xff]  ;;  %v8296_v21 = vadd.f32 %v8278_v46, %v1714_v13 }
0x14fd   :  { %v1362_v47 = vadd.f32 %v1357_v23, %v7860_v43  ;;  %v6267_v43 = vld [vmem:[%s10109_s3 + $0x58] sm:$0xff]  ;;  %v7180_v34 = vpack.c.bf16 %v1765_v31, %v1764_v58 }
0x14fe   :  { %7447 = vtanh.f32 %v1363_v22  ;;  %v8257_v30 = vpack.c.bf16 %v6267_v43, %v6266_v27  ;;  %v6810_v22 = vpop.f32.mrb[36].mxu1 }
0x14ff   :  { %7449 = vtanh.f32 %v1362_v47  ;;  %7181 = vmatprep.subr.bf16.mxu0 %v7180_v34  ;;  %v8299_v23 = vadd.f32 %v6810_v22, %v8278_v46  ;;  %v1724_v47 = vpop.f32.mrb[37].mxu1  ;;  %v1766_v22 = vld [vmem:[#allocation2 + $0x50] sm:$0xff] }
0x1500   :  { %7201 = vmatprep.subr.bf16.mxu1 %v8257_v30  ;;  %7183 = vmatpush3.bf16.msra.mxu0 %v7180_v34  ;;  %v8302_v24 = vadd.f32 %v8278_v46, %v1724_v47  ;;  %v1767_v47 = vld [vmem:[#allocation2 + $0x58] sm:$0xff] }
0x1501   :  { %7203 = vmatpush3.bf16.msra.mxu1 %v8257_v30  ;;  %v6813_v26 = vpop.f32.mrb[38].mxu1 }
0x1502   :  { %7205 = vmatprep.subr.bf16.mxu1 %v8171_v10  ;;  %v8305_v27 = vadd.f32 %v6813_v26, %v8278_v46  ;;  %v1734_v43 = vpop.f32.mrb[39].mxu1  ;;  %v7184_v26 = vpack.c.bf16 %v1767_v47, %v1766_v22  ;;  %v6274_v47 = vld [vmem:[%s10111_s5 + $0x2] ss:$0 sm:$0xff] }
0x1503   :  { %v8308_v58 = vadd.f32 %v8278_v46, %v1734_v43  ;;  %v1367_v43 = vsub.f32 1.0, %v8124_v62 }
0x1504   :  { %6872 = vmatmul.mubr.f32.vlgmr.msra.gmra.mrb[46].mxu1 %v7687_v29  ;;  %v8281_v29 = vadd.f32 %v6801_v61, %v8278_v46  ;;  %7185 = vmatprep.subr.bf16.mxu0 %v7184_v26 }
0x1505   :  { %7207 = vmatpush3.bf16.msra.mxu1 %v8171_v10  ;;  %v6816_v31 = vpop.f32.mrb[40].mxu1  ;;  %7187 = vmatpush3.bf16.msra.mxu0 %v7184_v26 }
0x1506   :  { %7209 = vmatprep.subr.bf16.mxu1 %v8179_v52  ;;  %v1744_v34 = vpop.f32.mrb[41].mxu1  ;;  %7221 = vmatprep.subr.bf16.mxu0 %v8171_v10 }
0x1508   :  { %v7448_v33 = vpop.eup %7447 }
0x1509   :  { %v7450_v38 = vpop.eup %7449  ;;  %1372 = vrot.lane.b32.xlu0 %v7448_v33, %s7688_s19  ;;  %7211 = vmatpush3.bf16.msra.mxu1 %v8179_v52  ;;  %v8311_v33 = vadd.f32 %v6816_v31, %v8278_v46  ;;  %v6819_v61 = vpop.f32.mrb[42].mxu1 }
0x150a   :  { %1370 = vrot.lane.b32.xlu1 %v7450_v38, %s7688_s19  ;;  %7213 = vmatprep.subr.bf16.mxu1 %v8252_v28  ;;  %v8314_v38 = vadd.f32 %v8278_v46, %v1744_v34  ;;  %v8317_v41 = vadd.f32 %v6819_v61, %v8278_v46  ;;  %v1754_v9 = vpop.f32.mrb[43].mxu1  ;;  %v1366_v34 = vsub.f32 1.0, %v8126_v0  ;;  %v1379_v61 = vmul.f32 %v8124_v62, %v8078_v54  ;;  %v6271_v54 = vld [vmem:[%s10111_s5 + $0x1] ss:$0 sm:$0xff] }
0x150b   :  { %v8320_v12 = vadd.f32 %v8278_v46, %v1754_v9  ;;  %v1378_v9 = vmul.f32 %v8126_v0, %v8080_v45 }
0x150d   :  { %v8322_v7 = vpop.f32.mrb[44].mxu1 }
0x150e   :  { %v8324_v13 = vpop.f32.mrb[45].mxu1 }
0x157b   :  { %v1373_v31 = vpop.permute.xlu0 %1372 }
0x157c   :  { %v1377_v49 = vmul.f32 %v1373_v31, %v1367_v43  ;;  %v1371_v56 = vpop.permute.xlu1 %1370 }
0x157d   :  { %v1376_v48 = vmul.f32 %v1371_v56, %v1366_v34 }
0x157e   :  { %v1381_v35 = vadd.f32 %v1379_v61, %v1377_v49 }
0x157f   :  { %v1380_v22 = vadd.f32 %v1378_v9, %v1376_v48 }
0x1580   :  { %1390 = vrot.lane.b32.xlu0 %v1381_v35, %s7688_s19 }
0x1581   :  { %1388 = vrot.lane.b32.xlu1 %v1380_v22, %s7688_s19 }
0x1584   :  { %2166 = vrot.lane.b32.xlu0 %v6274_v47, %s7686_s12 }
0x1585   :  { %2029 = vrot.lane.b32.xlu1 %v6271_v54, %s7686_s12 }
0x15d7   :  { %v8343_v56 = vpop.f32.mrb[46].mxu1 }
0x15d8   :  { %v8345_v49 = vpop.f32.mrb[47].mxu1 }
0x15f2   :  { %v1391_v48 = vpop.permute.xlu0 %1390 }
0x15f3   :  { %v1389_v35 = vpop.permute.xlu1 %1388 }
0x15f4   :  { %6774 = vmatmul.mubr.msk.f32.gmra.mrb[10].mxu0 %vm70_vm0, %v1389_v35 }
0x15f5   :  { %6776 = vmatprep.mubr.msk.f32.mxu0 %vm70_vm0, %v7892_v44 }
0x15f6   :  { %v8352_v62 = vpop.permute.xlu0 %2166 }
0x15f7   :  { %v8350_v45 = vpop.permute.xlu1 %2029  ;;  %v2169_v44 = vadd.f32 %v8352_v62, %v8345_v49  ;;  %v2170_v43 = vadd.f32 %v8343_v56, %v8352_v62 }
0x15f8   :  { %6777 = vmatmul.mubr.msk.f32.gmra.mrb[12].mxu0 %vm70_vm0, %v7918_v25  ;;  %v2033_v0 = vadd.f32 %v8322_v7, %v8350_v45  ;;  %v2032_v26 = vadd.f32 %v8350_v45, %v8324_v13  ;;  %v8417_v25 = vadd.f32 %v8271_v40, %v8278_v46 }
0x15f9   :  { %6779 = vmatprep.mubr.msk.f32.mxu0 %vm70_vm0, %v7944_v15  ;;  %v8421_v15 = vadd.f32 %v8278_v46, %v8273_v42 }
0x15fa   :  { %2038 = vrot.lane.b32.xlu0 %v2033_v0, %s7686_s12  ;;  %2036 = vrot.lane.b32.xlu1 %v2032_v26, %s7686_s12 }
0x15fc   :  { %6780 = vmatmul.mubr.msk.f32.gmra.mrb[14].mxu0 %vm70_vm0, %v7970_v3  ;;  %v2011_v3 = vadd.f32 %v8322_v7, %v8417_v25 }
0x15fd   :  { %6782 = vmatprep.mubr.msk.f32.mxu0 %vm70_vm0, %v7995_v51  ;;  %v2010_v51 = vadd.f32 %v8324_v13, %v8421_v15  ;;  %v6242_v13 = vld [vmem:[%s10110_s4 + $0x2] ss:$0 sm:$0xff] }
0x15fe   :  { %2175 = vrot.lane.b32.xlu0 %v2170_v43, %s7686_s12  ;;  %2173 = vrot.lane.b32.xlu1 %v2169_v44, %s7686_s12 }
0x1600   :  { %6783 = vmatmul.mubr.msk.f32.gmra.mrb[16].mxu0 %vm70_vm0, %v8036_v36  ;;  %v6270_v36 = vmul.f32 -1.442695, %v2011_v3 }
0x1601   :  { %6785 = vmatprep.mubr.msk.f32.mxu0 %vm70_vm0, %v8086_v39  ;;  %v6269_v39 = vmul.f32 -1.442695, %v2010_v51 }
0x1602   :  { %7451 = vpow2.f32 %v6270_v36 }
0x1603   :  { %7453 = vpow2.f32 %v6269_v39 }
0x1604   :  { %6786 = vmatmul.mubr.msk.f32.gmra.mrb[18].mxu0 %vm70_vm0, %v1391_v48 }
0x1605   :  { %6828 = vmatprep.mubr.msk.f32.mxu0 %vm70_vm0, %v8101_v53 }
0x1608   :  { %6829 = vmatmul.mubr.msk.f32.vlgmr.msra.gmra.mrb[20].mxu0 %vm70_vm0, %v8108_v55 }
0x1609   :  { %6831 = vmatprep.mubr.msk.f32.mxu0 %vm70_vm0, %v8113_v57  ;;  %7223 = vmatpush3.bf16.msra.mxu0 %v8171_v10 }
0x160a   :  { %7225 = vmatprep.subr.bf16.mxu0 %v8179_v52 }
0x160c   :  { %6832 = vmatmul.mubr.msk.f32.gmra.mrb[22].mxu0 %vm70_vm0, %v8122_v59  ;;  %v7452_v53 = vpop.eup %7451 }
0x160d   :  { %6834 = vmatprep.mubr.msk.f32.mxu0 %vm70_vm0, %v8136_v50  ;;  %7227 = vmatpush3.bf16.msra.mxu0 %v8179_v52  ;;  %v7454_v55 = vpop.eup %7453  ;;  %v2019_v57 = vadd.f32 1.0, %v7452_v53 }
0x160e   :  { %7237 = vmatprep.subr.bf16.mxu0 %v8171_v10  ;;  %v2018_v59 = vadd.f32 1.0, %v7454_v55 }
0x160f   :  { %7455 = vrcp.f32 %v2019_v57 }
0x1610   :  { %6835 = vmatmul.mubr.msk.f32.gmra.mrb[24].mxu0 %vm70_vm0, %v8144_v2  ;;  %7457 = vrcp.f32 %v2018_v59 }
0x1611   :  { %6837 = vmatprep.mubr.msk.f32.mxu0 %vm70_vm0, %v8149_v4 }
0x1614   :  { %6838 = vmatmul.mubr.msk.f32.gmra.mrb[26].mxu0 %vm70_vm0, %v8158_v5 }
0x1615   :  { %6840 = vmatprep.mubr.msk.f32.mxu0 %vm70_vm0, %v8169_v8 }
0x1618   :  { %6841 = vmatmul.mubr.msk.f32.gmra.mrb[28].mxu0 %vm70_vm0, %v8189_v14 }
0x1619   :  { %6843 = vmatprep.mubr.msk.f32.mxu0 %vm70_vm0, %v8195_v16  ;;  %v8427_v50 = vpop.eup %7455 }
0x161a   :  { %v8429_v2 = vpop.eup %7457 }
0x161c   :  { %6844 = vmatmul.mubr.msk.f32.gmra.mrb[30].mxu0 %vm70_vm0, %v8205_v17 }
0x161d   :  { %6846 = vmatprep.mubr.msk.f32.mxu0 %vm70_vm0, %v8211_v18 }
0x1620   :  { %6847 = vmatmul.mubr.msk.f32.gmra.mrb[32].mxu0 %vm70_vm0, %v8220_v60 }
0x1621   :  { %6849 = vmatprep.mubr.msk.f32.mxu0 %vm70_vm0, %v8225_v19 }
0x1624   :  { %6850 = vmatmul.mubr.msk.f32.gmra.mrb[34].mxu0 %vm70_vm0, %v8234_v20 }
0x166c   :  { %v2039_v4 = vpop.permute.xlu0 %2038  ;;  %v2037_v5 = vpop.permute.xlu1 %2036 }
0x166d   :  { %v2043_v8 = vmul.f32 %v8427_v50, %v2039_v4  ;;  %v2042_v14 = vmul.f32 %v8429_v2, %v2037_v5 }
0x166f   :  { %2048 = vrot.lane.b32.xlu0 %v2043_v8, %s7686_s12  ;;  %2046 = vrot.lane.b32.xlu1 %v2042_v14, %s7686_s12 }
0x16c7   :  { %v8435_v16 = vpop.f32.mrb[10].mxu0 }
0x16c8   :  { %v8437_v17 = vpop.f32.mrb[11].mxu0 }
0x16cb   :  { %v8439_v18 = vpop.f32.mrb[12].mxu0 }
0x16cc   :  { %v8441_v60 = vpop.f32.mrb[13].mxu0 }
0x16cd   :  { %10119 = vst [vmem:[#allocation9_spill] sm:$0xff] %v8441_v60 }
0x16cf   :  { %v8443_v19 = vpop.f32.mrb[14].mxu0 }
0x16d0   :  { %10120 = vst [vmem:[#allocation10_spill] sm:$0xff] %v8443_v19  ;;  %v8445_v20 = vpop.f32.mrb[15].mxu0 }
0x16d1   :  { %10121 = vst [vmem:[#allocation11_spill] sm:$0xff] %v8445_v20 }
0x16d3   :  { %v8447_v40 = vpop.f32.mrb[16].mxu0 }
0x16d4   :  { %10122 = vst [vmem:[#allocation12_spill] sm:$0xff] %v8447_v40  ;;  %v8449_v42 = vpop.f32.mrb[17].mxu0 }
0x16d5   :  { %10123 = vst [vmem:[#allocation13_spill] sm:$0xff] %v8449_v42 }
0x16d7   :  { %v8451_v46 = vpop.f32.mrb[18].mxu0 }
0x16d8   :  { %10124 = vst [vmem:[#allocation14_spill] sm:$0xff] %v8451_v46  ;;  %v8453_v7 = vpop.f32.mrb[19].mxu0 }
0x16d9   :  { %10125 = vst [vmem:[#allocation15_spill] sm:$0xff] %v8453_v7  ;;  %v2174_v7 = vpop.permute.xlu1 %2173 }
0x16db   :  { %v6830_v31 = vpop.f32.mrb[20].mxu0 }
0x16dc   :  { %v8458_v34 = vadd.f32 %v6830_v31, %v6242_v13  ;;  %v1842_v61 = vpop.f32.mrb[21].mxu0 }
0x16dd   :  { %v8460_v9 = vadd.f32 %v6242_v13, %v1842_v61 }
0x16df   :  { %v6833_v22 = vpop.f32.mrb[22].mxu0 }
0x16e0   :  { %v8462_v47 = vadd.f32 %v6833_v22, %v6242_v13  ;;  %v1852_v54 = vpop.f32.mrb[23].mxu0 }
0x16e1   :  { %v8464_v48 = vadd.f32 %v6242_v13, %v1852_v54  ;;  %v2047_v20 = vpop.permute.xlu1 %2046 }
0x16e3   :  { %v6836_v35 = vpop.f32.mrb[24].mxu0 }
0x16e4   :  { %v8466_v0 = vadd.f32 %v6836_v35, %v6242_v13  ;;  %v1862_v26 = vpop.f32.mrb[25].mxu0 }
0x16e5   :  { %v8468_v44 = vadd.f32 %v6242_v13, %v1862_v26 }
0x16e7   :  { %v6839_v43 = vpop.f32.mrb[26].mxu0 }
0x16e8   :  { %v8470_v3 = vadd.f32 %v6839_v43, %v6242_v13  ;;  %v1872_v51 = vpop.f32.mrb[27].mxu0 }
0x16e9   :  { %v8472_v36 = vadd.f32 %v6242_v13, %v1872_v51 }
0x16eb   :  { %v6842_v39 = vpop.f32.mrb[28].mxu0 }
0x16ec   :  { %v8474_v53 = vadd.f32 %v6842_v39, %v6242_v13  ;;  %v1882_v55 = vpop.f32.mrb[29].mxu0 }
0x16ed   :  { %v8476_v57 = vadd.f32 %v6242_v13, %v1882_v55 }
0x16ef   :  { %v6845_v59 = vpop.f32.mrb[30].mxu0 }
0x16f0   :  { %v8478_v4 = vadd.f32 %v6845_v59, %v6242_v13  ;;  %v1892_v5 = vpop.f32.mrb[31].mxu0 }
0x16f1   :  { %v8480_v8 = vadd.f32 %v6242_v13, %v1892_v5  ;;  %v2176_v5 = vpop.permute.xlu0 %2175 }
0x16f3   :  { %v6848_v14 = vpop.f32.mrb[32].mxu0 }
0x16f4   :  { %v8482_v31 = vadd.f32 %v6848_v14, %v6242_v13  ;;  %v1902_v61 = vpop.f32.mrb[33].mxu0 }
0x16f5   :  { %v8484_v22 = vadd.f32 %v6242_v13, %v1902_v61  ;;  %v2049_v40 = vpop.permute.xlu0 %2048 }
0x16f7   :  { %v6851_v54 = vpop.f32.mrb[34].mxu0 }
0x16f8   :  { %v1918_v35 = vadd.f32 %v6851_v54, %v6242_v13  ;;  %v1912_v26 = vpop.f32.mrb[35].mxu0 }
0x16f9   :  { %v1913_v43 = vadd.f32 %v6242_v13, %v1912_v26  ;;  %v2053_v13 = vadd.f32 %v2049_v40, %v8417_v25 }
0x16fa   :  { %v2148_v51 = vadd.f32 %v8343_v56, %v1918_v35  ;;  %v2052_v56 = vadd.f32 %v2047_v20, %v8421_v15 }
0x16fb   :  { %v2147_v39 = vadd.f32 %v8345_v49, %v1913_v43 }
0x16fc   :  { %v6273_v55 = vmul.f32 -1.442695, %v2148_v51 }
0x16fd   :  { %v6272_v59 = vmul.f32 -1.442695, %v2147_v39 }
0x16fe   :  { %7459 = vpow2.f32 %v6273_v55  ;;  %v2057_v55 = vsub.f32 1.0, %v8427_v50 }
0x16ff   :  { %7461 = vpow2.f32 %v6272_v59  ;;  %v2056_v59 = vsub.f32 1.0, %v8429_v2 }
0x1708   :  { %v7460_v46 = vpop.eup %7459 }
0x1709   :  { %v7462_v14 = vpop.eup %7461  ;;  %v2156_v42 = vadd.f32 1.0, %v7460_v46 }
0x170a   :  { %v2155_v61 = vadd.f32 1.0, %v7462_v14 }
0x170b   :  { %7463 = vrcp.f32 %v2156_v42 }
0x170c   :  { %7465 = vrcp.f32 %v2155_v61 }
0x170d   :  { %7467 = vtanh.f32 %v2053_v13 }
0x170e   :  { %7469 = vtanh.f32 %v2052_v56  ;;  %v2069_v56 = vmul.f32 0.0, %v8427_v50 }
0x1715   :  { %v7464_v49 = vpop.eup %7463 }
0x1716   :  { %v7466_v54 = vpop.eup %7465  ;;  %v2180_v26 = vmul.f32 %v7464_v49, %v2176_v5  ;;  %v2206_v50 = vmul.f32 0.0, %v7464_v49 }
0x1717   :  { %v2179_v51 = vmul.f32 %v7466_v54, %v2174_v7  ;;  %v7468_v46 = vpop.eup %7467 }
0x1718   :  { %2185 = vrot.lane.b32.xlu0 %v2180_v26, %s7686_s12  ;;  %v7470_v39 = vpop.eup %7469 }
0x1719   :  { %2183 = vrot.lane.b32.xlu1 %v2179_v51, %s7686_s12  ;;  %v2194_v51 = vsub.f32 1.0, %v7464_v49 }
0x171c   :  { %2062 = vrot.lane.b32.xlu0 %v7468_v46, %s7688_s19 }
0x171d   :  { %2060 = vrot.lane.b32.xlu1 %v7470_v39, %s7688_s19  ;;  %v2193_v39 = vsub.f32 1.0, %v7466_v54 }
0x178a   :  { %v2186_v42 = vpop.permute.xlu0 %2185 }
0x178b   :  { %v2190_v25 = vadd.f32 %v2186_v42, %v1918_v35  ;;  %v2184_v40 = vpop.permute.xlu1 %2183  ;;  %v2068_v35 = vmul.f32 0.0, %v8429_v2 }
0x178c   :  { %v2189_v15 = vadd.f32 %v2184_v40, %v1913_v43  ;;  %v2205_v40 = vmul.f32 0.0, %v7466_v54 }
0x178d   :  { %7471 = vtanh.f32 %v2190_v25 }
0x178e   :  { %7473 = vtanh.f32 %v2189_v15  ;;  %v2063_v20 = vpop.permute.xlu0 %2062 }
0x178f   :  { %v2061_v7 = vpop.permute.xlu1 %2060  ;;  %v2067_v5 = vmul.f32 %v2063_v20, %v2057_v55 }
0x1790   :  { %v2066_v61 = vmul.f32 %v2061_v7, %v2056_v59 }
0x1791   :  { %v8500_v43 = vadd.f32 %v2069_v56, %v2067_v5 }
0x1792   :  { %v8502_v26 = vadd.f32 %v2068_v35, %v2066_v61 }
0x1797   :  { %v7472_v14 = vpop.eup %7471 }
0x1798   :  { %v7474_v13 = vpop.eup %7473  ;;  %2199 = vrot.lane.b32.xlu0 %v7472_v14, %s7688_s19 }
0x1799   :  { %2197 = vrot.lane.b32.xlu1 %v7474_v13, %s7688_s19 }
0x179c   :  { %2213 = vrot.lane.b32.xlu0 %v8500_v43, %s7688_s19 }
0x179d   :  { %2211 = vrot.lane.b32.xlu1 %v8502_v26, %s7688_s19 }
0x180a   :  { %v2200_v46 = vpop.permute.xlu0 %2199 }
0x180b   :  { %v2204_v42 = vmul.f32 %v2200_v46, %v2194_v51  ;;  %v2198_v25 = vpop.permute.xlu1 %2197 }
0x180c   :  { %v2203_v2 = vmul.f32 %v2198_v25, %v2193_v39 }
0x180d   :  { %v8508_v15 = vadd.f32 %v2206_v50, %v2204_v42 }
0x180e   :  { %v8510_v20 = vadd.f32 %v2205_v40, %v2203_v2  ;;  %v8516_v7 = vpop.permute.xlu0 %2213 }
0x180f   :  { %2352 = vrot.lane.b32.xlu0 %v8508_v15, %s7688_s19  ;;  %v8514_v55 = vpop.permute.xlu1 %2211 }
0x1810   :  { %2350 = vrot.lane.b32.xlu1 %v8510_v20, %s7688_s19  ;;  %6882 = vmatprep.mubr.msk.f32.mxu1 %vm70_vm0, %v8514_v55 }
0x1811   :  { %6883 = vmatmul.mubr.msk.f32.vlgmr.msra.gmra.mrb[48].mxu1 %vm70_vm0, %v8516_v7 }
0x1812   :  { %7215 = vmatpush3.bf16.msra.mxu1 %v8252_v28 }
0x1813   :  { %7217 = vmatprep.subr.bf16.mxu1 %v8257_v30 }
0x1816   :  { %7219 = vmatpush3.bf16.msra.mxu1 %v8257_v30 }
0x1817   :  { %7229 = vmatprep.subr.bf16.mxu1 %v8252_v28 }
0x1881   :  { %v8530_v54 = vpop.permute.xlu0 %2352 }
0x1882   :  { %v8528_v49 = vpop.permute.xlu1 %2350 }
0x1883   :  { %6893 = vmatprep.mubr.msk.f32.mxu1 %vm70_vm0, %v8528_v49 }
0x1884   :  { %6894 = vmatmul.mubr.msk.f32.vlgmr.msra.gmra.mrb[50].mxu1 %vm70_vm0, %v8530_v54 }
0x1885   :  { %7231 = vmatpush3.bf16.msra.mxu1 %v8252_v28 }
0x1886   :  { %7233 = vmatprep.subr.bf16.mxu1 %v8257_v30 }
0x1889   :  { %7235 = vmatpush3.bf16.msra.mxu1 %v8257_v30 }
0x188a   :  { %7245 = vmatprep.subr.bf16.mxu1 %v8252_v28 }
0x18e4   :  { %v6884_v59 = vpop.f32.mrb[48].mxu1 }
0x18e5   :  { %v2285_v5 = vpop.f32.mrb[49].mxu1  ;;  %v2309_v51 = vadd.f32 %v6884_v59, %v8350_v45  ;;  %v2295_v40 = vadd.f32 %v6884_v59, %v8281_v29 }
0x18e6   :  { %v2308_v35 = vadd.f32 %v2285_v5, %v8350_v45  ;;  %v2294_v39 = vadd.f32 %v2285_v5, %v8284_v63 }
0x18e8   :  { %v6277_v25 = vmul.f32 -1.442695, %v2294_v39 }
0x1957   :  { %v6895_v14 = vpop.f32.mrb[50].mxu1 }
0x1958   :  { %v2448_v61 = vadd.f32 %v6895_v14, %v8352_v62  ;;  %v2424_v13 = vpop.f32.mrb[51].mxu1  ;;  %v2434_v50 = vadd.f32 %v6895_v14, %v8482_v31 }
0x1959   :  { %v2447_v56 = vadd.f32 %v2424_v13, %v8352_v62  ;;  %v2433_v46 = vadd.f32 %v2424_v13, %v8484_v22 }
0x195a   :  { %2453 = vrot.lane.b32.xlu0 %v2448_v61, %s7686_s12  ;;  %v6282_v2 = vmul.f32 -1.442695, %v2434_v50  ;;  %v6278_v61 = vmul.f32 -1.442695, %v2295_v40 }
0x195b   :  { %2451 = vrot.lane.b32.xlu1 %v2447_v56, %s7686_s12  ;;  %v6281_v42 = vmul.f32 -1.442695, %v2433_v46 }
0x195d   :  { %7475 = vpow2.f32 %v6281_v42 }
0x195e   :  { %7477 = vpow2.f32 %v6277_v25 }
0x195f   :  { %2312 = vrot.lane.b32.xlu1 %v2308_v35, %s7686_s12  ;;  %7479 = vpow2.f32 %v6282_v2 }
0x1960   :  { %7481 = vpow2.f32 %v6278_v61 }
0x1963   :  { %2314 = vrot.lane.b32.xlu1 %v2309_v51, %s7686_s12 }
0x1967   :  { %v7476_v56 = vpop.eup %7475 }
0x1968   :  { %v7478_v35 = vpop.eup %7477  ;;  %v2441_v19 = vadd.f32 1.0, %v7476_v56 }
0x1969   :  { %v7480_v51 = vpop.eup %7479  ;;  %v2302_v60 = vadd.f32 1.0, %v7478_v35 }
0x196a   :  { %v2442_v13 = vadd.f32 1.0, %v7480_v51  ;;  %7483 = vrcp.f32 %v2441_v19  ;;  %v7482_v5 = vpop.eup %7481 }
0x196b   :  { %7485 = vrcp.f32 %v2302_v60  ;;  %v2303_v14 = vadd.f32 1.0, %v7482_v5 }
0x196c   :  { %7487 = vrcp.f32 %v2442_v13 }
0x196d   :  { %7489 = vrcp.f32 %v2303_v14 }
0x1974   :  { %v7484_v46 = vpop.eup %7483 }
0x1975   :  { %v7486_v42 = vpop.eup %7485 }
0x1976   :  { %v7488_v25 = vpop.eup %7487 }
0x1977   :  { %v7490_v19 = vpop.eup %7489 }
0x19cc   :  { %v2454_v50 = vpop.permute.xlu0 %2453 }
0x19cd   :  { %v2452_v59 = vpop.permute.xlu1 %2451  ;;  %v2458_v2 = vmul.f32 %v7488_v25, %v2454_v50 }
0x19ce   :  { %v2457_v39 = vmul.f32 %v7484_v46, %v2452_v59 }
0x19d0   :  { %2461 = vrot.lane.b32.xlu0 %v2457_v39, %s7686_s12 }
0x19d1   :  { %v2313_v40 = vpop.permute.xlu1 %2312 }
0x19d2   :  { %v2318_v61 = vmul.f32 %v7486_v42, %v2313_v40 }
0x19d4   :  { %2322 = vrot.lane.b32.xlu1 %v2318_v61, %s7686_s12  ;;  %2463 = vrot.lane.b32.xlu0 %v2458_v2, %s7686_s12 }
0x19d5   :  { %v2315_v60 = vpop.permute.xlu1 %2314 }
0x19d6   :  { %v2319_v56 = vmul.f32 %v7490_v19, %v2315_v60  ;;  %v2483_v60 = vmul.f32 %v7484_v46, %v8510_v20  ;;  %v2333_v20 = vsub.f32 1.0, %v7490_v19 }
0x19d8   :  { %2324 = vrot.lane.b32.xlu0 %v2319_v56, %s7686_s12 }
0x1a42   :  { %v2462_v35 = vpop.permute.xlu0 %2461 }
0x1a43   :  { %v2467_v51 = vadd.f32 %v2462_v35, %v8484_v22 }
0x1a45   :  { %7491 = vtanh.f32 %v2467_v51 }
0x1a46   :  { %v2323_v13 = vpop.permute.xlu1 %2322  ;;  %v2464_v5 = vpop.permute.xlu0 %2463 }
0x1a47   :  { %v2328_v14 = vadd.f32 %v2323_v13, %v8284_v63  ;;  %v2468_v59 = vadd.f32 %v2464_v5, %v8482_v31  ;;  %v2471_v63 = vsub.f32 1.0, %v7484_v46  ;;  %v2472_v13 = vsub.f32 1.0, %v7488_v25 }
0x1a48   :  { %v2344_v5 = vmul.f32 %v7486_v42, %v8502_v26 }
0x1a49   :  { %7493 = vtanh.f32 %v2328_v14 }
0x1a4a   :  { %7495 = vtanh.f32 %v2468_v59  ;;  %v2325_v39 = vpop.permute.xlu0 %2324 }
0x1a4b   :  { %v2329_v50 = vadd.f32 %v2325_v39, %v8281_v29  ;;  %v2332_v29 = vsub.f32 1.0, %v7486_v42  ;;  %v2484_v39 = vmul.f32 %v7488_v25, %v8508_v15 }
0x1a4d   :  { %7497 = vtanh.f32 %v2329_v50 }
0x1a4f   :  { %v7492_v40 = vpop.eup %7491 }
0x1a50   :  { %2475 = vrot.lane.b32.xlu1 %v7492_v40, %s7688_s19 }
0x1a53   :  { %v7494_v2 = vpop.eup %7493 }
0x1a54   :  { %v7496_v61 = vpop.eup %7495  ;;  %2336 = vrot.lane.b32.xlu1 %v7494_v2, %s7688_s19 }
0x1a55   :  { %2477 = vrot.lane.b32.xlu0 %v7496_v61, %s7688_s19  ;;  %v2345_v61 = vmul.f32 %v7490_v19, %v8500_v43 }
0x1a57   :  { %v7498_v22 = vpop.eup %7497 }
0x1a59   :  { %2338 = vrot.lane.b32.xlu0 %v7498_v22, %s7688_s19 }
0x1ac2   :  { %v2476_v31 = vpop.permute.xlu1 %2475 }
0x1ac3   :  { %v2481_v56 = vmul.f32 %v2476_v31, %v2471_v63 }
0x1ac5   :  { %v8565_v35 = vadd.f32 %v2483_v60, %v2481_v56 }
0x1ac6   :  { %v2337_v51 = vpop.permute.xlu1 %2336 }
0x1ac7   :  { %v2342_v14 = vmul.f32 %v2337_v51, %v2332_v29  ;;  %v2478_v59 = vpop.permute.xlu0 %2477  ;;  %2628 = vrot.lane.b32.xlu1 %v8565_v35, %s7688_s19 }
0x1ac8   :  { %v2482_v50 = vmul.f32 %v2478_v59, %v2472_v13 }
0x1ac9   :  { %v8571_v40 = vadd.f32 %v2344_v5, %v2342_v14 }
0x1aca   :  { %v8573_v2 = vadd.f32 %v2484_v39, %v2482_v50 }
0x1acb   :  { %v2339_v46 = vpop.permute.xlu0 %2338  ;;  %2489 = vrot.lane.b32.xlu1 %v8571_v40, %s7688_s19 }
0x1acc   :  { %v2343_v26 = vmul.f32 %v2339_v46, %v2333_v20  ;;  %2630 = vrot.lane.b32.xlu0 %v8573_v2, %s7688_s19 }
0x1ace   :  { %v8580_v42 = vadd.f32 %v2345_v61, %v2343_v26 }
0x1ad0   :  { %2491 = vrot.lane.b32.xlu0 %v8580_v42, %s7688_s19 }
0x1b39   :  { %v8584_v15 = vpop.permute.xlu1 %2628 }
0x1b3a   :  { %6915 = vmatprep.mubr.msk.f32.mxu1 %vm70_vm0, %v8584_v15 }
0x1b3d   :  { %v8588_v25 = vpop.permute.xlu1 %2489 }
0x1b3e   :  { %v8590_v22 = vpop.permute.xlu0 %2630  ;;  %6904 = vmatprep.mubr.msk.f32.mxu0 %vm70_vm0, %v8588_v25 }
0x1b3f   :  { %6916 = vmatmul.mubr.msk.f32.vlgmr.msra.gmra.mrb[52].mxu1 %vm70_vm0, %v8590_v22 }
0x1b40   :  { %7247 = vmatpush3.bf16.msra.mxu1 %v8252_v28 }
0x1b41   :  { %7249 = vmatprep.subr.bf16.mxu1 %v8257_v30 }
0x1b42   :  { %v8598_v43 = vpop.permute.xlu0 %2491 }
0x1b43   :  { %6905 = vmatmul.mubr.msk.f32.vlgmr.msra.gmra.mrb[36].mxu0 %vm70_vm0, %v8598_v43 }
0x1b44   :  { %7239 = vmatpush3.bf16.msra.mxu0 %v8171_v10  ;;  %7251 = vmatpush3.bf16.msra.mxu1 %v8257_v30 }
0x1b45   :  { %7241 = vmatprep.subr.bf16.mxu0 %v8179_v52  ;;  %7261 = vmatprep.subr.bf16.mxu1 %v8252_v28 }
0x1b48   :  { %7243 = vmatpush3.bf16.msra.mxu0 %v8179_v52 }
0x1b49   :  { %7253 = vmatprep.subr.bf16.mxu0 %v8171_v10 }
0x1c12   :  { %v6917_v19 = vpop.f32.mrb[52].mxu1 }
0x1c13   :  { %v2726_v63 = vadd.f32 %v6917_v19, %v8352_v62  ;;  %v2702_v31 = vpop.f32.mrb[53].mxu1  ;;  %v2712_v14 = vadd.f32 %v6917_v19, %v8478_v4 }
0x1c14   :  { %v2725_v60 = vadd.f32 %v2702_v31, %v8352_v62  ;;  %v2711_v5 = vadd.f32 %v2702_v31, %v8480_v8 }
0x1c15   :  { %2731 = vrot.lane.b32.xlu0 %v2726_v63, %s7686_s12  ;;  %v6290_v50 = vmul.f32 -1.442695, %v2712_v14 }
0x1c16   :  { %2729 = vrot.lane.b32.xlu1 %v2725_v60, %s7686_s12  ;;  %v6906_v56 = vpop.f32.mrb[36].mxu0  ;;  %v6289_v59 = vmul.f32 -1.442695, %v2711_v5 }
0x1c17   :  { %v2563_v29 = vpop.f32.mrb[37].mxu0  ;;  %v2587_v13 = vadd.f32 %v6906_v56, %v8350_v45  ;;  %v2573_v20 = vadd.f32 %v6906_v56, %v8287_v1 }
0x1c18   :  { %v2586_v51 = vadd.f32 %v2563_v29, %v8350_v45  ;;  %v2572_v39 = vadd.f32 %v2563_v29, %v8290_v6  ;;  %7499 = vpow2.f32 %v6289_v59 }
0x1c19   :  { %7501 = vpow2.f32 %v6290_v50  ;;  %v6286_v61 = vmul.f32 -1.442695, %v2573_v20 }
0x1c1a   :  { %2590 = vrot.lane.b32.xlu1 %v2586_v51, %s7686_s12  ;;  %v6285_v46 = vmul.f32 -1.442695, %v2572_v39 }
0x1c1c   :  { %7503 = vpow2.f32 %v6285_v46 }
0x1c1d   :  { %7505 = vpow2.f32 %v6286_v61 }
0x1c1e   :  { %2592 = vrot.lane.b32.xlu1 %v2587_v13, %s7686_s12 }
0x1c22   :  { %v7500_v26 = vpop.eup %7499 }
0x1c23   :  { %v7502_v63 = vpop.eup %7501  ;;  %v2719_v60 = vadd.f32 1.0, %v7500_v26 }
0x1c24   :  { %v2720_v13 = vadd.f32 1.0, %v7502_v63 }
0x1c25   :  { %7507 = vrcp.f32 %v2719_v60 }
0x1c26   :  { %v7504_v51 = vpop.eup %7503  ;;  %7509 = vrcp.f32 %v2720_v13 }
0x1c27   :  { %v2580_v31 = vadd.f32 1.0, %v7504_v51  ;;  %v7506_v19 = vpop.eup %7505 }
0x1c28   :  { %v2581_v5 = vadd.f32 1.0, %v7506_v19 }
0x1c29   :  { %7511 = vrcp.f32 %v2580_v31 }
0x1c2a   :  { %7513 = vrcp.f32 %v2581_v5 }
0x1c2f   :  { %v7508_v29 = vpop.eup %7507 }
0x1c30   :  { %v7510_v39 = vpop.eup %7509 }
0x1c33   :  { %v7512_v50 = vpop.eup %7511 }
0x1c34   :  { %v7514_v26 = vpop.eup %7513 }
0x1c87   :  { %v2732_v59 = vpop.permute.xlu0 %2731 }
0x1c88   :  { %v2730_v14 = vpop.permute.xlu1 %2729  ;;  %v2736_v46 = vmul.f32 %v7510_v39, %v2732_v59 }
0x1c89   :  { %v2735_v56 = vmul.f32 %v7508_v29, %v2730_v14 }
0x1c8b   :  { %2739 = vrot.lane.b32.xlu0 %v2735_v56, %s7686_s12 }
0x1c8c   :  { %v2591_v20 = vpop.permute.xlu1 %2590 }
0x1c8d   :  { %v2596_v61 = vmul.f32 %v7512_v50, %v2591_v20 }
0x1c8f   :  { %2600 = vrot.lane.b32.xlu1 %v2596_v61, %s7686_s12  ;;  %2741 = vrot.lane.b32.xlu0 %v2736_v46, %s7686_s12 }
0x1c90   :  { %v2593_v63 = vpop.permute.xlu1 %2592 }
0x1c91   :  { %v2597_v60 = vmul.f32 %v7514_v26, %v2593_v63  ;;  %v2761_v63 = vmul.f32 %v7508_v29, %v8565_v35  ;;  %v2611_v35 = vsub.f32 1.0, %v7514_v26 }
0x1c93   :  { %2602 = vrot.lane.b32.xlu0 %v2597_v60, %s7686_s12 }
0x1cfd   :  { %v2740_v51 = vpop.permute.xlu0 %2739 }
0x1cfe   :  { %v2745_v13 = vadd.f32 %v2740_v51, %v8480_v8 }
0x1d00   :  { %7515 = vtanh.f32 %v2745_v13 }
0x1d01   :  { %v2601_v31 = vpop.permute.xlu1 %2600  ;;  %v2742_v19 = vpop.permute.xlu0 %2741 }
0x1d02   :  { %v2606_v5 = vadd.f32 %v2601_v31, %v8290_v6  ;;  %v2746_v14 = vadd.f32 %v2742_v19, %v8478_v4  ;;  %v2749_v6 = vsub.f32 1.0, %v7508_v29  ;;  %v2750_v31 = vsub.f32 1.0, %v7510_v39 }
0x1d03   :  { %v2622_v19 = vmul.f32 %v7512_v50, %v8571_v40 }
0x1d04   :  { %7517 = vtanh.f32 %v2606_v5 }
0x1d05   :  { %7519 = vtanh.f32 %v2746_v14  ;;  %v2603_v56 = vpop.permute.xlu0 %2602 }
0x1d06   :  { %v2607_v59 = vadd.f32 %v2603_v56, %v8287_v1  ;;  %v2610_v1 = vsub.f32 1.0, %v7512_v50  ;;  %v2762_v56 = vmul.f32 %v7510_v39, %v8573_v2 }
0x1d08   :  { %7521 = vtanh.f32 %v2607_v59 }
0x1d0a   :  { %v7516_v20 = vpop.eup %7515 }
0x1d0b   :  { %2753 = vrot.lane.b32.xlu1 %v7516_v20, %s7688_s19 }
0x1d0e   :  { %v7518_v46 = vpop.eup %7517 }
0x1d0f   :  { %v7520_v61 = vpop.eup %7519  ;;  %2614 = vrot.lane.b32.xlu1 %v7518_v46, %s7688_s19 }
0x1d10   :  { %2755 = vrot.lane.b32.xlu0 %v7520_v61, %s7688_s19  ;;  %v2623_v61 = vmul.f32 %v7514_v26, %v8580_v42 }
0x1d12   :  { %v7522_v8 = vpop.eup %7521 }
0x1d14   :  { %2616 = vrot.lane.b32.xlu0 %v7522_v8, %s7688_s19 }
0x1d7d   :  { %v2754_v4 = vpop.permute.xlu1 %2753 }
0x1d7e   :  { %v2759_v60 = vmul.f32 %v2754_v4, %v2749_v6 }
0x1d80   :  { %v8633_v51 = vadd.f32 %v2761_v63, %v2759_v60 }
0x1d81   :  { %v2615_v13 = vpop.permute.xlu1 %2614 }
0x1d82   :  { %v2620_v5 = vmul.f32 %v2615_v13, %v2610_v1  ;;  %v2756_v14 = vpop.permute.xlu0 %2755  ;;  %2906 = vrot.lane.b32.xlu1 %v8633_v51, %s7688_s19 }
0x1d83   :  { %v2760_v59 = vmul.f32 %v2756_v14, %v2750_v31 }
0x1d84   :  { %v8639_v20 = vadd.f32 %v2622_v19, %v2620_v5 }
0x1d85   :  { %v8641_v46 = vadd.f32 %v2762_v56, %v2760_v59 }
0x1d86   :  { %v2617_v29 = vpop.permute.xlu0 %2616  ;;  %2767 = vrot.lane.b32.xlu1 %v8639_v20, %s7688_s19 }
0x1d87   :  { %v2621_v40 = vmul.f32 %v2617_v29, %v2611_v35  ;;  %2908 = vrot.lane.b32.xlu0 %v8641_v46, %s7688_s19 }
0x1d89   :  { %v8648_v50 = vadd.f32 %v2623_v61, %v2621_v40 }
0x1d8b   :  { %2769 = vrot.lane.b32.xlu0 %v8648_v50, %s7688_s19 }
0x1df4   :  { %v8652_v2 = vpop.permute.xlu1 %2906 }
0x1df5   :  { %6937 = vmatprep.mubr.msk.f32.mxu1 %vm70_vm0, %v8652_v2 }
0x1df8   :  { %v8656_v39 = vpop.permute.xlu1 %2767 }
0x1df9   :  { %v8658_v8 = vpop.permute.xlu0 %2908  ;;  %6926 = vmatprep.mubr.msk.f32.mxu0 %vm70_vm0, %v8656_v39 }
0x1dfa   :  { %6938 = vmatmul.mubr.msk.f32.vlgmr.msra.gmra.mrb[54].mxu1 %vm70_vm0, %v8658_v8 }
0x1dfb   :  { %7263 = vmatpush3.bf16.msra.mxu1 %v8252_v28 }
0x1dfc   :  { %7265 = vmatprep.subr.bf16.mxu1 %v8257_v30 }
0x1dfd   :  { %v8666_v42 = vpop.permute.xlu0 %2769 }
0x1dfe   :  { %6927 = vmatmul.mubr.msk.f32.vlgmr.msra.gmra.mrb[38].mxu0 %vm70_vm0, %v8666_v42 }
0x1dff   :  { %7255 = vmatpush3.bf16.msra.mxu0 %v8171_v10  ;;  %7267 = vmatpush3.bf16.msra.mxu1 %v8257_v30 }
0x1e00   :  { %7257 = vmatprep.subr.bf16.mxu0 %v8179_v52  ;;  %7277 = vmatprep.subr.bf16.mxu1 %v8252_v28 }
0x1e03   :  { %7259 = vmatpush3.bf16.msra.mxu0 %v8179_v52 }
0x1e04   :  { %7269 = vmatprep.subr.bf16.mxu0 %v8171_v10 }
0x1ecd   :  { %v6939_v26 = vpop.f32.mrb[54].mxu1 }
0x1ece   :  { %v3004_v6 = vadd.f32 %v6939_v26, %v8352_v62  ;;  %v2980_v4 = vpop.f32.mrb[55].mxu1  ;;  %v2990_v5 = vadd.f32 %v6939_v26, %v8474_v53 }
0x1ecf   :  { %v3003_v63 = vadd.f32 %v2980_v4, %v8352_v62  ;;  %v2989_v19 = vadd.f32 %v2980_v4, %v8476_v57 }
0x1ed0   :  { %3009 = vrot.lane.b32.xlu0 %v3004_v6, %s7686_s12  ;;  %v6298_v59 = vmul.f32 -1.442695, %v2990_v5 }
0x1ed1   :  { %3007 = vrot.lane.b32.xlu1 %v3003_v63, %s7686_s12  ;;  %v6928_v60 = vpop.f32.mrb[38].mxu0  ;;  %v6297_v14 = vmul.f32 -1.442695, %v2989_v19 }
0x1ed2   :  { %v2841_v1 = vpop.f32.mrb[39].mxu0  ;;  %v2865_v31 = vadd.f32 %v6928_v60, %v8350_v45  ;;  %v2851_v35 = vadd.f32 %v6928_v60, %v8293_v11 }
0x1ed3   :  { %v2864_v13 = vadd.f32 %v2841_v1, %v8350_v45  ;;  %v2850_v56 = vadd.f32 %v2841_v1, %v8296_v21  ;;  %7523 = vpow2.f32 %v6297_v14 }
0x1ed4   :  { %7525 = vpow2.f32 %v6298_v59  ;;  %v6294_v61 = vmul.f32 -1.442695, %v2851_v35 }
0x1ed5   :  { %2868 = vrot.lane.b32.xlu1 %v2864_v13, %s7686_s12  ;;  %v6293_v29 = vmul.f32 -1.442695, %v2850_v56 }
0x1ed7   :  { %7527 = vpow2.f32 %v6293_v29 }
0x1ed8   :  { %7529 = vpow2.f32 %v6294_v61 }
0x1ed9   :  { %2870 = vrot.lane.b32.xlu1 %v2865_v31, %s7686_s12 }
0x1edd   :  { %v7524_v40 = vpop.eup %7523 }
0x1ede   :  { %v7526_v6 = vpop.eup %7525  ;;  %v2997_v63 = vadd.f32 1.0, %v7524_v40 }
0x1edf   :  { %v2998_v31 = vadd.f32 1.0, %v7526_v6 }
0x1ee0   :  { %7531 = vrcp.f32 %v2997_v63 }
0x1ee1   :  { %v7528_v13 = vpop.eup %7527  ;;  %7533 = vrcp.f32 %v2998_v31 }
0x1ee2   :  { %v2858_v4 = vadd.f32 1.0, %v7528_v13  ;;  %v7530_v26 = vpop.eup %7529 }
0x1ee3   :  { %v2859_v19 = vadd.f32 1.0, %v7530_v26 }
0x1ee4   :  { %7535 = vrcp.f32 %v2858_v4 }
0x1ee5   :  { %7537 = vrcp.f32 %v2859_v19 }
0x1eea   :  { %v7532_v1 = vpop.eup %7531 }
0x1eeb   :  { %v7534_v56 = vpop.eup %7533 }
0x1eee   :  { %v7536_v59 = vpop.eup %7535 }
0x1eef   :  { %v7538_v40 = vpop.eup %7537 }
0x1f42   :  { %v3010_v14 = vpop.permute.xlu0 %3009 }
0x1f43   :  { %v3008_v5 = vpop.permute.xlu1 %3007  ;;  %v3014_v29 = vmul.f32 %v7534_v56, %v3010_v14 }
0x1f44   :  { %v3013_v60 = vmul.f32 %v7532_v1, %v3008_v5 }
0x1f46   :  { %3017 = vrot.lane.b32.xlu0 %v3013_v60, %s7686_s12 }
0x1f47   :  { %v2869_v35 = vpop.permute.xlu1 %2868 }
0x1f48   :  { %v2874_v61 = vmul.f32 %v7536_v59, %v2869_v35 }
0x1f4a   :  { %2878 = vrot.lane.b32.xlu1 %v2874_v61, %s7686_s12  ;;  %3019 = vrot.lane.b32.xlu0 %v3014_v29, %s7686_s12 }
0x1f4b   :  { %v2871_v6 = vpop.permute.xlu1 %2870 }
0x1f4c   :  { %v2875_v63 = vmul.f32 %v7538_v40, %v2871_v6  ;;  %v3039_v6 = vmul.f32 %v7532_v1, %v8633_v51  ;;  %v2889_v51 = vsub.f32 1.0, %v7538_v40 }
0x1f4e   :  { %2880 = vrot.lane.b32.xlu0 %v2875_v63, %s7686_s12 }
0x1fb8   :  { %v3018_v13 = vpop.permute.xlu0 %3017 }
0x1fb9   :  { %v3023_v31 = vadd.f32 %v3018_v13, %v8476_v57 }
0x1fbb   :  { %7539 = vtanh.f32 %v3023_v31 }
0x1fbc   :  { %v2879_v4 = vpop.permute.xlu1 %2878  ;;  %v3020_v26 = vpop.permute.xlu0 %3019 }
0x1fbd   :  { %v2884_v19 = vadd.f32 %v2879_v4, %v8296_v21  ;;  %v3024_v5 = vadd.f32 %v3020_v26, %v8474_v53  ;;  %v3027_v21 = vsub.f32 1.0, %v7532_v1  ;;  %v3028_v4 = vsub.f32 1.0, %v7534_v56 }
0x1fbe   :  { %v2900_v26 = vmul.f32 %v7536_v59, %v8639_v20 }
0x1fbf   :  { %7541 = vtanh.f32 %v2884_v19 }
0x1fc0   :  { %7543 = vtanh.f32 %v3024_v5  ;;  %v2881_v60 = vpop.permute.xlu0 %2880 }
0x1fc1   :  { %v2885_v14 = vadd.f32 %v2881_v60, %v8293_v11  ;;  %v2888_v11 = vsub.f32 1.0, %v7536_v59  ;;  %v3040_v60 = vmul.f32 %v7534_v56, %v8641_v46 }
0x1fc3   :  { %7545 = vtanh.f32 %v2885_v14 }
0x1fc5   :  { %v7540_v35 = vpop.eup %7539 }
0x1fc6   :  { %3031 = vrot.lane.b32.xlu1 %v7540_v35, %s7688_s19 }
0x1fc9   :  { %v7542_v29 = vpop.eup %7541 }
0x1fca   :  { %v7544_v61 = vpop.eup %7543  ;;  %2892 = vrot.lane.b32.xlu1 %v7542_v29, %s7688_s19 }
0x1fcb   :  { %3033 = vrot.lane.b32.xlu0 %v7544_v61, %s7688_s19  ;;  %v2901_v61 = vmul.f32 %v7538_v40, %v8648_v50 }
0x1fcd   :  { %v7546_v57 = vpop.eup %7545 }
0x1fcf   :  { %2894 = vrot.lane.b32.xlu0 %v7546_v57, %s7688_s19 }
0x2038   :  { %v3032_v53 = vpop.permute.xlu1 %3031 }
0x2039   :  { %v3037_v63 = vmul.f32 %v3032_v53, %v3027_v21 }
0x203b   :  { %v8701_v13 = vadd.f32 %v3039_v6, %v3037_v63 }
0x203c   :  { %v2893_v31 = vpop.permute.xlu1 %2892 }
0x203d   :  { %v2898_v19 = vmul.f32 %v2893_v31, %v2888_v11  ;;  %v3034_v5 = vpop.permute.xlu0 %3033  ;;  %3184 = vrot.lane.b32.xlu1 %v8701_v13, %s7688_s19 }
0x203e   :  { %v3038_v14 = vmul.f32 %v3034_v5, %v3028_v4 }
0x203f   :  { %v8707_v35 = vadd.f32 %v2900_v26, %v2898_v19 }
0x2040   :  { %v8709_v29 = vadd.f32 %v3040_v60, %v3038_v14 }
0x2041   :  { %v2895_v1 = vpop.permute.xlu0 %2894  ;;  %3045 = vrot.lane.b32.xlu1 %v8707_v35, %s7688_s19 }
0x2042   :  { %v2899_v20 = vmul.f32 %v2895_v1, %v2889_v51  ;;  %3186 = vrot.lane.b32.xlu0 %v8709_v29, %s7688_s19 }
0x2044   :  { %v8716_v59 = vadd.f32 %v2901_v61, %v2899_v20 }
0x2046   :  { %3047 = vrot.lane.b32.xlu0 %v8716_v59, %s7688_s19 }
0x20af   :  { %v8720_v46 = vpop.permute.xlu1 %3184 }
0x20b0   :  { %6959 = vmatprep.mubr.msk.f32.mxu1 %vm70_vm0, %v8720_v46 }
0x20b3   :  { %v8724_v56 = vpop.permute.xlu1 %3045 }
0x20b4   :  { %v8726_v57 = vpop.permute.xlu0 %3186  ;;  %6948 = vmatprep.mubr.msk.f32.mxu0 %vm70_vm0, %v8724_v56 }
0x20b5   :  { %6960 = vmatmul.mubr.msk.f32.vlgmr.msra.gmra.mrb[56].mxu1 %vm70_vm0, %v8726_v57 }
0x20b6   :  { %7279 = vmatpush3.bf16.msra.mxu1 %v8252_v28 }
0x20b7   :  { %7281 = vmatprep.subr.bf16.mxu1 %v8257_v30 }
0x20b8   :  { %v8734_v50 = vpop.permute.xlu0 %3047 }
0x20b9   :  { %6949 = vmatmul.mubr.msk.f32.vlgmr.msra.gmra.mrb[40].mxu0 %vm70_vm0, %v8734_v50 }
0x20ba   :  { %7271 = vmatpush3.bf16.msra.mxu0 %v8171_v10  ;;  %7283 = vmatpush3.bf16.msra.mxu1 %v8257_v30 }
0x20bb   :  { %7273 = vmatprep.subr.bf16.mxu0 %v8179_v52  ;;  %7293 = vmatprep.subr.bf16.mxu1 %v8252_v28 }
0x20be   :  { %7275 = vmatpush3.bf16.msra.mxu0 %v8179_v52 }
0x20bf   :  { %7285 = vmatprep.subr.bf16.mxu0 %v8171_v10 }
0x2188   :  { %v6961_v40 = vpop.f32.mrb[56].mxu1 }
0x2189   :  { %v3282_v21 = vadd.f32 %v6961_v40, %v8352_v62  ;;  %v3258_v53 = vpop.f32.mrb[57].mxu1  ;;  %v3268_v19 = vadd.f32 %v6961_v40, %v8470_v3 }
0x218a   :  { %v3281_v6 = vadd.f32 %v3258_v53, %v8352_v62  ;;  %v3267_v26 = vadd.f32 %v3258_v53, %v8472_v36 }
0x218b   :  { %3287 = vrot.lane.b32.xlu0 %v3282_v21, %s7686_s12  ;;  %v6306_v14 = vmul.f32 -1.442695, %v3268_v19 }
0x218c   :  { %3285 = vrot.lane.b32.xlu1 %v3281_v6, %s7686_s12  ;;  %v6950_v63 = vpop.f32.mrb[40].mxu0  ;;  %v6305_v5 = vmul.f32 -1.442695, %v3267_v26 }
0x218d   :  { %v3119_v11 = vpop.f32.mrb[41].mxu0  ;;  %v3143_v4 = vadd.f32 %v6950_v63, %v8350_v45  ;;  %v3129_v51 = vadd.f32 %v6950_v63, %v8299_v23 }
0x218e   :  { %v3142_v31 = vadd.f32 %v3119_v11, %v8350_v45  ;;  %v3128_v60 = vadd.f32 %v3119_v11, %v8302_v24  ;;  %7547 = vpow2.f32 %v6305_v5 }
0x218f   :  { %7549 = vpow2.f32 %v6306_v14  ;;  %v6302_v61 = vmul.f32 -1.442695, %v3129_v51 }
0x2190   :  { %3146 = vrot.lane.b32.xlu1 %v3142_v31, %s7686_s12  ;;  %v6301_v1 = vmul.f32 -1.442695, %v3128_v60 }
0x2192   :  { %7551 = vpow2.f32 %v6301_v1 }
0x2193   :  { %7553 = vpow2.f32 %v6302_v61 }
0x2194   :  { %3148 = vrot.lane.b32.xlu1 %v3143_v4, %s7686_s12 }
0x2198   :  { %v7548_v20 = vpop.eup %7547 }
0x2199   :  { %v7550_v21 = vpop.eup %7549  ;;  %v3275_v6 = vadd.f32 1.0, %v7548_v20 }
0x219a   :  { %v3276_v4 = vadd.f32 1.0, %v7550_v21 }
0x219b   :  { %7555 = vrcp.f32 %v3275_v6 }
0x219c   :  { %v7552_v31 = vpop.eup %7551  ;;  %7557 = vrcp.f32 %v3276_v4 }
0x219d   :  { %v3136_v53 = vadd.f32 1.0, %v7552_v31  ;;  %v7554_v40 = vpop.eup %7553 }
0x219e   :  { %v3137_v26 = vadd.f32 1.0, %v7554_v40 }
0x219f   :  { %7559 = vrcp.f32 %v3136_v53 }
0x21a0   :  { %7561 = vrcp.f32 %v3137_v26 }
0x21a5   :  { %v7556_v11 = vpop.eup %7555 }
0x21a6   :  { %v7558_v60 = vpop.eup %7557 }
0x21a9   :  { %v7560_v14 = vpop.eup %7559 }
0x21aa   :  { %v7562_v20 = vpop.eup %7561 }
0x21fd   :  { %v3288_v5 = vpop.permute.xlu0 %3287 }
0x21fe   :  { %v3286_v19 = vpop.permute.xlu1 %3285  ;;  %v3292_v1 = vmul.f32 %v7558_v60, %v3288_v5 }
0x21ff   :  { %v3291_v63 = vmul.f32 %v7556_v11, %v3286_v19 }
0x2201   :  { %3295 = vrot.lane.b32.xlu0 %v3291_v63, %s7686_s12 }
0x2202   :  { %v3147_v51 = vpop.permute.xlu1 %3146 }
0x2203   :  { %v3152_v61 = vmul.f32 %v7560_v14, %v3147_v51 }
0x2205   :  { %3156 = vrot.lane.b32.xlu1 %v3152_v61, %s7686_s12  ;;  %3297 = vrot.lane.b32.xlu0 %v3292_v1, %s7686_s12 }
0x2206   :  { %v3149_v21 = vpop.permute.xlu1 %3148 }
0x2207   :  { %v3153_v6 = vmul.f32 %v7562_v20, %v3149_v21  ;;  %v3317_v21 = vmul.f32 %v7556_v11, %v8701_v13  ;;  %v3167_v13 = vsub.f32 1.0, %v7562_v20 }
0x2209   :  { %3158 = vrot.lane.b32.xlu0 %v3153_v6, %s7686_s12 }
0x2273   :  { %v3296_v31 = vpop.permute.xlu0 %3295 }
0x2274   :  { %v3301_v4 = vadd.f32 %v3296_v31, %v8472_v36 }
0x2276   :  { %7563 = vtanh.f32 %v3301_v4 }
0x2277   :  { %v3157_v53 = vpop.permute.xlu1 %3156  ;;  %v3298_v40 = vpop.permute.xlu0 %3297 }
0x2278   :  { %v3162_v26 = vadd.f32 %v3157_v53, %v8302_v24  ;;  %v3302_v19 = vadd.f32 %v3298_v40, %v8470_v3  ;;  %v3305_v24 = vsub.f32 1.0, %v7556_v11  ;;  %v3306_v53 = vsub.f32 1.0, %v7558_v60 }
0x2279   :  { %v3178_v40 = vmul.f32 %v7560_v14, %v8707_v35 }
0x227a   :  { %7565 = vtanh.f32 %v3162_v26 }
0x227b   :  { %7567 = vtanh.f32 %v3302_v19  ;;  %v3159_v63 = vpop.permute.xlu0 %3158 }
0x227c   :  { %v3163_v5 = vadd.f32 %v3159_v63, %v8299_v23  ;;  %v3166_v23 = vsub.f32 1.0, %v7560_v14  ;;  %v3318_v63 = vmul.f32 %v7558_v60, %v8709_v29 }
0x227e   :  { %7569 = vtanh.f32 %v3163_v5 }
0x2280   :  { %v7564_v51 = vpop.eup %7563 }
0x2281   :  { %3309 = vrot.lane.b32.xlu1 %v7564_v51, %s7688_s19 }
0x2284   :  { %v7566_v1 = vpop.eup %7565 }
0x2285   :  { %v7568_v61 = vpop.eup %7567  ;;  %3170 = vrot.lane.b32.xlu1 %v7566_v1, %s7688_s19 }
0x2286   :  { %3311 = vrot.lane.b32.xlu0 %v7568_v61, %s7688_s19  ;;  %v3179_v61 = vmul.f32 %v7562_v20, %v8716_v59 }
0x2288   :  { %v7570_v36 = vpop.eup %7569 }
0x228a   :  { %3172 = vrot.lane.b32.xlu0 %v7570_v36, %s7688_s19 }
0x22f3   :  { %v3310_v3 = vpop.permute.xlu1 %3309 }
0x22f4   :  { %v3315_v6 = vmul.f32 %v3310_v3, %v3305_v24 }
0x22f6   :  { %v8769_v31 = vadd.f32 %v3317_v21, %v3315_v6 }
0x22f7   :  { %v3171_v4 = vpop.permute.xlu1 %3170 }
0x22f8   :  { %v3176_v26 = vmul.f32 %v3171_v4, %v3166_v23  ;;  %v3312_v19 = vpop.permute.xlu0 %3311  ;;  %3462 = vrot.lane.b32.xlu1 %v8769_v31, %s7688_s19 }
0x22f9   :  { %v3316_v5 = vmul.f32 %v3312_v19, %v3306_v53 }
0x22fa   :  { %v8775_v51 = vadd.f32 %v3178_v40, %v3176_v26 }
0x22fb   :  { %v8777_v1 = vadd.f32 %v3318_v63, %v3316_v5 }
0x22fc   :  { %v3173_v11 = vpop.permute.xlu0 %3172  ;;  %3323 = vrot.lane.b32.xlu1 %v8775_v51, %s7688_s19 }
0x22fd   :  { %v3177_v35 = vmul.f32 %v3173_v11, %v3167_v13  ;;  %3464 = vrot.lane.b32.xlu0 %v8777_v1, %s7688_s19 }
0x22ff   :  { %v8784_v14 = vadd.f32 %v3179_v61, %v3177_v35 }
0x2301   :  { %3325 = vrot.lane.b32.xlu0 %v8784_v14, %s7688_s19 }
0x236a   :  { %v8788_v29 = vpop.permute.xlu1 %3462 }
0x236b   :  { %6981 = vmatprep.mubr.msk.f32.mxu1 %vm70_vm0, %v8788_v29 }
0x236e   :  { %v8792_v60 = vpop.permute.xlu1 %3323 }
0x236f   :  { %v8794_v36 = vpop.permute.xlu0 %3464  ;;  %6970 = vmatprep.mubr.msk.f32.mxu0 %vm70_vm0, %v8792_v60 }
0x2370   :  { %6982 = vmatmul.mubr.msk.f32.vlgmr.msra.gmra.mrb[58].mxu1 %vm70_vm0, %v8794_v36 }
0x2371   :  { %7295 = vmatpush3.bf16.msra.mxu1 %v8252_v28 }
0x2372   :  { %7297 = vmatprep.subr.bf16.mxu1 %v8257_v30 }
0x2373   :  { %v8802_v59 = vpop.permute.xlu0 %3325 }
0x2374   :  { %6971 = vmatmul.mubr.msk.f32.vlgmr.msra.gmra.mrb[42].mxu0 %vm70_vm0, %v8802_v59 }
0x2375   :  { %7287 = vmatpush3.bf16.msra.mxu0 %v8171_v10  ;;  %7299 = vmatpush3.bf16.msra.mxu1 %v8257_v30 }
0x2376   :  { %7289 = vmatprep.subr.bf16.mxu0 %v8179_v52  ;;  %7309 = vmatprep.subr.bf16.mxu1 %v8252_v28 }
0x2379   :  { %7291 = vmatpush3.bf16.msra.mxu0 %v8179_v52 }
0x237a   :  { %7301 = vmatprep.subr.bf16.mxu0 %v8171_v10 }
0x2443   :  { %v6983_v20 = vpop.f32.mrb[58].mxu1 }
0x2444   :  { %v3560_v24 = vadd.f32 %v6983_v20, %v8352_v62  ;;  %v3536_v3 = vpop.f32.mrb[59].mxu1  ;;  %v3546_v26 = vadd.f32 %v6983_v20, %v8466_v0 }
0x2445   :  { %v3559_v21 = vadd.f32 %v3536_v3, %v8352_v62  ;;  %v3545_v40 = vadd.f32 %v3536_v3, %v8468_v44 }
0x2446   :  { %3565 = vrot.lane.b32.xlu0 %v3560_v24, %s7686_s12  ;;  %v6314_v5 = vmul.f32 -1.442695, %v3546_v26 }
0x2447   :  { %3563 = vrot.lane.b32.xlu1 %v3559_v21, %s7686_s12  ;;  %v6972_v6 = vpop.f32.mrb[42].mxu0  ;;  %v6313_v19 = vmul.f32 -1.442695, %v3545_v40 }
0x2448   :  { %v3397_v23 = vpop.f32.mrb[43].mxu0  ;;  %v3421_v53 = vadd.f32 %v6972_v6, %v8350_v45  ;;  %v3407_v13 = vadd.f32 %v6972_v6, %v8305_v27 }
0x2449   :  { %v3420_v4 = vadd.f32 %v3397_v23, %v8350_v45  ;;  %v3406_v63 = vadd.f32 %v3397_v23, %v8308_v58  ;;  %7571 = vpow2.f32 %v6313_v19 }
0x244a   :  { %7573 = vpow2.f32 %v6314_v5  ;;  %v6310_v61 = vmul.f32 -1.442695, %v3407_v13 }
0x244b   :  { %3424 = vrot.lane.b32.xlu1 %v3420_v4, %s7686_s12  ;;  %v6309_v11 = vmul.f32 -1.442695, %v3406_v63 }
0x244d   :  { %7575 = vpow2.f32 %v6309_v11 }
0x244e   :  { %7577 = vpow2.f32 %v6310_v61 }
0x244f   :  { %3426 = vrot.lane.b32.xlu1 %v3421_v53, %s7686_s12 }
0x2453   :  { %v7572_v35 = vpop.eup %7571 }
0x2454   :  { %v7574_v24 = vpop.eup %7573  ;;  %v3553_v21 = vadd.f32 1.0, %v7572_v35 }
0x2455   :  { %v3554_v53 = vadd.f32 1.0, %v7574_v24 }
0x2456   :  { %7579 = vrcp.f32 %v3553_v21 }
0x2457   :  { %v7576_v4 = vpop.eup %7575  ;;  %7581 = vrcp.f32 %v3554_v53 }
0x2458   :  { %v3414_v3 = vadd.f32 1.0, %v7576_v4  ;;  %v7578_v20 = vpop.eup %7577 }
0x2459   :  { %v3415_v40 = vadd.f32 1.0, %v7578_v20 }
0x245a   :  { %7583 = vrcp.f32 %v3414_v3 }
0x245b   :  { %7585 = vrcp.f32 %v3415_v40 }
0x2460   :  { %v7580_v23 = vpop.eup %7579 }
0x2461   :  { %v7582_v63 = vpop.eup %7581 }
0x2464   :  { %v7584_v5 = vpop.eup %7583 }
0x2465   :  { %v7586_v35 = vpop.eup %7585 }
0x24b8   :  { %v3566_v19 = vpop.permute.xlu0 %3565 }
0x24b9   :  { %v3564_v26 = vpop.permute.xlu1 %3563  ;;  %v3570_v11 = vmul.f32 %v7582_v63, %v3566_v19 }
0x24ba   :  { %v3569_v6 = vmul.f32 %v7580_v23, %v3564_v26 }
0x24bc   :  { %3573 = vrot.lane.b32.xlu0 %v3569_v6, %s7686_s12 }
0x24bd   :  { %v3425_v13 = vpop.permute.xlu1 %3424 }
0x24be   :  { %v3430_v61 = vmul.f32 %v7584_v5, %v3425_v13 }
0x24c0   :  { %3434 = vrot.lane.b32.xlu1 %v3430_v61, %s7686_s12  ;;  %3575 = vrot.lane.b32.xlu0 %v3570_v11, %s7686_s12 }
0x24c1   :  { %v3427_v24 = vpop.permute.xlu1 %3426 }
0x24c2   :  { %v3431_v21 = vmul.f32 %v7586_v35, %v3427_v24  ;;  %v3595_v24 = vmul.f32 %v7580_v23, %v8769_v31  ;;  %v3445_v31 = vsub.f32 1.0, %v7586_v35 }
0x24c4   :  { %3436 = vrot.lane.b32.xlu0 %v3431_v21, %s7686_s12 }
0x252e   :  { %v3574_v4 = vpop.permute.xlu0 %3573 }
0x252f   :  { %v3579_v53 = vadd.f32 %v3574_v4, %v8468_v44 }
0x2531   :  { %7587 = vtanh.f32 %v3579_v53 }
0x2532   :  { %v3435_v3 = vpop.permute.xlu1 %3434  ;;  %v3576_v20 = vpop.permute.xlu0 %3575 }
0x2533   :  { %v3440_v40 = vadd.f32 %v3435_v3, %v8308_v58  ;;  %v3580_v26 = vadd.f32 %v3576_v20, %v8466_v0  ;;  %v3583_v58 = vsub.f32 1.0, %v7580_v23  ;;  %v3584_v3 = vsub.f32 1.0, %v7582_v63 }
0x2534   :  { %v3456_v20 = vmul.f32 %v7584_v5, %v8775_v51 }
0x2535   :  { %7589 = vtanh.f32 %v3440_v40 }
0x2536   :  { %7591 = vtanh.f32 %v3580_v26  ;;  %v3437_v6 = vpop.permute.xlu0 %3436 }
0x2537   :  { %v3441_v19 = vadd.f32 %v3437_v6, %v8305_v27  ;;  %v3444_v27 = vsub.f32 1.0, %v7584_v5  ;;  %v3596_v6 = vmul.f32 %v7582_v63, %v8777_v1 }
0x2539   :  { %7593 = vtanh.f32 %v3441_v19 }
0x253b   :  { %v7588_v13 = vpop.eup %7587 }
0x253c   :  { %3587 = vrot.lane.b32.xlu1 %v7588_v13, %s7688_s19 }
0x253f   :  { %v7590_v11 = vpop.eup %7589 }
0x2540   :  { %v7592_v61 = vpop.eup %7591  ;;  %3448 = vrot.lane.b32.xlu1 %v7590_v11, %s7688_s19 }
0x2541   :  { %3589 = vrot.lane.b32.xlu0 %v7592_v61, %s7688_s19  ;;  %v3457_v61 = vmul.f32 %v7586_v35, %v8784_v14 }
0x2543   :  { %v7594_v44 = vpop.eup %7593 }
0x2545   :  { %3450 = vrot.lane.b32.xlu0 %v7594_v44, %s7688_s19 }
0x25ae   :  { %v3588_v0 = vpop.permute.xlu1 %3587 }
0x25af   :  { %v3593_v21 = vmul.f32 %v3588_v0, %v3583_v58 }
0x25b1   :  { %v8837_v4 = vadd.f32 %v3595_v24, %v3593_v21 }
0x25b2   :  { %v3449_v53 = vpop.permute.xlu1 %3448 }
0x25b3   :  { %v3454_v40 = vmul.f32 %v3449_v53, %v3444_v27  ;;  %v3590_v26 = vpop.permute.xlu0 %3589  ;;  %3740 = vrot.lane.b32.xlu1 %v8837_v4, %s7688_s19 }
0x25b4   :  { %v3594_v19 = vmul.f32 %v3590_v26, %v3584_v3 }
0x25b5   :  { %v8843_v13 = vadd.f32 %v3456_v20, %v3454_v40 }
0x25b6   :  { %v8845_v11 = vadd.f32 %v3596_v6, %v3594_v19 }
0x25b7   :  { %v3451_v23 = vpop.permute.xlu0 %3450  ;;  %3601 = vrot.lane.b32.xlu1 %v8843_v13, %s7688_s19 }
0x25b8   :  { %v3455_v51 = vmul.f32 %v3451_v23, %v3445_v31  ;;  %3742 = vrot.lane.b32.xlu0 %v8845_v11, %s7688_s19 }
0x25ba   :  { %v8852_v5 = vadd.f32 %v3457_v61, %v3455_v51 }
0x25bc   :  { %3603 = vrot.lane.b32.xlu0 %v8852_v5, %s7688_s19 }
0x2625   :  { %v8856_v1 = vpop.permute.xlu1 %3740 }
0x2626   :  { %7003 = vmatprep.mubr.msk.f32.mxu1 %vm70_vm0, %v8856_v1 }
0x2629   :  { %v8860_v63 = vpop.permute.xlu1 %3601 }
0x262a   :  { %v8862_v44 = vpop.permute.xlu0 %3742  ;;  %6992 = vmatprep.mubr.msk.f32.mxu0 %vm70_vm0, %v8860_v63 }
0x262b   :  { %7004 = vmatmul.mubr.msk.f32.vlgmr.msra.gmra.mrb[60].mxu1 %vm70_vm0, %v8862_v44 }
0x262c   :  { %7311 = vmatpush3.bf16.msra.mxu1 %v8252_v28 }
0x262d   :  { %7313 = vmatprep.subr.bf16.mxu1 %v8257_v30 }
0x262e   :  { %v8870_v14 = vpop.permute.xlu0 %3603 }
0x262f   :  { %6993 = vmatmul.mubr.msk.f32.vlgmr.msra.gmra.mrb[44].mxu0 %vm70_vm0, %v8870_v14 }
0x2630   :  { %7303 = vmatpush3.bf16.msra.mxu0 %v8171_v10  ;;  %7315 = vmatpush3.bf16.msra.mxu1 %v8257_v30 }
0x2631   :  { %7305 = vmatprep.subr.bf16.mxu0 %v8179_v52 }
0x2634   :  { %7307 = vmatpush3.bf16.msra.mxu0 %v8179_v52 }
0x26fe   :  { %v7005_v35 = vpop.f32.mrb[60].mxu1 }
0x26ff   :  { %v3838_v58 = vadd.f32 %v7005_v35, %v8352_v62  ;;  %v3814_v0 = vpop.f32.mrb[61].mxu1  ;;  %v3824_v27 = vadd.f32 %v7005_v35, %v8462_v47 }
0x2700   :  { %v3837_v28 = vadd.f32 %v3814_v0, %v8352_v62  ;;  %v3823_v52 = vadd.f32 %v3814_v0, %v8464_v48 }
0x2701   :  { %3843 = vrot.lane.b32.xlu0 %v3838_v58, %s7686_s12  ;;  %v6322_v20 = vmul.f32 -1.442695, %v3824_v27 }
0x2702   :  { %3841 = vrot.lane.b32.xlu1 %v3837_v28, %s7686_s12  ;;  %v6994_v24 = vpop.f32.mrb[44].mxu0  ;;  %v6321_v53 = vmul.f32 -1.442695, %v3823_v52 }
0x2703   :  { %v3675_v21 = vpop.f32.mrb[45].mxu0  ;;  %v3699_v30 = vadd.f32 %v6994_v24, %v8350_v45  ;;  %v3685_v40 = vadd.f32 %v6994_v24, %v8311_v33 }
0x2704   :  { %v3698_v10 = vadd.f32 %v3675_v21, %v8350_v45  ;;  %v3684_v3 = vadd.f32 %v3675_v21, %v8314_v38  ;;  %7595 = vpow2.f32 %v6321_v53 }
0x2705   :  { %7597 = vpow2.f32 %v6322_v20  ;;  %v6318_v6 = vmul.f32 -1.442695, %v3685_v40 }
0x2706   :  { %3702 = vrot.lane.b32.xlu1 %v3698_v10, %s7686_s12  ;;  %v6317_v26 = vmul.f32 -1.442695, %v3684_v3 }
0x2708   :  { %7599 = vpow2.f32 %v6317_v26 }
0x2709   :  { %7601 = vpow2.f32 %v6318_v6 }
0x270a   :  { %3704 = vrot.lane.b32.xlu1 %v3699_v30, %s7686_s12 }
0x270e   :  { %v7596_v19 = vpop.eup %7595 }
0x270f   :  { %v7598_v31 = vpop.eup %7597  ;;  %v3831_v23 = vadd.f32 1.0, %v7596_v19 }
0x2710   :  { %v3832_v51 = vadd.f32 1.0, %v7598_v31 }
0x2711   :  { %7603 = vrcp.f32 %v3831_v23 }
0x2712   :  { %v7600_v61 = vpop.eup %7599  ;;  %7605 = vrcp.f32 %v3832_v51 }
0x2713   :  { %v3692_v58 = vadd.f32 1.0, %v7600_v61  ;;  %v7602_v35 = vpop.eup %7601 }
0x2714   :  { %v3693_v0 = vadd.f32 1.0, %v7602_v35 }
0x2715   :  { %7607 = vrcp.f32 %v3692_v58 }
0x2716   :  { %7609 = vrcp.f32 %v3693_v0 }
0x271b   :  { %v7604_v28 = vpop.eup %7603 }
0x271c   :  { %v7606_v30 = vpop.eup %7605 }
0x271f   :  { %v7608_v52 = vpop.eup %7607 }
0x2720   :  { %v7610_v20 = vpop.eup %7609 }
0x2773   :  { %v3844_v10 = vpop.permute.xlu0 %3843 }
0x2774   :  { %v3842_v21 = vpop.permute.xlu1 %3841  ;;  %v3848_v53 = vmul.f32 %v7606_v30, %v3844_v10  ;;  %v3873_v10 = vmul.f32 %v7604_v28, %v8837_v4  ;;  %v3723_v4 = vsub.f32 1.0, %v7610_v20 }
0x2775   :  { %v3847_v24 = vmul.f32 %v7604_v28, %v3842_v21 }
0x2777   :  { %3851 = vrot.lane.b32.xlu0 %v3847_v24, %s7686_s12 }
0x2778   :  { %v3703_v27 = vpop.permute.xlu1 %3702 }
0x2779   :  { %v3708_v3 = vmul.f32 %v7608_v52, %v3703_v27 }
0x277b   :  { %3712 = vrot.lane.b32.xlu1 %v3708_v3, %s7686_s12  ;;  %3853 = vrot.lane.b32.xlu0 %v3848_v53, %s7686_s12 }
0x277c   :  { %v3705_v40 = vpop.permute.xlu1 %3704 }
0x277d   :  { %v3709_v26 = vmul.f32 %v7610_v20, %v3705_v40  ;;  %v3862_v40 = vsub.f32 1.0, %v7606_v30 }
0x277f   :  { %3714 = vrot.lane.b32.xlu0 %v3709_v26, %s7686_s12  ;;  %v3734_v26 = vmul.f32 %v7608_v52, %v8843_v13 }
0x27e9   :  { %v3852_v6 = vpop.permute.xlu0 %3851 }
0x27ea   :  { %v3857_v19 = vadd.f32 %v3852_v6, %v8464_v48 }
0x27ec   :  { %7611 = vtanh.f32 %v3857_v19 }
0x27ed   :  { %v3713_v31 = vpop.permute.xlu1 %3712  ;;  %v3854_v23 = vpop.permute.xlu0 %3853 }
0x27ee   :  { %v3718_v61 = vadd.f32 %v3713_v31, %v8314_v38  ;;  %v3858_v51 = vadd.f32 %v3854_v23, %v8462_v47  ;;  %v3861_v38 = vsub.f32 1.0, %v7604_v28  ;;  %v3874_v31 = vmul.f32 %v7606_v30, %v8845_v11 }
0x27f0   :  { %7613 = vtanh.f32 %v3718_v61 }
0x27f1   :  { %7615 = vtanh.f32 %v3858_v51  ;;  %v3715_v58 = vpop.permute.xlu0 %3714 }
0x27f2   :  { %v3719_v35 = vadd.f32 %v3715_v58, %v8311_v33  ;;  %v3722_v33 = vsub.f32 1.0, %v7608_v52  ;;  %v3735_v58 = vmul.f32 %v7610_v20, %v8852_v5 }
0x27f4   :  { %7617 = vtanh.f32 %v3719_v35 }
0x27f6   :  { %v7612_v0 = vpop.eup %7611 }
0x27f7   :  { %3865 = vrot.lane.b32.xlu1 %v7612_v0, %s7688_s19 }
0x27fa   :  { %v7614_v21 = vpop.eup %7613 }
0x27fb   :  { %v7616_v24 = vpop.eup %7615  ;;  %3726 = vrot.lane.b32.xlu1 %v7614_v21, %s7688_s19 }
0x27fc   :  { %3867 = vrot.lane.b32.xlu0 %v7616_v24, %s7688_s19 }
0x27fe   :  { %v7618_v48 = vpop.eup %7617 }
0x2800   :  { %3728 = vrot.lane.b32.xlu0 %v7618_v48, %s7688_s19 }
0x2869   :  { %v3866_v47 = vpop.permute.xlu1 %3865 }
0x286a   :  { %v3871_v27 = vmul.f32 %v3866_v47, %v3861_v38 }
0x286c   :  { %v8903_v53 = vadd.f32 %v3873_v10, %v3871_v27 }
0x286d   :  { %v3727_v3 = vpop.permute.xlu1 %3726 }
0x286e   :  { %v3732_v6 = vmul.f32 %v3727_v3, %v3722_v33  ;;  %v3868_v19 = vpop.permute.xlu0 %3867  ;;  %4018 = vrot.lane.b32.xlu1 %v8903_v53, %s7688_s19 }
0x286f   :  { %v3872_v23 = vmul.f32 %v3868_v19, %v3862_v40 }
0x2870   :  { %v8909_v61 = vadd.f32 %v3734_v26, %v3732_v6 }
0x2871   :  { %v8911_v51 = vadd.f32 %v3874_v31, %v3872_v23 }
0x2872   :  { %v3729_v28 = vpop.permute.xlu0 %3728  ;;  %3879 = vrot.lane.b32.xlu1 %v8909_v61, %s7688_s19 }
0x2873   :  { %v3733_v13 = vmul.f32 %v3729_v28, %v3723_v4  ;;  %4020 = vrot.lane.b32.xlu0 %v8911_v51, %s7688_s19 }
0x2875   :  { %v8918_v52 = vadd.f32 %v3735_v58, %v3733_v13 }
0x2877   :  { %3881 = vrot.lane.b32.xlu0 %v8918_v52, %s7688_s19 }
0x28e0   :  { %v8922_v11 = vpop.permute.xlu1 %4018 }
0x28e1   :  { %7025 = vmatprep.mubr.msk.f32.mxu1 %vm70_vm0, %v8922_v11 }
0x28e4   :  { %v8926_v30 = vpop.permute.xlu1 %3879 }
0x28e5   :  { %v8928_v35 = vpop.permute.xlu0 %4020  ;;  %7014 = vmatprep.mubr.msk.f32.mxu0 %vm70_vm0, %v8926_v30 }
0x28e6   :  { %7026 = vmatmul.mubr.msk.f32.vlgmr.msra.gmra.mrb[62].mxu1 %vm70_vm0, %v8928_v35 }
0x28e9   :  { %v8934_v5 = vpop.permute.xlu0 %3881 }
0x28ea   :  { %7015 = vmatmul.mubr.msk.f32.vlgmr.msra.gmra.mrb[46].mxu0 %vm70_vm0, %v8934_v5 }
0x29b9   :  { %v7027_v20 = vpop.f32.mrb[62].mxu1 }
0x29ba   :  { %v4116_v0 = vadd.f32 %v7027_v20, %v8352_v62  ;;  %v4092_v21 = vpop.f32.mrb[63].mxu1  ;;  %v4102_v33 = vadd.f32 %v7027_v20, %v8458_v34 }
0x29bb   :  { %v4115_v24 = vadd.f32 %v4092_v21, %v8352_v62  ;;  %v4101_v27 = vadd.f32 %v4092_v21, %v8460_v9 }
0x29bc   :  { %4121 = vrot.lane.b32.xlu0 %v4116_v0, %s7686_s12  ;;  %v6330_v40 = vmul.f32 -1.442695, %v4102_v33 }
0x29bd   :  { %4119 = vrot.lane.b32.xlu1 %v4115_v24, %s7686_s12  ;;  %v7016_v48 = vpop.f32.mrb[46].mxu0  ;;  %v6329_v3 = vmul.f32 -1.442695, %v4101_v27 }
0x29be   :  { %v3953_v38 = vpop.f32.mrb[47].mxu0  ;;  %v3977_v10 = vadd.f32 %v7016_v48, %v8350_v45  ;;  %v3963_v26 = vadd.f32 %v7016_v48, %v8317_v41 }
0x29bf   :  { %v3976_v47 = vadd.f32 %v3953_v38, %v8350_v45  ;;  %v3962_v62 = vadd.f32 %v3953_v38, %v8320_v12  ;;  %7619 = vpow2.f32 %v6329_v3 }
0x29c0   :  { %7621 = vpow2.f32 %v6330_v40  ;;  %v6326_v19 = vmul.f32 -1.442695, %v3963_v26 }
0x29c1   :  { %3980 = vrot.lane.b32.xlu1 %v3976_v47, %s7686_s12  ;;  %v6325_v6 = vmul.f32 -1.442695, %v3962_v62 }
0x29c3   :  { %7623 = vpow2.f32 %v6325_v6 }
0x29c4   :  { %7625 = vpow2.f32 %v6326_v19 }
0x29c5   :  { %3982 = vrot.lane.b32.xlu1 %v3977_v10, %s7686_s12 }
0x29c9   :  { %v7620_v31 = vpop.eup %7619 }
0x29ca   :  { %v7622_v45 = vpop.eup %7621  ;;  %v4109_v23 = vadd.f32 1.0, %v7620_v31 }
0x29cb   :  { %v4110_v28 = vadd.f32 1.0, %v7622_v45 }
0x29cc   :  { %7627 = vrcp.f32 %v4109_v23 }
0x29cd   :  { %v7624_v4 = vpop.eup %7623  ;;  %7629 = vrcp.f32 %v4110_v28 }
0x29ce   :  { %v3970_v58 = vadd.f32 1.0, %v7624_v4  ;;  %v7626_v13 = vpop.eup %7625 }
0x29cf   :  { %v3971_v20 = vadd.f32 1.0, %v7626_v13  ;;  %v6336_v13 = vld [vmem:[%s10112_s6 + $0x48] sm:$0xff] }
0x29d0   :  { %7631 = vrcp.f32 %v3970_v58 }
0x29d1   :  { %7633 = vrcp.f32 %v3971_v20 }
0x29d6   :  { %v7628_v0 = vpop.eup %7627 }
0x29d7   :  { %v7630_v38 = vpop.eup %7629 }
0x29da   :  { %v7632_v47 = vpop.eup %7631 }
0x29db   :  { %v7634_v3 = vpop.eup %7633 }
0x2a2e   :  { %v4122_v48 = vpop.permute.xlu0 %4121 }
0x2a2f   :  { %v4120_v21 = vpop.permute.xlu1 %4119  ;;  %v4126_v27 = vmul.f32 %v7630_v38, %v4122_v48 }
0x2a30   :  { %v4125_v24 = vmul.f32 %v7628_v0, %v4120_v21  ;;  %v6337_v21 = vld [vmem:[%s10112_s6 + $0x50] sm:$0xff] }
0x2a32   :  { %4129 = vrot.lane.b32.xlu0 %v4125_v24, %s7686_s12  ;;  %v6338_v24 = vld [vmem:[%s10112_s6 + $0x58] sm:$0xff] }
0x2a33   :  { %v3981_v10 = vpop.permute.xlu1 %3980  ;;  %v7320_v48 = vpack.c.bf16 %v6338_v24, %v6337_v21 }
0x2a34   :  { %v3986_v33 = vmul.f32 %v7632_v47, %v3981_v10  ;;  %v6331_v10 = vld [vmem:[%s10112_s6 + $0x20] sm:$0xff] }
0x2a36   :  { %3990 = vrot.lane.b32.xlu1 %v3986_v33, %s7686_s12  ;;  %4131 = vrot.lane.b32.xlu0 %v4126_v27, %s7686_s12  ;;  %v6332_v27 = vld [vmem:[%s10112_s6 + $0x28] sm:$0xff] }
0x2a37   :  { %v3983_v62 = vpop.permute.xlu1 %3982  ;;  %v7324_v33 = vpack.c.bf16 %v6332_v27, %v6331_v10  ;;  %v10131_v27 = vld [vmem:[#allocation10_spill] sm:$0xff] }
0x2a38   :  { %v3987_v40 = vmul.f32 %v7634_v3, %v3983_v62  ;;  %v4139_v62 = vsub.f32 1.0, %v7628_v0 }
0x2a3a   :  { %3992 = vrot.lane.b32.xlu0 %v3987_v40, %s7686_s12 }
0x2aa4   :  { %v4130_v26 = vpop.permute.xlu0 %4129 }
0x2aa5   :  { %v4135_v6 = vadd.f32 %v4130_v26, %v8460_v9  ;;  %v6335_v9 = vld [vmem:[%s10112_s6 + $0x40] sm:$0xff]  ;;  %v4151_v26 = vmul.f32 %v7628_v0, %v8903_v53  ;;  %v4013_v53 = vmul.f32 %v7634_v3, %v8918_v52 }
0x2aa7   :  { %7635 = vtanh.f32 %v4135_v6 }
0x2aa8   :  { %v3991_v19 = vpop.permute.xlu1 %3990  ;;  %v4132_v31 = vpop.permute.xlu0 %4131 }
0x2aa9   :  { %v3996_v45 = vadd.f32 %v3991_v19, %v8320_v12  ;;  %v4136_v23 = vadd.f32 %v4132_v31, %v8458_v34  ;;  %v7316_v12 = vpack.c.bf16 %v6336_v13, %v6335_v9  ;;  %v4000_v31 = vsub.f32 1.0, %v7632_v47 }
0x2aaa   :  { %v4152_v9 = vmul.f32 %v7630_v38, %v8911_v51  ;;  %v6333_v51 = vld [vmem:[%s10112_s6 + $0x30] sm:$0xff] }
0x2aab   :  { %7637 = vtanh.f32 %v3996_v45  ;;  %7317 = vmatprep.subr.bf16.mxu0 %v7316_v12 }
0x2aac   :  { %7639 = vtanh.f32 %v4136_v23  ;;  %v3993_v4 = vpop.permute.xlu0 %3992  ;;  %7319 = vmatpush3.bf16.msra.mxu0 %v7316_v12  ;;  %v4140_v23 = vsub.f32 1.0, %v7630_v38  ;;  %v6334_v38 = vld [vmem:[%s10112_s6 + $0x38] sm:$0xff] }
0x2aad   :  { %v3997_v28 = vadd.f32 %v3993_v4, %v8317_v41  ;;  %7321 = vmatprep.subr.bf16.mxu0 %v7320_v48  ;;  %v4012_v4 = vmul.f32 %v7632_v47, %v8909_v61  ;;  %v7328_v47 = vpack.c.bf16 %v6334_v38, %v6333_v51 }
0x2aaf   :  { %7641 = vtanh.f32 %v3997_v28 }
0x2ab0   :  { %7323 = vmatpush3.bf16.msra.mxu0 %v7320_v48  ;;  %v10130_v48 = vld [vmem:[#allocation9_spill] sm:$0xff] }
0x2ab1   :  { %v7636_v58 = vpop.eup %7635  ;;  %7325 = vmatprep.subr.bf16.mxu0 %v7324_v33 }
0x2ab2   :  { %4143 = vrot.lane.b32.xlu1 %v7636_v58, %s7688_s19 }
0x2ab5   :  { %v7638_v20 = vpop.eup %7637 }
0x2ab6   :  { %v7640_v34 = vpop.eup %7639  ;;  %4004 = vrot.lane.b32.xlu1 %v7638_v20, %s7688_s19 }
0x2ab7   :  { %4145 = vrot.lane.b32.xlu0 %v7640_v34, %s7688_s19  ;;  %v4001_v34 = vsub.f32 1.0, %v7634_v3  ;;  %v7652_v3 = vld [vmem:[%s10106_s0 + $0x40] sm:$0xff] }
0x2ab8   :  { %v4483_v10 = vadd.f32 %v7652_v3, %v10130_v48 }
0x2ab9   :  { %v7642_v41 = vpop.eup %7641 }
0x2abb   :  { %4006 = vrot.lane.b32.xlu0 %v7642_v41, %s7688_s19 }
0x2b24   :  { %v4144_v40 = vpop.permute.xlu1 %4143 }
0x2b25   :  { %v4149_v6 = vmul.f32 %v4144_v40, %v4139_v62  ;;  %v10132_v62 = vld [vmem:[#allocation11_spill] sm:$0xff] }
0x2b27   :  { %v4153_v19 = vadd.f32 %v4151_v26, %v4149_v6  ;;  %v10133_v6 = vld [vmem:[#allocation12_spill] sm:$0xff] }
0x2b28   :  { %v4005_v45 = vpop.permute.xlu1 %4004 }
0x2b29   :  { %v4010_v28 = vmul.f32 %v4005_v45, %v4000_v31  ;;  %v4146_v58 = vpop.permute.xlu0 %4145  ;;  %4167 = vrot.lane.b32.xlu1 %v4153_v19, %s7688_s19  ;;  %v7656_v31 = vld [vmem:[%s10106_s0 + $0x60] sm:$0xff] }
0x2b2a   :  { %v4150_v13 = vmul.f32 %v4146_v58, %v4140_v23  ;;  %v10134_v45 = vld [vmem:[#allocation13_spill] sm:$0xff] }
0x2b2b   :  { %v4014_v12 = vadd.f32 %v4012_v4, %v4010_v28  ;;  %v4487_v23 = vadd.f32 %v7656_v31, %v10134_v45 }
0x2b2c   :  { %v4154_v20 = vadd.f32 %v4152_v9, %v4150_v13  ;;  %v7657_v9 = vld [vmem:[%s10106_s0 + $0x78] sm:$0xff]  ;;  %v10135_v13 = vld [vmem:[#allocation14_spill] sm:$0xff] }
0x2b2d   :  { %v4007_v41 = vpop.permute.xlu0 %4006  ;;  %4322 = vrot.lane.b32.xlu1 %v4014_v12, %s7688_s19  ;;  %v4490_v12 = vadd.f32 %v7657_v9, %v10135_v13 }
0x2b2e   :  { %v4011_v0 = vmul.f32 %v4007_v41, %v4001_v34  ;;  %4169 = vrot.lane.b32.xlu0 %v4154_v20, %s7688_s19  ;;  %v7658_v20 = vld [vmem:[%s10106_s0 + $0x70] sm:$0xff] }
0x2b2f   :  { %v10136_v34 = vld [vmem:[#allocation15_spill] sm:$0xff] }
0x2b30   :  { %v4015_v21 = vadd.f32 %v4013_v53, %v4011_v0  ;;  %v4489_v41 = vadd.f32 %v7658_v20, %v10136_v34 }
0x2b32   :  { %4324 = vrot.lane.b32.xlu0 %v4015_v21, %s7688_s19 }
0x2b9b   :  { %v4168_v61 = vpop.permute.xlu1 %4167 }
0x2b9c   :  { %7036 = vmatprep.mubr.msk.f32.mxu0 %vm70_vm0, %v4168_v61 }
0x2ba0   :  { %v4170_v24 = vpop.permute.xlu0 %4169 }
0x2ba1   :  { %7037 = vmatmul.mubr.msk.f32.vlgmr.msra.gmra.mrb[48].mxu0 %vm70_vm0, %v4170_v24 }
0x2ba2   :  { %7039 = vmatprep.mubr.msk.f32.mxu0 %vm70_vm0, %v8922_v11  ;;  %7327 = vmatpush3.bf16.msra.mxu0 %v7324_v33  ;;  %v7650_v11 = vld [vmem:[%s10106_s0 + $0x30] sm:$0xff] }
0x2ba3   :  { %7329 = vmatprep.subr.bf16.mxu0 %v7328_v47 }
0x2ba5   :  { %7040 = vmatmul.mubr.msk.f32.gmra.mrb[50].mxu0 %vm70_vm0, %v8928_v35  ;;  %v7651_v35 = vld [vmem:[%s10106_s0 + $0x48] sm:$0xff] }
0x2ba6   :  { %7042 = vmatprep.mubr.msk.f32.mxu0 %vm70_vm0, %v8856_v1  ;;  %7331 = vmatpush3.bf16.msra.mxu0 %v7328_v47  ;;  %v7648_v1 = vld [vmem:[%s10106_s0 + $0x20] sm:$0xff] }
0x2ba9   :  { %7043 = vmatmul.mubr.msk.f32.gmra.mrb[52].mxu0 %vm70_vm0, %v8862_v44 }
0x2baa   :  { %7045 = vmatprep.mubr.msk.f32.mxu0 %vm70_vm0, %v8788_v29  ;;  %v10127_v29 = vld [vmem:[#allocation6_spill] sm:$0xff] }
0x2bad   :  { %7046 = vmatmul.mubr.msk.f32.gmra.mrb[54].mxu0 %vm70_vm0, %v8794_v36  ;;  %v10128_v36 = vld [vmem:[#allocation7_spill] sm:$0xff] }
0x2bae   :  { %7048 = vmatprep.mubr.msk.f32.mxu0 %vm70_vm0, %v8720_v46 }
0x2bb1   :  { %7049 = vmatmul.mubr.msk.f32.gmra.mrb[56].mxu0 %vm70_vm0, %v8726_v57  ;;  %v10126_v57 = vld [vmem:[#allocation5_spill] sm:$0xff] }
0x2bb2   :  { %7051 = vmatprep.mubr.msk.f32.mxu0 %vm70_vm0, %v8652_v2  ;;  %v7644_v2 = vld [vmem:[%s10106_s0] sm:$0xff] }
0x2bb5   :  { %7052 = vmatmul.mubr.msk.f32.gmra.mrb[58].mxu0 %vm70_vm0, %v8658_v8 }
0x2bb6   :  { %7054 = vmatprep.mubr.msk.f32.mxu0 %vm70_vm0, %v8584_v15  ;;  %v4520_v15 = vlaneseq }
0x2bb9   :  { %7055 = vmatmul.mubr.msk.f32.gmra.mrb[60].mxu0 %vm70_vm0, %v8590_v22 }
0x2bba   :  { %7057 = vmatprep.mubr.msk.f32.mxu0 %vm70_vm0, %v8528_v49  ;;  %v7689_v49 = vmov 1966171168  }
0x2bbd   :  { %7058 = vmatmul.mubr.msk.f32.gmra.mrb[62].mxu0 %vm70_vm0, %v8530_v54  ;;  %v4518_v54 = vunpack.c.l.s4 %v7689_v49 }
0x2bbe   :  { %7068 = vmatprep.mubr.msk.f32.mxu0 %vm70_vm0, %v8514_v55  ;;  %v4323_v55 = vpop.permute.xlu1 %4322 }
0x2bbf   :  { %v4519_v8 = vunpack.c.0.s8 %v4518_v54 }
0x2bc1   :  { %7069 = vmatmul.mubr.msk.f32.vlgmr.msra.gmra.mrb[48].mxu0 %vm70_vm0, %v8516_v7  ;;  %v4325_v7 = vpop.permute.xlu0 %4324 }
0x2bc2   :  { %7071 = vmatprep.mubr.msk.f32.mxu0 %vm70_vm0, %v8588_v25  ;;  %v7643_v25 = vld [vmem:[%s10106_s0 + $0x8] sm:$0xff] }
0x2bc3   :  { %v4476_v22 = vadd.f32 %v7643_v25, %v8056_v32 }
0x2bc5   :  { %7072 = vmatmul.mubr.msk.f32.gmra.mrb[50].mxu0 %vm70_vm0, %v8598_v43  ;;  %v6371_v43 = vld [vmem:[%s10113_s7] ss:$0 sm:$0xff] }
0x2bc6   :  { %7074 = vmatprep.mubr.msk.f32.mxu0 %vm70_vm0, %v8656_v39  ;;  %v4475_v39 = vadd.f32 %v7644_v2, %v8058_v37  ;;  %v9065_v46 = vadd.f32 %v6371_v43, %v4476_v22  ;;  %v7647_v37 = vld [vmem:[%s10106_s0 + $0x28] sm:$0xff]  ;;  %v9141_v38 = vadd.f32 %v6371_v43, %v4483_v10  ;;  %v9149_v49 = vadd.f32 %v6371_v43, %v4487_v23 }
0x2bc7   :  { %v9152_v22 = vadd.f32 %v6371_v43, %v4490_v12  ;;  %v9154_v2 = vadd.f32 %v6371_v43, %v4489_v41 }
0x2bc8   :  { %v9107_v26 = vadd.f32 %v6371_v43, %v4475_v39 }
0x2bc9   :  { %7075 = vmatmul.mubr.msk.f32.gmra.mrb[52].mxu0 %vm70_vm0, %v8666_v42  ;;  %v4521_v42 = vshrl.u32 %v4520_v15, 7 }
0x2bca   :  { %7077 = vmatprep.mubr.msk.f32.mxu0 %vm70_vm0, %v8724_v56  ;;  %v7645_v56 = vld [vmem:[%s10106_s0 + $0x18] sm:$0xff] }
0x2bcb   :  { %v4478_v32 = vadd.f32 %v7645_v56, %v10126_v57  ;;  %v9117_v4 = vsub.s32 %v4519_v8, %v4521_v42 }
0x2bcd   :  { %7078 = vmatmul.mubr.msk.f32.gmra.mrb[54].mxu0 %vm70_vm0, %v8734_v50  ;;  %v7646_v50 = vld [vmem:[%s10106_s0 + $0x10] sm:$0xff]  ;;  %v9119_v28 = vadd.f32 %v6371_v43, %v4478_v32 }
0x2bce   :  { %7080 = vmatprep.mubr.msk.f32.mxu0 %vm70_vm0, %v8792_v60  ;;  %v4477_v60 = vadd.f32 %v7646_v50, %v10127_v29  ;;  %v9159_v50 = vsub.s32 0, %v4521_v42 }
0x2bd0   :  { %v9121_v58 = vadd.f32 %v6371_v43, %v4477_v60 }
0x2bd1   :  { %7081 = vmatmul.mubr.msk.f32.gmra.mrb[56].mxu0 %vm70_vm0, %v8802_v59  ;;  %v4480_v59 = vadd.f32 %v7647_v37, %v10128_v36 }
0x2bd2   :  { %7083 = vmatprep.mubr.msk.f32.mxu0 %vm70_vm0, %v8860_v63  ;;  %v10129_v63 = vld [vmem:[#allocation8_spill] sm:$0xff] }
0x2bd3   :  { %v4479_v44 = vadd.f32 %v7648_v1, %v10129_v63  ;;  %v9131_v53 = vadd.f32 %v6371_v43, %v4480_v59 }
0x2bd5   :  { %7084 = vmatmul.mubr.msk.f32.gmra.mrb[58].mxu0 %vm70_vm0, %v8870_v14  ;;  %v7649_v14 = vld [vmem:[%s10106_s0 + $0x38] sm:$0xff]  ;;  %v9133_v0 = vadd.f32 %v6371_v43, %v4479_v44 }
0x2bd6   :  { %7086 = vmatprep.mubr.msk.f32.mxu0 %vm70_vm0, %v8926_v30  ;;  %v4482_v52 = vadd.f32 %v7649_v14, %v8435_v16  ;;  %v4481_v30 = vadd.f32 %v7650_v11, %v8437_v17  ;;  %v7653_v16 = vld [vmem:[%s10106_s0 + $0x58] sm:$0xff]  ;;  %v7654_v17 = vld [vmem:[%s10106_s0 + $0x50] sm:$0xff] }
0x2bd7   :  { %v4486_v33 = vadd.f32 %v7653_v16, %v10131_v27  ;;  %v4485_v40 = vadd.f32 %v7654_v17, %v10132_v62 }
0x2bd8   :  { %v9135_v21 = vadd.f32 %v6371_v43, %v4482_v52  ;;  %v9137_v61 = vadd.f32 %v6371_v43, %v4481_v30 }
0x2bd9   :  { %7087 = vmatmul.mubr.msk.f32.gmra.mrb[60].mxu0 %vm70_vm0, %v8934_v5  ;;  %v4484_v5 = vadd.f32 %v7651_v35, %v8439_v18  ;;  %v7655_v18 = vld [vmem:[%s10106_s0 + $0x68] sm:$0xff]  ;;  %v9143_v47 = vadd.f32 %v6371_v43, %v4486_v33  ;;  %v9145_v24 = vadd.f32 %v6371_v43, %v4485_v40 }
0x2bda   :  { %7089 = vmatprep.mubr.msk.f32.mxu0 %vm70_vm0, %v4323_v55  ;;  %v4488_v19 = vadd.f32 %v7655_v18, %v10133_v6 }
0x2bdb   :  { %v9139_v51 = vadd.f32 %v6371_v43, %v4484_v5 }
0x2bdd   :  { %7090 = vmatmul.mubr.msk.f32.gmra.mrb[62].mxu0 %vm70_vm0, %v4325_v7  ;;  %v9147_v7 = vadd.f32 %v6371_v43, %v4488_v19 }
0x2c94   :  { %v7070_v55 = vpop.f32.mrb[48].mxu0 }
0x2c95   :  { %v4565_v54 = vcombine.high %v7070_v55, %v7070_v55  ;;  %v4572_v15 = vrot.slane %v7070_v55, %v9117_v4  ;;  %v4396_v25 = vpop.f32.mrb[49].mxu0 }
0x2c96   :  { %v4516_v39 = vcombine.high %v4396_v25, %v4396_v25  ;;  %v4523_v8 = vrot.slane %v4396_v25, %v9117_v4 }
0x2c97   :  { %v4579_v56 = vrot.slane %v4565_v54, %v9117_v4  ;;  %v4580_v57 = vcombine.high %v4572_v15, %v4572_v15  ;;  %v4588_v32 = vrot.slane %v4572_v15, %v9117_v4 }
0x2c98   :  { %v4530_v29 = vrot.slane %v4516_v39, %v9117_v4  ;;  %v4531_v60 = vcombine.high %v4523_v8, %v4523_v8  ;;  %v4539_v37 = vrot.slane %v4523_v8, %v9117_v4  ;;  %v9163_v36 = vpop.f32.mrb[50].mxu0 }
0x2c99   :  { %v4581_v43 = vcombine.high %v4579_v56, %v4579_v56  ;;  %v4595_v59 = vrot.slane %v4579_v56, %v9117_v4  ;;  %v4602_v1 = vrot.slane %v4580_v57, %v9117_v4  ;;  %v4610_v63 = vcombine.high %v4588_v32, %v4588_v32  ;;  %v4406_v44 = vpop.f32.mrb[51].mxu0 }
0x2c9a   :  { %v4638_v14 = vadd.f32 %v4588_v32, %v9141_v38  ;;  %v4532_v52 = vcombine.high %v4530_v29, %v4530_v29  ;;  %v4546_v42 = vrot.slane %v4530_v29, %v9117_v4  ;;  %v4553_v11 = vrot.slane %v4531_v60, %v9117_v4 }
0x2c9b   :  { %v4609_v30 = vrot.slane %v4581_v43, %v9117_v4  ;;  %v4611_v35 = vcombine.high %v4595_v59, %v4595_v59  ;;  %v4612_v5 = vcombine.high %v4602_v1, %v4602_v1  ;;  %v4639_v3 = vadd.f32 %v4602_v1, %v9139_v51 }
0x2c9c   :  { %v4640_v48 = vadd.f32 %v4610_v63, %v9145_v24  ;;  %v4642_v10 = vadd.f32 %v4595_v59, %v9149_v49  ;;  %4655 = vst.msk [vmem:[%s10114_s8 + $0x40] sm:$0x1] %vm4646_vm1, %v4638_v14  ;;  %v4560_v16 = vrot.slane %v4532_v52, %v9117_v4  ;;  %v4561_v27 = vcombine.high %v4539_v37, %v4539_v37  ;;  %v7076_v33 = vpop.f32.mrb[52].mxu0 }
0x2c9d   :  { %v4613_v17 = vcombine.high %v4609_v30, %v4609_v30  ;;  %v4641_v62 = vadd.f32 %v4612_v5, %v9143_v47  ;;  %v4643_v40 = vadd.f32 %v4609_v30, %v9147_v7  ;;  %v4644_v18 = vadd.f32 %v4611_v35, %v9154_v2  ;;  %4656 = vst.msk [vmem:[%s10114_s8 + $0x48] sm:$0x1] %vm4646_vm1, %v4639_v3  ;;  %v9186_v6 = vpop.f32.mrb[53].mxu0 }
0x2c9e   :  { %4657 = vst.msk [vmem:[%s10114_s8 + $0x50] sm:$0x1] %vm4646_vm1, %v4640_v48  ;;  %4659 = vst.msk [vmem:[%s10114_s8 + $0x60] sm:$0x1] %vm4646_vm1, %v4642_v10  ;;  %v4562_v19 = vcombine.high %v4546_v42, %v4546_v42  ;;  %v4563_v31 = vcombine.high %v4553_v11, %v4553_v11  ;;  %v4564_v45 = vcombine.high %v4560_v16, %v4560_v16 }
0x2c9f   :  { %v4630_v23 = vadd.f32 %v4539_v37, %v9107_v26  ;;  %v4645_v9 = vadd.f32 %v4613_v17, %v9152_v22  ;;  %4658 = vst.msk [vmem:[%s10114_s8 + $0x58] sm:$0x1] %vm4646_vm1, %v4641_v62  ;;  %4660 = vst.msk [vmem:[%s10114_s8 + $0x68] sm:$0x1] %vm4646_vm1, %v4643_v40  ;;  %v4631_v13 = vadd.f32 %v4553_v11, %v9065_v46 }
0x2ca0   :  { %4661 = vst.msk [vmem:[%s10114_s8 + $0x70] sm:$0x1] %vm4646_vm1, %v4644_v18  ;;  %v4632_v12 = vadd.f32 %v4561_v27, %v9121_v58  ;;  %v4634_v20 = vadd.f32 %v4546_v42, %v9133_v0  ;;  %v4633_v34 = vadd.f32 %v4563_v31, %v9119_v28  ;;  %v4635_v41 = vadd.f32 %v4560_v16, %v9131_v53  ;;  %v9221_v15 = vpop.f32.mrb[54].mxu0 }
0x2ca1   :  { %v4636_v55 = vadd.f32 %v4562_v19, %v9137_v61  ;;  %v4637_v54 = vadd.f32 %v4564_v45, %v9135_v21  ;;  %4647 = vst.msk [vmem:[%s10114_s8] sm:$0x1] %vm4646_vm1, %v4630_v23  ;;  %4662 = vst.msk [vmem:[%s10114_s8 + $0x78] sm:$0x1] %vm4646_vm1, %v4645_v9  ;;  %v4714_v25 = vcombine.high %v9163_v36, %v9163_v36  ;;  %v9244_v57 = vpop.f32.mrb[55].mxu0 }
0x2ca2   :  { %4648 = vst.msk [vmem:[%s10114_s8 + $0x8] sm:$0x1] %vm4646_vm1, %v4631_v13  ;;  %4649 = vst.msk [vmem:[%s10114_s8 + $0x10] sm:$0x1] %vm4646_vm1, %v4632_v12  ;;  %v4721_v39 = vrot.slane %v9163_v36, %v9117_v4  ;;  %v4665_v8 = vcombine.high %v4406_v44, %v4406_v44  ;;  %v4672_v56 = vrot.slane %v4406_v44, %v9117_v4 }
0x2ca3   :  { %4651 = vst.msk [vmem:[%s10114_s8 + $0x20] sm:$0x1] %vm4646_vm1, %v4634_v20  ;;  %4650 = vst.msk [vmem:[%s10114_s8 + $0x18] sm:$0x1] %vm4646_vm1, %v4633_v34  ;;  %v4927_v32 = vcombine.high %v7076_v33, %v7076_v33  ;;  %v9263_v29 = vrot.slane %v7076_v33, %v9117_v4  ;;  %v4878_v60 = vcombine.high %v9186_v6, %v9186_v6 }
0x2ca4   :  { %4652 = vst.msk [vmem:[%s10114_s8 + $0x28] sm:$0x1] %vm4646_vm1, %v4635_v41  ;;  %4653 = vst.msk [vmem:[%s10114_s8 + $0x30] sm:$0x1] %vm4646_vm1, %v4636_v55  ;;  %v9269_v37 = vrot.slane %v9186_v6, %v9117_v4  ;;  %v4728_v36 = vrot.slane %v4714_v25, %v9117_v4  ;;  %v4729_v43 = vcombine.high %v4721_v39, %v4721_v39  ;;  %v9280_v42 = vpop.f32.mrb[56].mxu0 }
0x2ca5   :  { %4654 = vst.msk [vmem:[%s10114_s8 + $0x38] sm:$0x1] %vm4646_vm1, %v4637_v54  ;;  %v4737_v59 = vrot.slane %v4721_v39, %v9117_v4  ;;  %v4679_v1 = vrot.slane %v4665_v8, %v9117_v4  ;;  %v4680_v63 = vcombine.high %v4672_v56, %v4672_v56  ;;  %v4688_v44 = vrot.slane %v4672_v56, %v9117_v4  ;;  %v9284_v3 = vpop.f32.mrb[57].mxu0 }
0x2ca6   :  { %v9276_v14 = vrot.slane %v4927_v32, %v9117_v4  ;;  %v4942_v52 = vcombine.high %v9263_v29, %v9263_v29  ;;  %v4730_v11 = vcombine.high %v4728_v36, %v4728_v36  ;;  %v4744_v30 = vrot.slane %v4728_v36, %v9117_v4 }
0x2ca7   :  { %v4751_v35 = vrot.slane %v4729_v43, %v9117_v4  ;;  %v4759_v5 = vcombine.high %v4737_v59, %v4737_v59  ;;  %v4798_v48 = vrot.slane %v4737_v59, %v9159_v50  ;;  %v4681_v10 = vcombine.high %v4679_v1, %v4679_v1 }
0x2ca8   :  { %v4695_v16 = vrot.slane %v4679_v1, %v9117_v4  ;;  %v4702_v27 = vrot.slane %v4680_v63, %v9117_v4  ;;  %v4758_v33 = vrot.slane %v4730_v11, %v9117_v4  ;;  %v4760_v17 = vcombine.high %v4744_v30, %v4744_v30  ;;  %v9295_v23 = vpop.f32.mrb[58].mxu0 }
0x2ca9   :  { %v4761_v62 = vcombine.high %v4751_v35, %v4751_v35  ;;  %v4802_v40 = vrot.slane %v4751_v35, %v9159_v50  ;;  %v4806_v18 = vrot.slane %v4759_v5, %v9159_v50  ;;  %v4814_v19 = vrot.slane %v4744_v30, %v9159_v50  ;;  %v9300_v34 = vpop.f32.mrb[59].mxu0 }
0x2caa   :  { %v4851_v31 = vadd.f32 %v4798_v48, %v9141_v38  ;;  %v4709_v45 = vrot.slane %v4681_v10, %v9117_v4  ;;  %v4762_v9 = vcombine.high %v4758_v33, %v4758_v33  ;;  %v4818_v12 = vrot.slane %v4758_v33, %v9159_v50 }
0x2cab   :  { %v4810_v13 = vrot.slane %v4761_v62, %v9159_v50  ;;  %v4822_v20 = vrot.slane %v4760_v17, %v9159_v50  ;;  %v4852_v41 = vadd.f32 %v4802_v40, %v9139_v51  ;;  %v4853_v55 = vadd.f32 %v4806_v18, %v9145_v24 }
0x2cac   :  { %v4855_v54 = vadd.f32 %v4814_v19, %v9149_v49  ;;  %4868 = vst.msk [vmem:[%s10114_s8 + $0x40] sm:$0x2] %vm4859_vm2, %v4851_v31  ;;  %v4710_v25 = vcombine.high %v4688_v44, %v4688_v44  ;;  %v4826_v39 = vrot.slane %v4762_v9, %v9159_v50  ;;  %v4856_v56 = vadd.f32 %v4818_v12, %v9147_v7  ;;  %v9326_v63 = vpop.f32.mrb[60].mxu0 }
0x2cad   :  { %v4854_v8 = vadd.f32 %v4810_v13, %v9143_v47  ;;  %v4857_v32 = vadd.f32 %v4822_v20, %v9154_v2  ;;  %4869 = vst.msk [vmem:[%s10114_s8 + $0x48] sm:$0x2] %vm4859_vm2, %v4852_v41  ;;  %4870 = vst.msk [vmem:[%s10114_s8 + $0x50] sm:$0x2] %vm4859_vm2, %v4853_v55  ;;  %v4711_v36 = vcombine.high %v4695_v16, %v4695_v16  ;;  %v9344_v5 = vpop.f32.mrb[61].mxu0 }
0x2cae   :  { %4872 = vst.msk [vmem:[%s10114_s8 + $0x60] sm:$0x2] %vm4859_vm2, %v4855_v54  ;;  %v4712_v43 = vcombine.high %v4702_v27, %v4702_v27  ;;  %v4713_v59 = vcombine.high %v4709_v45, %v4709_v45  ;;  %v4766_v1 = vrot.slane %v4688_v44, %v9159_v50  ;;  %v4858_v11 = vadd.f32 %v4826_v39, %v9152_v22 }
0x2caf   :  { %4871 = vst.msk [vmem:[%s10114_s8 + $0x58] sm:$0x2] %vm4859_vm2, %v4854_v8  ;;  %4873 = vst.msk [vmem:[%s10114_s8 + $0x68] sm:$0x2] %vm4859_vm2, %v4856_v56  ;;  %v4770_v44 = vrot.slane %v4702_v27, %v9159_v50  ;;  %v4774_v30 = vrot.slane %v4710_v25, %v9159_v50  ;;  %v4782_v35 = vrot.slane %v4695_v16, %v9159_v50 }
0x2cb0   :  { %4874 = vst.msk [vmem:[%s10114_s8 + $0x70] sm:$0x2] %vm4859_vm2, %v4857_v32  ;;  %v4778_v48 = vrot.slane %v4712_v43, %v9159_v50  ;;  %v4786_v10 = vrot.slane %v4709_v45, %v9159_v50  ;;  %v4790_v33 = vrot.slane %v4711_v36, %v9159_v50  ;;  %v4794_v17 = vrot.slane %v4713_v59, %v9159_v50  ;;  %v9362_v9 = vpop.f32.mrb[62].mxu0 }
0x2cb1   :  { %4875 = vst.msk [vmem:[%s10114_s8 + $0x78] sm:$0x2] %vm4859_vm2, %v4858_v11  ;;  %v4843_v27 = vadd.f32 %v4766_v1, %v9107_v26  ;;  %v4844_v16 = vadd.f32 %v4770_v44, %v9065_v46  ;;  %v4845_v62 = vadd.f32 %v4774_v30, %v9121_v58  ;;  %v4847_v40 = vadd.f32 %v4782_v35, %v9133_v0  ;;  %v9390_v55 = vpop.f32.mrb[63].mxu0 }
0x2cb2   :  { %v4846_v18 = vadd.f32 %v4778_v48, %v9119_v28  ;;  %v4848_v19 = vadd.f32 %v4786_v10, %v9131_v53  ;;  %v4849_v31 = vadd.f32 %v4790_v33, %v9137_v61  ;;  %v4850_v45 = vadd.f32 %v4794_v17, %v9135_v21 }
0x2cb3   :  { %4860 = vst.msk [vmem:[%s10114_s8] sm:$0x2] %vm4859_vm2, %v4843_v27  ;;  %4861 = vst.msk [vmem:[%s10114_s8 + $0x8] sm:$0x2] %vm4859_vm2, %v4844_v16  ;;  %v4943_v13 = vcombine.high %v9276_v14, %v9276_v14  ;;  %v4950_v12 = vrot.slane %v9263_v29, %v9117_v4  ;;  %v4957_v20 = vrot.slane %v9276_v14, %v9117_v4 }
0x2cb4   :  { %4862 = vst.msk [vmem:[%s10114_s8 + $0x10] sm:$0x2] %vm4859_vm2, %v4845_v62  ;;  %4864 = vst.msk [vmem:[%s10114_s8 + $0x20] sm:$0x2] %vm4859_vm2, %v4847_v40  ;;  %v4964_v41 = vrot.slane %v4942_v52, %v9117_v4  ;;  %v4892_v29 = vrot.slane %v4878_v60, %v9117_v4  ;;  %v4893_v14 = vcombine.high %v9269_v37, %v9269_v37 }
0x2cb5   :  { %4863 = vst.msk [vmem:[%s10114_s8 + $0x18] sm:$0x2] %vm4859_vm2, %v4846_v18  ;;  %4865 = vst.msk [vmem:[%s10114_s8 + $0x28] sm:$0x2] %vm4859_vm2, %v4848_v19  ;;  %v4901_v52 = vrot.slane %v9269_v37, %v9117_v4  ;;  %v5140_v54 = vcombine.high %v9221_v15, %v9221_v15  ;;  %v4971_v25 = vrot.slane %v4943_v13, %v9117_v4 }
0x2cb6   :  { %4866 = vst.msk [vmem:[%s10114_s8 + $0x30] sm:$0x2] %vm4859_vm2, %v4849_v31  ;;  %4867 = vst.msk [vmem:[%s10114_s8 + $0x38] sm:$0x2] %vm4859_vm2, %v4850_v45  ;;  %v4972_v39 = vcombine.high %v4950_v12, %v4950_v12  ;;  %v4973_v8 = vcombine.high %v4957_v20, %v4957_v20  ;;  %v4974_v56 = vcombine.high %v4964_v41, %v4964_v41 }
0x2cb7   :  { %v5011_v32 = vrot.slane %v4950_v12, %v9159_v50  ;;  %v5015_v36 = vrot.slane %v4964_v41, %v9159_v50  ;;  %v5027_v6 = vrot.slane %v4957_v20, %v9159_v50  ;;  %v4894_v60 = vcombine.high %v4892_v29, %v4892_v29 }
0x2cb8   :  { %v4975_v43 = vcombine.high %v4971_v25, %v4971_v25  ;;  %v5019_v59 = vrot.slane %v4972_v39, %v9159_v50  ;;  %v5023_v37 = vrot.slane %v4974_v56, %v9159_v50  ;;  %v5031_v1 = vrot.slane %v4971_v25, %v9159_v50 }
0x2cb9   :  { %v5035_v11 = vrot.slane %v4973_v8, %v9159_v50  ;;  %v5064_v44 = vadd.f32 %v5011_v32, %v9141_v38  ;;  %v5065_v30 = vadd.f32 %v5015_v36, %v9139_v51  ;;  %v5068_v35 = vadd.f32 %v5027_v6, %v9149_v49 }
0x2cba   :  { %v5039_v48 = vrot.slane %v4975_v43, %v9159_v50  ;;  %v5066_v10 = vadd.f32 %v5019_v59, %v9145_v24  ;;  %v5067_v33 = vadd.f32 %v5023_v37, %v9143_v47  ;;  %v5069_v17 = vadd.f32 %v5031_v1, %v9147_v7 }
0x2cbb   :  { %v5070_v27 = vadd.f32 %v5035_v11, %v9154_v2  ;;  %5081 = vst.msk [vmem:[%s10114_s8 + $0x40] sm:$0x4] %vm5072_vm3, %v5064_v44  ;;  %5082 = vst.msk [vmem:[%s10114_s8 + $0x48] sm:$0x4] %vm5072_vm3, %v5065_v30  ;;  %v4908_v16 = vrot.slane %v4892_v29, %v9117_v4  ;;  %v4915_v62 = vrot.slane %v4893_v14, %v9117_v4 }
0x2cbc   :  { %5085 = vst.msk [vmem:[%s10114_s8 + $0x60] sm:$0x4] %vm5072_vm3, %v5068_v35  ;;  %v4922_v40 = vrot.slane %v4894_v60, %v9117_v4  ;;  %v5071_v18 = vadd.f32 %v5039_v48, %v9152_v22  ;;  %5083 = vst.msk [vmem:[%s10114_s8 + $0x50] sm:$0x4] %vm5072_vm3, %v5066_v10  ;;  %v4923_v19 = vcombine.high %v4901_v52, %v4901_v52 }
0x2cbd   :  { %5084 = vst.msk [vmem:[%s10114_s8 + $0x58] sm:$0x4] %vm5072_vm3, %v5067_v33  ;;  %5086 = vst.msk [vmem:[%s10114_s8 + $0x68] sm:$0x4] %vm5072_vm3, %v5069_v17  ;;  %v4979_v31 = vrot.slane %v4901_v52, %v9159_v50  ;;  %v5147_v45 = vrot.slane %v9221_v15, %v9117_v4  ;;  %v4924_v13 = vcombine.high %v4908_v16, %v4908_v16 }
0x2cbe   :  { %5087 = vst.msk [vmem:[%s10114_s8 + $0x70] sm:$0x4] %vm5072_vm3, %v5070_v27  ;;  %v4925_v12 = vcombine.high %v4915_v62, %v4915_v62  ;;  %v4926_v20 = vcombine.high %v4922_v40, %v4922_v40  ;;  %v4983_v41 = vrot.slane %v4915_v62, %v9159_v50  ;;  %5088 = vst.msk [vmem:[%s10114_s8 + $0x78] sm:$0x4] %vm5072_vm3, %v5071_v18 }
0x2cbf   :  { %v4987_v29 = vrot.slane %v4923_v19, %v9159_v50  ;;  %v4995_v14 = vrot.slane %v4908_v16, %v9159_v50  ;;  %v4999_v15 = vrot.slane %v4922_v40, %v9159_v50  ;;  %v5056_v52 = vadd.f32 %v4979_v31, %v9107_v26 }
0x2cc0   :  { %v4991_v25 = vrot.slane %v4925_v12, %v9159_v50  ;;  %v5003_v39 = vrot.slane %v4924_v13, %v9159_v50  ;;  %v5007_v8 = vrot.slane %v4926_v20, %v9159_v50  ;;  %v5057_v56 = vadd.f32 %v4983_v41, %v9065_v46 }
0x2cc1   :  { %v5058_v32 = vadd.f32 %v4987_v29, %v9121_v58  ;;  %v5060_v36 = vadd.f32 %v4995_v14, %v9133_v0  ;;  %v5061_v6 = vadd.f32 %v4999_v15, %v9131_v53  ;;  %5073 = vst.msk [vmem:[%s10114_s8] sm:$0x4] %vm5072_vm3, %v5056_v52  ;;  %v5154_v60 = vrot.slane %v5140_v54, %v9117_v4 }
0x2cc2   :  { %v5059_v43 = vadd.f32 %v4991_v25, %v9119_v28  ;;  %v5062_v59 = vadd.f32 %v5003_v39, %v9137_v61  ;;  %v5063_v37 = vadd.f32 %v5007_v8, %v9135_v21  ;;  %5074 = vst.msk [vmem:[%s10114_s8 + $0x8] sm:$0x4] %vm5072_vm3, %v5057_v56  ;;  %v5155_v1 = vcombine.high %v5147_v45, %v5147_v45 }
0x2cc3   :  { %5075 = vst.msk [vmem:[%s10114_s8 + $0x10] sm:$0x4] %vm5072_vm3, %v5058_v32  ;;  %5077 = vst.msk [vmem:[%s10114_s8 + $0x20] sm:$0x4] %vm5072_vm3, %v5060_v36  ;;  %v5156_v54 = vcombine.high %v5154_v60, %v5154_v60  ;;  %v5163_v11 = vrot.slane %v5147_v45, %v9117_v4  ;;  %v5170_v44 = vrot.slane %v5154_v60, %v9117_v4 }
0x2cc4   :  { %5078 = vst.msk [vmem:[%s10114_s8 + $0x28] sm:$0x4] %vm5072_vm3, %v5061_v6  ;;  %v5091_v30 = vcombine.high %v9244_v57, %v9244_v57  ;;  %5076 = vst.msk [vmem:[%s10114_s8 + $0x18] sm:$0x4] %vm5072_vm3, %v5059_v43  ;;  %v5177_v35 = vrot.slane %v5155_v1, %v9117_v4  ;;  %v5098_v48 = vrot.slane %v9244_v57, %v9117_v4 }
0x2cc5   :  { %5079 = vst.msk [vmem:[%s10114_s8 + $0x30] sm:$0x4] %vm5072_vm3, %v5062_v59  ;;  %5080 = vst.msk [vmem:[%s10114_s8 + $0x38] sm:$0x4] %vm5072_vm3, %v5063_v37  ;;  %v5353_v10 = vcombine.high %v9280_v42, %v9280_v42  ;;  %v9532_v33 = vrot.slane %v9280_v42, %v9117_v4  ;;  %v5184_v17 = vrot.slane %v5156_v54, %v9117_v4 }
0x2cc6   :  { %v5185_v27 = vcombine.high %v5163_v11, %v5163_v11  ;;  %v5186_v16 = vcombine.high %v5170_v44, %v5170_v44  ;;  %v5224_v62 = vrot.slane %v5163_v11, %v9159_v50  ;;  %v5187_v40 = vcombine.high %v5177_v35, %v5177_v35 }
0x2cc7   :  { %v5228_v18 = vrot.slane %v5177_v35, %v9159_v50  ;;  %v5240_v19 = vrot.slane %v5170_v44, %v9159_v50  ;;  %v5105_v57 = vrot.slane %v5091_v30, %v9117_v4  ;;  %v5188_v31 = vcombine.high %v5184_v17, %v5184_v17 }
0x2cc8   :  { %v5232_v45 = vrot.slane %v5185_v27, %v9159_v50  ;;  %v5244_v13 = vrot.slane %v5184_v17, %v9159_v50  ;;  %v5248_v42 = vrot.slane %v5186_v16, %v9159_v50  ;;  %v5236_v12 = vrot.slane %v5187_v40, %v9159_v50 }
0x2cc9   :  { %v5277_v20 = vadd.f32 %v5224_v62, %v9141_v38  ;;  %v5278_v41 = vadd.f32 %v5228_v18, %v9139_v51  ;;  %v5281_v29 = vadd.f32 %v5240_v19, %v9149_v49  ;;  %v5252_v14 = vrot.slane %v5188_v31, %v9159_v50 }
0x2cca   :  { %v5279_v15 = vadd.f32 %v5232_v45, %v9145_v24  ;;  %v5282_v52 = vadd.f32 %v5244_v13, %v9147_v7  ;;  %v5283_v25 = vadd.f32 %v5248_v42, %v9154_v2  ;;  %v5280_v39 = vadd.f32 %v5236_v12, %v9143_v47 }
0x2ccb   :  { %5294 = vst.msk [vmem:[%s10114_s8 + $0x40] sm:$0x8] %vm5285_vm4, %v5277_v20  ;;  %5295 = vst.msk [vmem:[%s10114_s8 + $0x48] sm:$0x8] %vm5285_vm4, %v5278_v41  ;;  %v5106_v8 = vcombine.high %v5098_v48, %v5098_v48  ;;  %v5107_v56 = vcombine.high %v5105_v57, %v5105_v57  ;;  %v5114_v32 = vrot.slane %v5098_v48, %v9117_v4 }
0x2ccc   :  { %5298 = vst.msk [vmem:[%s10114_s8 + $0x60] sm:$0x8] %vm5285_vm4, %v5281_v29  ;;  %v5284_v36 = vadd.f32 %v5252_v14, %v9152_v22  ;;  %5296 = vst.msk [vmem:[%s10114_s8 + $0x50] sm:$0x8] %vm5285_vm4, %v5279_v15  ;;  %v5121_v6 = vrot.slane %v5105_v57, %v9117_v4  ;;  %v5367_v60 = vrot.slane %v5353_v10, %v9117_v4 }
0x2ccd   :  { %5299 = vst.msk [vmem:[%s10114_s8 + $0x68] sm:$0x8] %vm5285_vm4, %v5282_v52  ;;  %5300 = vst.msk [vmem:[%s10114_s8 + $0x70] sm:$0x8] %vm5285_vm4, %v5283_v25  ;;  %v5368_v43 = vcombine.high %v9532_v33, %v9532_v33  ;;  %v5128_v59 = vrot.slane %v5106_v8, %v9117_v4  ;;  %v5135_v37 = vrot.slane %v5107_v56, %v9117_v4 }
0x2cce   :  { %5297 = vst.msk [vmem:[%s10114_s8 + $0x58] sm:$0x8] %vm5285_vm4, %v5280_v39  ;;  %v5136_v1 = vcombine.high %v5114_v32, %v5114_v32  ;;  %v5192_v54 = vrot.slane %v5114_v32, %v9159_v50  ;;  %5301 = vst.msk [vmem:[%s10114_s8 + $0x78] sm:$0x8] %vm5285_vm4, %v5284_v36  ;;  %v5137_v11 = vcombine.high %v5121_v6, %v5121_v6 }
0x2ccf   :  { %v5208_v44 = vrot.slane %v5121_v6, %v9159_v50  ;;  %v5369_v30 = vcombine.high %v5367_v60, %v5367_v60  ;;  %v5376_v35 = vrot.slane %v9532_v33, %v9117_v4  ;;  %v5138_v48 = vcombine.high %v5128_v59, %v5128_v59 }
0x2cd0   :  { %v5139_v10 = vcombine.high %v5135_v37, %v5135_v37  ;;  %v5196_v17 = vrot.slane %v5128_v59, %v9159_v50  ;;  %v5200_v27 = vrot.slane %v5136_v1, %v9159_v50  ;;  %v5212_v16 = vrot.slane %v5135_v37, %v9159_v50 }
0x2cd1   :  { %v5216_v62 = vrot.slane %v5137_v11, %v9159_v50  ;;  %v5269_v40 = vadd.f32 %v5192_v54, %v9107_v26  ;;  %v5273_v18 = vadd.f32 %v5208_v44, %v9133_v0  ;;  %v5204_v19 = vrot.slane %v5138_v48, %v9159_v50 }
0x2cd2   :  { %v5220_v57 = vrot.slane %v5139_v10, %v9159_v50  ;;  %v5270_v33 = vadd.f32 %v5196_v17, %v9065_v46  ;;  %v5271_v31 = vadd.f32 %v5200_v27, %v9121_v58  ;;  %v5274_v45 = vadd.f32 %v5212_v16, %v9131_v53 }
0x2cd3   :  { %v5275_v13 = vadd.f32 %v5216_v62, %v9137_v61  ;;  %5286 = vst.msk [vmem:[%s10114_s8] sm:$0x8] %vm5285_vm4, %v5269_v40  ;;  %5290 = vst.msk [vmem:[%s10114_s8 + $0x20] sm:$0x8] %vm5285_vm4, %v5273_v18  ;;  %v5383_v42 = vrot.slane %v5367_v60, %v9117_v4  ;;  %v5390_v12 = vrot.slane %v5368_v43, %v9117_v4 }
0x2cd4   :  { %v5272_v20 = vadd.f32 %v5204_v19, %v9119_v28  ;;  %v5276_v41 = vadd.f32 %v5220_v57, %v9135_v21  ;;  %5287 = vst.msk [vmem:[%s10114_s8 + $0x8] sm:$0x8] %vm5285_vm4, %v5270_v33  ;;  %5288 = vst.msk [vmem:[%s10114_s8 + $0x10] sm:$0x8] %vm5285_vm4, %v5271_v31  ;;  %v5397_v29 = vrot.slane %v5369_v30, %v9117_v4 }
0x2cd5   :  { %v5398_v14 = vcombine.high %v5376_v35, %v5376_v35  ;;  %5291 = vst.msk [vmem:[%s10114_s8 + $0x28] sm:$0x8] %vm5285_vm4, %v5274_v45  ;;  %5292 = vst.msk [vmem:[%s10114_s8 + $0x30] sm:$0x8] %vm5285_vm4, %v5275_v13  ;;  %v5399_v15 = vcombine.high %v5383_v42, %v5383_v42  ;;  %v5400_v52 = vcombine.high %v5390_v12, %v5390_v12 }
0x2cd6   :  { %v5437_v25 = vrot.slane %v5376_v35, %v9159_v50  ;;  %v5441_v39 = vrot.slane %v5390_v12, %v9159_v50  ;;  %5289 = vst.msk [vmem:[%s10114_s8 + $0x18] sm:$0x8] %vm5285_vm4, %v5272_v20  ;;  %5293 = vst.msk [vmem:[%s10114_s8 + $0x38] sm:$0x8] %vm5285_vm4, %v5276_v41  ;;  %v5401_v8 = vcombine.high %v5397_v29, %v5397_v29 }
0x2cd7   :  { %v5445_v56 = vrot.slane %v5398_v14, %v9159_v50  ;;  %v5453_v32 = vrot.slane %v5383_v42, %v9159_v50  ;;  %v5457_v36 = vrot.slane %v5397_v29, %v9159_v50  ;;  %v5449_v6 = vrot.slane %v5400_v52, %v9159_v50 }
0x2cd8   :  { %v5461_v60 = vrot.slane %v5399_v15, %v9159_v50  ;;  %v5490_v43 = vadd.f32 %v5437_v25, %v9141_v38  ;;  %v5491_v59 = vadd.f32 %v5441_v39, %v9139_v51  ;;  %v5465_v37 = vrot.slane %v5401_v8, %v9159_v50 }
0x2cd9   :  { %v5492_v1 = vadd.f32 %v5445_v56, %v9145_v24  ;;  %v5494_v54 = vadd.f32 %v5453_v32, %v9149_v49  ;;  %v5495_v11 = vadd.f32 %v5457_v36, %v9147_v7  ;;  %v5493_v44 = vadd.f32 %v5449_v6, %v9143_v47 }
0x2cda   :  { %v5496_v30 = vadd.f32 %v5461_v60, %v9154_v2  ;;  %5507 = vst.msk [vmem:[%s10114_s8 + $0x40] sm:$0x10] %vm5498_vm5, %v5490_v43  ;;  %5508 = vst.msk [vmem:[%s10114_s8 + $0x48] sm:$0x10] %vm5498_vm5, %v5491_v59  ;;  %v5304_v35 = vcombine.high %v9284_v3, %v9284_v3  ;;  %v5311_v48 = vrot.slane %v9284_v3, %v9117_v4 }
0x2cdb   :  { %v5497_v10 = vadd.f32 %v5465_v37, %v9152_v22  ;;  %5509 = vst.msk [vmem:[%s10114_s8 + $0x50] sm:$0x10] %vm5498_vm5, %v5492_v1  ;;  %5511 = vst.msk [vmem:[%s10114_s8 + $0x60] sm:$0x10] %vm5498_vm5, %v5494_v54  ;;  %v5566_v3 = vcombine.high %v9295_v23, %v9295_v23  ;;  %v5573_v17 = vrot.slane %v9295_v23, %v9117_v4 }
0x2cdc   :  { %5512 = vst.msk [vmem:[%s10114_s8 + $0x68] sm:$0x10] %vm5498_vm5, %v5495_v11  ;;  %v5517_v27 = vcombine.high %v9300_v34, %v9300_v34  ;;  %5510 = vst.msk [vmem:[%s10114_s8 + $0x58] sm:$0x10] %vm5498_vm5, %v5493_v44  ;;  %v5318_v16 = vrot.slane %v5304_v35, %v9117_v4  ;;  %v5319_v62 = vcombine.high %v5311_v48, %v5311_v48 }
0x2cdd   :  { %5513 = vst.msk [vmem:[%s10114_s8 + $0x70] sm:$0x10] %vm5498_vm5, %v5496_v30  ;;  %v5327_v40 = vrot.slane %v5311_v48, %v9117_v4  ;;  %v9702_v23 = vrot.slane %v9300_v34, %v9117_v4  ;;  %5514 = vst.msk [vmem:[%s10114_s8 + $0x78] sm:$0x10] %vm5498_vm5, %v5497_v10  ;;  %v5580_v18 = vrot.slane %v5566_v3, %v9117_v4 }
0x2cde   :  { %v5581_v19 = vcombine.high %v5573_v17, %v5573_v17  ;;  %v5589_v57 = vrot.slane %v5573_v17, %v9117_v4  ;;  %v9711_v33 = vrot.slane %v5517_v27, %v9117_v4  ;;  %v5320_v31 = vcombine.high %v5318_v16, %v5318_v16 }
0x2cdf   :  { %v5334_v45 = vrot.slane %v5318_v16, %v9117_v4  ;;  %v5341_v13 = vrot.slane %v5319_v62, %v9117_v4  ;;  %v5349_v34 = vcombine.high %v5327_v40, %v5327_v40  ;;  %v5405_v42 = vrot.slane %v5327_v40, %v9159_v50 }
0x2ce0   :  { %v5582_v12 = vcombine.high %v5580_v18, %v5580_v18  ;;  %v5596_v20 = vrot.slane %v5580_v18, %v9117_v4  ;;  %v5603_v41 = vrot.slane %v5581_v19, %v9117_v4  ;;  %v5348_v29 = vrot.slane %v5320_v31, %v9117_v4 }
0x2ce1   :  { %v5350_v14 = vcombine.high %v5334_v45, %v5334_v45  ;;  %v5351_v15 = vcombine.high %v5341_v13, %v5341_v13  ;;  %v5409_v52 = vrot.slane %v5341_v13, %v9159_v50  ;;  %v5413_v25 = vrot.slane %v5349_v34, %v9159_v50 }
0x2ce2   :  { %v5421_v39 = vrot.slane %v5334_v45, %v9159_v50  ;;  %v5482_v8 = vadd.f32 %v5405_v42, %v9107_v26  ;;  %v5610_v56 = vrot.slane %v5582_v12, %v9117_v4  ;;  %v5352_v32 = vcombine.high %v5348_v29, %v5348_v29 }
0x2ce3   :  { %v5417_v36 = vrot.slane %v5351_v15, %v9159_v50  ;;  %v5425_v6 = vrot.slane %v5348_v29, %v9159_v50  ;;  %v5429_v60 = vrot.slane %v5350_v14, %v9159_v50  ;;  %v5483_v43 = vadd.f32 %v5409_v52, %v9065_v46 }
0x2ce4   :  { %v5484_v59 = vadd.f32 %v5413_v25, %v9121_v58  ;;  %v5486_v37 = vadd.f32 %v5421_v39, %v9133_v0  ;;  %5499 = vst.msk [vmem:[%s10114_s8] sm:$0x10] %vm5498_vm5, %v5482_v8  ;;  %v5611_v1 = vcombine.high %v5589_v57, %v5589_v57  ;;  %v5433_v54 = vrot.slane %v5352_v32, %v9159_v50 }
0x2ce5   :  { %v5485_v11 = vadd.f32 %v5417_v36, %v9119_v28  ;;  %v5487_v44 = vadd.f32 %v5425_v6, %v9131_v53  ;;  %v5488_v30 = vadd.f32 %v5429_v60, %v9137_v61  ;;  %5500 = vst.msk [vmem:[%s10114_s8 + $0x8] sm:$0x10] %vm5498_vm5, %v5483_v43  ;;  %v5612_v35 = vcombine.high %v5596_v20, %v5596_v20 }
0x2ce6   :  { %5501 = vst.msk [vmem:[%s10114_s8 + $0x10] sm:$0x10] %vm5498_vm5, %v5484_v59  ;;  %5503 = vst.msk [vmem:[%s10114_s8 + $0x20] sm:$0x10] %vm5498_vm5, %v5486_v37  ;;  %v5613_v48 = vcombine.high %v5603_v41, %v5603_v41  ;;  %v5614_v10 = vcombine.high %v5610_v56, %v5610_v56  ;;  %v5650_v3 = vrot.slane %v5589_v57, %v9159_v50 }
0x2ce7   :  { %v5489_v17 = vadd.f32 %v5433_v54, %v9135_v21  ;;  %5502 = vst.msk [vmem:[%s10114_s8 + $0x18] sm:$0x10] %vm5498_vm5, %v5485_v11  ;;  %5504 = vst.msk [vmem:[%s10114_s8 + $0x28] sm:$0x10] %vm5498_vm5, %v5487_v44  ;;  %v5654_v27 = vrot.slane %v5603_v41, %v9159_v50  ;;  %v5658_v16 = vrot.slane %v5611_v1, %v9159_v50 }
0x2ce8   :  { %5505 = vst.msk [vmem:[%s10114_s8 + $0x30] sm:$0x10] %vm5498_vm5, %v5488_v30  ;;  %v5666_v62 = vrot.slane %v5596_v20, %v9159_v50  ;;  %v5662_v40 = vrot.slane %v5613_v48, %v9159_v50  ;;  %v5670_v18 = vrot.slane %v5610_v56, %v9159_v50  ;;  %v5674_v19 = vrot.slane %v5612_v35, %v9159_v50 }
0x2ce9   :  { %v5678_v57 = vrot.slane %v5614_v10, %v9159_v50  ;;  %5506 = vst.msk [vmem:[%s10114_s8 + $0x38] sm:$0x10] %vm5498_vm5, %v5489_v17  ;;  %v5703_v31 = vadd.f32 %v5650_v3, %v9141_v38  ;;  %v5704_v45 = vadd.f32 %v5654_v27, %v9139_v51  ;;  %v5705_v13 = vadd.f32 %v5658_v16, %v9145_v24 }
0x2cea   :  { %v5707_v34 = vadd.f32 %v5666_v62, %v9149_v49  ;;  %v5706_v42 = vadd.f32 %v5662_v40, %v9143_v47  ;;  %v5708_v12 = vadd.f32 %v5670_v18, %v9147_v7  ;;  %v5709_v20 = vadd.f32 %v5674_v19, %v9154_v2 }
0x2ceb   :  { %v5710_v41 = vadd.f32 %v5678_v57, %v9152_v22  ;;  %5720 = vst.msk [vmem:[%s10114_s8 + $0x40] sm:$0x20] %vm5711_vm6, %v5703_v31  ;;  %5721 = vst.msk [vmem:[%s10114_s8 + $0x48] sm:$0x20] %vm5711_vm6, %v5704_v45  ;;  %v5532_v29 = vcombine.high %v9702_v23, %v9702_v23  ;;  %v5533_v14 = vcombine.high %v9711_v33, %v9711_v33 }
0x2cec   :  { %5722 = vst.msk [vmem:[%s10114_s8 + $0x50] sm:$0x20] %vm5711_vm6, %v5705_v13  ;;  %5724 = vst.msk [vmem:[%s10114_s8 + $0x60] sm:$0x20] %vm5711_vm6, %v5707_v34  ;;  %v5540_v15 = vrot.slane %v9702_v23, %v9117_v4  ;;  %v5547_v52 = vrot.slane %v9711_v33, %v9117_v4  ;;  %v5779_v23 = vcombine.high %v9326_v63, %v9326_v63 }
0x2ced   :  { %5723 = vst.msk [vmem:[%s10114_s8 + $0x58] sm:$0x20] %vm5711_vm6, %v5706_v42  ;;  %5725 = vst.msk [vmem:[%s10114_s8 + $0x68] sm:$0x20] %vm5711_vm6, %v5708_v12  ;;  %v5786_v33 = vrot.slane %v9326_v63, %v9117_v4  ;;  %v5730_v25 = vcombine.high %v9344_v5, %v9344_v5  ;;  %v9831_v39 = vrot.slane %v9344_v5, %v9117_v4 }
0x2cee   :  { %5726 = vst.msk [vmem:[%s10114_s8 + $0x70] sm:$0x20] %vm5711_vm6, %v5709_v20  ;;  %5727 = vst.msk [vmem:[%s10114_s8 + $0x78] sm:$0x20] %vm5711_vm6, %v5710_v41  ;;  %v5554_v8 = vrot.slane %v5532_v29, %v9117_v4  ;;  %v5561_v56 = vrot.slane %v5533_v14, %v9117_v4  ;;  %v5562_v32 = vcombine.high %v5540_v15, %v5540_v15 }
0x2cef   :  { %v5563_v36 = vcombine.high %v5547_v52, %v5547_v52  ;;  %v5618_v6 = vrot.slane %v5540_v15, %v9159_v50  ;;  %v5634_v60 = vrot.slane %v5547_v52, %v9159_v50  ;;  %v5793_v63 = vrot.slane %v5779_v23, %v9117_v4 }
0x2cf0   :  { %v5794_v43 = vcombine.high %v5786_v33, %v5786_v33  ;;  %v5564_v59 = vcombine.high %v5554_v8, %v5554_v8  ;;  %v5565_v37 = vcombine.high %v5561_v56, %v5561_v56  ;;  %v5622_v1 = vrot.slane %v5554_v8, %v9159_v50 }
0x2cf1   :  { %v5626_v5 = vrot.slane %v5562_v32, %v9159_v50  ;;  %v5638_v54 = vrot.slane %v5561_v56, %v9159_v50  ;;  %v5642_v11 = vrot.slane %v5563_v36, %v9159_v50  ;;  %v5695_v44 = vadd.f32 %v5618_v6, %v9107_v26 }
0x2cf2   :  { %v5699_v30 = vadd.f32 %v5634_v60, %v9133_v0  ;;  %v5630_v35 = vrot.slane %v5564_v59, %v9159_v50  ;;  %v5646_v48 = vrot.slane %v5565_v37, %v9159_v50  ;;  %v5696_v10 = vadd.f32 %v5622_v1, %v9065_v46 }
0x2cf3   :  { %v5697_v3 = vadd.f32 %v5626_v5, %v9121_v58  ;;  %v5700_v17 = vadd.f32 %v5638_v54, %v9131_v53  ;;  %v5701_v27 = vadd.f32 %v5642_v11, %v9137_v61  ;;  %5712 = vst.msk [vmem:[%s10114_s8] sm:$0x20] %vm5711_vm6, %v5695_v44  ;;  %v5795_v16 = vcombine.high %v5793_v63, %v5793_v63 }
0x2cf4   :  { %5716 = vst.msk [vmem:[%s10114_s8 + $0x20] sm:$0x20] %vm5711_vm6, %v5699_v30  ;;  %v5802_v62 = vrot.slane %v5786_v33, %v9117_v4  ;;  %v5698_v40 = vadd.f32 %v5630_v35, %v9119_v28  ;;  %v5702_v18 = vadd.f32 %v5646_v48, %v9135_v21  ;;  %5713 = vst.msk [vmem:[%s10114_s8 + $0x8] sm:$0x20] %vm5711_vm6, %v5696_v10 }
0x2cf5   :  { %5714 = vst.msk [vmem:[%s10114_s8 + $0x10] sm:$0x20] %vm5711_vm6, %v5697_v3  ;;  %v5809_v19 = vrot.slane %v5793_v63, %v9117_v4  ;;  %v5816_v57 = vrot.slane %v5794_v43, %v9117_v4  ;;  %5717 = vst.msk [vmem:[%s10114_s8 + $0x28] sm:$0x20] %vm5711_vm6, %v5700_v17  ;;  %v5823_v31 = vrot.slane %v5795_v16, %v9117_v4 }
0x2cf6   :  { %5718 = vst.msk [vmem:[%s10114_s8 + $0x30] sm:$0x20] %vm5711_vm6, %v5701_v27  ;;  %v5824_v45 = vcombine.high %v5802_v62, %v5802_v62  ;;  %v5863_v13 = vrot.slane %v5802_v62, %v9159_v50  ;;  %v5744_v34 = vrot.slane %v5730_v25, %v9117_v4  ;;  %5715 = vst.msk [vmem:[%s10114_s8 + $0x18] sm:$0x20] %vm5711_vm6, %v5698_v40 }
0x2cf7   :  { %5719 = vst.msk [vmem:[%s10114_s8 + $0x38] sm:$0x20] %vm5711_vm6, %v5702_v18  ;;  %v5825_v42 = vcombine.high %v5809_v19, %v5809_v19  ;;  %v5826_v12 = vcombine.high %v5816_v57, %v5816_v57  ;;  %v5867_v20 = vrot.slane %v5816_v57, %v9159_v50  ;;  %v5879_v41 = vrot.slane %v5809_v19, %v9159_v50 }
0x2cf8   :  { %v5827_v29 = vcombine.high %v5823_v31, %v5823_v31  ;;  %v5871_v14 = vrot.slane %v5824_v45, %v9159_v50  ;;  %v5883_v15 = vrot.slane %v5823_v31, %v9159_v50  ;;  %v5916_v52 = vadd.f32 %v5863_v13, %v9141_v38 }
0x2cf9   :  { %v5875_v23 = vrot.slane %v5826_v12, %v9159_v50  ;;  %v5887_v33 = vrot.slane %v5825_v42, %v9159_v50  ;;  %v5917_v25 = vadd.f32 %v5867_v20, %v9139_v51  ;;  %v5920_v8 = vadd.f32 %v5879_v41, %v9149_v49 }
0x2cfa   :  { %v5891_v56 = vrot.slane %v5827_v29, %v9159_v50  ;;  %v5918_v32 = vadd.f32 %v5871_v14, %v9145_v24  ;;  %v5921_v36 = vadd.f32 %v5883_v15, %v9147_v7  ;;  %5933 = vst.msk [vmem:[%s10114_s8 + $0x40] sm:$0x40] %vm5924_vm7, %v5916_v52  ;;  %v5745_v6 = vcombine.high %v9831_v39, %v9831_v39 }
0x2cfb   :  { %v5919_v60 = vadd.f32 %v5875_v23, %v9143_v47  ;;  %v5922_v63 = vadd.f32 %v5887_v33, %v9154_v2  ;;  %5934 = vst.msk [vmem:[%s10114_s8 + $0x48] sm:$0x40] %vm5924_vm7, %v5917_v25  ;;  %5937 = vst.msk [vmem:[%s10114_s8 + $0x60] sm:$0x40] %vm5924_vm7, %v5920_v8  ;;  %v5746_v43 = vcombine.high %v5744_v34, %v5744_v34 }
0x2cfc   :  { %v5753_v59 = vrot.slane %v9831_v39, %v9117_v4  ;;  %v5923_v37 = vadd.f32 %v5891_v56, %v9152_v22  ;;  %5935 = vst.msk [vmem:[%s10114_s8 + $0x50] sm:$0x40] %vm5924_vm7, %v5918_v32  ;;  %5938 = vst.msk [vmem:[%s10114_s8 + $0x68] sm:$0x40] %vm5924_vm7, %v5921_v36  ;;  %v5760_v1 = vrot.slane %v5744_v34, %v9117_v4 }
0x2cfd   :  { %v5767_v5 = vrot.slane %v5745_v6, %v9117_v4  ;;  %v5992_v54 = vcombine.high %v9362_v9, %v9362_v9  ;;  %5936 = vst.msk [vmem:[%s10114_s8 + $0x58] sm:$0x40] %vm5924_vm7, %v5919_v60  ;;  %5939 = vst.msk [vmem:[%s10114_s8 + $0x70] sm:$0x40] %vm5924_vm7, %v5922_v63  ;;  %v5774_v39 = vrot.slane %v5746_v43, %v9117_v4 }
0x2cfe   :  { %v5775_v11 = vcombine.high %v5753_v59, %v5753_v59  ;;  %v5831_v44 = vrot.slane %v5753_v59, %v9159_v50  ;;  %v5999_v30 = vrot.slane %v9362_v9, %v9117_v4  ;;  %5940 = vst.msk [vmem:[%s10114_s8 + $0x78] sm:$0x40] %vm5924_vm7, %v5923_v37  ;;  %v5776_v35 = vcombine.high %v5760_v1, %v5760_v1 }
0x2cff   :  { %v5777_v48 = vcombine.high %v5767_v5, %v5767_v5  ;;  %v5835_v10 = vrot.slane %v5767_v5, %v9159_v50  ;;  %v5847_v3 = vrot.slane %v5760_v1, %v9159_v50  ;;  %v5778_v17 = vcombine.high %v5774_v39, %v5774_v39 }
0x2d00   :  { %v5839_v27 = vrot.slane %v5775_v11, %v9159_v50  ;;  %v5851_v16 = vrot.slane %v5774_v39, %v9159_v50  ;;  %v5908_v62 = vadd.f32 %v5831_v44, %v9107_v26  ;;  %v5855_v40 = vrot.slane %v5776_v35, %v9159_v50 }
0x2d01   :  { %v5843_v9 = vrot.slane %v5777_v48, %v9159_v50  ;;  %v5909_v18 = vadd.f32 %v5835_v10, %v9065_v46  ;;  %v5912_v19 = vadd.f32 %v5847_v3, %v9133_v0  ;;  %v5859_v57 = vrot.slane %v5778_v17, %v9159_v50 }
0x2d02   :  { %v5910_v31 = vadd.f32 %v5839_v27, %v9121_v58  ;;  %v5913_v45 = vadd.f32 %v5851_v16, %v9131_v53  ;;  %5925 = vst.msk [vmem:[%s10114_s8] sm:$0x40] %vm5924_vm7, %v5908_v62  ;;  %v6006_v13 = vrot.slane %v5992_v54, %v9117_v4  ;;  %v5914_v42 = vadd.f32 %v5855_v40, %v9137_v61 }
0x2d03   :  { %v5911_v34 = vadd.f32 %v5843_v9, %v9119_v28  ;;  %5926 = vst.msk [vmem:[%s10114_s8 + $0x8] sm:$0x40] %vm5924_vm7, %v5909_v18  ;;  %5929 = vst.msk [vmem:[%s10114_s8 + $0x20] sm:$0x40] %vm5924_vm7, %v5912_v19  ;;  %v6007_v12 = vcombine.high %v5999_v30, %v5999_v30  ;;  %v6015_v20 = vrot.slane %v5999_v30, %v9117_v4 }
0x2d04   :  { %v5915_v41 = vadd.f32 %v5859_v57, %v9135_v21  ;;  %5927 = vst.msk [vmem:[%s10114_s8 + $0x10] sm:$0x40] %vm5924_vm7, %v5910_v31  ;;  %5930 = vst.msk [vmem:[%s10114_s8 + $0x28] sm:$0x40] %vm5924_vm7, %v5913_v45  ;;  %v6008_v29 = vcombine.high %v6006_v13, %v6006_v13  ;;  %v6022_v14 = vrot.slane %v6006_v13, %v9117_v4 }
0x2d05   :  { %v5943_v15 = vcombine.high %v9390_v55, %v9390_v55  ;;  %5928 = vst.msk [vmem:[%s10114_s8 + $0x18] sm:$0x40] %vm5924_vm7, %v5911_v34  ;;  %5931 = vst.msk [vmem:[%s10114_s8 + $0x30] sm:$0x40] %vm5924_vm7, %v5914_v42  ;;  %v6029_v52 = vrot.slane %v6007_v12, %v9117_v4  ;;  %v6037_v23 = vcombine.high %v6015_v20, %v6015_v20 }
0x2d06   :  { %v6076_v33 = vrot.slane %v6015_v20, %v9159_v50  ;;  %v5950_v25 = vrot.slane %v9390_v55, %v9117_v4  ;;  %5932 = vst.msk [vmem:[%s10114_s8 + $0x38] sm:$0x40] %vm5924_vm7, %v5915_v41  ;;  %v6036_v8 = vrot.slane %v6008_v29, %v9117_v4  ;;  %v6038_v56 = vcombine.high %v6022_v14, %v6022_v14 }
0x2d07   :  { %v6092_v32 = vrot.slane %v6022_v14, %v9159_v50  ;;  %v5957_v36 = vrot.slane %v5943_v15, %v9117_v4  ;;  %v6039_v6 = vcombine.high %v6029_v52, %v6029_v52  ;;  %v6080_v60 = vrot.slane %v6029_v52, %v9159_v50 }
0x2d08   :  { %v6084_v63 = vrot.slane %v6037_v23, %v9159_v50  ;;  %v6129_v43 = vadd.f32 %v6076_v33, %v9141_v38  ;;  %v6040_v55 = vcombine.high %v6036_v8, %v6036_v8  ;;  %v6096_v59 = vrot.slane %v6036_v8, %v9159_v50 }
0x2d09   :  { %v6100_v37 = vrot.slane %v6038_v56, %v9159_v50  ;;  %v6133_v1 = vadd.f32 %v6092_v32, %v9149_v49  ;;  %v6088_v5 = vrot.slane %v6039_v6, %v9159_v50  ;;  %v6130_v54 = vadd.f32 %v6080_v60, %v9139_v51 }
0x2d0a   :  { %v6131_v39 = vadd.f32 %v6084_v63, %v9145_v24  ;;  %6146 = vst.msk [vmem:[%s10114_s8 + $0x40] sm:$0x80] %vm6137_vm8, %v6129_v43  ;;  %v5958_v11 = vcombine.high %v5950_v25, %v5950_v25  ;;  %v6104_v38 = vrot.slane %v6040_v55, %v9159_v50  ;;  %v6134_v44 = vadd.f32 %v6096_v59, %v9147_v7 }
0x2d0b   :  { %v6135_v30 = vadd.f32 %v6100_v37, %v9154_v2  ;;  %6150 = vst.msk [vmem:[%s10114_s8 + $0x60] sm:$0x80] %vm6137_vm8, %v6133_v1  ;;  %v5959_v51 = vcombine.high %v5957_v36, %v5957_v36  ;;  %v6132_v24 = vadd.f32 %v6088_v5, %v9143_v47  ;;  %6147 = vst.msk [vmem:[%s10114_s8 + $0x48] sm:$0x80] %vm6137_vm8, %v6130_v54 }
0x2d0c   :  { %6148 = vst.msk [vmem:[%s10114_s8 + $0x50] sm:$0x80] %vm6137_vm8, %v6131_v39  ;;  %v5966_v7 = vrot.slane %v5950_v25, %v9117_v4  ;;  %v5973_v49 = vrot.slane %v5957_v36, %v9117_v4  ;;  %v5980_v2 = vrot.slane %v5958_v11, %v9117_v4  ;;  %v6136_v35 = vadd.f32 %v6104_v38, %v9152_v22 }
0x2d0d   :  { %6151 = vst.msk [vmem:[%s10114_s8 + $0x68] sm:$0x80] %vm6137_vm8, %v6134_v44  ;;  %6152 = vst.msk [vmem:[%s10114_s8 + $0x70] sm:$0x80] %vm6137_vm8, %v6135_v30  ;;  %v5987_v47 = vrot.slane %v5959_v51, %v9117_v4 }
0x2d0e   :  { %6149 = vst.msk [vmem:[%s10114_s8 + $0x58] sm:$0x80] %vm6137_vm8, %v6132_v24  ;;  %v5988_v48 = vcombine.high %v5966_v7, %v5966_v7  ;;  %v5989_v10 = vcombine.high %v5973_v49, %v5973_v49  ;;  %v5990_v22 = vcombine.high %v5980_v2, %v5980_v2  ;;  %v6044_v3 = vrot.slane %v5966_v7, %v9159_v50 }
0x2d0f   :  { %6153 = vst.msk [vmem:[%s10114_s8 + $0x78] sm:$0x80] %vm6137_vm8, %v6136_v35  ;;  %v5991_v17 = vcombine.high %v5987_v47, %v5987_v47  ;;  %v6048_v27 = vrot.slane %v5980_v2, %v9159_v50  ;;  %v6060_v4 = vrot.slane %v5973_v49, %v9159_v50  ;;  %v6064_v16 = vrot.slane %v5987_v47, %v9159_v50 }
0x2d10   :  { %v6052_v62 = vrot.slane %v5988_v48, %v9159_v50  ;;  %v6056_v9 = vrot.slane %v5990_v22, %v9159_v50  ;;  %v6068_v40 = vrot.slane %v5989_v10, %v9159_v50  ;;  %v6121_v18 = vadd.f32 %v6044_v3, %v9107_v26 }
0x2d11   :  { %v6072_v19 = vrot.slane %v5991_v17, %v9159_v50  ;;  %v6122_v57 = vadd.f32 %v6048_v27, %v9065_v46  ;;  %v6125_v31 = vadd.f32 %v6060_v4, %v9133_v0  ;;  %v6126_v45 = vadd.f32 %v6064_v16, %v9131_v53 }
0x2d12   :  { %v6123_v13 = vadd.f32 %v6052_v62, %v9121_v58  ;;  %v6124_v34 = vadd.f32 %v6056_v9, %v9119_v28  ;;  %v6127_v42 = vadd.f32 %v6068_v40, %v9137_v61  ;;  %6138 = vst.msk [vmem:[%s10114_s8] sm:$0x80] %vm6137_vm8, %v6121_v18 }
0x2d13   :  { %v6128_v26 = vadd.f32 %v6072_v19, %v9135_v21  ;;  %6139 = vst.msk [vmem:[%s10114_s8 + $0x8] sm:$0x80] %vm6137_vm8, %v6122_v57  ;;  %6142 = vst.msk [vmem:[%s10114_s8 + $0x20] sm:$0x80] %vm6137_vm8, %v6125_v31 }
0x2d14   :  { %6143 = vst.msk [vmem:[%s10114_s8 + $0x28] sm:$0x80] %vm6137_vm8, %v6126_v45  ;;  %6140 = vst.msk [vmem:[%s10114_s8 + $0x10] sm:$0x80] %vm6137_vm8, %v6123_v13 }
0x2d15   :  { %6141 = vst.msk [vmem:[%s10114_s8 + $0x18] sm:$0x80] %vm6137_vm8, %v6124_v34  ;;  %6144 = vst.msk [vmem:[%s10114_s8 + $0x30] sm:$0x80] %vm6137_vm8, %v6127_v42 }
0x2d16   :  { %6145 = vst.msk [vmem:[%s10114_s8 + $0x38] sm:$0x80] %vm6137_vm8, %v6128_v26 }
0x2d17   :  { %6158 = vsyncpa [#allocation3], 1 }

</bundles_post_ra>
